<compile_context>
chip_gen: v7x
topology: tpu7x:2x2x1
jax: 0.10.0
libtpu: 0.0.40
codegen_flags: <defaults>
</compile_context>

<pallas_src>
import functools
import math

import jax
import jax.numpy as jnp
from jax.experimental import pallas as pl
from jax.experimental.pallas import tpu as pltpu

_BLK = 256  # output-column block for the pool / stride-selection matmuls


# ----------------------------- fused Pallas kernel ---------------------------

def _zero_margins(ref, pad_lo, interior_len):
    """Zero only the pad margins of a (rows, width) padded scratch buffer."""
    rows, width = ref.shape
    if pad_lo > 0:
        ref[:, :pad_lo] = jnp.zeros((rows, pad_lo), ref.dtype)
    hi = pad_lo + interior_len
    if width > hi:
        ref[:, hi:] = jnp.zeros((rows, width - hi), ref.dtype)


def _fused_kernel(*refs, cfg):
    """One batch element per grid step; whole subdiscriminator forward in VMEM."""
    layers = cfg["layers"]
    n_layers = len(layers)
    n_pool = cfg["n_pool"]
    blk = cfg["blk"]

    # --- unpack refs ----------------------------------------------------------
    pos = 0
    x_ref = refs[pos]; pos += 1                         # (1, 1, L) f32
    pool_mat_ref = None
    if n_pool:
        pool_mat_ref = refs[pos]; pos += 1              # (2*blk+2, blk) bf16
    layer_refs = []
    for lc in layers:
        w_ref = refs[pos]; pos += 1                     # (G, Cout/G, K*Cin/G) bf16
        b_ref = refs[pos]; pos += 1                     # (Cout, 1) f32
        s_ref = None
        if lc["stride"] > 1:
            s_ref = refs[pos]; pos += 1                 # (stride*blk, blk) bf16 0/1
        layer_refs.append((w_ref, b_ref, s_ref))
    out_refs = refs[pos:pos + n_layers]; pos += n_layers
    scratch = refs[pos:]
    pool_scratch = scratch[:n_pool]
    conv_scratch = scratch[n_pool:]

    def first_conv_dst():
        lc0 = layers[0]
        return conv_scratch[cfg["scratch_off"][0]], lc0["pad"], lc0["lin"]

    # --- raw input -> first padded buffer (pad margins only are zeroed) --------
    if n_pool:
        dst, off, dlen = pool_scratch[0], 2, cfg["pool_lin"][0]
    else:
        dst, off, dlen = first_conv_dst()
    _zero_margins(dst, off, dlen)
    dst[:, off:off + dlen] = x_ref[0].astype(dst.dtype)

    # --- AvgPool1d(k=4, s=2, p=2) stages: block-wise banded matmul, O(L) -------
    for i in range(n_pool):
        src = pool_scratch[i]
        lin_i = cfg["pool_lin"][i]
        lout_i = cfg["pool_lout"][i]
        if i + 1 < n_pool:
            dst, off, dlen = pool_scratch[i + 1], 2, cfg["pool_lin"][i + 1]
        else:
            dst, off, dlen = first_conv_dst()
        _zero_margins(dst, off, dlen)
        nb = (lout_i + blk - 1) // blk
        for b in range(nb):
            ob = min(blk, lout_i - b * blk)
            start = 2 * blk * b
            ib = min(2 * blk + 2, (lin_i + 4) - start)
            res = jnp.dot(src[:, start:start + ib], pool_mat_ref[:ib, :ob],
                          preferred_element_type=jnp.float32)          # (1, ob) f32
            dst[:, off + b * blk: off + b * blk + ob] = res.astype(dst.dtype)

    # --- conv layers, all VMEM-resident ----------------------------------------
    for l, lc in enumerate(layers):
        w_ref, b_ref, s_ref = layer_refs[l]
        so = cfg["scratch_off"][l]
        xpad_ref = conv_scratch[so]                     # (Cin, Lp)       bf16/f32
        xim_ref = conv_scratch[so + 1]                  # (G, K*Cin_g, T1) bf16/f32
        idx = so + 2
        yout_ref = None
        if lc["groups"] > 1:
            yout_ref = conv_scratch[idx]; idx += 1      # (Cout, T1) f32
        ydec_ref = None
        if lc["stride"] > 1:
            ydec_ref = conv_scratch[idx]; idx += 1      # (Cout, Tout) f32

        G, K, s = lc["groups"], lc["k"], lc["stride"]
        cin_g, cout_g = lc["cin_g"], lc["cout_g"]
        t1, tout = lc["t1"], lc["tout"]

        # im2col (per-group slabs) + one bf16 MXU matmul per group
        res = None
        for g in range(G):
            for k in range(K):
                xim_ref[g, k * cin_g:(k + 1) * cin_g, :] = (
                    xpad_ref[g * cin_g:(g + 1) * cin_g, k:k + t1]
                    .astype(xim_ref.dtype))
            res = jnp.dot(w_ref[g], xim_ref[g].astype(jnp.bfloat16),
                          preferred_element_type=jnp.float32)           # (Cout_g, T1)
            if G > 1:
                yout_ref[g * cout_g:(g + 1) * cout_g, :] = res
        y = yout_ref[...] if G > 1 else res                              # (Cout, T1)

        # conv stride: block-wise exact 0/1 column selection (hi/lo bf16 split)
        if s > 1:
            nb = (tout + blk - 1) // blk
            for b in range(nb):
                ob = min(blk, tout - b * blk)
                start = s * blk * b
                ib = min(s * blk, t1 - start)
                chunk = y[:, start:start + ib]
                hi = chunk.astype(jnp.bfloat16)
                lo = (chunk - hi.astype(jnp.float32)).astype(jnp.bfloat16)
                sel = s_ref[:ib, :ob]
                picked = (jnp.dot(hi, sel, preferred_element_type=jnp.float32)
                          + jnp.dot(lo, sel, preferred_element_type=jnp.float32))
                ydec_ref[:, b * blk: b * blk + ob] = picked
            y = ydec_ref[...]                                            # (Cout, Tout)

        y = y + b_ref[...]
        if lc["act"]:
            y = jnp.where(y >= 0.0, y, 0.01 * y)                         # LeakyReLU(0.01)
        out_refs[l][0] = y.astype(out_refs[l].dtype)

        # feed next layer's padded scratch: single f32->bf16 cast per layer
        if l + 1 < n_layers:
            nxt = layers[l + 1]
            nxt_pad = conv_scratch[cfg["scratch_off"][l + 1]]
            _zero_margins(nxt_pad, nxt["pad"], nxt["lin"])
            nxt_pad[:, nxt["pad"]:nxt["pad"] + nxt["lin"]] = y.astype(nxt_pad.dtype)


# ------------------------------- host-side prep -------------------------------

def _pool_block_matrix(blk):
    """AvgPool1d(k=4, s=2, p=2, count_include_pad=True) on the zero-padded signal,
    for one block of `blk` output columns: out[j] = 0.25 * sum_{i=2j..2j+3} padded[i]."""
    i = jnp.arange(2 * blk + 2)[:, None]
    j = jnp.arange(blk)[None, :]
    m = jnp.where((i >= 2 * j) & (i <= 2 * j + 3), 0.25, 0.0)
    return m.astype(jnp.bfloat16)


def _stride_sel_matrix(stride, blk):
    """Constant 0/1 matrix: column j picks input column stride*j within a block."""
    i = jnp.arange(stride * blk)[:, None]
    j = jnp.arange(blk)[None, :]
    return (i == stride * j).astype(jnp.bfloat16)


def subdiscriminator_forward(x, params, factor):
    """Fused Pallas forward. Returns (x, features_from_layers[:-1]) like the module."""
    B, c0, L = x.shape
    assert c0 == 1
    blk = _BLK

    # pooling chain lengths
    n_pool = 0 if factor == 1 else int(math.log2(factor))
    pool_lin, pool_lout = [], []
    lin = L
    for _ in range(n_pool):
        pool_lin.append(lin)
        lin = lin // 2 + 1
        pool_lout.append(lin)

    # per-layer static config + im2col-layout bf16 weights + f32 bias
    layer_cfgs, layer_tensors = [], []
    for p in params:
        cout, cin_g, k = p["w"].shape
        g = p["groups"]
        cin, cout_g = cin_g * g, cout // g
        stride, pad = p["stride"], p["pad"]
        lp = lin + 2 * pad
        t1 = lp - k + 1                               # stride-1 output length
        tout = (t1 - 1) // stride + 1                 # strided output length
        w_im = jnp.transpose(p["w"].reshape(g, cout_g, cin_g, k), (0, 1, 3, 2))
        w_im = w_im.reshape(g, cout_g, k * cin_g).astype(jnp.bfloat16)
        b2 = p["b"].reshape(cout, 1).astype(jnp.float32)
        layer_cfgs.append(dict(cin=cin, cout=cout, cin_g=cin_g, cout_g=cout_g,
                               k=k, groups=g, stride=stride, pad=pad,
                               lin=lin, lp=lp, t1=t1, tout=tout, act=p["act"]))
        layer_tensors.append((w_im, b2))
        lin = tout

    def bcast(arr):
        return pl.BlockSpec(arr.shape, lambda b, n=arr.ndim: (0,) * n)

    inputs = [x.astype(jnp.float32)]
    in_specs = [pl.BlockSpec((1, 1, L), lambda b: (b, 0, 0))]
    if n_pool:
        pm = _pool_block_matrix(blk)
        inputs.append(pm)
        in_specs.append(bcast(pm))
    for lc, (w_im, b2) in zip(layer_cfgs, layer_tensors):
        inputs += [w_im, b2]
        in_specs += [bcast(w_im), bcast(b2)]
        if lc["stride"] > 1:
            sel = _stride_sel_matrix(lc["stride"], blk)
            inputs.append(sel)
            in_specs.append(bcast(sel))

    out_shape = tuple(jax.ShapeDtypeStruct((B, lc["cout"], lc["tout"]), jnp.float32)
                      for lc in layer_cfgs)
    out_specs = tuple(pl.BlockSpec((1, lc["cout"], lc["tout"]), lambda b: (b, 0, 0))
                      for lc in layer_cfgs)

    # scratch: per pool stage a padded row; per layer xpad, im2col slabs, and
    # (if needed) grouped-output / decimated-output buffers.
    scratch_shapes = []
    for i in range(n_pool):
        scratch_shapes.append(pltpu.VMEM((1, pool_lin[i] + 4), jnp.bfloat16))
    scratch_off = []
    for lc in layer_cfgs:
        scratch_off.append(len(scratch_shapes) - n_pool)
        even = (lc["cin_g"] % 2 == 0)
        xpad_dt = jnp.bfloat16 if (lc["groups"] == 1 or even) else jnp.float32
        xim_dt = jnp.bfloat16 if even else jnp.float32
        scratch_shapes.append(pltpu.VMEM((lc["cin"], lc["lp"]), xpad_dt))
        scratch_shapes.append(
            pltpu.VMEM((lc["groups"], lc["k"] * lc["cin_g"], lc["t1"]), xim_dt))
        if lc["groups"] > 1:
            scratch_shapes.append(pltpu.VMEM((lc["cout"], lc["t1"]), jnp.float32))
        if lc["stride"] > 1:
            scratch_shapes.append(pltpu.VMEM((lc["cout"], lc["tout"]), jnp.float32))

    cfg = dict(n_pool=n_pool, blk=blk, layers=layer_cfgs, scratch_off=scratch_off,
               pool_lin=pool_lin, pool_lout=pool_lout)

    outs = pl.pallas_call(
        functools.partial(_fused_kernel, cfg=cfg),
        out_shape=out_shape,
        grid=(B,),
        in_specs=in_specs,
        out_specs=out_specs,
        scratch_shapes=scratch_shapes,
        compiler_params=pltpu.CompilerParams(
            dimension_semantics=("parallel",),
            vmem_limit_bytes=48 * 1024 * 1024),
    )(*inputs)

    outs = list(outs)
    return outs[-1], outs[:-1]


# ------------------------------ reference & params ----------------------------

def make_params(key, kernel_sizes, strides, groups, channels):
    """Deterministic synthetic parameters matching the module's __init__ shapes."""
    chans = [1] + list(channels)
    params = []
    for i, (k, s, g) in enumerate(zip(kernel_sizes, strides, groups)):
        cin, cout = chans[i], chans[i + 1]
        key, wk, bk = jax.random.split(key, 3)
        fan_in = (cin // g) * k
        w = jax.random.normal(wk, (cout, cin // g, k), jnp.float32) / math.sqrt(fan_in)
        b = 0.01 * jax.random.normal(bk, (cout,), jnp.float32)
        params.append(dict(w=w, b=b, stride=s, groups=g, k=k, pad=(k - 1) // 2, act=True))
    # final Conv1d(channels[-1] -> 1, k=3, stride=1, pad=1), no activation
    key, wk, bk = jax.random.split(key, 3)
    w = jax.random.normal(wk, (1, chans[-1], 3), jnp.float32) / math.sqrt(3 * chans[-1])
    b = 0.01 * jax.random.normal(bk, (1,), jnp.float32)
    params.append(dict(w=w, b=b, stride=1, groups=1, k=3, pad=1, act=False))
    return params


def reference_forward(x, params, factor):
    """Pure-JAX reference mirroring the PyTorch forward.  Inputs/weights are rounded
    to bf16 before each conv/pool stage (the same quantization the kernel's MXU
    matmuls use) and accumulated in f32, so the comparison isolates structural and
    indexing errors."""
    hi = jax.lax.Precision.HIGHEST

    def bf(v):
        return v.astype(jnp.bfloat16).astype(jnp.float32)

    if factor != 1:
        pw = jnp.full((1, 1, 4), 0.25, jnp.float32)
        for _ in range(int(math.log2(factor))):
            x = jax.lax.conv_general_dilated(
                bf(x), pw, (2,), [(2, 2)],
                dimension_numbers=("NCH", "OIH", "NCH"), precision=hi)
            x = bf(x)  # the kernel stores each pooled stage to bf16
    feats = []
    for p in params:
        y = jax.lax.conv_general_dilated(
            bf(x), bf(p["w"]), (p["stride"],), [(p["pad"], p["pad"])],
            dimension_numbers=("NCH", "OIH", "NCH"),
            feature_group_count=p["groups"], precision=hi)
        y = y + p["b"][None, :, None]
        if p["act"]:
            y = jnp.where(y >= 0, y, 0.01 * y)
        x = y
        feats.append(x)
    return x, feats[:-1]


# --------------------------------- main ---------------------------------------

if __name__ == "__main__":
    key = jax.random.PRNGKey(0)

    # Small MSD-style config: factor=2 -> one AvgPool stage, weight_norm branch.
    factor = 2
    kernel_sizes = [15, 41, 5]
    strides = [1, 2, 1]
    groups = [1, 4, 1]
    channels = [16, 32, 32]

    B, T = 2, 256
    kx, kp = jax.random.split(key)
    x = jax.random.normal(kx, (B, 1, T), jnp.float32)
    params = make_params(kp, kernel_sizes, strides, groups, channels)

    out, feats = subdiscriminator_forward(x, params, factor)
    out = jax.block_until_ready(out)
    feats = [jax.block_until_ready(f) for f in feats]

    ref_out, ref_feats = reference_forward(x, params, factor)

    # shape + value checks (tolerance covers bf16 operand quantization noise)
    assert out.shape == ref_out.shape, (out.shape, ref_out.shape)
    assert len(feats) == len(ref_feats) == len(kernel_sizes)
    for a, b in zip([out] + feats, [ref_out] + ref_feats):
        assert a.shape == b.shape, (a.shape, b.shape)
        err = jnp.max(jnp.abs(a - b))
        assert bool(err < 1e-2), f"max abs err {err}"

    print("KERNEL_OK")
</pallas_src>

<mosaic_0001>
module attributes {stable_mosaic.version = 11 : i64} {
  func.func @_fused_kernel(%arg0: i32, %arg1: memref<1x1x256xf32, #tpu.memory_space<vmem>>, %arg2: memref<514x256xbf16, #tpu.memory_space<vmem>>, %arg3: memref<1x16x15xbf16, #tpu.memory_space<vmem>>, %arg4: memref<16x1xf32, #tpu.memory_space<vmem>>, %arg5: memref<4x8x164xbf16, #tpu.memory_space<vmem>>, %arg6: memref<32x1xf32, #tpu.memory_space<vmem>>, %arg7: memref<512x256xbf16, #tpu.memory_space<vmem>>, %arg8: memref<1x32x160xbf16, #tpu.memory_space<vmem>>, %arg9: memref<32x1xf32, #tpu.memory_space<vmem>>, %arg10: memref<1x1x96xbf16, #tpu.memory_space<vmem>>, %arg11: memref<1x1xf32, #tpu.memory_space<vmem>>, %arg12: memref<1x16x129xf32, #tpu.memory_space<vmem>>, %arg13: memref<1x32x65xf32, #tpu.memory_space<vmem>>, %arg14: memref<1x32x65xf32, #tpu.memory_space<vmem>>, %arg15: memref<1x1x65xf32, #tpu.memory_space<vmem>>, %arg16: memref<1x260xbf16, #tpu.memory_space<vmem>>, %arg17: memref<1x143xbf16, #tpu.memory_space<vmem>>, %arg18: memref<1x15x129xf32, #tpu.memory_space<vmem>>, %arg19: memref<16x169xbf16, #tpu.memory_space<vmem>>, %arg20: memref<4x164x129xbf16, #tpu.memory_space<vmem>>, %arg21: memref<32x129xf32, #tpu.memory_space<vmem>>, %arg22: memref<32x65xf32, #tpu.memory_space<vmem>>, %arg23: memref<32x69xbf16, #tpu.memory_space<vmem>>, %arg24: memref<1x160x65xbf16, #tpu.memory_space<vmem>>, %arg25: memref<32x67xbf16, #tpu.memory_space<vmem>>, %arg26: memref<1x96x65xbf16, #tpu.memory_space<vmem>>) attributes {dimension_semantics = [#tpu.dimension_semantics<parallel>], iteration_bounds = array<i64: 2>, scalar_prefetch = 0 : i64, scratch_operands = 11 : i64, tpu.core_type = #tpu.core_type<tc>, window_params = [{transform_indices = @transform_0, window_bounds = array<i64: 1, 1, 256>}, {pipeline_mode = #tpu.pipeline_mode<synchronous>, transform_indices = @transform_1, window_bounds = array<i64: 514, 256>}, {pipeline_mode = #tpu.pipeline_mode<synchronous>, transform_indices = @transform_2, window_bounds = array<i64: 1, 16, 15>}, {pipeline_mode = #tpu.pipeline_mode<synchronous>, transform_indices = @transform_3, window_bounds = array<i64: 16, 1>}, {pipeline_mode = #tpu.pipeline_mode<synchronous>, transform_indices = @transform_4, window_bounds = array<i64: 4, 8, 164>}, {pipeline_mode = #tpu.pipeline_mode<synchronous>, transform_indices = @transform_5, window_bounds = array<i64: 32, 1>}, {pipeline_mode = #tpu.pipeline_mode<synchronous>, transform_indices = @transform_6, window_bounds = array<i64: 512, 256>}, {pipeline_mode = #tpu.pipeline_mode<synchronous>, transform_indices = @transform_7, window_bounds = array<i64: 1, 32, 160>}, {pipeline_mode = #tpu.pipeline_mode<synchronous>, transform_indices = @transform_8, window_bounds = array<i64: 32, 1>}, {pipeline_mode = #tpu.pipeline_mode<synchronous>, transform_indices = @transform_9, window_bounds = array<i64: 1, 1, 96>}, {pipeline_mode = #tpu.pipeline_mode<synchronous>, transform_indices = @transform_10, window_bounds = array<i64: 1, 1>}, {transform_indices = @transform_11, window_bounds = array<i64: 1, 16, 129>}, {transform_indices = @transform_12, window_bounds = array<i64: 1, 32, 65>}, {transform_indices = @transform_13, window_bounds = array<i64: 1, 32, 65>}, {transform_indices = @transform_14, window_bounds = array<i64: 1, 1, 65>}]} {
    %cst = arith.constant 0.000000e+00 : bf16
    %0 = vector.broadcast %cst : bf16 to vector<1x2xbf16>
    %c0 = arith.constant 0 : index
    %c0_0 = arith.constant 0 : index
    %1 = vector.load %arg16[%c0, %c0_0] : memref<1x260xbf16, #tpu.memory_space<vmem>>, vector<1x2xbf16>
    tpu.vector_store %arg16[%c0, %c0_0], %0 {strides = array<i32>} : memref<1x260xbf16, #tpu.memory_space<vmem>>, vector<1x2xbf16>,
    %cst_1 = arith.constant 0.000000e+00 : bf16
    %2 = vector.broadcast %cst_1 : bf16 to vector<1x2xbf16>
    %c0_2 = arith.constant 0 : index
    %c258 = arith.constant 258 : index
    %3 = vector.load %arg16[%c0_2, %c258] : memref<1x260xbf16, #tpu.memory_space<vmem>>, vector<1x2xbf16>
    tpu.vector_store %arg16[%c0_2, %c258], %2 {strides = array<i32>} : memref<1x260xbf16, #tpu.memory_space<vmem>>, vector<1x2xbf16>,
    %c0_3 = arith.constant 0 : index
    %c0_4 = arith.constant 0 : index
    %c0_5 = arith.constant 0 : index
    %4 = vector.load %arg1[%c0_3, %c0_4, %c0_5] : memref<1x1x256xf32, #tpu.memory_space<vmem>>, vector<1x1x256xf32>
    %5 = vector.shape_cast %4 : vector<1x1x256xf32> to vector<1x256xf32>
    %6 = arith.truncf %5 : vector<1x256xf32> to vector<1x256xbf16>
    %c0_6 = arith.constant 0 : index
    %c2 = arith.constant 2 : index
    %7 = vector.load %arg16[%c0_6, %c2] : memref<1x260xbf16, #tpu.memory_space<vmem>>, vector<1x256xbf16>
    tpu.vector_store %arg16[%c0_6, %c2], %6 {strides = array<i32>} : memref<1x260xbf16, #tpu.memory_space<vmem>>, vector<1x256xbf16>,
    %cst_7 = arith.constant 0.000000e+00 : bf16
    %8 = vector.broadcast %cst_7 : bf16 to vector<1x7xbf16>
    %c0_8 = arith.constant 0 : index
    %c0_9 = arith.constant 0 : index
    %9 = vector.load %arg17[%c0_8, %c0_9] : memref<1x143xbf16, #tpu.memory_space<vmem>>, vector<1x7xbf16>
    tpu.vector_store %arg17[%c0_8, %c0_9], %8 {strides = array<i32>} : memref<1x143xbf16, #tpu.memory_space<vmem>>, vector<1x7xbf16>,
    %cst_10 = arith.constant 0.000000e+00 : bf16
    %10 = vector.broadcast %cst_10 : bf16 to vector<1x7xbf16>
    %c0_11 = arith.constant 0 : index
    %c136 = arith.constant 136 : index
    %11 = vector.load %arg17[%c0_11, %c136] : memref<1x143xbf16, #tpu.memory_space<vmem>>, vector<1x7xbf16>
    tpu.vector_store %arg17[%c0_11, %c136], %10 {strides = array<i32>} : memref<1x143xbf16, #tpu.memory_space<vmem>>, vector<1x7xbf16>,
    %c0_12 = arith.constant 0 : index
    %c0_13 = arith.constant 0 : index
    %12 = vector.load %arg16[%c0_12, %c0_13] : memref<1x260xbf16, #tpu.memory_space<vmem>>, vector<1x260xbf16>
    %c0_14 = arith.constant 0 : index
    %c0_15 = arith.constant 0 : index
    %13 = vector.load %arg2[%c0_14, %c0_15] : memref<514x256xbf16, #tpu.memory_space<vmem>>, vector<260x129xbf16>
    %cst_16 = arith.constant dense<0.000000e+00> : vector<1x129xf32>
    %14 = tpu.matmul %12, %13, %cst_16 {dimension_numbers = #tpu.dot_dimension_numbers<[1], [0], [0], [1], [0, 0, 1, 1], [], []>} : vector<1x260xbf16>, vector<260x129xbf16>, vector<1x129xf32> -> vector<1x129xf32>
    %15 = arith.truncf %14 : vector<1x129xf32> to vector<1x129xbf16>
    %c0_17 = arith.constant 0 : index
    %c7 = arith.constant 7 : index
    %16 = vector.load %arg17[%c0_17, %c7] : memref<1x143xbf16, #tpu.memory_space<vmem>>, vector<1x129xbf16>
    tpu.vector_store %arg17[%c0_17, %c7], %15 {strides = array<i32>} : memref<1x143xbf16, #tpu.memory_space<vmem>>, vector<1x129xbf16>,
    %c0_18 = arith.constant 0 : index
    %c0_19 = arith.constant 0 : index
    %17 = vector.load %arg17[%c0_18, %c0_19] : memref<1x143xbf16, #tpu.memory_space<vmem>>, vector<1x129xbf16>
    %18 = arith.extf %17 : vector<1x129xbf16> to vector<1x129xf32>
    %c0_20 = arith.constant 0 : index
    %c0_21 = arith.constant 0 : index
    %c0_22 = arith.constant 0 : index
    %19 = vector.load %arg18[%c0_20, %c0_21, %c0_22] : memref<1x15x129xf32, #tpu.memory_space<vmem>>, vector<1x1x129xf32>
    %20 = vector.shape_cast %19 : vector<1x1x129xf32> to vector<1x129xf32>
    %21 = vector.shape_cast %18 : vector<1x129xf32> to vector<1x1x129xf32>
    tpu.vector_store %arg18[%c0_20, %c0_21, %c0_22], %21 {strides = array<i32>} : memref<1x15x129xf32, #tpu.memory_space<vmem>>, vector<1x1x129xf32>,
    %c0_23 = arith.constant 0 : index
    %c1 = arith.constant 1 : index
    %22 = vector.load %arg17[%c0_23, %c1] : memref<1x143xbf16, #tpu.memory_space<vmem>>, vector<1x129xbf16>
    %23 = arith.extf %22 : vector<1x129xbf16> to vector<1x129xf32>
    %c0_24 = arith.constant 0 : index
    %c1_25 = arith.constant 1 : index
    %c0_26 = arith.constant 0 : index
    %24 = vector.load %arg18[%c0_24, %c1_25, %c0_26] : memref<1x15x129xf32, #tpu.memory_space<vmem>>, vector<1x1x129xf32>
    %25 = vector.shape_cast %24 : vector<1x1x129xf32> to vector<1x129xf32>
    %26 = vector.shape_cast %23 : vector<1x129xf32> to vector<1x1x129xf32>
    tpu.vector_store %arg18[%c0_24, %c1_25, %c0_26], %26 {strides = array<i32>} : memref<1x15x129xf32, #tpu.memory_space<vmem>>, vector<1x1x129xf32>,
    %c0_27 = arith.constant 0 : index
    %c2_28 = arith.constant 2 : index
    %27 = vector.load %arg17[%c0_27, %c2_28] : memref<1x143xbf16, #tpu.memory_space<vmem>>, vector<1x129xbf16>
    %28 = arith.extf %27 : vector<1x129xbf16> to vector<1x129xf32>
    %c0_29 = arith.constant 0 : index
    %c2_30 = arith.constant 2 : index
    %c0_31 = arith.constant 0 : index
    %29 = vector.load %arg18[%c0_29, %c2_30, %c0_31] : memref<1x15x129xf32, #tpu.memory_space<vmem>>, vector<1x1x129xf32>
    %30 = vector.shape_cast %29 : vector<1x1x129xf32> to vector<1x129xf32>
    %31 = vector.shape_cast %28 : vector<1x129xf32> to vector<1x1x129xf32>
    tpu.vector_store %arg18[%c0_29, %c2_30, %c0_31], %31 {strides = array<i32>} : memref<1x15x129xf32, #tpu.memory_space<vmem>>, vector<1x1x129xf32>,
    %c0_32 = arith.constant 0 : index
    %c3 = arith.constant 3 : index
    %32 = vector.load %arg17[%c0_32, %c3] : memref<1x143xbf16, #tpu.memory_space<vmem>>, vector<1x129xbf16>
    %33 = arith.extf %32 : vector<1x129xbf16> to vector<1x129xf32>
    %c0_33 = arith.constant 0 : index
    %c3_34 = arith.constant 3 : index
    %c0_35 = arith.constant 0 : index
    %34 = vector.load %arg18[%c0_33, %c3_34, %c0_35] : memref<1x15x129xf32, #tpu.memory_space<vmem>>, vector<1x1x129xf32>
    %35 = vector.shape_cast %34 : vector<1x1x129xf32> to vector<1x129xf32>
    %36 = vector.shape_cast %33 : vector<1x129xf32> to vector<1x1x129xf32>
    tpu.vector_store %arg18[%c0_33, %c3_34, %c0_35], %36 {strides = array<i32>} : memref<1x15x129xf32, #tpu.memory_space<vmem>>, vector<1x1x129xf32>,
    %c0_36 = arith.constant 0 : index
    %c4 = arith.constant 4 : index
    %37 = vector.load %arg17[%c0_36, %c4] : memref<1x143xbf16, #tpu.memory_space<vmem>>, vector<1x129xbf16>
    %38 = arith.extf %37 : vector<1x129xbf16> to vector<1x129xf32>
    %c0_37 = arith.constant 0 : index
    %c4_38 = arith.constant 4 : index
    %c0_39 = arith.constant 0 : index
    %39 = vector.load %arg18[%c0_37, %c4_38, %c0_39] : memref<1x15x129xf32, #tpu.memory_space<vmem>>, vector<1x1x129xf32>
    %40 = vector.shape_cast %39 : vector<1x1x129xf32> to vector<1x129xf32>
    %41 = vector.shape_cast %38 : vector<1x129xf32> to vector<1x1x129xf32>
    tpu.vector_store %arg18[%c0_37, %c4_38, %c0_39], %41 {strides = array<i32>} : memref<1x15x129xf32, #tpu.memory_space<vmem>>, vector<1x1x129xf32>,
    %c0_40 = arith.constant 0 : index
    %c5 = arith.constant 5 : index
    %42 = vector.load %arg17[%c0_40, %c5] : memref<1x143xbf16, #tpu.memory_space<vmem>>, vector<1x129xbf16>
    %43 = arith.extf %42 : vector<1x129xbf16> to vector<1x129xf32>
    %c0_41 = arith.constant 0 : index
    %c5_42 = arith.constant 5 : index
    %c0_43 = arith.constant 0 : index
    %44 = vector.load %arg18[%c0_41, %c5_42, %c0_43] : memref<1x15x129xf32, #tpu.memory_space<vmem>>, vector<1x1x129xf32>
    %45 = vector.shape_cast %44 : vector<1x1x129xf32> to vector<1x129xf32>
    %46 = vector.shape_cast %43 : vector<1x129xf32> to vector<1x1x129xf32>
    tpu.vector_store %arg18[%c0_41, %c5_42, %c0_43], %46 {strides = array<i32>} : memref<1x15x129xf32, #tpu.memory_space<vmem>>, vector<1x1x129xf32>,
    %c0_44 = arith.constant 0 : index
    %c6 = arith.constant 6 : index
    %47 = vector.load %arg17[%c0_44, %c6] : memref<1x143xbf16, #tpu.memory_space<vmem>>, vector<1x129xbf16>
    %48 = arith.extf %47 : vector<1x129xbf16> to vector<1x129xf32>
    %c0_45 = arith.constant 0 : index
    %c6_46 = arith.constant 6 : index
    %c0_47 = arith.constant 0 : index
    %49 = vector.load %arg18[%c0_45, %c6_46, %c0_47] : memref<1x15x129xf32, #tpu.memory_space<vmem>>, vector<1x1x129xf32>
    %50 = vector.shape_cast %49 : vector<1x1x129xf32> to vector<1x129xf32>
    %51 = vector.shape_cast %48 : vector<1x129xf32> to vector<1x1x129xf32>
    tpu.vector_store %arg18[%c0_45, %c6_46, %c0_47], %51 {strides = array<i32>} : memref<1x15x129xf32, #tpu.memory_space<vmem>>, vector<1x1x129xf32>,
    %c0_48 = arith.constant 0 : index
    %c7_49 = arith.constant 7 : index
    %52 = vector.load %arg17[%c0_48, %c7_49] : memref<1x143xbf16, #tpu.memory_space<vmem>>, vector<1x129xbf16>
    %53 = arith.extf %52 : vector<1x129xbf16> to vector<1x129xf32>
    %c0_50 = arith.constant 0 : index
    %c7_51 = arith.constant 7 : index
    %c0_52 = arith.constant 0 : index
    %54 = vector.load %arg18[%c0_50, %c7_51, %c0_52] : memref<1x15x129xf32, #tpu.memory_space<vmem>>, vector<1x1x129xf32>
    %55 = vector.shape_cast %54 : vector<1x1x129xf32> to vector<1x129xf32>
    %56 = vector.shape_cast %53 : vector<1x129xf32> to vector<1x1x129xf32>
    tpu.vector_store %arg18[%c0_50, %c7_51, %c0_52], %56 {strides = array<i32>} : memref<1x15x129xf32, #tpu.memory_space<vmem>>, vector<1x1x129xf32>,
    %c0_53 = arith.constant 0 : index
    %c8 = arith.constant 8 : index
    %57 = vector.load %arg17[%c0_53, %c8] : memref<1x143xbf16, #tpu.memory_space<vmem>>, vector<1x129xbf16>
    %58 = arith.extf %57 : vector<1x129xbf16> to vector<1x129xf32>
    %c0_54 = arith.constant 0 : index
    %c8_55 = arith.constant 8 : index
    %c0_56 = arith.constant 0 : index
    %59 = vector.load %arg18[%c0_54, %c8_55, %c0_56] : memref<1x15x129xf32, #tpu.memory_space<vmem>>, vector<1x1x129xf32>
    %60 = vector.shape_cast %59 : vector<1x1x129xf32> to vector<1x129xf32>
    %61 = vector.shape_cast %58 : vector<1x129xf32> to vector<1x1x129xf32>
    tpu.vector_store %arg18[%c0_54, %c8_55, %c0_56], %61 {strides = array<i32>} : memref<1x15x129xf32, #tpu.memory_space<vmem>>, vector<1x1x129xf32>,
    %c0_57 = arith.constant 0 : index
    %c9 = arith.constant 9 : index
    %62 = vector.load %arg17[%c0_57, %c9] : memref<1x143xbf16, #tpu.memory_space<vmem>>, vector<1x129xbf16>
    %63 = arith.extf %62 : vector<1x129xbf16> to vector<1x129xf32>
    %c0_58 = arith.constant 0 : index
    %c9_59 = arith.constant 9 : index
    %c0_60 = arith.constant 0 : index
    %64 = vector.load %arg18[%c0_58, %c9_59, %c0_60] : memref<1x15x129xf32, #tpu.memory_space<vmem>>, vector<1x1x129xf32>
    %65 = vector.shape_cast %64 : vector<1x1x129xf32> to vector<1x129xf32>
    %66 = vector.shape_cast %63 : vector<1x129xf32> to vector<1x1x129xf32>
    tpu.vector_store %arg18[%c0_58, %c9_59, %c0_60], %66 {strides = array<i32>} : memref<1x15x129xf32, #tpu.memory_space<vmem>>, vector<1x1x129xf32>,
    %c0_61 = arith.constant 0 : index
    %c10 = arith.constant 10 : index
    %67 = vector.load %arg17[%c0_61, %c10] : memref<1x143xbf16, #tpu.memory_space<vmem>>, vector<1x129xbf16>
    %68 = arith.extf %67 : vector<1x129xbf16> to vector<1x129xf32>
    %c0_62 = arith.constant 0 : index
    %c10_63 = arith.constant 10 : index
    %c0_64 = arith.constant 0 : index
    %69 = vector.load %arg18[%c0_62, %c10_63, %c0_64] : memref<1x15x129xf32, #tpu.memory_space<vmem>>, vector<1x1x129xf32>
    %70 = vector.shape_cast %69 : vector<1x1x129xf32> to vector<1x129xf32>
    %71 = vector.shape_cast %68 : vector<1x129xf32> to vector<1x1x129xf32>
    tpu.vector_store %arg18[%c0_62, %c10_63, %c0_64], %71 {strides = array<i32>} : memref<1x15x129xf32, #tpu.memory_space<vmem>>, vector<1x1x129xf32>,
    %c0_65 = arith.constant 0 : index
    %c11 = arith.constant 11 : index
    %72 = vector.load %arg17[%c0_65, %c11] : memref<1x143xbf16, #tpu.memory_space<vmem>>, vector<1x129xbf16>
    %73 = arith.extf %72 : vector<1x129xbf16> to vector<1x129xf32>
    %c0_66 = arith.constant 0 : index
    %c11_67 = arith.constant 11 : index
    %c0_68 = arith.constant 0 : index
    %74 = vector.load %arg18[%c0_66, %c11_67, %c0_68] : memref<1x15x129xf32, #tpu.memory_space<vmem>>, vector<1x1x129xf32>
    %75 = vector.shape_cast %74 : vector<1x1x129xf32> to vector<1x129xf32>
    %76 = vector.shape_cast %73 : vector<1x129xf32> to vector<1x1x129xf32>
    tpu.vector_store %arg18[%c0_66, %c11_67, %c0_68], %76 {strides = array<i32>} : memref<1x15x129xf32, #tpu.memory_space<vmem>>, vector<1x1x129xf32>,
    %c0_69 = arith.constant 0 : index
    %c12 = arith.constant 12 : index
    %77 = vector.load %arg17[%c0_69, %c12] : memref<1x143xbf16, #tpu.memory_space<vmem>>, vector<1x129xbf16>
    %78 = arith.extf %77 : vector<1x129xbf16> to vector<1x129xf32>
    %c0_70 = arith.constant 0 : index
    %c12_71 = arith.constant 12 : index
    %c0_72 = arith.constant 0 : index
    %79 = vector.load %arg18[%c0_70, %c12_71, %c0_72] : memref<1x15x129xf32, #tpu.memory_space<vmem>>, vector<1x1x129xf32>
    %80 = vector.shape_cast %79 : vector<1x1x129xf32> to vector<1x129xf32>
    %81 = vector.shape_cast %78 : vector<1x129xf32> to vector<1x1x129xf32>
    tpu.vector_store %arg18[%c0_70, %c12_71, %c0_72], %81 {strides = array<i32>} : memref<1x15x129xf32, #tpu.memory_space<vmem>>, vector<1x1x129xf32>,
    %c0_73 = arith.constant 0 : index
    %c13 = arith.constant 13 : index
    %82 = vector.load %arg17[%c0_73, %c13] : memref<1x143xbf16, #tpu.memory_space<vmem>>, vector<1x129xbf16>
    %83 = arith.extf %82 : vector<1x129xbf16> to vector<1x129xf32>
    %c0_74 = arith.constant 0 : index
    %c13_75 = arith.constant 13 : index
    %c0_76 = arith.constant 0 : index
    %84 = vector.load %arg18[%c0_74, %c13_75, %c0_76] : memref<1x15x129xf32, #tpu.memory_space<vmem>>, vector<1x1x129xf32>
    %85 = vector.shape_cast %84 : vector<1x1x129xf32> to vector<1x129xf32>
    %86 = vector.shape_cast %83 : vector<1x129xf32> to vector<1x1x129xf32>
    tpu.vector_store %arg18[%c0_74, %c13_75, %c0_76], %86 {strides = array<i32>} : memref<1x15x129xf32, #tpu.memory_space<vmem>>, vector<1x1x129xf32>,
    %c0_77 = arith.constant 0 : index
    %c14 = arith.constant 14 : index
    %87 = vector.load %arg17[%c0_77, %c14] : memref<1x143xbf16, #tpu.memory_space<vmem>>, vector<1x129xbf16>
    %88 = arith.extf %87 : vector<1x129xbf16> to vector<1x129xf32>
    %c0_78 = arith.constant 0 : index
    %c14_79 = arith.constant 14 : index
    %c0_80 = arith.constant 0 : index
    %89 = vector.load %arg18[%c0_78, %c14_79, %c0_80] : memref<1x15x129xf32, #tpu.memory_space<vmem>>, vector<1x1x129xf32>
    %90 = vector.shape_cast %89 : vector<1x1x129xf32> to vector<1x129xf32>
    %91 = vector.shape_cast %88 : vector<1x129xf32> to vector<1x1x129xf32>
    tpu.vector_store %arg18[%c0_78, %c14_79, %c0_80], %91 {strides = array<i32>} : memref<1x15x129xf32, #tpu.memory_space<vmem>>, vector<1x1x129xf32>,
    %c0_81 = arith.constant 0 : index
    %c0_82 = arith.constant 0 : index
    %c0_83 = arith.constant 0 : index
    %92 = vector.load %arg3[%c0_81, %c0_82, %c0_83] : memref<1x16x15xbf16, #tpu.memory_space<vmem>>, vector<1x16x15xbf16>
    %93 = vector.shape_cast %92 : vector<1x16x15xbf16> to vector<16x15xbf16>
    %c0_84 = arith.constant 0 : index
    %c0_85 = arith.constant 0 : index
    %c0_86 = arith.constant 0 : index
    %94 = vector.load %arg18[%c0_84, %c0_85, %c0_86] : memref<1x15x129xf32, #tpu.memory_space<vmem>>, vector<1x15x129xf32>
    %95 = vector.shape_cast %94 : vector<1x15x129xf32> to vector<15x129xf32>
    %96 = arith.truncf %95 : vector<15x129xf32> to vector<15x129xbf16>
    %cst_87 = arith.constant dense<0.000000e+00> : vector<16x129xf32>
    %97 = tpu.matmul %93, %96, %cst_87 {dimension_numbers = #tpu.dot_dimension_numbers<[1], [0], [0], [1], [0, 0, 1, 1], [], []>} : vector<16x15xbf16>, vector<15x129xbf16>, vector<16x129xf32> -> vector<16x129xf32>
    %c0_88 = arith.constant 0 : index
    %c0_89 = arith.constant 0 : index
    %98 = vector.load %arg4[%c0_88, %c0_89] : memref<16x1xf32, #tpu.memory_space<vmem>>, vector<16x1xf32>
    %99 = vector.broadcast %98 : vector<16x1xf32> to vector<16x129xf32>
    %100 = arith.addf %97, %99 : vector<16x129xf32>
    %cst_90 = arith.constant 0.000000e+00 : f32
    %101 = vector.broadcast %cst_90 : f32 to vector<16x129xf32>
    %102 = arith.cmpf oge, %100, %101 : vector<16x129xf32>
    %cst_91 = arith.constant 0.00999999977 : f32
    %103 = vector.broadcast %cst_91 : f32 to vector<16x129xf32>
    %104 = arith.mulf %103, %100 : vector<16x129xf32>
    %105 = arith.select %102, %100, %104 : vector<16x129xi1>, vector<16x129xf32>
    %c0_92 = arith.constant 0 : index
    %c0_93 = arith.constant 0 : index
    %c0_94 = arith.constant 0 : index
    %106 = vector.load %arg12[%c0_92, %c0_93, %c0_94] : memref<1x16x129xf32, #tpu.memory_space<vmem>>, vector<1x16x129xf32>
    %107 = vector.shape_cast %106 : vector<1x16x129xf32> to vector<16x129xf32>
    %108 = vector.shape_cast %105 : vector<16x129xf32> to vector<1x16x129xf32>
    tpu.vector_store %arg12[%c0_92, %c0_93, %c0_94], %108 {strides = array<i32>} : memref<1x16x129xf32, #tpu.memory_space<vmem>>, vector<1x16x129xf32>,
    %cst_95 = arith.constant 0.000000e+00 : bf16
    %109 = vector.broadcast %cst_95 : bf16 to vector<16x20xbf16>
    %c0_96 = arith.constant 0 : index
    %c0_97 = arith.constant 0 : index
    %110 = vector.load %arg19[%c0_96, %c0_97] : memref<16x169xbf16, #tpu.memory_space<vmem>>, vector<16x20xbf16>
    tpu.vector_store %arg19[%c0_96, %c0_97], %109 {strides = array<i32>} : memref<16x169xbf16, #tpu.memory_space<vmem>>, vector<16x20xbf16>,
    %cst_98 = arith.constant 0.000000e+00 : bf16
    %111 = vector.broadcast %cst_98 : bf16 to vector<16x20xbf16>
    %c0_99 = arith.constant 0 : index
    %c149 = arith.constant 149 : index
    %112 = vector.load %arg19[%c0_99, %c149] : memref<16x169xbf16, #tpu.memory_space<vmem>>, vector<16x20xbf16>
    tpu.vector_store %arg19[%c0_99, %c149], %111 {strides = array<i32>} : memref<16x169xbf16, #tpu.memory_space<vmem>>, vector<16x20xbf16>,
    %113 = arith.truncf %105 : vector<16x129xf32> to vector<16x129xbf16>
    %c0_100 = arith.constant 0 : index
    %c20 = arith.constant 20 : index
    %114 = vector.load %arg19[%c0_100, %c20] : memref<16x169xbf16, #tpu.memory_space<vmem>>, vector<16x129xbf16>
    tpu.vector_store %arg19[%c0_100, %c20], %113 {strides = array<i32>} : memref<16x169xbf16, #tpu.memory_space<vmem>>, vector<16x129xbf16>,
    %c0_101 = arith.constant 0 : index
    %c0_102 = arith.constant 0 : index
    %115 = vector.load %arg19[%c0_101, %c0_102] : memref<16x169xbf16, #tpu.memory_space<vmem>>, vector<4x129xbf16>
    %c0_103 = arith.constant 0 : index
    %c0_104 = arith.constant 0 : index
    %c0_105 = arith.constant 0 : index
    %116 = vector.load %arg20[%c0_103, %c0_104, %c0_105] : memref<4x164x129xbf16, #tpu.memory_space<vmem>>, vector<1x4x129xbf16>
    %117 = vector.shape_cast %116 : vector<1x4x129xbf16> to vector<4x129xbf16>
    %118 = vector.shape_cast %115 : vector<4x129xbf16> to vector<1x4x129xbf16>
    tpu.vector_store %arg20[%c0_103, %c0_104, %c0_105], %118 {strides = array<i32>} : memref<4x164x129xbf16, #tpu.memory_space<vmem>>, vector<1x4x129xbf16>,
    %c0_106 = arith.constant 0 : index
    %c1_107 = arith.constant 1 : index
    %119 = vector.load %arg19[%c0_106, %c1_107] : memref<16x169xbf16, #tpu.memory_space<vmem>>, vector<4x129xbf16>
    %c0_108 = arith.constant 0 : index
    %c4_109 = arith.constant 4 : index
    %c0_110 = arith.constant 0 : index
    %120 = vector.load %arg20[%c0_108, %c4_109, %c0_110] : memref<4x164x129xbf16, #tpu.memory_space<vmem>>, vector<1x4x129xbf16>
    %121 = vector.shape_cast %120 : vector<1x4x129xbf16> to vector<4x129xbf16>
    %122 = vector.shape_cast %119 : vector<4x129xbf16> to vector<1x4x129xbf16>
    tpu.vector_store %arg20[%c0_108, %c4_109, %c0_110], %122 {strides = array<i32>} : memref<4x164x129xbf16, #tpu.memory_space<vmem>>, vector<1x4x129xbf16>,
    %c0_111 = arith.constant 0 : index
    %c2_112 = arith.constant 2 : index
    %123 = vector.load %arg19[%c0_111, %c2_112] : memref<16x169xbf16, #tpu.memory_space<vmem>>, vector<4x129xbf16>
    %c0_113 = arith.constant 0 : index
    %c8_114 = arith.constant 8 : index
    %c0_115 = arith.constant 0 : index
    %124 = vector.load %arg20[%c0_113, %c8_114, %c0_115] : memref<4x164x129xbf16, #tpu.memory_space<vmem>>, vector<1x4x129xbf16>
    %125 = vector.shape_cast %124 : vector<1x4x129xbf16> to vector<4x129xbf16>
    %126 = vector.shape_cast %123 : vector<4x129xbf16> to vector<1x4x129xbf16>
    tpu.vector_store %arg20[%c0_113, %c8_114, %c0_115], %126 {strides = array<i32>} : memref<4x164x129xbf16, #tpu.memory_space<vmem>>, vector<1x4x129xbf16>,
    %c0_116 = arith.constant 0 : index
    %c3_117 = arith.constant 3 : index
    %127 = vector.load %arg19[%c0_116, %c3_117] : memref<16x169xbf16, #tpu.memory_space<vmem>>, vector<4x129xbf16>
    %c0_118 = arith.constant 0 : index
    %c12_119 = arith.constant 12 : index
    %c0_120 = arith.constant 0 : index
    %128 = vector.load %arg20[%c0_118, %c12_119, %c0_120] : memref<4x164x129xbf16, #tpu.memory_space<vmem>>, vector<1x4x129xbf16>
    %129 = vector.shape_cast %128 : vector<1x4x129xbf16> to vector<4x129xbf16>
    %130 = vector.shape_cast %127 : vector<4x129xbf16> to vector<1x4x129xbf16>
    tpu.vector_store %arg20[%c0_118, %c12_119, %c0_120], %130 {strides = array<i32>} : memref<4x164x129xbf16, #tpu.memory_space<vmem>>, vector<1x4x129xbf16>,
    %c0_121 = arith.constant 0 : index
    %c4_122 = arith.constant 4 : index
    %131 = vector.load %arg19[%c0_121, %c4_122] : memref<16x169xbf16, #tpu.memory_space<vmem>>, vector<4x129xbf16>
    %c0_123 = arith.constant 0 : index
    %c16 = arith.constant 16 : index
    %c0_124 = arith.constant 0 : index
    %132 = vector.load %arg20[%c0_123, %c16, %c0_124] : memref<4x164x129xbf16, #tpu.memory_space<vmem>>, vector<1x4x129xbf16>
    %133 = vector.shape_cast %132 : vector<1x4x129xbf16> to vector<4x129xbf16>
    %134 = vector.shape_cast %131 : vector<4x129xbf16> to vector<1x4x129xbf16>
    tpu.vector_store %arg20[%c0_123, %c16, %c0_124], %134 {strides = array<i32>} : memref<4x164x129xbf16, #tpu.memory_space<vmem>>, vector<1x4x129xbf16>,
    %c0_125 = arith.constant 0 : index
    %c5_126 = arith.constant 5 : index
    %135 = vector.load %arg19[%c0_125, %c5_126] : memref<16x169xbf16, #tpu.memory_space<vmem>>, vector<4x129xbf16>
    %c0_127 = arith.constant 0 : index
    %c20_128 = arith.constant 20 : index
    %c0_129 = arith.constant 0 : index
    %136 = vector.load %arg20[%c0_127, %c20_128, %c0_129] : memref<4x164x129xbf16, #tpu.memory_space<vmem>>, vector<1x4x129xbf16>
    %137 = vector.shape_cast %136 : vector<1x4x129xbf16> to vector<4x129xbf16>
    %138 = vector.shape_cast %135 : vector<4x129xbf16> to vector<1x4x129xbf16>
    tpu.vector_store %arg20[%c0_127, %c20_128, %c0_129], %138 {strides = array<i32>} : memref<4x164x129xbf16, #tpu.memory_space<vmem>>, vector<1x4x129xbf16>,
    %c0_130 = arith.constant 0 : index
    %c6_131 = arith.constant 6 : index
    %139 = vector.load %arg19[%c0_130, %c6_131] : memref<16x169xbf16, #tpu.memory_space<vmem>>, vector<4x129xbf16>
    %c0_132 = arith.constant 0 : index
    %c24 = arith.constant 24 : index
    %c0_133 = arith.constant 0 : index
    %140 = vector.load %arg20[%c0_132, %c24, %c0_133] : memref<4x164x129xbf16, #tpu.memory_space<vmem>>, vector<1x4x129xbf16>
    %141 = vector.shape_cast %140 : vector<1x4x129xbf16> to vector<4x129xbf16>
    %142 = vector.shape_cast %139 : vector<4x129xbf16> to vector<1x4x129xbf16>
    tpu.vector_store %arg20[%c0_132, %c24, %c0_133], %142 {strides = array<i32>} : memref<4x164x129xbf16, #tpu.memory_space<vmem>>, vector<1x4x129xbf16>,
    %c0_134 = arith.constant 0 : index
    %c7_135 = arith.constant 7 : index
    %143 = vector.load %arg19[%c0_134, %c7_135] : memref<16x169xbf16, #tpu.memory_space<vmem>>, vector<4x129xbf16>
    %c0_136 = arith.constant 0 : index
    %c28 = arith.constant 28 : index
    %c0_137 = arith.constant 0 : index
    %144 = vector.load %arg20[%c0_136, %c28, %c0_137] : memref<4x164x129xbf16, #tpu.memory_space<vmem>>, vector<1x4x129xbf16>
    %145 = vector.shape_cast %144 : vector<1x4x129xbf16> to vector<4x129xbf16>
    %146 = vector.shape_cast %143 : vector<4x129xbf16> to vector<1x4x129xbf16>
    tpu.vector_store %arg20[%c0_136, %c28, %c0_137], %146 {strides = array<i32>} : memref<4x164x129xbf16, #tpu.memory_space<vmem>>, vector<1x4x129xbf16>,
    %c0_138 = arith.constant 0 : index
    %c8_139 = arith.constant 8 : index
    %147 = vector.load %arg19[%c0_138, %c8_139] : memref<16x169xbf16, #tpu.memory_space<vmem>>, vector<4x129xbf16>
    %c0_140 = arith.constant 0 : index
    %c32 = arith.constant 32 : index
    %c0_141 = arith.constant 0 : index
    %148 = vector.load %arg20[%c0_140, %c32, %c0_141] : memref<4x164x129xbf16, #tpu.memory_space<vmem>>, vector<1x4x129xbf16>
    %149 = vector.shape_cast %148 : vector<1x4x129xbf16> to vector<4x129xbf16>
    %150 = vector.shape_cast %147 : vector<4x129xbf16> to vector<1x4x129xbf16>
    tpu.vector_store %arg20[%c0_140, %c32, %c0_141], %150 {strides = array<i32>} : memref<4x164x129xbf16, #tpu.memory_space<vmem>>, vector<1x4x129xbf16>,
    %c0_142 = arith.constant 0 : index
    %c9_143 = arith.constant 9 : index
    %151 = vector.load %arg19[%c0_142, %c9_143] : memref<16x169xbf16, #tpu.memory_space<vmem>>, vector<4x129xbf16>
    %c0_144 = arith.constant 0 : index
    %c36 = arith.constant 36 : index
    %c0_145 = arith.constant 0 : index
    %152 = vector.load %arg20[%c0_144, %c36, %c0_145] : memref<4x164x129xbf16, #tpu.memory_space<vmem>>, vector<1x4x129xbf16>
    %153 = vector.shape_cast %152 : vector<1x4x129xbf16> to vector<4x129xbf16>
    %154 = vector.shape_cast %151 : vector<4x129xbf16> to vector<1x4x129xbf16>
    tpu.vector_store %arg20[%c0_144, %c36, %c0_145], %154 {strides = array<i32>} : memref<4x164x129xbf16, #tpu.memory_space<vmem>>, vector<1x4x129xbf16>,
    %c0_146 = arith.constant 0 : index
    %c10_147 = arith.constant 10 : index
    %155 = vector.load %arg19[%c0_146, %c10_147] : memref<16x169xbf16, #tpu.memory_space<vmem>>, vector<4x129xbf16>
    %c0_148 = arith.constant 0 : index
    %c40 = arith.constant 40 : index
    %c0_149 = arith.constant 0 : index
    %156 = vector.load %arg20[%c0_148, %c40, %c0_149] : memref<4x164x129xbf16, #tpu.memory_space<vmem>>, vector<1x4x129xbf16>
    %157 = vector.shape_cast %156 : vector<1x4x129xbf16> to vector<4x129xbf16>
    %158 = vector.shape_cast %155 : vector<4x129xbf16> to vector<1x4x129xbf16>
    tpu.vector_store %arg20[%c0_148, %c40, %c0_149], %158 {strides = array<i32>} : memref<4x164x129xbf16, #tpu.memory_space<vmem>>, vector<1x4x129xbf16>,
    %c0_150 = arith.constant 0 : index
    %c11_151 = arith.constant 11 : index
    %159 = vector.load %arg19[%c0_150, %c11_151] : memref<16x169xbf16, #tpu.memory_space<vmem>>, vector<4x129xbf16>
    %c0_152 = arith.constant 0 : index
    %c44 = arith.constant 44 : index
    %c0_153 = arith.constant 0 : index
    %160 = vector.load %arg20[%c0_152, %c44, %c0_153] : memref<4x164x129xbf16, #tpu.memory_space<vmem>>, vector<1x4x129xbf16>
    %161 = vector.shape_cast %160 : vector<1x4x129xbf16> to vector<4x129xbf16>
    %162 = vector.shape_cast %159 : vector<4x129xbf16> to vector<1x4x129xbf16>
    tpu.vector_store %arg20[%c0_152, %c44, %c0_153], %162 {strides = array<i32>} : memref<4x164x129xbf16, #tpu.memory_space<vmem>>, vector<1x4x129xbf16>,
    %c0_154 = arith.constant 0 : index
    %c12_155 = arith.constant 12 : index
    %163 = vector.load %arg19[%c0_154, %c12_155] : memref<16x169xbf16, #tpu.memory_space<vmem>>, vector<4x129xbf16>
    %c0_156 = arith.constant 0 : index
    %c48 = arith.constant 48 : index
    %c0_157 = arith.constant 0 : index
    %164 = vector.load %arg20[%c0_156, %c48, %c0_157] : memref<4x164x129xbf16, #tpu.memory_space<vmem>>, vector<1x4x129xbf16>
    %165 = vector.shape_cast %164 : vector<1x4x129xbf16> to vector<4x129xbf16>
    %166 = vector.shape_cast %163 : vector<4x129xbf16> to vector<1x4x129xbf16>
    tpu.vector_store %arg20[%c0_156, %c48, %c0_157], %166 {strides = array<i32>} : memref<4x164x129xbf16, #tpu.memory_space<vmem>>, vector<1x4x129xbf16>,
    %c0_158 = arith.constant 0 : index
    %c13_159 = arith.constant 13 : index
    %167 = vector.load %arg19[%c0_158, %c13_159] : memref<16x169xbf16, #tpu.memory_space<vmem>>, vector<4x129xbf16>
    %c0_160 = arith.constant 0 : index
    %c52 = arith.constant 52 : index
    %c0_161 = arith.constant 0 : index
    %168 = vector.load %arg20[%c0_160, %c52, %c0_161] : memref<4x164x129xbf16, #tpu.memory_space<vmem>>, vector<1x4x129xbf16>
    %169 = vector.shape_cast %168 : vector<1x4x129xbf16> to vector<4x129xbf16>
    %170 = vector.shape_cast %167 : vector<4x129xbf16> to vector<1x4x129xbf16>
    tpu.vector_store %arg20[%c0_160, %c52, %c0_161], %170 {strides = array<i32>} : memref<4x164x129xbf16, #tpu.memory_space<vmem>>, vector<1x4x129xbf16>,
    %c0_162 = arith.constant 0 : index
    %c14_163 = arith.constant 14 : index
    %171 = vector.load %arg19[%c0_162, %c14_163] : memref<16x169xbf16, #tpu.memory_space<vmem>>, vector<4x129xbf16>
    %c0_164 = arith.constant 0 : index
    %c56 = arith.constant 56 : index
    %c0_165 = arith.constant 0 : index
    %172 = vector.load %arg20[%c0_164, %c56, %c0_165] : memref<4x164x129xbf16, #tpu.memory_space<vmem>>, vector<1x4x129xbf16>
    %173 = vector.shape_cast %172 : vector<1x4x129xbf16> to vector<4x129xbf16>
    %174 = vector.shape_cast %171 : vector<4x129xbf16> to vector<1x4x129xbf16>
    tpu.vector_store %arg20[%c0_164, %c56, %c0_165], %174 {strides = array<i32>} : memref<4x164x129xbf16, #tpu.memory_space<vmem>>, vector<1x4x129xbf16>,
    %c0_166 = arith.constant 0 : index
    %c15 = arith.constant 15 : index
    %175 = vector.load %arg19[%c0_166, %c15] : memref<16x169xbf16, #tpu.memory_space<vmem>>, vector<4x129xbf16>
    %c0_167 = arith.constant 0 : index
    %c60 = arith.constant 60 : index
    %c0_168 = arith.constant 0 : index
    %176 = vector.load %arg20[%c0_167, %c60, %c0_168] : memref<4x164x129xbf16, #tpu.memory_space<vmem>>, vector<1x4x129xbf16>
    %177 = vector.shape_cast %176 : vector<1x4x129xbf16> to vector<4x129xbf16>
    %178 = vector.shape_cast %175 : vector<4x129xbf16> to vector<1x4x129xbf16>
    tpu.vector_store %arg20[%c0_167, %c60, %c0_168], %178 {strides = array<i32>} : memref<4x164x129xbf16, #tpu.memory_space<vmem>>, vector<1x4x129xbf16>,
    %c0_169 = arith.constant 0 : index
    %c16_170 = arith.constant 16 : index
    %179 = vector.load %arg19[%c0_169, %c16_170] : memref<16x169xbf16, #tpu.memory_space<vmem>>, vector<4x129xbf16>
    %c0_171 = arith.constant 0 : index
    %c64 = arith.constant 64 : index
    %c0_172 = arith.constant 0 : index
    %180 = vector.load %arg20[%c0_171, %c64, %c0_172] : memref<4x164x129xbf16, #tpu.memory_space<vmem>>, vector<1x4x129xbf16>
    %181 = vector.shape_cast %180 : vector<1x4x129xbf16> to vector<4x129xbf16>
    %182 = vector.shape_cast %179 : vector<4x129xbf16> to vector<1x4x129xbf16>
    tpu.vector_store %arg20[%c0_171, %c64, %c0_172], %182 {strides = array<i32>} : memref<4x164x129xbf16, #tpu.memory_space<vmem>>, vector<1x4x129xbf16>,
    %c0_173 = arith.constant 0 : index
    %c17 = arith.constant 17 : index
    %183 = vector.load %arg19[%c0_173, %c17] : memref<16x169xbf16, #tpu.memory_space<vmem>>, vector<4x129xbf16>
    %c0_174 = arith.constant 0 : index
    %c68 = arith.constant 68 : index
    %c0_175 = arith.constant 0 : index
    %184 = vector.load %arg20[%c0_174, %c68, %c0_175] : memref<4x164x129xbf16, #tpu.memory_space<vmem>>, vector<1x4x129xbf16>
    %185 = vector.shape_cast %184 : vector<1x4x129xbf16> to vector<4x129xbf16>
    %186 = vector.shape_cast %183 : vector<4x129xbf16> to vector<1x4x129xbf16>
    tpu.vector_store %arg20[%c0_174, %c68, %c0_175], %186 {strides = array<i32>} : memref<4x164x129xbf16, #tpu.memory_space<vmem>>, vector<1x4x129xbf16>,
    %c0_176 = arith.constant 0 : index
    %c18 = arith.constant 18 : index
    %187 = vector.load %arg19[%c0_176, %c18] : memref<16x169xbf16, #tpu.memory_space<vmem>>, vector<4x129xbf16>
    %c0_177 = arith.constant 0 : index
    %c72 = arith.constant 72 : index
    %c0_178 = arith.constant 0 : index
    %188 = vector.load %arg20[%c0_177, %c72, %c0_178] : memref<4x164x129xbf16, #tpu.memory_space<vmem>>, vector<1x4x129xbf16>
    %189 = vector.shape_cast %188 : vector<1x4x129xbf16> to vector<4x129xbf16>
    %190 = vector.shape_cast %187 : vector<4x129xbf16> to vector<1x4x129xbf16>
    tpu.vector_store %arg20[%c0_177, %c72, %c0_178], %190 {strides = array<i32>} : memref<4x164x129xbf16, #tpu.memory_space<vmem>>, vector<1x4x129xbf16>,
    %c0_179 = arith.constant 0 : index
    %c19 = arith.constant 19 : index
    %191 = vector.load %arg19[%c0_179, %c19] : memref<16x169xbf16, #tpu.memory_space<vmem>>, vector<4x129xbf16>
    %c0_180 = arith.constant 0 : index
    %c76 = arith.constant 76 : index
    %c0_181 = arith.constant 0 : index
    %192 = vector.load %arg20[%c0_180, %c76, %c0_181] : memref<4x164x129xbf16, #tpu.memory_space<vmem>>, vector<1x4x129xbf16>
    %193 = vector.shape_cast %192 : vector<1x4x129xbf16> to vector<4x129xbf16>
    %194 = vector.shape_cast %191 : vector<4x129xbf16> to vector<1x4x129xbf16>
    tpu.vector_store %arg20[%c0_180, %c76, %c0_181], %194 {strides = array<i32>} : memref<4x164x129xbf16, #tpu.memory_space<vmem>>, vector<1x4x129xbf16>,
    %c0_182 = arith.constant 0 : index
    %c20_183 = arith.constant 20 : index
    %195 = vector.load %arg19[%c0_182, %c20_183] : memref<16x169xbf16, #tpu.memory_space<vmem>>, vector<4x129xbf16>
    %c0_184 = arith.constant 0 : index
    %c80 = arith.constant 80 : index
    %c0_185 = arith.constant 0 : index
    %196 = vector.load %arg20[%c0_184, %c80, %c0_185] : memref<4x164x129xbf16, #tpu.memory_space<vmem>>, vector<1x4x129xbf16>
    %197 = vector.shape_cast %196 : vector<1x4x129xbf16> to vector<4x129xbf16>
    %198 = vector.shape_cast %195 : vector<4x129xbf16> to vector<1x4x129xbf16>
    tpu.vector_store %arg20[%c0_184, %c80, %c0_185], %198 {strides = array<i32>} : memref<4x164x129xbf16, #tpu.memory_space<vmem>>, vector<1x4x129xbf16>,
    %c0_186 = arith.constant 0 : index
    %c21 = arith.constant 21 : index
    %199 = vector.load %arg19[%c0_186, %c21] : memref<16x169xbf16, #tpu.memory_space<vmem>>, vector<4x129xbf16>
    %c0_187 = arith.constant 0 : index
    %c84 = arith.constant 84 : index
    %c0_188 = arith.constant 0 : index
    %200 = vector.load %arg20[%c0_187, %c84, %c0_188] : memref<4x164x129xbf16, #tpu.memory_space<vmem>>, vector<1x4x129xbf16>
    %201 = vector.shape_cast %200 : vector<1x4x129xbf16> to vector<4x129xbf16>
    %202 = vector.shape_cast %199 : vector<4x129xbf16> to vector<1x4x129xbf16>
    tpu.vector_store %arg20[%c0_187, %c84, %c0_188], %202 {strides = array<i32>} : memref<4x164x129xbf16, #tpu.memory_space<vmem>>, vector<1x4x129xbf16>,
    %c0_189 = arith.constant 0 : index
    %c22 = arith.constant 22 : index
    %203 = vector.load %arg19[%c0_189, %c22] : memref<16x169xbf16, #tpu.memory_space<vmem>>, vector<4x129xbf16>
    %c0_190 = arith.constant 0 : index
    %c88 = arith.constant 88 : index
    %c0_191 = arith.constant 0 : index
    %204 = vector.load %arg20[%c0_190, %c88, %c0_191] : memref<4x164x129xbf16, #tpu.memory_space<vmem>>, vector<1x4x129xbf16>
    %205 = vector.shape_cast %204 : vector<1x4x129xbf16> to vector<4x129xbf16>
    %206 = vector.shape_cast %203 : vector<4x129xbf16> to vector<1x4x129xbf16>
    tpu.vector_store %arg20[%c0_190, %c88, %c0_191], %206 {strides = array<i32>} : memref<4x164x129xbf16, #tpu.memory_space<vmem>>, vector<1x4x129xbf16>,
    %c0_192 = arith.constant 0 : index
    %c23 = arith.constant 23 : index
    %207 = vector.load %arg19[%c0_192, %c23] : memref<16x169xbf16, #tpu.memory_space<vmem>>, vector<4x129xbf16>
    %c0_193 = arith.constant 0 : index
    %c92 = arith.constant 92 : index
    %c0_194 = arith.constant 0 : index
    %208 = vector.load %arg20[%c0_193, %c92, %c0_194] : memref<4x164x129xbf16, #tpu.memory_space<vmem>>, vector<1x4x129xbf16>
    %209 = vector.shape_cast %208 : vector<1x4x129xbf16> to vector<4x129xbf16>
    %210 = vector.shape_cast %207 : vector<4x129xbf16> to vector<1x4x129xbf16>
    tpu.vector_store %arg20[%c0_193, %c92, %c0_194], %210 {strides = array<i32>} : memref<4x164x129xbf16, #tpu.memory_space<vmem>>, vector<1x4x129xbf16>,
    %c0_195 = arith.constant 0 : index
    %c24_196 = arith.constant 24 : index
    %211 = vector.load %arg19[%c0_195, %c24_196] : memref<16x169xbf16, #tpu.memory_space<vmem>>, vector<4x129xbf16>
    %c0_197 = arith.constant 0 : index
    %c96 = arith.constant 96 : index
    %c0_198 = arith.constant 0 : index
    %212 = vector.load %arg20[%c0_197, %c96, %c0_198] : memref<4x164x129xbf16, #tpu.memory_space<vmem>>, vector<1x4x129xbf16>
    %213 = vector.shape_cast %212 : vector<1x4x129xbf16> to vector<4x129xbf16>
    %214 = vector.shape_cast %211 : vector<4x129xbf16> to vector<1x4x129xbf16>
    tpu.vector_store %arg20[%c0_197, %c96, %c0_198], %214 {strides = array<i32>} : memref<4x164x129xbf16, #tpu.memory_space<vmem>>, vector<1x4x129xbf16>,
    %c0_199 = arith.constant 0 : index
    %c25 = arith.constant 25 : index
    %215 = vector.load %arg19[%c0_199, %c25] : memref<16x169xbf16, #tpu.memory_space<vmem>>, vector<4x129xbf16>
    %c0_200 = arith.constant 0 : index
    %c100 = arith.constant 100 : index
    %c0_201 = arith.constant 0 : index
    %216 = vector.load %arg20[%c0_200, %c100, %c0_201] : memref<4x164x129xbf16, #tpu.memory_space<vmem>>, vector<1x4x129xbf16>
    %217 = vector.shape_cast %216 : vector<1x4x129xbf16> to vector<4x129xbf16>
    %218 = vector.shape_cast %215 : vector<4x129xbf16> to vector<1x4x129xbf16>
    tpu.vector_store %arg20[%c0_200, %c100, %c0_201], %218 {strides = array<i32>} : memref<4x164x129xbf16, #tpu.memory_space<vmem>>, vector<1x4x129xbf16>,
    %c0_202 = arith.constant 0 : index
    %c26 = arith.constant 26 : index
    %219 = vector.load %arg19[%c0_202, %c26] : memref<16x169xbf16, #tpu.memory_space<vmem>>, vector<4x129xbf16>
    %c0_203 = arith.constant 0 : index
    %c104 = arith.constant 104 : index
    %c0_204 = arith.constant 0 : index
    %220 = vector.load %arg20[%c0_203, %c104, %c0_204] : memref<4x164x129xbf16, #tpu.memory_space<vmem>>, vector<1x4x129xbf16>
    %221 = vector.shape_cast %220 : vector<1x4x129xbf16> to vector<4x129xbf16>
    %222 = vector.shape_cast %219 : vector<4x129xbf16> to vector<1x4x129xbf16>
    tpu.vector_store %arg20[%c0_203, %c104, %c0_204], %222 {strides = array<i32>} : memref<4x164x129xbf16, #tpu.memory_space<vmem>>, vector<1x4x129xbf16>,
    %c0_205 = arith.constant 0 : index
    %c27 = arith.constant 27 : index
    %223 = vector.load %arg19[%c0_205, %c27] : memref<16x169xbf16, #tpu.memory_space<vmem>>, vector<4x129xbf16>
    %c0_206 = arith.constant 0 : index
    %c108 = arith.constant 108 : index
    %c0_207 = arith.constant 0 : index
    %224 = vector.load %arg20[%c0_206, %c108, %c0_207] : memref<4x164x129xbf16, #tpu.memory_space<vmem>>, vector<1x4x129xbf16>
    %225 = vector.shape_cast %224 : vector<1x4x129xbf16> to vector<4x129xbf16>
    %226 = vector.shape_cast %223 : vector<4x129xbf16> to vector<1x4x129xbf16>
    tpu.vector_store %arg20[%c0_206, %c108, %c0_207], %226 {strides = array<i32>} : memref<4x164x129xbf16, #tpu.memory_space<vmem>>, vector<1x4x129xbf16>,
    %c0_208 = arith.constant 0 : index
    %c28_209 = arith.constant 28 : index
    %227 = vector.load %arg19[%c0_208, %c28_209] : memref<16x169xbf16, #tpu.memory_space<vmem>>, vector<4x129xbf16>
    %c0_210 = arith.constant 0 : index
    %c112 = arith.constant 112 : index
    %c0_211 = arith.constant 0 : index
    %228 = vector.load %arg20[%c0_210, %c112, %c0_211] : memref<4x164x129xbf16, #tpu.memory_space<vmem>>, vector<1x4x129xbf16>
    %229 = vector.shape_cast %228 : vector<1x4x129xbf16> to vector<4x129xbf16>
    %230 = vector.shape_cast %227 : vector<4x129xbf16> to vector<1x4x129xbf16>
    tpu.vector_store %arg20[%c0_210, %c112, %c0_211], %230 {strides = array<i32>} : memref<4x164x129xbf16, #tpu.memory_space<vmem>>, vector<1x4x129xbf16>,
    %c0_212 = arith.constant 0 : index
    %c29 = arith.constant 29 : index
    %231 = vector.load %arg19[%c0_212, %c29] : memref<16x169xbf16, #tpu.memory_space<vmem>>, vector<4x129xbf16>
    %c0_213 = arith.constant 0 : index
    %c116 = arith.constant 116 : index
    %c0_214 = arith.constant 0 : index
    %232 = vector.load %arg20[%c0_213, %c116, %c0_214] : memref<4x164x129xbf16, #tpu.memory_space<vmem>>, vector<1x4x129xbf16>
    %233 = vector.shape_cast %232 : vector<1x4x129xbf16> to vector<4x129xbf16>
    %234 = vector.shape_cast %231 : vector<4x129xbf16> to vector<1x4x129xbf16>
    tpu.vector_store %arg20[%c0_213, %c116, %c0_214], %234 {strides = array<i32>} : memref<4x164x129xbf16, #tpu.memory_space<vmem>>, vector<1x4x129xbf16>,
    %c0_215 = arith.constant 0 : index
    %c30 = arith.constant 30 : index
    %235 = vector.load %arg19[%c0_215, %c30] : memref<16x169xbf16, #tpu.memory_space<vmem>>, vector<4x129xbf16>
    %c0_216 = arith.constant 0 : index
    %c120 = arith.constant 120 : index
    %c0_217 = arith.constant 0 : index
    %236 = vector.load %arg20[%c0_216, %c120, %c0_217] : memref<4x164x129xbf16, #tpu.memory_space<vmem>>, vector<1x4x129xbf16>
    %237 = vector.shape_cast %236 : vector<1x4x129xbf16> to vector<4x129xbf16>
    %238 = vector.shape_cast %235 : vector<4x129xbf16> to vector<1x4x129xbf16>
    tpu.vector_store %arg20[%c0_216, %c120, %c0_217], %238 {strides = array<i32>} : memref<4x164x129xbf16, #tpu.memory_space<vmem>>, vector<1x4x129xbf16>,
    %c0_218 = arith.constant 0 : index
    %c31 = arith.constant 31 : index
    %239 = vector.load %arg19[%c0_218, %c31] : memref<16x169xbf16, #tpu.memory_space<vmem>>, vector<4x129xbf16>
    %c0_219 = arith.constant 0 : index
    %c124 = arith.constant 124 : index
    %c0_220 = arith.constant 0 : index
    %240 = vector.load %arg20[%c0_219, %c124, %c0_220] : memref<4x164x129xbf16, #tpu.memory_space<vmem>>, vector<1x4x129xbf16>
    %241 = vector.shape_cast %240 : vector<1x4x129xbf16> to vector<4x129xbf16>
    %242 = vector.shape_cast %239 : vector<4x129xbf16> to vector<1x4x129xbf16>
    tpu.vector_store %arg20[%c0_219, %c124, %c0_220], %242 {strides = array<i32>} : memref<4x164x129xbf16, #tpu.memory_space<vmem>>, vector<1x4x129xbf16>,
    %c0_221 = arith.constant 0 : index
    %c32_222 = arith.constant 32 : index
    %243 = vector.load %arg19[%c0_221, %c32_222] : memref<16x169xbf16, #tpu.memory_space<vmem>>, vector<4x129xbf16>
    %c0_223 = arith.constant 0 : index
    %c128 = arith.constant 128 : index
    %c0_224 = arith.constant 0 : index
    %244 = vector.load %arg20[%c0_223, %c128, %c0_224] : memref<4x164x129xbf16, #tpu.memory_space<vmem>>, vector<1x4x129xbf16>
    %245 = vector.shape_cast %244 : vector<1x4x129xbf16> to vector<4x129xbf16>
    %246 = vector.shape_cast %243 : vector<4x129xbf16> to vector<1x4x129xbf16>
    tpu.vector_store %arg20[%c0_223, %c128, %c0_224], %246 {strides = array<i32>} : memref<4x164x129xbf16, #tpu.memory_space<vmem>>, vector<1x4x129xbf16>,
    %c0_225 = arith.constant 0 : index
    %c33 = arith.constant 33 : index
    %247 = vector.load %arg19[%c0_225, %c33] : memref<16x169xbf16, #tpu.memory_space<vmem>>, vector<4x129xbf16>
    %c0_226 = arith.constant 0 : index
    %c132 = arith.constant 132 : index
    %c0_227 = arith.constant 0 : index
    %248 = vector.load %arg20[%c0_226, %c132, %c0_227] : memref<4x164x129xbf16, #tpu.memory_space<vmem>>, vector<1x4x129xbf16>
    %249 = vector.shape_cast %248 : vector<1x4x129xbf16> to vector<4x129xbf16>
    %250 = vector.shape_cast %247 : vector<4x129xbf16> to vector<1x4x129xbf16>
    tpu.vector_store %arg20[%c0_226, %c132, %c0_227], %250 {strides = array<i32>} : memref<4x164x129xbf16, #tpu.memory_space<vmem>>, vector<1x4x129xbf16>,
    %c0_228 = arith.constant 0 : index
    %c34 = arith.constant 34 : index
    %251 = vector.load %arg19[%c0_228, %c34] : memref<16x169xbf16, #tpu.memory_space<vmem>>, vector<4x129xbf16>
    %c0_229 = arith.constant 0 : index
    %c136_230 = arith.constant 136 : index
    %c0_231 = arith.constant 0 : index
    %252 = vector.load %arg20[%c0_229, %c136_230, %c0_231] : memref<4x164x129xbf16, #tpu.memory_space<vmem>>, vector<1x4x129xbf16>
    %253 = vector.shape_cast %252 : vector<1x4x129xbf16> to vector<4x129xbf16>
    %254 = vector.shape_cast %251 : vector<4x129xbf16> to vector<1x4x129xbf16>
    tpu.vector_store %arg20[%c0_229, %c136_230, %c0_231], %254 {strides = array<i32>} : memref<4x164x129xbf16, #tpu.memory_space<vmem>>, vector<1x4x129xbf16>,
    %c0_232 = arith.constant 0 : index
    %c35 = arith.constant 35 : index
    %255 = vector.load %arg19[%c0_232, %c35] : memref<16x169xbf16, #tpu.memory_space<vmem>>, vector<4x129xbf16>
    %c0_233 = arith.constant 0 : index
    %c140 = arith.constant 140 : index
    %c0_234 = arith.constant 0 : index
    %256 = vector.load %arg20[%c0_233, %c140, %c0_234] : memref<4x164x129xbf16, #tpu.memory_space<vmem>>, vector<1x4x129xbf16>
    %257 = vector.shape_cast %256 : vector<1x4x129xbf16> to vector<4x129xbf16>
    %258 = vector.shape_cast %255 : vector<4x129xbf16> to vector<1x4x129xbf16>
    tpu.vector_store %arg20[%c0_233, %c140, %c0_234], %258 {strides = array<i32>} : memref<4x164x129xbf16, #tpu.memory_space<vmem>>, vector<1x4x129xbf16>,
    %c0_235 = arith.constant 0 : index
    %c36_236 = arith.constant 36 : index
    %259 = vector.load %arg19[%c0_235, %c36_236] : memref<16x169xbf16, #tpu.memory_space<vmem>>, vector<4x129xbf16>
    %c0_237 = arith.constant 0 : index
    %c144 = arith.constant 144 : index
    %c0_238 = arith.constant 0 : index
    %260 = vector.load %arg20[%c0_237, %c144, %c0_238] : memref<4x164x129xbf16, #tpu.memory_space<vmem>>, vector<1x4x129xbf16>
    %261 = vector.shape_cast %260 : vector<1x4x129xbf16> to vector<4x129xbf16>
    %262 = vector.shape_cast %259 : vector<4x129xbf16> to vector<1x4x129xbf16>
    tpu.vector_store %arg20[%c0_237, %c144, %c0_238], %262 {strides = array<i32>} : memref<4x164x129xbf16, #tpu.memory_space<vmem>>, vector<1x4x129xbf16>,
    %c0_239 = arith.constant 0 : index
    %c37 = arith.constant 37 : index
    %263 = vector.load %arg19[%c0_239, %c37] : memref<16x169xbf16, #tpu.memory_space<vmem>>, vector<4x129xbf16>
    %c0_240 = arith.constant 0 : index
    %c148 = arith.constant 148 : index
    %c0_241 = arith.constant 0 : index
    %264 = vector.load %arg20[%c0_240, %c148, %c0_241] : memref<4x164x129xbf16, #tpu.memory_space<vmem>>, vector<1x4x129xbf16>
    %265 = vector.shape_cast %264 : vector<1x4x129xbf16> to vector<4x129xbf16>
    %266 = vector.shape_cast %263 : vector<4x129xbf16> to vector<1x4x129xbf16>
    tpu.vector_store %arg20[%c0_240, %c148, %c0_241], %266 {strides = array<i32>} : memref<4x164x129xbf16, #tpu.memory_space<vmem>>, vector<1x4x129xbf16>,
    %c0_242 = arith.constant 0 : index
    %c38 = arith.constant 38 : index
    %267 = vector.load %arg19[%c0_242, %c38] : memref<16x169xbf16, #tpu.memory_space<vmem>>, vector<4x129xbf16>
    %c0_243 = arith.constant 0 : index
    %c152 = arith.constant 152 : index
    %c0_244 = arith.constant 0 : index
    %268 = vector.load %arg20[%c0_243, %c152, %c0_244] : memref<4x164x129xbf16, #tpu.memory_space<vmem>>, vector<1x4x129xbf16>
    %269 = vector.shape_cast %268 : vector<1x4x129xbf16> to vector<4x129xbf16>
    %270 = vector.shape_cast %267 : vector<4x129xbf16> to vector<1x4x129xbf16>
    tpu.vector_store %arg20[%c0_243, %c152, %c0_244], %270 {strides = array<i32>} : memref<4x164x129xbf16, #tpu.memory_space<vmem>>, vector<1x4x129xbf16>,
    %c0_245 = arith.constant 0 : index
    %c39 = arith.constant 39 : index
    %271 = vector.load %arg19[%c0_245, %c39] : memref<16x169xbf16, #tpu.memory_space<vmem>>, vector<4x129xbf16>
    %c0_246 = arith.constant 0 : index
    %c156 = arith.constant 156 : index
    %c0_247 = arith.constant 0 : index
    %272 = vector.load %arg20[%c0_246, %c156, %c0_247] : memref<4x164x129xbf16, #tpu.memory_space<vmem>>, vector<1x4x129xbf16>
    %273 = vector.shape_cast %272 : vector<1x4x129xbf16> to vector<4x129xbf16>
    %274 = vector.shape_cast %271 : vector<4x129xbf16> to vector<1x4x129xbf16>
    tpu.vector_store %arg20[%c0_246, %c156, %c0_247], %274 {strides = array<i32>} : memref<4x164x129xbf16, #tpu.memory_space<vmem>>, vector<1x4x129xbf16>,
    %c0_248 = arith.constant 0 : index
    %c40_249 = arith.constant 40 : index
    %275 = vector.load %arg19[%c0_248, %c40_249] : memref<16x169xbf16, #tpu.memory_space<vmem>>, vector<4x129xbf16>
    %c0_250 = arith.constant 0 : index
    %c160 = arith.constant 160 : index
    %c0_251 = arith.constant 0 : index
    %276 = vector.load %arg20[%c0_250, %c160, %c0_251] : memref<4x164x129xbf16, #tpu.memory_space<vmem>>, vector<1x4x129xbf16>
    %277 = vector.shape_cast %276 : vector<1x4x129xbf16> to vector<4x129xbf16>
    %278 = vector.shape_cast %275 : vector<4x129xbf16> to vector<1x4x129xbf16>
    tpu.vector_store %arg20[%c0_250, %c160, %c0_251], %278 {strides = array<i32>} : memref<4x164x129xbf16, #tpu.memory_space<vmem>>, vector<1x4x129xbf16>,
    %c0_252 = arith.constant 0 : index
    %c0_253 = arith.constant 0 : index
    %c0_254 = arith.constant 0 : index
    %279 = vector.load %arg5[%c0_252, %c0_253, %c0_254] : memref<4x8x164xbf16, #tpu.memory_space<vmem>>, vector<1x8x164xbf16>
    %280 = vector.shape_cast %279 : vector<1x8x164xbf16> to vector<8x164xbf16>
    %c0_255 = arith.constant 0 : index
    %c0_256 = arith.constant 0 : index
    %c0_257 = arith.constant 0 : index
    %281 = vector.load %arg20[%c0_255, %c0_256, %c0_257] : memref<4x164x129xbf16, #tpu.memory_space<vmem>>, vector<1x164x129xbf16>
    %282 = vector.shape_cast %281 : vector<1x164x129xbf16> to vector<164x129xbf16>
    %cst_258 = arith.constant dense<0.000000e+00> : vector<8x129xf32>
    %283 = tpu.matmul %280, %282, %cst_258 {dimension_numbers = #tpu.dot_dimension_numbers<[1], [0], [0], [1], [0, 0, 1, 1], [], []>} : vector<8x164xbf16>, vector<164x129xbf16>, vector<8x129xf32> -> vector<8x129xf32>
    %c0_259 = arith.constant 0 : index
    %c0_260 = arith.constant 0 : index
    %284 = vector.load %arg21[%c0_259, %c0_260] : memref<32x129xf32, #tpu.memory_space<vmem>>, vector<8x129xf32>
    tpu.vector_store %arg21[%c0_259, %c0_260], %283 {strides = array<i32>} : memref<32x129xf32, #tpu.memory_space<vmem>>, vector<8x129xf32>,
    %c4_261 = arith.constant 4 : index
    %c0_262 = arith.constant 0 : index
    %285 = vector.load %arg19[%c4_261, %c0_262] : memref<16x169xbf16, #tpu.memory_space<vmem>>, vector<4x129xbf16>
    %c1_263 = arith.constant 1 : index
    %c0_264 = arith.constant 0 : index
    %c0_265 = arith.constant 0 : index
    %286 = vector.load %arg20[%c1_263, %c0_264, %c0_265] : memref<4x164x129xbf16, #tpu.memory_space<vmem>>, vector<1x4x129xbf16>
    %287 = vector.shape_cast %286 : vector<1x4x129xbf16> to vector<4x129xbf16>
    %288 = vector.shape_cast %285 : vector<4x129xbf16> to vector<1x4x129xbf16>
    tpu.vector_store %arg20[%c1_263, %c0_264, %c0_265], %288 {strides = array<i32>} : memref<4x164x129xbf16, #tpu.memory_space<vmem>>, vector<1x4x129xbf16>,
    %c4_266 = arith.constant 4 : index
    %c1_267 = arith.constant 1 : index
    %289 = vector.load %arg19[%c4_266, %c1_267] : memref<16x169xbf16, #tpu.memory_space<vmem>>, vector<4x129xbf16>
    %c1_268 = arith.constant 1 : index
    %c4_269 = arith.constant 4 : index
    %c0_270 = arith.constant 0 : index
    %290 = vector.load %arg20[%c1_268, %c4_269, %c0_270] : memref<4x164x129xbf16, #tpu.memory_space<vmem>>, vector<1x4x129xbf16>
    %291 = vector.shape_cast %290 : vector<1x4x129xbf16> to vector<4x129xbf16>
    %292 = vector.shape_cast %289 : vector<4x129xbf16> to vector<1x4x129xbf16>
    tpu.vector_store %arg20[%c1_268, %c4_269, %c0_270], %292 {strides = array<i32>} : memref<4x164x129xbf16, #tpu.memory_space<vmem>>, vector<1x4x129xbf16>,
    %c4_271 = arith.constant 4 : index
    %c2_272 = arith.constant 2 : index
    %293 = vector.load %arg19[%c4_271, %c2_272] : memref<16x169xbf16, #tpu.memory_space<vmem>>, vector<4x129xbf16>
    %c1_273 = arith.constant 1 : index
    %c8_274 = arith.constant 8 : index
    %c0_275 = arith.constant 0 : index
    %294 = vector.load %arg20[%c1_273, %c8_274, %c0_275] : memref<4x164x129xbf16, #tpu.memory_space<vmem>>, vector<1x4x129xbf16>
    %295 = vector.shape_cast %294 : vector<1x4x129xbf16> to vector<4x129xbf16>
    %296 = vector.shape_cast %293 : vector<4x129xbf16> to vector<1x4x129xbf16>
    tpu.vector_store %arg20[%c1_273, %c8_274, %c0_275], %296 {strides = array<i32>} : memref<4x164x129xbf16, #tpu.memory_space<vmem>>, vector<1x4x129xbf16>,
    %c4_276 = arith.constant 4 : index
    %c3_277 = arith.constant 3 : index
    %297 = vector.load %arg19[%c4_276, %c3_277] : memref<16x169xbf16, #tpu.memory_space<vmem>>, vector<4x129xbf16>
    %c1_278 = arith.constant 1 : index
    %c12_279 = arith.constant 12 : index
    %c0_280 = arith.constant 0 : index
    %298 = vector.load %arg20[%c1_278, %c12_279, %c0_280] : memref<4x164x129xbf16, #tpu.memory_space<vmem>>, vector<1x4x129xbf16>
    %299 = vector.shape_cast %298 : vector<1x4x129xbf16> to vector<4x129xbf16>
    %300 = vector.shape_cast %297 : vector<4x129xbf16> to vector<1x4x129xbf16>
    tpu.vector_store %arg20[%c1_278, %c12_279, %c0_280], %300 {strides = array<i32>} : memref<4x164x129xbf16, #tpu.memory_space<vmem>>, vector<1x4x129xbf16>,
    %c4_281 = arith.constant 4 : index
    %c4_282 = arith.constant 4 : index
    %301 = vector.load %arg19[%c4_281, %c4_282] : memref<16x169xbf16, #tpu.memory_space<vmem>>, vector<4x129xbf16>
    %c1_283 = arith.constant 1 : index
    %c16_284 = arith.constant 16 : index
    %c0_285 = arith.constant 0 : index
    %302 = vector.load %arg20[%c1_283, %c16_284, %c0_285] : memref<4x164x129xbf16, #tpu.memory_space<vmem>>, vector<1x4x129xbf16>
    %303 = vector.shape_cast %302 : vector<1x4x129xbf16> to vector<4x129xbf16>
    %304 = vector.shape_cast %301 : vector<4x129xbf16> to vector<1x4x129xbf16>
    tpu.vector_store %arg20[%c1_283, %c16_284, %c0_285], %304 {strides = array<i32>} : memref<4x164x129xbf16, #tpu.memory_space<vmem>>, vector<1x4x129xbf16>,
    %c4_286 = arith.constant 4 : index
    %c5_287 = arith.constant 5 : index
    %305 = vector.load %arg19[%c4_286, %c5_287] : memref<16x169xbf16, #tpu.memory_space<vmem>>, vector<4x129xbf16>
    %c1_288 = arith.constant 1 : index
    %c20_289 = arith.constant 20 : index
    %c0_290 = arith.constant 0 : index
    %306 = vector.load %arg20[%c1_288, %c20_289, %c0_290] : memref<4x164x129xbf16, #tpu.memory_space<vmem>>, vector<1x4x129xbf16>
    %307 = vector.shape_cast %306 : vector<1x4x129xbf16> to vector<4x129xbf16>
    %308 = vector.shape_cast %305 : vector<4x129xbf16> to vector<1x4x129xbf16>
    tpu.vector_store %arg20[%c1_288, %c20_289, %c0_290], %308 {strides = array<i32>} : memref<4x164x129xbf16, #tpu.memory_space<vmem>>, vector<1x4x129xbf16>,
    %c4_291 = arith.constant 4 : index
    %c6_292 = arith.constant 6 : index
    %309 = vector.load %arg19[%c4_291, %c6_292] : memref<16x169xbf16, #tpu.memory_space<vmem>>, vector<4x129xbf16>
    %c1_293 = arith.constant 1 : index
    %c24_294 = arith.constant 24 : index
    %c0_295 = arith.constant 0 : index
    %310 = vector.load %arg20[%c1_293, %c24_294, %c0_295] : memref<4x164x129xbf16, #tpu.memory_space<vmem>>, vector<1x4x129xbf16>
    %311 = vector.shape_cast %310 : vector<1x4x129xbf16> to vector<4x129xbf16>
    %312 = vector.shape_cast %309 : vector<4x129xbf16> to vector<1x4x129xbf16>
    tpu.vector_store %arg20[%c1_293, %c24_294, %c0_295], %312 {strides = array<i32>} : memref<4x164x129xbf16, #tpu.memory_space<vmem>>, vector<1x4x129xbf16>,
    %c4_296 = arith.constant 4 : index
    %c7_297 = arith.constant 7 : index
    %313 = vector.load %arg19[%c4_296, %c7_297] : memref<16x169xbf16, #tpu.memory_space<vmem>>, vector<4x129xbf16>
    %c1_298 = arith.constant 1 : index
    %c28_299 = arith.constant 28 : index
    %c0_300 = arith.constant 0 : index
    %314 = vector.load %arg20[%c1_298, %c28_299, %c0_300] : memref<4x164x129xbf16, #tpu.memory_space<vmem>>, vector<1x4x129xbf16>
    %315 = vector.shape_cast %314 : vector<1x4x129xbf16> to vector<4x129xbf16>
    %316 = vector.shape_cast %313 : vector<4x129xbf16> to vector<1x4x129xbf16>
    tpu.vector_store %arg20[%c1_298, %c28_299, %c0_300], %316 {strides = array<i32>} : memref<4x164x129xbf16, #tpu.memory_space<vmem>>, vector<1x4x129xbf16>,
    %c4_301 = arith.constant 4 : index
    %c8_302 = arith.constant 8 : index
    %317 = vector.load %arg19[%c4_301, %c8_302] : memref<16x169xbf16, #tpu.memory_space<vmem>>, vector<4x129xbf16>
    %c1_303 = arith.constant 1 : index
    %c32_304 = arith.constant 32 : index
    %c0_305 = arith.constant 0 : index
    %318 = vector.load %arg20[%c1_303, %c32_304, %c0_305] : memref<4x164x129xbf16, #tpu.memory_space<vmem>>, vector<1x4x129xbf16>
    %319 = vector.shape_cast %318 : vector<1x4x129xbf16> to vector<4x129xbf16>
    %320 = vector.shape_cast %317 : vector<4x129xbf16> to vector<1x4x129xbf16>
    tpu.vector_store %arg20[%c1_303, %c32_304, %c0_305], %320 {strides = array<i32>} : memref<4x164x129xbf16, #tpu.memory_space<vmem>>, vector<1x4x129xbf16>,
    %c4_306 = arith.constant 4 : index
    %c9_307 = arith.constant 9 : index
    %321 = vector.load %arg19[%c4_306, %c9_307] : memref<16x169xbf16, #tpu.memory_space<vmem>>, vector<4x129xbf16>
    %c1_308 = arith.constant 1 : index
    %c36_309 = arith.constant 36 : index
    %c0_310 = arith.constant 0 : index
    %322 = vector.load %arg20[%c1_308, %c36_309, %c0_310] : memref<4x164x129xbf16, #tpu.memory_space<vmem>>, vector<1x4x129xbf16>
    %323 = vector.shape_cast %322 : vector<1x4x129xbf16> to vector<4x129xbf16>
    %324 = vector.shape_cast %321 : vector<4x129xbf16> to vector<1x4x129xbf16>
    tpu.vector_store %arg20[%c1_308, %c36_309, %c0_310], %324 {strides = array<i32>} : memref<4x164x129xbf16, #tpu.memory_space<vmem>>, vector<1x4x129xbf16>,
    %c4_311 = arith.constant 4 : index
    %c10_312 = arith.constant 10 : index
    %325 = vector.load %arg19[%c4_311, %c10_312] : memref<16x169xbf16, #tpu.memory_space<vmem>>, vector<4x129xbf16>
    %c1_313 = arith.constant 1 : index
    %c40_314 = arith.constant 40 : index
    %c0_315 = arith.constant 0 : index
    %326 = vector.load %arg20[%c1_313, %c40_314, %c0_315] : memref<4x164x129xbf16, #tpu.memory_space<vmem>>, vector<1x4x129xbf16>
    %327 = vector.shape_cast %326 : vector<1x4x129xbf16> to vector<4x129xbf16>
    %328 = vector.shape_cast %325 : vector<4x129xbf16> to vector<1x4x129xbf16>
    tpu.vector_store %arg20[%c1_313, %c40_314, %c0_315], %328 {strides = array<i32>} : memref<4x164x129xbf16, #tpu.memory_space<vmem>>, vector<1x4x129xbf16>,
    %c4_316 = arith.constant 4 : index
    %c11_317 = arith.constant 11 : index
    %329 = vector.load %arg19[%c4_316, %c11_317] : memref<16x169xbf16, #tpu.memory_space<vmem>>, vector<4x129xbf16>
    %c1_318 = arith.constant 1 : index
    %c44_319 = arith.constant 44 : index
    %c0_320 = arith.constant 0 : index
    %330 = vector.load %arg20[%c1_318, %c44_319, %c0_320] : memref<4x164x129xbf16, #tpu.memory_space<vmem>>, vector<1x4x129xbf16>
    %331 = vector.shape_cast %330 : vector<1x4x129xbf16> to vector<4x129xbf16>
    %332 = vector.shape_cast %329 : vector<4x129xbf16> to vector<1x4x129xbf16>
    tpu.vector_store %arg20[%c1_318, %c44_319, %c0_320], %332 {strides = array<i32>} : memref<4x164x129xbf16, #tpu.memory_space<vmem>>, vector<1x4x129xbf16>,
    %c4_321 = arith.constant 4 : index
    %c12_322 = arith.constant 12 : index
    %333 = vector.load %arg19[%c4_321, %c12_322] : memref<16x169xbf16, #tpu.memory_space<vmem>>, vector<4x129xbf16>
    %c1_323 = arith.constant 1 : index
    %c48_324 = arith.constant 48 : index
    %c0_325 = arith.constant 0 : index
    %334 = vector.load %arg20[%c1_323, %c48_324, %c0_325] : memref<4x164x129xbf16, #tpu.memory_space<vmem>>, vector<1x4x129xbf16>
    %335 = vector.shape_cast %334 : vector<1x4x129xbf16> to vector<4x129xbf16>
    %336 = vector.shape_cast %333 : vector<4x129xbf16> to vector<1x4x129xbf16>
    tpu.vector_store %arg20[%c1_323, %c48_324, %c0_325], %336 {strides = array<i32>} : memref<4x164x129xbf16, #tpu.memory_space<vmem>>, vector<1x4x129xbf16>,
    %c4_326 = arith.constant 4 : index
    %c13_327 = arith.constant 13 : index
    %337 = vector.load %arg19[%c4_326, %c13_327] : memref<16x169xbf16, #tpu.memory_space<vmem>>, vector<4x129xbf16>
    %c1_328 = arith.constant 1 : index
    %c52_329 = arith.constant 52 : index
    %c0_330 = arith.constant 0 : index
    %338 = vector.load %arg20[%c1_328, %c52_329, %c0_330] : memref<4x164x129xbf16, #tpu.memory_space<vmem>>, vector<1x4x129xbf16>
    %339 = vector.shape_cast %338 : vector<1x4x129xbf16> to vector<4x129xbf16>
    %340 = vector.shape_cast %337 : vector<4x129xbf16> to vector<1x4x129xbf16>
    tpu.vector_store %arg20[%c1_328, %c52_329, %c0_330], %340 {strides = array<i32>} : memref<4x164x129xbf16, #tpu.memory_space<vmem>>, vector<1x4x129xbf16>,
    %c4_331 = arith.constant 4 : index
    %c14_332 = arith.constant 14 : index
    %341 = vector.load %arg19[%c4_331, %c14_332] : memref<16x169xbf16, #tpu.memory_space<vmem>>, vector<4x129xbf16>
    %c1_333 = arith.constant 1 : index
    %c56_334 = arith.constant 56 : index
    %c0_335 = arith.constant 0 : index
    %342 = vector.load %arg20[%c1_333, %c56_334, %c0_335] : memref<4x164x129xbf16, #tpu.memory_space<vmem>>, vector<1x4x129xbf16>
    %343 = vector.shape_cast %342 : vector<1x4x129xbf16> to vector<4x129xbf16>
    %344 = vector.shape_cast %341 : vector<4x129xbf16> to vector<1x4x129xbf16>
    tpu.vector_store %arg20[%c1_333, %c56_334, %c0_335], %344 {strides = array<i32>} : memref<4x164x129xbf16, #tpu.memory_space<vmem>>, vector<1x4x129xbf16>,
    %c4_336 = arith.constant 4 : index
    %c15_337 = arith.constant 15 : index
    %345 = vector.load %arg19[%c4_336, %c15_337] : memref<16x169xbf16, #tpu.memory_space<vmem>>, vector<4x129xbf16>
    %c1_338 = arith.constant 1 : index
    %c60_339 = arith.constant 60 : index
    %c0_340 = arith.constant 0 : index
    %346 = vector.load %arg20[%c1_338, %c60_339, %c0_340] : memref<4x164x129xbf16, #tpu.memory_space<vmem>>, vector<1x4x129xbf16>
    %347 = vector.shape_cast %346 : vector<1x4x129xbf16> to vector<4x129xbf16>
    %348 = vector.shape_cast %345 : vector<4x129xbf16> to vector<1x4x129xbf16>
    tpu.vector_store %arg20[%c1_338, %c60_339, %c0_340], %348 {strides = array<i32>} : memref<4x164x129xbf16, #tpu.memory_space<vmem>>, vector<1x4x129xbf16>,
    %c4_341 = arith.constant 4 : index
    %c16_342 = arith.constant 16 : index
    %349 = vector.load %arg19[%c4_341, %c16_342] : memref<16x169xbf16, #tpu.memory_space<vmem>>, vector<4x129xbf16>
    %c1_343 = arith.constant 1 : index
    %c64_344 = arith.constant 64 : index
    %c0_345 = arith.constant 0 : index
    %350 = vector.load %arg20[%c1_343, %c64_344, %c0_345] : memref<4x164x129xbf16, #tpu.memory_space<vmem>>, vector<1x4x129xbf16>
    %351 = vector.shape_cast %350 : vector<1x4x129xbf16> to vector<4x129xbf16>
    %352 = vector.shape_cast %349 : vector<4x129xbf16> to vector<1x4x129xbf16>
    tpu.vector_store %arg20[%c1_343, %c64_344, %c0_345], %352 {strides = array<i32>} : memref<4x164x129xbf16, #tpu.memory_space<vmem>>, vector<1x4x129xbf16>,
    %c4_346 = arith.constant 4 : index
    %c17_347 = arith.constant 17 : index
    %353 = vector.load %arg19[%c4_346, %c17_347] : memref<16x169xbf16, #tpu.memory_space<vmem>>, vector<4x129xbf16>
    %c1_348 = arith.constant 1 : index
    %c68_349 = arith.constant 68 : index
    %c0_350 = arith.constant 0 : index
    %354 = vector.load %arg20[%c1_348, %c68_349, %c0_350] : memref<4x164x129xbf16, #tpu.memory_space<vmem>>, vector<1x4x129xbf16>
    %355 = vector.shape_cast %354 : vector<1x4x129xbf16> to vector<4x129xbf16>
    %356 = vector.shape_cast %353 : vector<4x129xbf16> to vector<1x4x129xbf16>
    tpu.vector_store %arg20[%c1_348, %c68_349, %c0_350], %356 {strides = array<i32>} : memref<4x164x129xbf16, #tpu.memory_space<vmem>>, vector<1x4x129xbf16>,
    %c4_351 = arith.constant 4 : index
    %c18_352 = arith.constant 18 : index
    %357 = vector.load %arg19[%c4_351, %c18_352] : memref<16x169xbf16, #tpu.memory_space<vmem>>, vector<4x129xbf16>
    %c1_353 = arith.constant 1 : index
    %c72_354 = arith.constant 72 : index
    %c0_355 = arith.constant 0 : index
    %358 = vector.load %arg20[%c1_353, %c72_354, %c0_355] : memref<4x164x129xbf16, #tpu.memory_space<vmem>>, vector<1x4x129xbf16>
    %359 = vector.shape_cast %358 : vector<1x4x129xbf16> to vector<4x129xbf16>
    %360 = vector.shape_cast %357 : vector<4x129xbf16> to vector<1x4x129xbf16>
    tpu.vector_store %arg20[%c1_353, %c72_354, %c0_355], %360 {strides = array<i32>} : memref<4x164x129xbf16, #tpu.memory_space<vmem>>, vector<1x4x129xbf16>,
    %c4_356 = arith.constant 4 : index
    %c19_357 = arith.constant 19 : index
    %361 = vector.load %arg19[%c4_356, %c19_357] : memref<16x169xbf16, #tpu.memory_space<vmem>>, vector<4x129xbf16>
    %c1_358 = arith.constant 1 : index
    %c76_359 = arith.constant 76 : index
    %c0_360 = arith.constant 0 : index
    %362 = vector.load %arg20[%c1_358, %c76_359, %c0_360] : memref<4x164x129xbf16, #tpu.memory_space<vmem>>, vector<1x4x129xbf16>
    %363 = vector.shape_cast %362 : vector<1x4x129xbf16> to vector<4x129xbf16>
    %364 = vector.shape_cast %361 : vector<4x129xbf16> to vector<1x4x129xbf16>
    tpu.vector_store %arg20[%c1_358, %c76_359, %c0_360], %364 {strides = array<i32>} : memref<4x164x129xbf16, #tpu.memory_space<vmem>>, vector<1x4x129xbf16>,
    %c4_361 = arith.constant 4 : index
    %c20_362 = arith.constant 20 : index
    %365 = vector.load %arg19[%c4_361, %c20_362] : memref<16x169xbf16, #tpu.memory_space<vmem>>, vector<4x129xbf16>
    %c1_363 = arith.constant 1 : index
    %c80_364 = arith.constant 80 : index
    %c0_365 = arith.constant 0 : index
    %366 = vector.load %arg20[%c1_363, %c80_364, %c0_365] : memref<4x164x129xbf16, #tpu.memory_space<vmem>>, vector<1x4x129xbf16>
    %367 = vector.shape_cast %366 : vector<1x4x129xbf16> to vector<4x129xbf16>
    %368 = vector.shape_cast %365 : vector<4x129xbf16> to vector<1x4x129xbf16>
    tpu.vector_store %arg20[%c1_363, %c80_364, %c0_365], %368 {strides = array<i32>} : memref<4x164x129xbf16, #tpu.memory_space<vmem>>, vector<1x4x129xbf16>,
    %c4_366 = arith.constant 4 : index
    %c21_367 = arith.constant 21 : index
    %369 = vector.load %arg19[%c4_366, %c21_367] : memref<16x169xbf16, #tpu.memory_space<vmem>>, vector<4x129xbf16>
    %c1_368 = arith.constant 1 : index
    %c84_369 = arith.constant 84 : index
    %c0_370 = arith.constant 0 : index
    %370 = vector.load %arg20[%c1_368, %c84_369, %c0_370] : memref<4x164x129xbf16, #tpu.memory_space<vmem>>, vector<1x4x129xbf16>
    %371 = vector.shape_cast %370 : vector<1x4x129xbf16> to vector<4x129xbf16>
    %372 = vector.shape_cast %369 : vector<4x129xbf16> to vector<1x4x129xbf16>
    tpu.vector_store %arg20[%c1_368, %c84_369, %c0_370], %372 {strides = array<i32>} : memref<4x164x129xbf16, #tpu.memory_space<vmem>>, vector<1x4x129xbf16>,
    %c4_371 = arith.constant 4 : index
    %c22_372 = arith.constant 22 : index
    %373 = vector.load %arg19[%c4_371, %c22_372] : memref<16x169xbf16, #tpu.memory_space<vmem>>, vector<4x129xbf16>
    %c1_373 = arith.constant 1 : index
    %c88_374 = arith.constant 88 : index
    %c0_375 = arith.constant 0 : index
    %374 = vector.load %arg20[%c1_373, %c88_374, %c0_375] : memref<4x164x129xbf16, #tpu.memory_space<vmem>>, vector<1x4x129xbf16>
    %375 = vector.shape_cast %374 : vector<1x4x129xbf16> to vector<4x129xbf16>
    %376 = vector.shape_cast %373 : vector<4x129xbf16> to vector<1x4x129xbf16>
    tpu.vector_store %arg20[%c1_373, %c88_374, %c0_375], %376 {strides = array<i32>} : memref<4x164x129xbf16, #tpu.memory_space<vmem>>, vector<1x4x129xbf16>,
    %c4_376 = arith.constant 4 : index
    %c23_377 = arith.constant 23 : index
    %377 = vector.load %arg19[%c4_376, %c23_377] : memref<16x169xbf16, #tpu.memory_space<vmem>>, vector<4x129xbf16>
    %c1_378 = arith.constant 1 : index
    %c92_379 = arith.constant 92 : index
    %c0_380 = arith.constant 0 : index
    %378 = vector.load %arg20[%c1_378, %c92_379, %c0_380] : memref<4x164x129xbf16, #tpu.memory_space<vmem>>, vector<1x4x129xbf16>
    %379 = vector.shape_cast %378 : vector<1x4x129xbf16> to vector<4x129xbf16>
    %380 = vector.shape_cast %377 : vector<4x129xbf16> to vector<1x4x129xbf16>
    tpu.vector_store %arg20[%c1_378, %c92_379, %c0_380], %380 {strides = array<i32>} : memref<4x164x129xbf16, #tpu.memory_space<vmem>>, vector<1x4x129xbf16>,
    %c4_381 = arith.constant 4 : index
    %c24_382 = arith.constant 24 : index
    %381 = vector.load %arg19[%c4_381, %c24_382] : memref<16x169xbf16, #tpu.memory_space<vmem>>, vector<4x129xbf16>
    %c1_383 = arith.constant 1 : index
    %c96_384 = arith.constant 96 : index
    %c0_385 = arith.constant 0 : index
    %382 = vector.load %arg20[%c1_383, %c96_384, %c0_385] : memref<4x164x129xbf16, #tpu.memory_space<vmem>>, vector<1x4x129xbf16>
    %383 = vector.shape_cast %382 : vector<1x4x129xbf16> to vector<4x129xbf16>
    %384 = vector.shape_cast %381 : vector<4x129xbf16> to vector<1x4x129xbf16>
    tpu.vector_store %arg20[%c1_383, %c96_384, %c0_385], %384 {strides = array<i32>} : memref<4x164x129xbf16, #tpu.memory_space<vmem>>, vector<1x4x129xbf16>,
    %c4_386 = arith.constant 4 : index
    %c25_387 = arith.constant 25 : index
    %385 = vector.load %arg19[%c4_386, %c25_387] : memref<16x169xbf16, #tpu.memory_space<vmem>>, vector<4x129xbf16>
    %c1_388 = arith.constant 1 : index
    %c100_389 = arith.constant 100 : index
    %c0_390 = arith.constant 0 : index
    %386 = vector.load %arg20[%c1_388, %c100_389, %c0_390] : memref<4x164x129xbf16, #tpu.memory_space<vmem>>, vector<1x4x129xbf16>
    %387 = vector.shape_cast %386 : vector<1x4x129xbf16> to vector<4x129xbf16>
    %388 = vector.shape_cast %385 : vector<4x129xbf16> to vector<1x4x129xbf16>
    tpu.vector_store %arg20[%c1_388, %c100_389, %c0_390], %388 {strides = array<i32>} : memref<4x164x129xbf16, #tpu.memory_space<vmem>>, vector<1x4x129xbf16>,
    %c4_391 = arith.constant 4 : index
    %c26_392 = arith.constant 26 : index
    %389 = vector.load %arg19[%c4_391, %c26_392] : memref<16x169xbf16, #tpu.memory_space<vmem>>, vector<4x129xbf16>
    %c1_393 = arith.constant 1 : index
    %c104_394 = arith.constant 104 : index
    %c0_395 = arith.constant 0 : index
    %390 = vector.load %arg20[%c1_393, %c104_394, %c0_395] : memref<4x164x129xbf16, #tpu.memory_space<vmem>>, vector<1x4x129xbf16>
    %391 = vector.shape_cast %390 : vector<1x4x129xbf16> to vector<4x129xbf16>
    %392 = vector.shape_cast %389 : vector<4x129xbf16> to vector<1x4x129xbf16>
    tpu.vector_store %arg20[%c1_393, %c104_394, %c0_395], %392 {strides = array<i32>} : memref<4x164x129xbf16, #tpu.memory_space<vmem>>, vector<1x4x129xbf16>,
    %c4_396 = arith.constant 4 : index
    %c27_397 = arith.constant 27 : index
    %393 = vector.load %arg19[%c4_396, %c27_397] : memref<16x169xbf16, #tpu.memory_space<vmem>>, vector<4x129xbf16>
    %c1_398 = arith.constant 1 : index
    %c108_399 = arith.constant 108 : index
    %c0_400 = arith.constant 0 : index
    %394 = vector.load %arg20[%c1_398, %c108_399, %c0_400] : memref<4x164x129xbf16, #tpu.memory_space<vmem>>, vector<1x4x129xbf16>
    %395 = vector.shape_cast %394 : vector<1x4x129xbf16> to vector<4x129xbf16>
    %396 = vector.shape_cast %393 : vector<4x129xbf16> to vector<1x4x129xbf16>
    tpu.vector_store %arg20[%c1_398, %c108_399, %c0_400], %396 {strides = array<i32>} : memref<4x164x129xbf16, #tpu.memory_space<vmem>>, vector<1x4x129xbf16>,
    %c4_401 = arith.constant 4 : index
    %c28_402 = arith.constant 28 : index
    %397 = vector.load %arg19[%c4_401, %c28_402] : memref<16x169xbf16, #tpu.memory_space<vmem>>, vector<4x129xbf16>
    %c1_403 = arith.constant 1 : index
    %c112_404 = arith.constant 112 : index
    %c0_405 = arith.constant 0 : index
    %398 = vector.load %arg20[%c1_403, %c112_404, %c0_405] : memref<4x164x129xbf16, #tpu.memory_space<vmem>>, vector<1x4x129xbf16>
    %399 = vector.shape_cast %398 : vector<1x4x129xbf16> to vector<4x129xbf16>
    %400 = vector.shape_cast %397 : vector<4x129xbf16> to vector<1x4x129xbf16>
    tpu.vector_store %arg20[%c1_403, %c112_404, %c0_405], %400 {strides = array<i32>} : memref<4x164x129xbf16, #tpu.memory_space<vmem>>, vector<1x4x129xbf16>,
    %c4_406 = arith.constant 4 : index
    %c29_407 = arith.constant 29 : index
    %401 = vector.load %arg19[%c4_406, %c29_407] : memref<16x169xbf16, #tpu.memory_space<vmem>>, vector<4x129xbf16>
    %c1_408 = arith.constant 1 : index
    %c116_409 = arith.constant 116 : index
    %c0_410 = arith.constant 0 : index
    %402 = vector.load %arg20[%c1_408, %c116_409, %c0_410] : memref<4x164x129xbf16, #tpu.memory_space<vmem>>, vector<1x4x129xbf16>
    %403 = vector.shape_cast %402 : vector<1x4x129xbf16> to vector<4x129xbf16>
    %404 = vector.shape_cast %401 : vector<4x129xbf16> to vector<1x4x129xbf16>
    tpu.vector_store %arg20[%c1_408, %c116_409, %c0_410], %404 {strides = array<i32>} : memref<4x164x129xbf16, #tpu.memory_space<vmem>>, vector<1x4x129xbf16>,
    %c4_411 = arith.constant 4 : index
    %c30_412 = arith.constant 30 : index
    %405 = vector.load %arg19[%c4_411, %c30_412] : memref<16x169xbf16, #tpu.memory_space<vmem>>, vector<4x129xbf16>
    %c1_413 = arith.constant 1 : index
    %c120_414 = arith.constant 120 : index
    %c0_415 = arith.constant 0 : index
    %406 = vector.load %arg20[%c1_413, %c120_414, %c0_415] : memref<4x164x129xbf16, #tpu.memory_space<vmem>>, vector<1x4x129xbf16>
    %407 = vector.shape_cast %406 : vector<1x4x129xbf16> to vector<4x129xbf16>
    %408 = vector.shape_cast %405 : vector<4x129xbf16> to vector<1x4x129xbf16>
    tpu.vector_store %arg20[%c1_413, %c120_414, %c0_415], %408 {strides = array<i32>} : memref<4x164x129xbf16, #tpu.memory_space<vmem>>, vector<1x4x129xbf16>,
    %c4_416 = arith.constant 4 : index
    %c31_417 = arith.constant 31 : index
    %409 = vector.load %arg19[%c4_416, %c31_417] : memref<16x169xbf16, #tpu.memory_space<vmem>>, vector<4x129xbf16>
    %c1_418 = arith.constant 1 : index
    %c124_419 = arith.constant 124 : index
    %c0_420 = arith.constant 0 : index
    %410 = vector.load %arg20[%c1_418, %c124_419, %c0_420] : memref<4x164x129xbf16, #tpu.memory_space<vmem>>, vector<1x4x129xbf16>
    %411 = vector.shape_cast %410 : vector<1x4x129xbf16> to vector<4x129xbf16>
    %412 = vector.shape_cast %409 : vector<4x129xbf16> to vector<1x4x129xbf16>
    tpu.vector_store %arg20[%c1_418, %c124_419, %c0_420], %412 {strides = array<i32>} : memref<4x164x129xbf16, #tpu.memory_space<vmem>>, vector<1x4x129xbf16>,
    %c4_421 = arith.constant 4 : index
    %c32_422 = arith.constant 32 : index
    %413 = vector.load %arg19[%c4_421, %c32_422] : memref<16x169xbf16, #tpu.memory_space<vmem>>, vector<4x129xbf16>
    %c1_423 = arith.constant 1 : index
    %c128_424 = arith.constant 128 : index
    %c0_425 = arith.constant 0 : index
    %414 = vector.load %arg20[%c1_423, %c128_424, %c0_425] : memref<4x164x129xbf16, #tpu.memory_space<vmem>>, vector<1x4x129xbf16>
    %415 = vector.shape_cast %414 : vector<1x4x129xbf16> to vector<4x129xbf16>
    %416 = vector.shape_cast %413 : vector<4x129xbf16> to vector<1x4x129xbf16>
    tpu.vector_store %arg20[%c1_423, %c128_424, %c0_425], %416 {strides = array<i32>} : memref<4x164x129xbf16, #tpu.memory_space<vmem>>, vector<1x4x129xbf16>,
    %c4_426 = arith.constant 4 : index
    %c33_427 = arith.constant 33 : index
    %417 = vector.load %arg19[%c4_426, %c33_427] : memref<16x169xbf16, #tpu.memory_space<vmem>>, vector<4x129xbf16>
    %c1_428 = arith.constant 1 : index
    %c132_429 = arith.constant 132 : index
    %c0_430 = arith.constant 0 : index
    %418 = vector.load %arg20[%c1_428, %c132_429, %c0_430] : memref<4x164x129xbf16, #tpu.memory_space<vmem>>, vector<1x4x129xbf16>
    %419 = vector.shape_cast %418 : vector<1x4x129xbf16> to vector<4x129xbf16>
    %420 = vector.shape_cast %417 : vector<4x129xbf16> to vector<1x4x129xbf16>
    tpu.vector_store %arg20[%c1_428, %c132_429, %c0_430], %420 {strides = array<i32>} : memref<4x164x129xbf16, #tpu.memory_space<vmem>>, vector<1x4x129xbf16>,
    %c4_431 = arith.constant 4 : index
    %c34_432 = arith.constant 34 : index
    %421 = vector.load %arg19[%c4_431, %c34_432] : memref<16x169xbf16, #tpu.memory_space<vmem>>, vector<4x129xbf16>
    %c1_433 = arith.constant 1 : index
    %c136_434 = arith.constant 136 : index
    %c0_435 = arith.constant 0 : index
    %422 = vector.load %arg20[%c1_433, %c136_434, %c0_435] : memref<4x164x129xbf16, #tpu.memory_space<vmem>>, vector<1x4x129xbf16>
    %423 = vector.shape_cast %422 : vector<1x4x129xbf16> to vector<4x129xbf16>
    %424 = vector.shape_cast %421 : vector<4x129xbf16> to vector<1x4x129xbf16>
    tpu.vector_store %arg20[%c1_433, %c136_434, %c0_435], %424 {strides = array<i32>} : memref<4x164x129xbf16, #tpu.memory_space<vmem>>, vector<1x4x129xbf16>,
    %c4_436 = arith.constant 4 : index
    %c35_437 = arith.constant 35 : index
    %425 = vector.load %arg19[%c4_436, %c35_437] : memref<16x169xbf16, #tpu.memory_space<vmem>>, vector<4x129xbf16>
    %c1_438 = arith.constant 1 : index
    %c140_439 = arith.constant 140 : index
    %c0_440 = arith.constant 0 : index
    %426 = vector.load %arg20[%c1_438, %c140_439, %c0_440] : memref<4x164x129xbf16, #tpu.memory_space<vmem>>, vector<1x4x129xbf16>
    %427 = vector.shape_cast %426 : vector<1x4x129xbf16> to vector<4x129xbf16>
    %428 = vector.shape_cast %425 : vector<4x129xbf16> to vector<1x4x129xbf16>
    tpu.vector_store %arg20[%c1_438, %c140_439, %c0_440], %428 {strides = array<i32>} : memref<4x164x129xbf16, #tpu.memory_space<vmem>>, vector<1x4x129xbf16>,
    %c4_441 = arith.constant 4 : index
    %c36_442 = arith.constant 36 : index
    %429 = vector.load %arg19[%c4_441, %c36_442] : memref<16x169xbf16, #tpu.memory_space<vmem>>, vector<4x129xbf16>
    %c1_443 = arith.constant 1 : index
    %c144_444 = arith.constant 144 : index
    %c0_445 = arith.constant 0 : index
    %430 = vector.load %arg20[%c1_443, %c144_444, %c0_445] : memref<4x164x129xbf16, #tpu.memory_space<vmem>>, vector<1x4x129xbf16>
    %431 = vector.shape_cast %430 : vector<1x4x129xbf16> to vector<4x129xbf16>
    %432 = vector.shape_cast %429 : vector<4x129xbf16> to vector<1x4x129xbf16>
    tpu.vector_store %arg20[%c1_443, %c144_444, %c0_445], %432 {strides = array<i32>} : memref<4x164x129xbf16, #tpu.memory_space<vmem>>, vector<1x4x129xbf16>,
    %c4_446 = arith.constant 4 : index
    %c37_447 = arith.constant 37 : index
    %433 = vector.load %arg19[%c4_446, %c37_447] : memref<16x169xbf16, #tpu.memory_space<vmem>>, vector<4x129xbf16>
    %c1_448 = arith.constant 1 : index
    %c148_449 = arith.constant 148 : index
    %c0_450 = arith.constant 0 : index
    %434 = vector.load %arg20[%c1_448, %c148_449, %c0_450] : memref<4x164x129xbf16, #tpu.memory_space<vmem>>, vector<1x4x129xbf16>
    %435 = vector.shape_cast %434 : vector<1x4x129xbf16> to vector<4x129xbf16>
    %436 = vector.shape_cast %433 : vector<4x129xbf16> to vector<1x4x129xbf16>
    tpu.vector_store %arg20[%c1_448, %c148_449, %c0_450], %436 {strides = array<i32>} : memref<4x164x129xbf16, #tpu.memory_space<vmem>>, vector<1x4x129xbf16>,
    %c4_451 = arith.constant 4 : index
    %c38_452 = arith.constant 38 : index
    %437 = vector.load %arg19[%c4_451, %c38_452] : memref<16x169xbf16, #tpu.memory_space<vmem>>, vector<4x129xbf16>
    %c1_453 = arith.constant 1 : index
    %c152_454 = arith.constant 152 : index
    %c0_455 = arith.constant 0 : index
    %438 = vector.load %arg20[%c1_453, %c152_454, %c0_455] : memref<4x164x129xbf16, #tpu.memory_space<vmem>>, vector<1x4x129xbf16>
    %439 = vector.shape_cast %438 : vector<1x4x129xbf16> to vector<4x129xbf16>
    %440 = vector.shape_cast %437 : vector<4x129xbf16> to vector<1x4x129xbf16>
    tpu.vector_store %arg20[%c1_453, %c152_454, %c0_455], %440 {strides = array<i32>} : memref<4x164x129xbf16, #tpu.memory_space<vmem>>, vector<1x4x129xbf16>,
    %c4_456 = arith.constant 4 : index
    %c39_457 = arith.constant 39 : index
    %441 = vector.load %arg19[%c4_456, %c39_457] : memref<16x169xbf16, #tpu.memory_space<vmem>>, vector<4x129xbf16>
    %c1_458 = arith.constant 1 : index
    %c156_459 = arith.constant 156 : index
    %c0_460 = arith.constant 0 : index
    %442 = vector.load %arg20[%c1_458, %c156_459, %c0_460] : memref<4x164x129xbf16, #tpu.memory_space<vmem>>, vector<1x4x129xbf16>
    %443 = vector.shape_cast %442 : vector<1x4x129xbf16> to vector<4x129xbf16>
    %444 = vector.shape_cast %441 : vector<4x129xbf16> to vector<1x4x129xbf16>
    tpu.vector_store %arg20[%c1_458, %c156_459, %c0_460], %444 {strides = array<i32>} : memref<4x164x129xbf16, #tpu.memory_space<vmem>>, vector<1x4x129xbf16>,
    %c4_461 = arith.constant 4 : index
    %c40_462 = arith.constant 40 : index
    %445 = vector.load %arg19[%c4_461, %c40_462] : memref<16x169xbf16, #tpu.memory_space<vmem>>, vector<4x129xbf16>
    %c1_463 = arith.constant 1 : index
    %c160_464 = arith.constant 160 : index
    %c0_465 = arith.constant 0 : index
    %446 = vector.load %arg20[%c1_463, %c160_464, %c0_465] : memref<4x164x129xbf16, #tpu.memory_space<vmem>>, vector<1x4x129xbf16>
    %447 = vector.shape_cast %446 : vector<1x4x129xbf16> to vector<4x129xbf16>
    %448 = vector.shape_cast %445 : vector<4x129xbf16> to vector<1x4x129xbf16>
    tpu.vector_store %arg20[%c1_463, %c160_464, %c0_465], %448 {strides = array<i32>} : memref<4x164x129xbf16, #tpu.memory_space<vmem>>, vector<1x4x129xbf16>,
    %c1_466 = arith.constant 1 : index
    %c0_467 = arith.constant 0 : index
    %c0_468 = arith.constant 0 : index
    %449 = vector.load %arg5[%c1_466, %c0_467, %c0_468] : memref<4x8x164xbf16, #tpu.memory_space<vmem>>, vector<1x8x164xbf16>
    %450 = vector.shape_cast %449 : vector<1x8x164xbf16> to vector<8x164xbf16>
    %c1_469 = arith.constant 1 : index
    %c0_470 = arith.constant 0 : index
    %c0_471 = arith.constant 0 : index
    %451 = vector.load %arg20[%c1_469, %c0_470, %c0_471] : memref<4x164x129xbf16, #tpu.memory_space<vmem>>, vector<1x164x129xbf16>
    %452 = vector.shape_cast %451 : vector<1x164x129xbf16> to vector<164x129xbf16>
    %cst_472 = arith.constant dense<0.000000e+00> : vector<8x129xf32>
    %453 = tpu.matmul %450, %452, %cst_472 {dimension_numbers = #tpu.dot_dimension_numbers<[1], [0], [0], [1], [0, 0, 1, 1], [], []>} : vector<8x164xbf16>, vector<164x129xbf16>, vector<8x129xf32> -> vector<8x129xf32>
    %c8_473 = arith.constant 8 : index
    %c0_474 = arith.constant 0 : index
    %454 = vector.load %arg21[%c8_473, %c0_474] : memref<32x129xf32, #tpu.memory_space<vmem>>, vector<8x129xf32>
    tpu.vector_store %arg21[%c8_473, %c0_474], %453 {strides = array<i32>} : memref<32x129xf32, #tpu.memory_space<vmem>>, vector<8x129xf32>,
    %c8_475 = arith.constant 8 : index
    %c0_476 = arith.constant 0 : index
    %455 = vector.load %arg19[%c8_475, %c0_476] : memref<16x169xbf16, #tpu.memory_space<vmem>>, vector<4x129xbf16>
    %c2_477 = arith.constant 2 : index
    %c0_478 = arith.constant 0 : index
    %c0_479 = arith.constant 0 : index
    %456 = vector.load %arg20[%c2_477, %c0_478, %c0_479] : memref<4x164x129xbf16, #tpu.memory_space<vmem>>, vector<1x4x129xbf16>
    %457 = vector.shape_cast %456 : vector<1x4x129xbf16> to vector<4x129xbf16>
    %458 = vector.shape_cast %455 : vector<4x129xbf16> to vector<1x4x129xbf16>
    tpu.vector_store %arg20[%c2_477, %c0_478, %c0_479], %458 {strides = array<i32>} : memref<4x164x129xbf16, #tpu.memory_space<vmem>>, vector<1x4x129xbf16>,
    %c8_480 = arith.constant 8 : index
    %c1_481 = arith.constant 1 : index
    %459 = vector.load %arg19[%c8_480, %c1_481] : memref<16x169xbf16, #tpu.memory_space<vmem>>, vector<4x129xbf16>
    %c2_482 = arith.constant 2 : index
    %c4_483 = arith.constant 4 : index
    %c0_484 = arith.constant 0 : index
    %460 = vector.load %arg20[%c2_482, %c4_483, %c0_484] : memref<4x164x129xbf16, #tpu.memory_space<vmem>>, vector<1x4x129xbf16>
    %461 = vector.shape_cast %460 : vector<1x4x129xbf16> to vector<4x129xbf16>
    %462 = vector.shape_cast %459 : vector<4x129xbf16> to vector<1x4x129xbf16>
    tpu.vector_store %arg20[%c2_482, %c4_483, %c0_484], %462 {strides = array<i32>} : memref<4x164x129xbf16, #tpu.memory_space<vmem>>, vector<1x4x129xbf16>,
    %c8_485 = arith.constant 8 : index
    %c2_486 = arith.constant 2 : index
    %463 = vector.load %arg19[%c8_485, %c2_486] : memref<16x169xbf16, #tpu.memory_space<vmem>>, vector<4x129xbf16>
    %c2_487 = arith.constant 2 : index
    %c8_488 = arith.constant 8 : index
    %c0_489 = arith.constant 0 : index
    %464 = vector.load %arg20[%c2_487, %c8_488, %c0_489] : memref<4x164x129xbf16, #tpu.memory_space<vmem>>, vector<1x4x129xbf16>
    %465 = vector.shape_cast %464 : vector<1x4x129xbf16> to vector<4x129xbf16>
    %466 = vector.shape_cast %463 : vector<4x129xbf16> to vector<1x4x129xbf16>
    tpu.vector_store %arg20[%c2_487, %c8_488, %c0_489], %466 {strides = array<i32>} : memref<4x164x129xbf16, #tpu.memory_space<vmem>>, vector<1x4x129xbf16>,
    %c8_490 = arith.constant 8 : index
    %c3_491 = arith.constant 3 : index
    %467 = vector.load %arg19[%c8_490, %c3_491] : memref<16x169xbf16, #tpu.memory_space<vmem>>, vector<4x129xbf16>
    %c2_492 = arith.constant 2 : index
    %c12_493 = arith.constant 12 : index
    %c0_494 = arith.constant 0 : index
    %468 = vector.load %arg20[%c2_492, %c12_493, %c0_494] : memref<4x164x129xbf16, #tpu.memory_space<vmem>>, vector<1x4x129xbf16>
    %469 = vector.shape_cast %468 : vector<1x4x129xbf16> to vector<4x129xbf16>
    %470 = vector.shape_cast %467 : vector<4x129xbf16> to vector<1x4x129xbf16>
    tpu.vector_store %arg20[%c2_492, %c12_493, %c0_494], %470 {strides = array<i32>} : memref<4x164x129xbf16, #tpu.memory_space<vmem>>, vector<1x4x129xbf16>,
    %c8_495 = arith.constant 8 : index
    %c4_496 = arith.constant 4 : index
    %471 = vector.load %arg19[%c8_495, %c4_496] : memref<16x169xbf16, #tpu.memory_space<vmem>>, vector<4x129xbf16>
    %c2_497 = arith.constant 2 : index
    %c16_498 = arith.constant 16 : index
    %c0_499 = arith.constant 0 : index
    %472 = vector.load %arg20[%c2_497, %c16_498, %c0_499] : memref<4x164x129xbf16, #tpu.memory_space<vmem>>, vector<1x4x129xbf16>
    %473 = vector.shape_cast %472 : vector<1x4x129xbf16> to vector<4x129xbf16>
    %474 = vector.shape_cast %471 : vector<4x129xbf16> to vector<1x4x129xbf16>
    tpu.vector_store %arg20[%c2_497, %c16_498, %c0_499], %474 {strides = array<i32>} : memref<4x164x129xbf16, #tpu.memory_space<vmem>>, vector<1x4x129xbf16>,
    %c8_500 = arith.constant 8 : index
    %c5_501 = arith.constant 5 : index
    %475 = vector.load %arg19[%c8_500, %c5_501] : memref<16x169xbf16, #tpu.memory_space<vmem>>, vector<4x129xbf16>
    %c2_502 = arith.constant 2 : index
    %c20_503 = arith.constant 20 : index
    %c0_504 = arith.constant 0 : index
    %476 = vector.load %arg20[%c2_502, %c20_503, %c0_504] : memref<4x164x129xbf16, #tpu.memory_space<vmem>>, vector<1x4x129xbf16>
    %477 = vector.shape_cast %476 : vector<1x4x129xbf16> to vector<4x129xbf16>
    %478 = vector.shape_cast %475 : vector<4x129xbf16> to vector<1x4x129xbf16>
    tpu.vector_store %arg20[%c2_502, %c20_503, %c0_504], %478 {strides = array<i32>} : memref<4x164x129xbf16, #tpu.memory_space<vmem>>, vector<1x4x129xbf16>,
    %c8_505 = arith.constant 8 : index
    %c6_506 = arith.constant 6 : index
    %479 = vector.load %arg19[%c8_505, %c6_506] : memref<16x169xbf16, #tpu.memory_space<vmem>>, vector<4x129xbf16>
    %c2_507 = arith.constant 2 : index
    %c24_508 = arith.constant 24 : index
    %c0_509 = arith.constant 0 : index
    %480 = vector.load %arg20[%c2_507, %c24_508, %c0_509] : memref<4x164x129xbf16, #tpu.memory_space<vmem>>, vector<1x4x129xbf16>
    %481 = vector.shape_cast %480 : vector<1x4x129xbf16> to vector<4x129xbf16>
    %482 = vector.shape_cast %479 : vector<4x129xbf16> to vector<1x4x129xbf16>
    tpu.vector_store %arg20[%c2_507, %c24_508, %c0_509], %482 {strides = array<i32>} : memref<4x164x129xbf16, #tpu.memory_space<vmem>>, vector<1x4x129xbf16>,
    %c8_510 = arith.constant 8 : index
    %c7_511 = arith.constant 7 : index
    %483 = vector.load %arg19[%c8_510, %c7_511] : memref<16x169xbf16, #tpu.memory_space<vmem>>, vector<4x129xbf16>
    %c2_512 = arith.constant 2 : index
    %c28_513 = arith.constant 28 : index
    %c0_514 = arith.constant 0 : index
    %484 = vector.load %arg20[%c2_512, %c28_513, %c0_514] : memref<4x164x129xbf16, #tpu.memory_space<vmem>>, vector<1x4x129xbf16>
    %485 = vector.shape_cast %484 : vector<1x4x129xbf16> to vector<4x129xbf16>
    %486 = vector.shape_cast %483 : vector<4x129xbf16> to vector<1x4x129xbf16>
    tpu.vector_store %arg20[%c2_512, %c28_513, %c0_514], %486 {strides = array<i32>} : memref<4x164x129xbf16, #tpu.memory_space<vmem>>, vector<1x4x129xbf16>,
    %c8_515 = arith.constant 8 : index
    %c8_516 = arith.constant 8 : index
    %487 = vector.load %arg19[%c8_515, %c8_516] : memref<16x169xbf16, #tpu.memory_space<vmem>>, vector<4x129xbf16>
    %c2_517 = arith.constant 2 : index
    %c32_518 = arith.constant 32 : index
    %c0_519 = arith.constant 0 : index
    %488 = vector.load %arg20[%c2_517, %c32_518, %c0_519] : memref<4x164x129xbf16, #tpu.memory_space<vmem>>, vector<1x4x129xbf16>
    %489 = vector.shape_cast %488 : vector<1x4x129xbf16> to vector<4x129xbf16>
    %490 = vector.shape_cast %487 : vector<4x129xbf16> to vector<1x4x129xbf16>
    tpu.vector_store %arg20[%c2_517, %c32_518, %c0_519], %490 {strides = array<i32>} : memref<4x164x129xbf16, #tpu.memory_space<vmem>>, vector<1x4x129xbf16>,
    %c8_520 = arith.constant 8 : index
    %c9_521 = arith.constant 9 : index
    %491 = vector.load %arg19[%c8_520, %c9_521] : memref<16x169xbf16, #tpu.memory_space<vmem>>, vector<4x129xbf16>
    %c2_522 = arith.constant 2 : index
    %c36_523 = arith.constant 36 : index
    %c0_524 = arith.constant 0 : index
    %492 = vector.load %arg20[%c2_522, %c36_523, %c0_524] : memref<4x164x129xbf16, #tpu.memory_space<vmem>>, vector<1x4x129xbf16>
    %493 = vector.shape_cast %492 : vector<1x4x129xbf16> to vector<4x129xbf16>
    %494 = vector.shape_cast %491 : vector<4x129xbf16> to vector<1x4x129xbf16>
    tpu.vector_store %arg20[%c2_522, %c36_523, %c0_524], %494 {strides = array<i32>} : memref<4x164x129xbf16, #tpu.memory_space<vmem>>, vector<1x4x129xbf16>,
    %c8_525 = arith.constant 8 : index
    %c10_526 = arith.constant 10 : index
    %495 = vector.load %arg19[%c8_525, %c10_526] : memref<16x169xbf16, #tpu.memory_space<vmem>>, vector<4x129xbf16>
    %c2_527 = arith.constant 2 : index
    %c40_528 = arith.constant 40 : index
    %c0_529 = arith.constant 0 : index
    %496 = vector.load %arg20[%c2_527, %c40_528, %c0_529] : memref<4x164x129xbf16, #tpu.memory_space<vmem>>, vector<1x4x129xbf16>
    %497 = vector.shape_cast %496 : vector<1x4x129xbf16> to vector<4x129xbf16>
    %498 = vector.shape_cast %495 : vector<4x129xbf16> to vector<1x4x129xbf16>
    tpu.vector_store %arg20[%c2_527, %c40_528, %c0_529], %498 {strides = array<i32>} : memref<4x164x129xbf16, #tpu.memory_space<vmem>>, vector<1x4x129xbf16>,
    %c8_530 = arith.constant 8 : index
    %c11_531 = arith.constant 11 : index
    %499 = vector.load %arg19[%c8_530, %c11_531] : memref<16x169xbf16, #tpu.memory_space<vmem>>, vector<4x129xbf16>
    %c2_532 = arith.constant 2 : index
    %c44_533 = arith.constant 44 : index
    %c0_534 = arith.constant 0 : index
    %500 = vector.load %arg20[%c2_532, %c44_533, %c0_534] : memref<4x164x129xbf16, #tpu.memory_space<vmem>>, vector<1x4x129xbf16>
    %501 = vector.shape_cast %500 : vector<1x4x129xbf16> to vector<4x129xbf16>
    %502 = vector.shape_cast %499 : vector<4x129xbf16> to vector<1x4x129xbf16>
    tpu.vector_store %arg20[%c2_532, %c44_533, %c0_534], %502 {strides = array<i32>} : memref<4x164x129xbf16, #tpu.memory_space<vmem>>, vector<1x4x129xbf16>,
    %c8_535 = arith.constant 8 : index
    %c12_536 = arith.constant 12 : index
    %503 = vector.load %arg19[%c8_535, %c12_536] : memref<16x169xbf16, #tpu.memory_space<vmem>>, vector<4x129xbf16>
    %c2_537 = arith.constant 2 : index
    %c48_538 = arith.constant 48 : index
    %c0_539 = arith.constant 0 : index
    %504 = vector.load %arg20[%c2_537, %c48_538, %c0_539] : memref<4x164x129xbf16, #tpu.memory_space<vmem>>, vector<1x4x129xbf16>
    %505 = vector.shape_cast %504 : vector<1x4x129xbf16> to vector<4x129xbf16>
    %506 = vector.shape_cast %503 : vector<4x129xbf16> to vector<1x4x129xbf16>
    tpu.vector_store %arg20[%c2_537, %c48_538, %c0_539], %506 {strides = array<i32>} : memref<4x164x129xbf16, #tpu.memory_space<vmem>>, vector<1x4x129xbf16>,
    %c8_540 = arith.constant 8 : index
    %c13_541 = arith.constant 13 : index
    %507 = vector.load %arg19[%c8_540, %c13_541] : memref<16x169xbf16, #tpu.memory_space<vmem>>, vector<4x129xbf16>
    %c2_542 = arith.constant 2 : index
    %c52_543 = arith.constant 52 : index
    %c0_544 = arith.constant 0 : index
    %508 = vector.load %arg20[%c2_542, %c52_543, %c0_544] : memref<4x164x129xbf16, #tpu.memory_space<vmem>>, vector<1x4x129xbf16>
    %509 = vector.shape_cast %508 : vector<1x4x129xbf16> to vector<4x129xbf16>
    %510 = vector.shape_cast %507 : vector<4x129xbf16> to vector<1x4x129xbf16>
    tpu.vector_store %arg20[%c2_542, %c52_543, %c0_544], %510 {strides = array<i32>} : memref<4x164x129xbf16, #tpu.memory_space<vmem>>, vector<1x4x129xbf16>,
    %c8_545 = arith.constant 8 : index
    %c14_546 = arith.constant 14 : index
    %511 = vector.load %arg19[%c8_545, %c14_546] : memref<16x169xbf16, #tpu.memory_space<vmem>>, vector<4x129xbf16>
    %c2_547 = arith.constant 2 : index
    %c56_548 = arith.constant 56 : index
    %c0_549 = arith.constant 0 : index
    %512 = vector.load %arg20[%c2_547, %c56_548, %c0_549] : memref<4x164x129xbf16, #tpu.memory_space<vmem>>, vector<1x4x129xbf16>
    %513 = vector.shape_cast %512 : vector<1x4x129xbf16> to vector<4x129xbf16>
    %514 = vector.shape_cast %511 : vector<4x129xbf16> to vector<1x4x129xbf16>
    tpu.vector_store %arg20[%c2_547, %c56_548, %c0_549], %514 {strides = array<i32>} : memref<4x164x129xbf16, #tpu.memory_space<vmem>>, vector<1x4x129xbf16>,
    %c8_550 = arith.constant 8 : index
    %c15_551 = arith.constant 15 : index
    %515 = vector.load %arg19[%c8_550, %c15_551] : memref<16x169xbf16, #tpu.memory_space<vmem>>, vector<4x129xbf16>
    %c2_552 = arith.constant 2 : index
    %c60_553 = arith.constant 60 : index
    %c0_554 = arith.constant 0 : index
    %516 = vector.load %arg20[%c2_552, %c60_553, %c0_554] : memref<4x164x129xbf16, #tpu.memory_space<vmem>>, vector<1x4x129xbf16>
    %517 = vector.shape_cast %516 : vector<1x4x129xbf16> to vector<4x129xbf16>
    %518 = vector.shape_cast %515 : vector<4x129xbf16> to vector<1x4x129xbf16>
    tpu.vector_store %arg20[%c2_552, %c60_553, %c0_554], %518 {strides = array<i32>} : memref<4x164x129xbf16, #tpu.memory_space<vmem>>, vector<1x4x129xbf16>,
    %c8_555 = arith.constant 8 : index
    %c16_556 = arith.constant 16 : index
    %519 = vector.load %arg19[%c8_555, %c16_556] : memref<16x169xbf16, #tpu.memory_space<vmem>>, vector<4x129xbf16>
    %c2_557 = arith.constant 2 : index
    %c64_558 = arith.constant 64 : index
    %c0_559 = arith.constant 0 : index
    %520 = vector.load %arg20[%c2_557, %c64_558, %c0_559] : memref<4x164x129xbf16, #tpu.memory_space<vmem>>, vector<1x4x129xbf16>
    %521 = vector.shape_cast %520 : vector<1x4x129xbf16> to vector<4x129xbf16>
    %522 = vector.shape_cast %519 : vector<4x129xbf16> to vector<1x4x129xbf16>
    tpu.vector_store %arg20[%c2_557, %c64_558, %c0_559], %522 {strides = array<i32>} : memref<4x164x129xbf16, #tpu.memory_space<vmem>>, vector<1x4x129xbf16>,
    %c8_560 = arith.constant 8 : index
    %c17_561 = arith.constant 17 : index
    %523 = vector.load %arg19[%c8_560, %c17_561] : memref<16x169xbf16, #tpu.memory_space<vmem>>, vector<4x129xbf16>
    %c2_562 = arith.constant 2 : index
    %c68_563 = arith.constant 68 : index
    %c0_564 = arith.constant 0 : index
    %524 = vector.load %arg20[%c2_562, %c68_563, %c0_564] : memref<4x164x129xbf16, #tpu.memory_space<vmem>>, vector<1x4x129xbf16>
    %525 = vector.shape_cast %524 : vector<1x4x129xbf16> to vector<4x129xbf16>
    %526 = vector.shape_cast %523 : vector<4x129xbf16> to vector<1x4x129xbf16>
    tpu.vector_store %arg20[%c2_562, %c68_563, %c0_564], %526 {strides = array<i32>} : memref<4x164x129xbf16, #tpu.memory_space<vmem>>, vector<1x4x129xbf16>,
    %c8_565 = arith.constant 8 : index
    %c18_566 = arith.constant 18 : index
    %527 = vector.load %arg19[%c8_565, %c18_566] : memref<16x169xbf16, #tpu.memory_space<vmem>>, vector<4x129xbf16>
    %c2_567 = arith.constant 2 : index
    %c72_568 = arith.constant 72 : index
    %c0_569 = arith.constant 0 : index
    %528 = vector.load %arg20[%c2_567, %c72_568, %c0_569] : memref<4x164x129xbf16, #tpu.memory_space<vmem>>, vector<1x4x129xbf16>
    %529 = vector.shape_cast %528 : vector<1x4x129xbf16> to vector<4x129xbf16>
    %530 = vector.shape_cast %527 : vector<4x129xbf16> to vector<1x4x129xbf16>
    tpu.vector_store %arg20[%c2_567, %c72_568, %c0_569], %530 {strides = array<i32>} : memref<4x164x129xbf16, #tpu.memory_space<vmem>>, vector<1x4x129xbf16>,
    %c8_570 = arith.constant 8 : index
    %c19_571 = arith.constant 19 : index
    %531 = vector.load %arg19[%c8_570, %c19_571] : memref<16x169xbf16, #tpu.memory_space<vmem>>, vector<4x129xbf16>
    %c2_572 = arith.constant 2 : index
    %c76_573 = arith.constant 76 : index
    %c0_574 = arith.constant 0 : index
    %532 = vector.load %arg20[%c2_572, %c76_573, %c0_574] : memref<4x164x129xbf16, #tpu.memory_space<vmem>>, vector<1x4x129xbf16>
    %533 = vector.shape_cast %532 : vector<1x4x129xbf16> to vector<4x129xbf16>
    %534 = vector.shape_cast %531 : vector<4x129xbf16> to vector<1x4x129xbf16>
    tpu.vector_store %arg20[%c2_572, %c76_573, %c0_574], %534 {strides = array<i32>} : memref<4x164x129xbf16, #tpu.memory_space<vmem>>, vector<1x4x129xbf16>,
    %c8_575 = arith.constant 8 : index
    %c20_576 = arith.constant 20 : index
    %535 = vector.load %arg19[%c8_575, %c20_576] : memref<16x169xbf16, #tpu.memory_space<vmem>>, vector<4x129xbf16>
    %c2_577 = arith.constant 2 : index
    %c80_578 = arith.constant 80 : index
    %c0_579 = arith.constant 0 : index
    %536 = vector.load %arg20[%c2_577, %c80_578, %c0_579] : memref<4x164x129xbf16, #tpu.memory_space<vmem>>, vector<1x4x129xbf16>
    %537 = vector.shape_cast %536 : vector<1x4x129xbf16> to vector<4x129xbf16>
    %538 = vector.shape_cast %535 : vector<4x129xbf16> to vector<1x4x129xbf16>
    tpu.vector_store %arg20[%c2_577, %c80_578, %c0_579], %538 {strides = array<i32>} : memref<4x164x129xbf16, #tpu.memory_space<vmem>>, vector<1x4x129xbf16>,
    %c8_580 = arith.constant 8 : index
    %c21_581 = arith.constant 21 : index
    %539 = vector.load %arg19[%c8_580, %c21_581] : memref<16x169xbf16, #tpu.memory_space<vmem>>, vector<4x129xbf16>
    %c2_582 = arith.constant 2 : index
    %c84_583 = arith.constant 84 : index
    %c0_584 = arith.constant 0 : index
    %540 = vector.load %arg20[%c2_582, %c84_583, %c0_584] : memref<4x164x129xbf16, #tpu.memory_space<vmem>>, vector<1x4x129xbf16>
    %541 = vector.shape_cast %540 : vector<1x4x129xbf16> to vector<4x129xbf16>
    %542 = vector.shape_cast %539 : vector<4x129xbf16> to vector<1x4x129xbf16>
    tpu.vector_store %arg20[%c2_582, %c84_583, %c0_584], %542 {strides = array<i32>} : memref<4x164x129xbf16, #tpu.memory_space<vmem>>, vector<1x4x129xbf16>,
    %c8_585 = arith.constant 8 : index
    %c22_586 = arith.constant 22 : index
    %543 = vector.load %arg19[%c8_585, %c22_586] : memref<16x169xbf16, #tpu.memory_space<vmem>>, vector<4x129xbf16>
    %c2_587 = arith.constant 2 : index
    %c88_588 = arith.constant 88 : index
    %c0_589 = arith.constant 0 : index
    %544 = vector.load %arg20[%c2_587, %c88_588, %c0_589] : memref<4x164x129xbf16, #tpu.memory_space<vmem>>, vector<1x4x129xbf16>
    %545 = vector.shape_cast %544 : vector<1x4x129xbf16> to vector<4x129xbf16>
    %546 = vector.shape_cast %543 : vector<4x129xbf16> to vector<1x4x129xbf16>
    tpu.vector_store %arg20[%c2_587, %c88_588, %c0_589], %546 {strides = array<i32>} : memref<4x164x129xbf16, #tpu.memory_space<vmem>>, vector<1x4x129xbf16>,
    %c8_590 = arith.constant 8 : index
    %c23_591 = arith.constant 23 : index
    %547 = vector.load %arg19[%c8_590, %c23_591] : memref<16x169xbf16, #tpu.memory_space<vmem>>, vector<4x129xbf16>
    %c2_592 = arith.constant 2 : index
    %c92_593 = arith.constant 92 : index
    %c0_594 = arith.constant 0 : index
    %548 = vector.load %arg20[%c2_592, %c92_593, %c0_594] : memref<4x164x129xbf16, #tpu.memory_space<vmem>>, vector<1x4x129xbf16>
    %549 = vector.shape_cast %548 : vector<1x4x129xbf16> to vector<4x129xbf16>
    %550 = vector.shape_cast %547 : vector<4x129xbf16> to vector<1x4x129xbf16>
    tpu.vector_store %arg20[%c2_592, %c92_593, %c0_594], %550 {strides = array<i32>} : memref<4x164x129xbf16, #tpu.memory_space<vmem>>, vector<1x4x129xbf16>,
    %c8_595 = arith.constant 8 : index
    %c24_596 = arith.constant 24 : index
    %551 = vector.load %arg19[%c8_595, %c24_596] : memref<16x169xbf16, #tpu.memory_space<vmem>>, vector<4x129xbf16>
    %c2_597 = arith.constant 2 : index
    %c96_598 = arith.constant 96 : index
    %c0_599 = arith.constant 0 : index
    %552 = vector.load %arg20[%c2_597, %c96_598, %c0_599] : memref<4x164x129xbf16, #tpu.memory_space<vmem>>, vector<1x4x129xbf16>
    %553 = vector.shape_cast %552 : vector<1x4x129xbf16> to vector<4x129xbf16>
    %554 = vector.shape_cast %551 : vector<4x129xbf16> to vector<1x4x129xbf16>
    tpu.vector_store %arg20[%c2_597, %c96_598, %c0_599], %554 {strides = array<i32>} : memref<4x164x129xbf16, #tpu.memory_space<vmem>>, vector<1x4x129xbf16>,
    %c8_600 = arith.constant 8 : index
    %c25_601 = arith.constant 25 : index
    %555 = vector.load %arg19[%c8_600, %c25_601] : memref<16x169xbf16, #tpu.memory_space<vmem>>, vector<4x129xbf16>
    %c2_602 = arith.constant 2 : index
    %c100_603 = arith.constant 100 : index
    %c0_604 = arith.constant 0 : index
    %556 = vector.load %arg20[%c2_602, %c100_603, %c0_604] : memref<4x164x129xbf16, #tpu.memory_space<vmem>>, vector<1x4x129xbf16>
    %557 = vector.shape_cast %556 : vector<1x4x129xbf16> to vector<4x129xbf16>
    %558 = vector.shape_cast %555 : vector<4x129xbf16> to vector<1x4x129xbf16>
    tpu.vector_store %arg20[%c2_602, %c100_603, %c0_604], %558 {strides = array<i32>} : memref<4x164x129xbf16, #tpu.memory_space<vmem>>, vector<1x4x129xbf16>,
    %c8_605 = arith.constant 8 : index
    %c26_606 = arith.constant 26 : index
    %559 = vector.load %arg19[%c8_605, %c26_606] : memref<16x169xbf16, #tpu.memory_space<vmem>>, vector<4x129xbf16>
    %c2_607 = arith.constant 2 : index
    %c104_608 = arith.constant 104 : index
    %c0_609 = arith.constant 0 : index
    %560 = vector.load %arg20[%c2_607, %c104_608, %c0_609] : memref<4x164x129xbf16, #tpu.memory_space<vmem>>, vector<1x4x129xbf16>
    %561 = vector.shape_cast %560 : vector<1x4x129xbf16> to vector<4x129xbf16>
    %562 = vector.shape_cast %559 : vector<4x129xbf16> to vector<1x4x129xbf16>
    tpu.vector_store %arg20[%c2_607, %c104_608, %c0_609], %562 {strides = array<i32>} : memref<4x164x129xbf16, #tpu.memory_space<vmem>>, vector<1x4x129xbf16>,
    %c8_610 = arith.constant 8 : index
    %c27_611 = arith.constant 27 : index
    %563 = vector.load %arg19[%c8_610, %c27_611] : memref<16x169xbf16, #tpu.memory_space<vmem>>, vector<4x129xbf16>
    %c2_612 = arith.constant 2 : index
    %c108_613 = arith.constant 108 : index
    %c0_614 = arith.constant 0 : index
    %564 = vector.load %arg20[%c2_612, %c108_613, %c0_614] : memref<4x164x129xbf16, #tpu.memory_space<vmem>>, vector<1x4x129xbf16>
    %565 = vector.shape_cast %564 : vector<1x4x129xbf16> to vector<4x129xbf16>
    %566 = vector.shape_cast %563 : vector<4x129xbf16> to vector<1x4x129xbf16>
    tpu.vector_store %arg20[%c2_612, %c108_613, %c0_614], %566 {strides = array<i32>} : memref<4x164x129xbf16, #tpu.memory_space<vmem>>, vector<1x4x129xbf16>,
    %c8_615 = arith.constant 8 : index
    %c28_616 = arith.constant 28 : index
    %567 = vector.load %arg19[%c8_615, %c28_616] : memref<16x169xbf16, #tpu.memory_space<vmem>>, vector<4x129xbf16>
    %c2_617 = arith.constant 2 : index
    %c112_618 = arith.constant 112 : index
    %c0_619 = arith.constant 0 : index
    %568 = vector.load %arg20[%c2_617, %c112_618, %c0_619] : memref<4x164x129xbf16, #tpu.memory_space<vmem>>, vector<1x4x129xbf16>
    %569 = vector.shape_cast %568 : vector<1x4x129xbf16> to vector<4x129xbf16>
    %570 = vector.shape_cast %567 : vector<4x129xbf16> to vector<1x4x129xbf16>
    tpu.vector_store %arg20[%c2_617, %c112_618, %c0_619], %570 {strides = array<i32>} : memref<4x164x129xbf16, #tpu.memory_space<vmem>>, vector<1x4x129xbf16>,
    %c8_620 = arith.constant 8 : index
    %c29_621 = arith.constant 29 : index
    %571 = vector.load %arg19[%c8_620, %c29_621] : memref<16x169xbf16, #tpu.memory_space<vmem>>, vector<4x129xbf16>
    %c2_622 = arith.constant 2 : index
    %c116_623 = arith.constant 116 : index
    %c0_624 = arith.constant 0 : index
    %572 = vector.load %arg20[%c2_622, %c116_623, %c0_624] : memref<4x164x129xbf16, #tpu.memory_space<vmem>>, vector<1x4x129xbf16>
    %573 = vector.shape_cast %572 : vector<1x4x129xbf16> to vector<4x129xbf16>
    %574 = vector.shape_cast %571 : vector<4x129xbf16> to vector<1x4x129xbf16>
    tpu.vector_store %arg20[%c2_622, %c116_623, %c0_624], %574 {strides = array<i32>} : memref<4x164x129xbf16, #tpu.memory_space<vmem>>, vector<1x4x129xbf16>,
    %c8_625 = arith.constant 8 : index
    %c30_626 = arith.constant 30 : index
    %575 = vector.load %arg19[%c8_625, %c30_626] : memref<16x169xbf16, #tpu.memory_space<vmem>>, vector<4x129xbf16>
    %c2_627 = arith.constant 2 : index
    %c120_628 = arith.constant 120 : index
    %c0_629 = arith.constant 0 : index
    %576 = vector.load %arg20[%c2_627, %c120_628, %c0_629] : memref<4x164x129xbf16, #tpu.memory_space<vmem>>, vector<1x4x129xbf16>
    %577 = vector.shape_cast %576 : vector<1x4x129xbf16> to vector<4x129xbf16>
    %578 = vector.shape_cast %575 : vector<4x129xbf16> to vector<1x4x129xbf16>
    tpu.vector_store %arg20[%c2_627, %c120_628, %c0_629], %578 {strides = array<i32>} : memref<4x164x129xbf16, #tpu.memory_space<vmem>>, vector<1x4x129xbf16>,
    %c8_630 = arith.constant 8 : index
    %c31_631 = arith.constant 31 : index
    %579 = vector.load %arg19[%c8_630, %c31_631] : memref<16x169xbf16, #tpu.memory_space<vmem>>, vector<4x129xbf16>
    %c2_632 = arith.constant 2 : index
    %c124_633 = arith.constant 124 : index
    %c0_634 = arith.constant 0 : index
    %580 = vector.load %arg20[%c2_632, %c124_633, %c0_634] : memref<4x164x129xbf16, #tpu.memory_space<vmem>>, vector<1x4x129xbf16>
    %581 = vector.shape_cast %580 : vector<1x4x129xbf16> to vector<4x129xbf16>
    %582 = vector.shape_cast %579 : vector<4x129xbf16> to vector<1x4x129xbf16>
    tpu.vector_store %arg20[%c2_632, %c124_633, %c0_634], %582 {strides = array<i32>} : memref<4x164x129xbf16, #tpu.memory_space<vmem>>, vector<1x4x129xbf16>,
    %c8_635 = arith.constant 8 : index
    %c32_636 = arith.constant 32 : index
    %583 = vector.load %arg19[%c8_635, %c32_636] : memref<16x169xbf16, #tpu.memory_space<vmem>>, vector<4x129xbf16>
    %c2_637 = arith.constant 2 : index
    %c128_638 = arith.constant 128 : index
    %c0_639 = arith.constant 0 : index
    %584 = vector.load %arg20[%c2_637, %c128_638, %c0_639] : memref<4x164x129xbf16, #tpu.memory_space<vmem>>, vector<1x4x129xbf16>
    %585 = vector.shape_cast %584 : vector<1x4x129xbf16> to vector<4x129xbf16>
    %586 = vector.shape_cast %583 : vector<4x129xbf16> to vector<1x4x129xbf16>
    tpu.vector_store %arg20[%c2_637, %c128_638, %c0_639], %586 {strides = array<i32>} : memref<4x164x129xbf16, #tpu.memory_space<vmem>>, vector<1x4x129xbf16>,
    %c8_640 = arith.constant 8 : index
    %c33_641 = arith.constant 33 : index
    %587 = vector.load %arg19[%c8_640, %c33_641] : memref<16x169xbf16, #tpu.memory_space<vmem>>, vector<4x129xbf16>
    %c2_642 = arith.constant 2 : index
    %c132_643 = arith.constant 132 : index
    %c0_644 = arith.constant 0 : index
    %588 = vector.load %arg20[%c2_642, %c132_643, %c0_644] : memref<4x164x129xbf16, #tpu.memory_space<vmem>>, vector<1x4x129xbf16>
    %589 = vector.shape_cast %588 : vector<1x4x129xbf16> to vector<4x129xbf16>
    %590 = vector.shape_cast %587 : vector<4x129xbf16> to vector<1x4x129xbf16>
    tpu.vector_store %arg20[%c2_642, %c132_643, %c0_644], %590 {strides = array<i32>} : memref<4x164x129xbf16, #tpu.memory_space<vmem>>, vector<1x4x129xbf16>,
    %c8_645 = arith.constant 8 : index
    %c34_646 = arith.constant 34 : index
    %591 = vector.load %arg19[%c8_645, %c34_646] : memref<16x169xbf16, #tpu.memory_space<vmem>>, vector<4x129xbf16>
    %c2_647 = arith.constant 2 : index
    %c136_648 = arith.constant 136 : index
    %c0_649 = arith.constant 0 : index
    %592 = vector.load %arg20[%c2_647, %c136_648, %c0_649] : memref<4x164x129xbf16, #tpu.memory_space<vmem>>, vector<1x4x129xbf16>
    %593 = vector.shape_cast %592 : vector<1x4x129xbf16> to vector<4x129xbf16>
    %594 = vector.shape_cast %591 : vector<4x129xbf16> to vector<1x4x129xbf16>
    tpu.vector_store %arg20[%c2_647, %c136_648, %c0_649], %594 {strides = array<i32>} : memref<4x164x129xbf16, #tpu.memory_space<vmem>>, vector<1x4x129xbf16>,
    %c8_650 = arith.constant 8 : index
    %c35_651 = arith.constant 35 : index
    %595 = vector.load %arg19[%c8_650, %c35_651] : memref<16x169xbf16, #tpu.memory_space<vmem>>, vector<4x129xbf16>
    %c2_652 = arith.constant 2 : index
    %c140_653 = arith.constant 140 : index
    %c0_654 = arith.constant 0 : index
    %596 = vector.load %arg20[%c2_652, %c140_653, %c0_654] : memref<4x164x129xbf16, #tpu.memory_space<vmem>>, vector<1x4x129xbf16>
    %597 = vector.shape_cast %596 : vector<1x4x129xbf16> to vector<4x129xbf16>
    %598 = vector.shape_cast %595 : vector<4x129xbf16> to vector<1x4x129xbf16>
    tpu.vector_store %arg20[%c2_652, %c140_653, %c0_654], %598 {strides = array<i32>} : memref<4x164x129xbf16, #tpu.memory_space<vmem>>, vector<1x4x129xbf16>,
    %c8_655 = arith.constant 8 : index
    %c36_656 = arith.constant 36 : index
    %599 = vector.load %arg19[%c8_655, %c36_656] : memref<16x169xbf16, #tpu.memory_space<vmem>>, vector<4x129xbf16>
    %c2_657 = arith.constant 2 : index
    %c144_658 = arith.constant 144 : index
    %c0_659 = arith.constant 0 : index
    %600 = vector.load %arg20[%c2_657, %c144_658, %c0_659] : memref<4x164x129xbf16, #tpu.memory_space<vmem>>, vector<1x4x129xbf16>
    %601 = vector.shape_cast %600 : vector<1x4x129xbf16> to vector<4x129xbf16>
    %602 = vector.shape_cast %599 : vector<4x129xbf16> to vector<1x4x129xbf16>
    tpu.vector_store %arg20[%c2_657, %c144_658, %c0_659], %602 {strides = array<i32>} : memref<4x164x129xbf16, #tpu.memory_space<vmem>>, vector<1x4x129xbf16>,
    %c8_660 = arith.constant 8 : index
    %c37_661 = arith.constant 37 : index
    %603 = vector.load %arg19[%c8_660, %c37_661] : memref<16x169xbf16, #tpu.memory_space<vmem>>, vector<4x129xbf16>
    %c2_662 = arith.constant 2 : index
    %c148_663 = arith.constant 148 : index
    %c0_664 = arith.constant 0 : index
    %604 = vector.load %arg20[%c2_662, %c148_663, %c0_664] : memref<4x164x129xbf16, #tpu.memory_space<vmem>>, vector<1x4x129xbf16>
    %605 = vector.shape_cast %604 : vector<1x4x129xbf16> to vector<4x129xbf16>
    %606 = vector.shape_cast %603 : vector<4x129xbf16> to vector<1x4x129xbf16>
    tpu.vector_store %arg20[%c2_662, %c148_663, %c0_664], %606 {strides = array<i32>} : memref<4x164x129xbf16, #tpu.memory_space<vmem>>, vector<1x4x129xbf16>,
    %c8_665 = arith.constant 8 : index
    %c38_666 = arith.constant 38 : index
    %607 = vector.load %arg19[%c8_665, %c38_666] : memref<16x169xbf16, #tpu.memory_space<vmem>>, vector<4x129xbf16>
    %c2_667 = arith.constant 2 : index
    %c152_668 = arith.constant 152 : index
    %c0_669 = arith.constant 0 : index
    %608 = vector.load %arg20[%c2_667, %c152_668, %c0_669] : memref<4x164x129xbf16, #tpu.memory_space<vmem>>, vector<1x4x129xbf16>
    %609 = vector.shape_cast %608 : vector<1x4x129xbf16> to vector<4x129xbf16>
    %610 = vector.shape_cast %607 : vector<4x129xbf16> to vector<1x4x129xbf16>
    tpu.vector_store %arg20[%c2_667, %c152_668, %c0_669], %610 {strides = array<i32>} : memref<4x164x129xbf16, #tpu.memory_space<vmem>>, vector<1x4x129xbf16>,
    %c8_670 = arith.constant 8 : index
    %c39_671 = arith.constant 39 : index
    %611 = vector.load %arg19[%c8_670, %c39_671] : memref<16x169xbf16, #tpu.memory_space<vmem>>, vector<4x129xbf16>
    %c2_672 = arith.constant 2 : index
    %c156_673 = arith.constant 156 : index
    %c0_674 = arith.constant 0 : index
    %612 = vector.load %arg20[%c2_672, %c156_673, %c0_674] : memref<4x164x129xbf16, #tpu.memory_space<vmem>>, vector<1x4x129xbf16>
    %613 = vector.shape_cast %612 : vector<1x4x129xbf16> to vector<4x129xbf16>
    %614 = vector.shape_cast %611 : vector<4x129xbf16> to vector<1x4x129xbf16>
    tpu.vector_store %arg20[%c2_672, %c156_673, %c0_674], %614 {strides = array<i32>} : memref<4x164x129xbf16, #tpu.memory_space<vmem>>, vector<1x4x129xbf16>,
    %c8_675 = arith.constant 8 : index
    %c40_676 = arith.constant 40 : index
    %615 = vector.load %arg19[%c8_675, %c40_676] : memref<16x169xbf16, #tpu.memory_space<vmem>>, vector<4x129xbf16>
    %c2_677 = arith.constant 2 : index
    %c160_678 = arith.constant 160 : index
    %c0_679 = arith.constant 0 : index
    %616 = vector.load %arg20[%c2_677, %c160_678, %c0_679] : memref<4x164x129xbf16, #tpu.memory_space<vmem>>, vector<1x4x129xbf16>
    %617 = vector.shape_cast %616 : vector<1x4x129xbf16> to vector<4x129xbf16>
    %618 = vector.shape_cast %615 : vector<4x129xbf16> to vector<1x4x129xbf16>
    tpu.vector_store %arg20[%c2_677, %c160_678, %c0_679], %618 {strides = array<i32>} : memref<4x164x129xbf16, #tpu.memory_space<vmem>>, vector<1x4x129xbf16>,
    %c2_680 = arith.constant 2 : index
    %c0_681 = arith.constant 0 : index
    %c0_682 = arith.constant 0 : index
    %619 = vector.load %arg5[%c2_680, %c0_681, %c0_682] : memref<4x8x164xbf16, #tpu.memory_space<vmem>>, vector<1x8x164xbf16>
    %620 = vector.shape_cast %619 : vector<1x8x164xbf16> to vector<8x164xbf16>
    %c2_683 = arith.constant 2 : index
    %c0_684 = arith.constant 0 : index
    %c0_685 = arith.constant 0 : index
    %621 = vector.load %arg20[%c2_683, %c0_684, %c0_685] : memref<4x164x129xbf16, #tpu.memory_space<vmem>>, vector<1x164x129xbf16>
    %622 = vector.shape_cast %621 : vector<1x164x129xbf16> to vector<164x129xbf16>
    %cst_686 = arith.constant dense<0.000000e+00> : vector<8x129xf32>
    %623 = tpu.matmul %620, %622, %cst_686 {dimension_numbers = #tpu.dot_dimension_numbers<[1], [0], [0], [1], [0, 0, 1, 1], [], []>} : vector<8x164xbf16>, vector<164x129xbf16>, vector<8x129xf32> -> vector<8x129xf32>
    %c16_687 = arith.constant 16 : index
    %c0_688 = arith.constant 0 : index
    %624 = vector.load %arg21[%c16_687, %c0_688] : memref<32x129xf32, #tpu.memory_space<vmem>>, vector<8x129xf32>
    tpu.vector_store %arg21[%c16_687, %c0_688], %623 {strides = array<i32>} : memref<32x129xf32, #tpu.memory_space<vmem>>, vector<8x129xf32>,
    %c12_689 = arith.constant 12 : index
    %c0_690 = arith.constant 0 : index
    %625 = vector.load %arg19[%c12_689, %c0_690] : memref<16x169xbf16, #tpu.memory_space<vmem>>, vector<4x129xbf16>
    %c3_691 = arith.constant 3 : index
    %c0_692 = arith.constant 0 : index
    %c0_693 = arith.constant 0 : index
    %626 = vector.load %arg20[%c3_691, %c0_692, %c0_693] : memref<4x164x129xbf16, #tpu.memory_space<vmem>>, vector<1x4x129xbf16>
    %627 = vector.shape_cast %626 : vector<1x4x129xbf16> to vector<4x129xbf16>
    %628 = vector.shape_cast %625 : vector<4x129xbf16> to vector<1x4x129xbf16>
    tpu.vector_store %arg20[%c3_691, %c0_692, %c0_693], %628 {strides = array<i32>} : memref<4x164x129xbf16, #tpu.memory_space<vmem>>, vector<1x4x129xbf16>,
    %c12_694 = arith.constant 12 : index
    %c1_695 = arith.constant 1 : index
    %629 = vector.load %arg19[%c12_694, %c1_695] : memref<16x169xbf16, #tpu.memory_space<vmem>>, vector<4x129xbf16>
    %c3_696 = arith.constant 3 : index
    %c4_697 = arith.constant 4 : index
    %c0_698 = arith.constant 0 : index
    %630 = vector.load %arg20[%c3_696, %c4_697, %c0_698] : memref<4x164x129xbf16, #tpu.memory_space<vmem>>, vector<1x4x129xbf16>
    %631 = vector.shape_cast %630 : vector<1x4x129xbf16> to vector<4x129xbf16>
    %632 = vector.shape_cast %629 : vector<4x129xbf16> to vector<1x4x129xbf16>
    tpu.vector_store %arg20[%c3_696, %c4_697, %c0_698], %632 {strides = array<i32>} : memref<4x164x129xbf16, #tpu.memory_space<vmem>>, vector<1x4x129xbf16>,
    %c12_699 = arith.constant 12 : index
    %c2_700 = arith.constant 2 : index
    %633 = vector.load %arg19[%c12_699, %c2_700] : memref<16x169xbf16, #tpu.memory_space<vmem>>, vector<4x129xbf16>
    %c3_701 = arith.constant 3 : index
    %c8_702 = arith.constant 8 : index
    %c0_703 = arith.constant 0 : index
    %634 = vector.load %arg20[%c3_701, %c8_702, %c0_703] : memref<4x164x129xbf16, #tpu.memory_space<vmem>>, vector<1x4x129xbf16>
    %635 = vector.shape_cast %634 : vector<1x4x129xbf16> to vector<4x129xbf16>
    %636 = vector.shape_cast %633 : vector<4x129xbf16> to vector<1x4x129xbf16>
    tpu.vector_store %arg20[%c3_701, %c8_702, %c0_703], %636 {strides = array<i32>} : memref<4x164x129xbf16, #tpu.memory_space<vmem>>, vector<1x4x129xbf16>,
    %c12_704 = arith.constant 12 : index
    %c3_705 = arith.constant 3 : index
    %637 = vector.load %arg19[%c12_704, %c3_705] : memref<16x169xbf16, #tpu.memory_space<vmem>>, vector<4x129xbf16>
    %c3_706 = arith.constant 3 : index
    %c12_707 = arith.constant 12 : index
    %c0_708 = arith.constant 0 : index
    %638 = vector.load %arg20[%c3_706, %c12_707, %c0_708] : memref<4x164x129xbf16, #tpu.memory_space<vmem>>, vector<1x4x129xbf16>
    %639 = vector.shape_cast %638 : vector<1x4x129xbf16> to vector<4x129xbf16>
    %640 = vector.shape_cast %637 : vector<4x129xbf16> to vector<1x4x129xbf16>
    tpu.vector_store %arg20[%c3_706, %c12_707, %c0_708], %640 {strides = array<i32>} : memref<4x164x129xbf16, #tpu.memory_space<vmem>>, vector<1x4x129xbf16>,
    %c12_709 = arith.constant 12 : index
    %c4_710 = arith.constant 4 : index
    %641 = vector.load %arg19[%c12_709, %c4_710] : memref<16x169xbf16, #tpu.memory_space<vmem>>, vector<4x129xbf16>
    %c3_711 = arith.constant 3 : index
    %c16_712 = arith.constant 16 : index
    %c0_713 = arith.constant 0 : index
    %642 = vector.load %arg20[%c3_711, %c16_712, %c0_713] : memref<4x164x129xbf16, #tpu.memory_space<vmem>>, vector<1x4x129xbf16>
    %643 = vector.shape_cast %642 : vector<1x4x129xbf16> to vector<4x129xbf16>
    %644 = vector.shape_cast %641 : vector<4x129xbf16> to vector<1x4x129xbf16>
    tpu.vector_store %arg20[%c3_711, %c16_712, %c0_713], %644 {strides = array<i32>} : memref<4x164x129xbf16, #tpu.memory_space<vmem>>, vector<1x4x129xbf16>,
    %c12_714 = arith.constant 12 : index
    %c5_715 = arith.constant 5 : index
    %645 = vector.load %arg19[%c12_714, %c5_715] : memref<16x169xbf16, #tpu.memory_space<vmem>>, vector<4x129xbf16>
    %c3_716 = arith.constant 3 : index
    %c20_717 = arith.constant 20 : index
    %c0_718 = arith.constant 0 : index
    %646 = vector.load %arg20[%c3_716, %c20_717, %c0_718] : memref<4x164x129xbf16, #tpu.memory_space<vmem>>, vector<1x4x129xbf16>
    %647 = vector.shape_cast %646 : vector<1x4x129xbf16> to vector<4x129xbf16>
    %648 = vector.shape_cast %645 : vector<4x129xbf16> to vector<1x4x129xbf16>
    tpu.vector_store %arg20[%c3_716, %c20_717, %c0_718], %648 {strides = array<i32>} : memref<4x164x129xbf16, #tpu.memory_space<vmem>>, vector<1x4x129xbf16>,
    %c12_719 = arith.constant 12 : index
    %c6_720 = arith.constant 6 : index
    %649 = vector.load %arg19[%c12_719, %c6_720] : memref<16x169xbf16, #tpu.memory_space<vmem>>, vector<4x129xbf16>
    %c3_721 = arith.constant 3 : index
    %c24_722 = arith.constant 24 : index
    %c0_723 = arith.constant 0 : index
    %650 = vector.load %arg20[%c3_721, %c24_722, %c0_723] : memref<4x164x129xbf16, #tpu.memory_space<vmem>>, vector<1x4x129xbf16>
    %651 = vector.shape_cast %650 : vector<1x4x129xbf16> to vector<4x129xbf16>
    %652 = vector.shape_cast %649 : vector<4x129xbf16> to vector<1x4x129xbf16>
    tpu.vector_store %arg20[%c3_721, %c24_722, %c0_723], %652 {strides = array<i32>} : memref<4x164x129xbf16, #tpu.memory_space<vmem>>, vector<1x4x129xbf16>,
    %c12_724 = arith.constant 12 : index
    %c7_725 = arith.constant 7 : index
    %653 = vector.load %arg19[%c12_724, %c7_725] : memref<16x169xbf16, #tpu.memory_space<vmem>>, vector<4x129xbf16>
    %c3_726 = arith.constant 3 : index
    %c28_727 = arith.constant 28 : index
    %c0_728 = arith.constant 0 : index
    %654 = vector.load %arg20[%c3_726, %c28_727, %c0_728] : memref<4x164x129xbf16, #tpu.memory_space<vmem>>, vector<1x4x129xbf16>
    %655 = vector.shape_cast %654 : vector<1x4x129xbf16> to vector<4x129xbf16>
    %656 = vector.shape_cast %653 : vector<4x129xbf16> to vector<1x4x129xbf16>
    tpu.vector_store %arg20[%c3_726, %c28_727, %c0_728], %656 {strides = array<i32>} : memref<4x164x129xbf16, #tpu.memory_space<vmem>>, vector<1x4x129xbf16>,
    %c12_729 = arith.constant 12 : index
    %c8_730 = arith.constant 8 : index
    %657 = vector.load %arg19[%c12_729, %c8_730] : memref<16x169xbf16, #tpu.memory_space<vmem>>, vector<4x129xbf16>
    %c3_731 = arith.constant 3 : index
    %c32_732 = arith.constant 32 : index
    %c0_733 = arith.constant 0 : index
    %658 = vector.load %arg20[%c3_731, %c32_732, %c0_733] : memref<4x164x129xbf16, #tpu.memory_space<vmem>>, vector<1x4x129xbf16>
    %659 = vector.shape_cast %658 : vector<1x4x129xbf16> to vector<4x129xbf16>
    %660 = vector.shape_cast %657 : vector<4x129xbf16> to vector<1x4x129xbf16>
    tpu.vector_store %arg20[%c3_731, %c32_732, %c0_733], %660 {strides = array<i32>} : memref<4x164x129xbf16, #tpu.memory_space<vmem>>, vector<1x4x129xbf16>,
    %c12_734 = arith.constant 12 : index
    %c9_735 = arith.constant 9 : index
    %661 = vector.load %arg19[%c12_734, %c9_735] : memref<16x169xbf16, #tpu.memory_space<vmem>>, vector<4x129xbf16>
    %c3_736 = arith.constant 3 : index
    %c36_737 = arith.constant 36 : index
    %c0_738 = arith.constant 0 : index
    %662 = vector.load %arg20[%c3_736, %c36_737, %c0_738] : memref<4x164x129xbf16, #tpu.memory_space<vmem>>, vector<1x4x129xbf16>
    %663 = vector.shape_cast %662 : vector<1x4x129xbf16> to vector<4x129xbf16>
    %664 = vector.shape_cast %661 : vector<4x129xbf16> to vector<1x4x129xbf16>
    tpu.vector_store %arg20[%c3_736, %c36_737, %c0_738], %664 {strides = array<i32>} : memref<4x164x129xbf16, #tpu.memory_space<vmem>>, vector<1x4x129xbf16>,
    %c12_739 = arith.constant 12 : index
    %c10_740 = arith.constant 10 : index
    %665 = vector.load %arg19[%c12_739, %c10_740] : memref<16x169xbf16, #tpu.memory_space<vmem>>, vector<4x129xbf16>
    %c3_741 = arith.constant 3 : index
    %c40_742 = arith.constant 40 : index
    %c0_743 = arith.constant 0 : index
    %666 = vector.load %arg20[%c3_741, %c40_742, %c0_743] : memref<4x164x129xbf16, #tpu.memory_space<vmem>>, vector<1x4x129xbf16>
    %667 = vector.shape_cast %666 : vector<1x4x129xbf16> to vector<4x129xbf16>
    %668 = vector.shape_cast %665 : vector<4x129xbf16> to vector<1x4x129xbf16>
    tpu.vector_store %arg20[%c3_741, %c40_742, %c0_743], %668 {strides = array<i32>} : memref<4x164x129xbf16, #tpu.memory_space<vmem>>, vector<1x4x129xbf16>,
    %c12_744 = arith.constant 12 : index
    %c11_745 = arith.constant 11 : index
    %669 = vector.load %arg19[%c12_744, %c11_745] : memref<16x169xbf16, #tpu.memory_space<vmem>>, vector<4x129xbf16>
    %c3_746 = arith.constant 3 : index
    %c44_747 = arith.constant 44 : index
    %c0_748 = arith.constant 0 : index
    %670 = vector.load %arg20[%c3_746, %c44_747, %c0_748] : memref<4x164x129xbf16, #tpu.memory_space<vmem>>, vector<1x4x129xbf16>
    %671 = vector.shape_cast %670 : vector<1x4x129xbf16> to vector<4x129xbf16>
    %672 = vector.shape_cast %669 : vector<4x129xbf16> to vector<1x4x129xbf16>
    tpu.vector_store %arg20[%c3_746, %c44_747, %c0_748], %672 {strides = array<i32>} : memref<4x164x129xbf16, #tpu.memory_space<vmem>>, vector<1x4x129xbf16>,
    %c12_749 = arith.constant 12 : index
    %c12_750 = arith.constant 12 : index
    %673 = vector.load %arg19[%c12_749, %c12_750] : memref<16x169xbf16, #tpu.memory_space<vmem>>, vector<4x129xbf16>
    %c3_751 = arith.constant 3 : index
    %c48_752 = arith.constant 48 : index
    %c0_753 = arith.constant 0 : index
    %674 = vector.load %arg20[%c3_751, %c48_752, %c0_753] : memref<4x164x129xbf16, #tpu.memory_space<vmem>>, vector<1x4x129xbf16>
    %675 = vector.shape_cast %674 : vector<1x4x129xbf16> to vector<4x129xbf16>
    %676 = vector.shape_cast %673 : vector<4x129xbf16> to vector<1x4x129xbf16>
    tpu.vector_store %arg20[%c3_751, %c48_752, %c0_753], %676 {strides = array<i32>} : memref<4x164x129xbf16, #tpu.memory_space<vmem>>, vector<1x4x129xbf16>,
    %c12_754 = arith.constant 12 : index
    %c13_755 = arith.constant 13 : index
    %677 = vector.load %arg19[%c12_754, %c13_755] : memref<16x169xbf16, #tpu.memory_space<vmem>>, vector<4x129xbf16>
    %c3_756 = arith.constant 3 : index
    %c52_757 = arith.constant 52 : index
    %c0_758 = arith.constant 0 : index
    %678 = vector.load %arg20[%c3_756, %c52_757, %c0_758] : memref<4x164x129xbf16, #tpu.memory_space<vmem>>, vector<1x4x129xbf16>
    %679 = vector.shape_cast %678 : vector<1x4x129xbf16> to vector<4x129xbf16>
    %680 = vector.shape_cast %677 : vector<4x129xbf16> to vector<1x4x129xbf16>
    tpu.vector_store %arg20[%c3_756, %c52_757, %c0_758], %680 {strides = array<i32>} : memref<4x164x129xbf16, #tpu.memory_space<vmem>>, vector<1x4x129xbf16>,
    %c12_759 = arith.constant 12 : index
    %c14_760 = arith.constant 14 : index
    %681 = vector.load %arg19[%c12_759, %c14_760] : memref<16x169xbf16, #tpu.memory_space<vmem>>, vector<4x129xbf16>
    %c3_761 = arith.constant 3 : index
    %c56_762 = arith.constant 56 : index
    %c0_763 = arith.constant 0 : index
    %682 = vector.load %arg20[%c3_761, %c56_762, %c0_763] : memref<4x164x129xbf16, #tpu.memory_space<vmem>>, vector<1x4x129xbf16>
    %683 = vector.shape_cast %682 : vector<1x4x129xbf16> to vector<4x129xbf16>
    %684 = vector.shape_cast %681 : vector<4x129xbf16> to vector<1x4x129xbf16>
    tpu.vector_store %arg20[%c3_761, %c56_762, %c0_763], %684 {strides = array<i32>} : memref<4x164x129xbf16, #tpu.memory_space<vmem>>, vector<1x4x129xbf16>,
    %c12_764 = arith.constant 12 : index
    %c15_765 = arith.constant 15 : index
    %685 = vector.load %arg19[%c12_764, %c15_765] : memref<16x169xbf16, #tpu.memory_space<vmem>>, vector<4x129xbf16>
    %c3_766 = arith.constant 3 : index
    %c60_767 = arith.constant 60 : index
    %c0_768 = arith.constant 0 : index
    %686 = vector.load %arg20[%c3_766, %c60_767, %c0_768] : memref<4x164x129xbf16, #tpu.memory_space<vmem>>, vector<1x4x129xbf16>
    %687 = vector.shape_cast %686 : vector<1x4x129xbf16> to vector<4x129xbf16>
    %688 = vector.shape_cast %685 : vector<4x129xbf16> to vector<1x4x129xbf16>
    tpu.vector_store %arg20[%c3_766, %c60_767, %c0_768], %688 {strides = array<i32>} : memref<4x164x129xbf16, #tpu.memory_space<vmem>>, vector<1x4x129xbf16>,
    %c12_769 = arith.constant 12 : index
    %c16_770 = arith.constant 16 : index
    %689 = vector.load %arg19[%c12_769, %c16_770] : memref<16x169xbf16, #tpu.memory_space<vmem>>, vector<4x129xbf16>
    %c3_771 = arith.constant 3 : index
    %c64_772 = arith.constant 64 : index
    %c0_773 = arith.constant 0 : index
    %690 = vector.load %arg20[%c3_771, %c64_772, %c0_773] : memref<4x164x129xbf16, #tpu.memory_space<vmem>>, vector<1x4x129xbf16>
    %691 = vector.shape_cast %690 : vector<1x4x129xbf16> to vector<4x129xbf16>
    %692 = vector.shape_cast %689 : vector<4x129xbf16> to vector<1x4x129xbf16>
    tpu.vector_store %arg20[%c3_771, %c64_772, %c0_773], %692 {strides = array<i32>} : memref<4x164x129xbf16, #tpu.memory_space<vmem>>, vector<1x4x129xbf16>,
    %c12_774 = arith.constant 12 : index
    %c17_775 = arith.constant 17 : index
    %693 = vector.load %arg19[%c12_774, %c17_775] : memref<16x169xbf16, #tpu.memory_space<vmem>>, vector<4x129xbf16>
    %c3_776 = arith.constant 3 : index
    %c68_777 = arith.constant 68 : index
    %c0_778 = arith.constant 0 : index
    %694 = vector.load %arg20[%c3_776, %c68_777, %c0_778] : memref<4x164x129xbf16, #tpu.memory_space<vmem>>, vector<1x4x129xbf16>
    %695 = vector.shape_cast %694 : vector<1x4x129xbf16> to vector<4x129xbf16>
    %696 = vector.shape_cast %693 : vector<4x129xbf16> to vector<1x4x129xbf16>
    tpu.vector_store %arg20[%c3_776, %c68_777, %c0_778], %696 {strides = array<i32>} : memref<4x164x129xbf16, #tpu.memory_space<vmem>>, vector<1x4x129xbf16>,
    %c12_779 = arith.constant 12 : index
    %c18_780 = arith.constant 18 : index
    %697 = vector.load %arg19[%c12_779, %c18_780] : memref<16x169xbf16, #tpu.memory_space<vmem>>, vector<4x129xbf16>
    %c3_781 = arith.constant 3 : index
    %c72_782 = arith.constant 72 : index
    %c0_783 = arith.constant 0 : index
    %698 = vector.load %arg20[%c3_781, %c72_782, %c0_783] : memref<4x164x129xbf16, #tpu.memory_space<vmem>>, vector<1x4x129xbf16>
    %699 = vector.shape_cast %698 : vector<1x4x129xbf16> to vector<4x129xbf16>
    %700 = vector.shape_cast %697 : vector<4x129xbf16> to vector<1x4x129xbf16>
    tpu.vector_store %arg20[%c3_781, %c72_782, %c0_783], %700 {strides = array<i32>} : memref<4x164x129xbf16, #tpu.memory_space<vmem>>, vector<1x4x129xbf16>,
    %c12_784 = arith.constant 12 : index
    %c19_785 = arith.constant 19 : index
    %701 = vector.load %arg19[%c12_784, %c19_785] : memref<16x169xbf16, #tpu.memory_space<vmem>>, vector<4x129xbf16>
    %c3_786 = arith.constant 3 : index
    %c76_787 = arith.constant 76 : index
    %c0_788 = arith.constant 0 : index
    %702 = vector.load %arg20[%c3_786, %c76_787, %c0_788] : memref<4x164x129xbf16, #tpu.memory_space<vmem>>, vector<1x4x129xbf16>
    %703 = vector.shape_cast %702 : vector<1x4x129xbf16> to vector<4x129xbf16>
    %704 = vector.shape_cast %701 : vector<4x129xbf16> to vector<1x4x129xbf16>
    tpu.vector_store %arg20[%c3_786, %c76_787, %c0_788], %704 {strides = array<i32>} : memref<4x164x129xbf16, #tpu.memory_space<vmem>>, vector<1x4x129xbf16>,
    %c12_789 = arith.constant 12 : index
    %c20_790 = arith.constant 20 : index
    %705 = vector.load %arg19[%c12_789, %c20_790] : memref<16x169xbf16, #tpu.memory_space<vmem>>, vector<4x129xbf16>
    %c3_791 = arith.constant 3 : index
    %c80_792 = arith.constant 80 : index
    %c0_793 = arith.constant 0 : index
    %706 = vector.load %arg20[%c3_791, %c80_792, %c0_793] : memref<4x164x129xbf16, #tpu.memory_space<vmem>>, vector<1x4x129xbf16>
    %707 = vector.shape_cast %706 : vector<1x4x129xbf16> to vector<4x129xbf16>
    %708 = vector.shape_cast %705 : vector<4x129xbf16> to vector<1x4x129xbf16>
    tpu.vector_store %arg20[%c3_791, %c80_792, %c0_793], %708 {strides = array<i32>} : memref<4x164x129xbf16, #tpu.memory_space<vmem>>, vector<1x4x129xbf16>,
    %c12_794 = arith.constant 12 : index
    %c21_795 = arith.constant 21 : index
    %709 = vector.load %arg19[%c12_794, %c21_795] : memref<16x169xbf16, #tpu.memory_space<vmem>>, vector<4x129xbf16>
    %c3_796 = arith.constant 3 : index
    %c84_797 = arith.constant 84 : index
    %c0_798 = arith.constant 0 : index
    %710 = vector.load %arg20[%c3_796, %c84_797, %c0_798] : memref<4x164x129xbf16, #tpu.memory_space<vmem>>, vector<1x4x129xbf16>
    %711 = vector.shape_cast %710 : vector<1x4x129xbf16> to vector<4x129xbf16>
    %712 = vector.shape_cast %709 : vector<4x129xbf16> to vector<1x4x129xbf16>
    tpu.vector_store %arg20[%c3_796, %c84_797, %c0_798], %712 {strides = array<i32>} : memref<4x164x129xbf16, #tpu.memory_space<vmem>>, vector<1x4x129xbf16>,
    %c12_799 = arith.constant 12 : index
    %c22_800 = arith.constant 22 : index
    %713 = vector.load %arg19[%c12_799, %c22_800] : memref<16x169xbf16, #tpu.memory_space<vmem>>, vector<4x129xbf16>
    %c3_801 = arith.constant 3 : index
    %c88_802 = arith.constant 88 : index
    %c0_803 = arith.constant 0 : index
    %714 = vector.load %arg20[%c3_801, %c88_802, %c0_803] : memref<4x164x129xbf16, #tpu.memory_space<vmem>>, vector<1x4x129xbf16>
    %715 = vector.shape_cast %714 : vector<1x4x129xbf16> to vector<4x129xbf16>
    %716 = vector.shape_cast %713 : vector<4x129xbf16> to vector<1x4x129xbf16>
    tpu.vector_store %arg20[%c3_801, %c88_802, %c0_803], %716 {strides = array<i32>} : memref<4x164x129xbf16, #tpu.memory_space<vmem>>, vector<1x4x129xbf16>,
    %c12_804 = arith.constant 12 : index
    %c23_805 = arith.constant 23 : index
    %717 = vector.load %arg19[%c12_804, %c23_805] : memref<16x169xbf16, #tpu.memory_space<vmem>>, vector<4x129xbf16>
    %c3_806 = arith.constant 3 : index
    %c92_807 = arith.constant 92 : index
    %c0_808 = arith.constant 0 : index
    %718 = vector.load %arg20[%c3_806, %c92_807, %c0_808] : memref<4x164x129xbf16, #tpu.memory_space<vmem>>, vector<1x4x129xbf16>
    %719 = vector.shape_cast %718 : vector<1x4x129xbf16> to vector<4x129xbf16>
    %720 = vector.shape_cast %717 : vector<4x129xbf16> to vector<1x4x129xbf16>
    tpu.vector_store %arg20[%c3_806, %c92_807, %c0_808], %720 {strides = array<i32>} : memref<4x164x129xbf16, #tpu.memory_space<vmem>>, vector<1x4x129xbf16>,
    %c12_809 = arith.constant 12 : index
    %c24_810 = arith.constant 24 : index
    %721 = vector.load %arg19[%c12_809, %c24_810] : memref<16x169xbf16, #tpu.memory_space<vmem>>, vector<4x129xbf16>
    %c3_811 = arith.constant 3 : index
    %c96_812 = arith.constant 96 : index
    %c0_813 = arith.constant 0 : index
    %722 = vector.load %arg20[%c3_811, %c96_812, %c0_813] : memref<4x164x129xbf16, #tpu.memory_space<vmem>>, vector<1x4x129xbf16>
    %723 = vector.shape_cast %722 : vector<1x4x129xbf16> to vector<4x129xbf16>
    %724 = vector.shape_cast %721 : vector<4x129xbf16> to vector<1x4x129xbf16>
    tpu.vector_store %arg20[%c3_811, %c96_812, %c0_813], %724 {strides = array<i32>} : memref<4x164x129xbf16, #tpu.memory_space<vmem>>, vector<1x4x129xbf16>,
    %c12_814 = arith.constant 12 : index
    %c25_815 = arith.constant 25 : index
    %725 = vector.load %arg19[%c12_814, %c25_815] : memref<16x169xbf16, #tpu.memory_space<vmem>>, vector<4x129xbf16>
    %c3_816 = arith.constant 3 : index
    %c100_817 = arith.constant 100 : index
    %c0_818 = arith.constant 0 : index
    %726 = vector.load %arg20[%c3_816, %c100_817, %c0_818] : memref<4x164x129xbf16, #tpu.memory_space<vmem>>, vector<1x4x129xbf16>
    %727 = vector.shape_cast %726 : vector<1x4x129xbf16> to vector<4x129xbf16>
    %728 = vector.shape_cast %725 : vector<4x129xbf16> to vector<1x4x129xbf16>
    tpu.vector_store %arg20[%c3_816, %c100_817, %c0_818], %728 {strides = array<i32>} : memref<4x164x129xbf16, #tpu.memory_space<vmem>>, vector<1x4x129xbf16>,
    %c12_819 = arith.constant 12 : index
    %c26_820 = arith.constant 26 : index
    %729 = vector.load %arg19[%c12_819, %c26_820] : memref<16x169xbf16, #tpu.memory_space<vmem>>, vector<4x129xbf16>
    %c3_821 = arith.constant 3 : index
    %c104_822 = arith.constant 104 : index
    %c0_823 = arith.constant 0 : index
    %730 = vector.load %arg20[%c3_821, %c104_822, %c0_823] : memref<4x164x129xbf16, #tpu.memory_space<vmem>>, vector<1x4x129xbf16>
    %731 = vector.shape_cast %730 : vector<1x4x129xbf16> to vector<4x129xbf16>
    %732 = vector.shape_cast %729 : vector<4x129xbf16> to vector<1x4x129xbf16>
    tpu.vector_store %arg20[%c3_821, %c104_822, %c0_823], %732 {strides = array<i32>} : memref<4x164x129xbf16, #tpu.memory_space<vmem>>, vector<1x4x129xbf16>,
    %c12_824 = arith.constant 12 : index
    %c27_825 = arith.constant 27 : index
    %733 = vector.load %arg19[%c12_824, %c27_825] : memref<16x169xbf16, #tpu.memory_space<vmem>>, vector<4x129xbf16>
    %c3_826 = arith.constant 3 : index
    %c108_827 = arith.constant 108 : index
    %c0_828 = arith.constant 0 : index
    %734 = vector.load %arg20[%c3_826, %c108_827, %c0_828] : memref<4x164x129xbf16, #tpu.memory_space<vmem>>, vector<1x4x129xbf16>
    %735 = vector.shape_cast %734 : vector<1x4x129xbf16> to vector<4x129xbf16>
    %736 = vector.shape_cast %733 : vector<4x129xbf16> to vector<1x4x129xbf16>
    tpu.vector_store %arg20[%c3_826, %c108_827, %c0_828], %736 {strides = array<i32>} : memref<4x164x129xbf16, #tpu.memory_space<vmem>>, vector<1x4x129xbf16>,
    %c12_829 = arith.constant 12 : index
    %c28_830 = arith.constant 28 : index
    %737 = vector.load %arg19[%c12_829, %c28_830] : memref<16x169xbf16, #tpu.memory_space<vmem>>, vector<4x129xbf16>
    %c3_831 = arith.constant 3 : index
    %c112_832 = arith.constant 112 : index
    %c0_833 = arith.constant 0 : index
    %738 = vector.load %arg20[%c3_831, %c112_832, %c0_833] : memref<4x164x129xbf16, #tpu.memory_space<vmem>>, vector<1x4x129xbf16>
    %739 = vector.shape_cast %738 : vector<1x4x129xbf16> to vector<4x129xbf16>
    %740 = vector.shape_cast %737 : vector<4x129xbf16> to vector<1x4x129xbf16>
    tpu.vector_store %arg20[%c3_831, %c112_832, %c0_833], %740 {strides = array<i32>} : memref<4x164x129xbf16, #tpu.memory_space<vmem>>, vector<1x4x129xbf16>,
    %c12_834 = arith.constant 12 : index
    %c29_835 = arith.constant 29 : index
    %741 = vector.load %arg19[%c12_834, %c29_835] : memref<16x169xbf16, #tpu.memory_space<vmem>>, vector<4x129xbf16>
    %c3_836 = arith.constant 3 : index
    %c116_837 = arith.constant 116 : index
    %c0_838 = arith.constant 0 : index
    %742 = vector.load %arg20[%c3_836, %c116_837, %c0_838] : memref<4x164x129xbf16, #tpu.memory_space<vmem>>, vector<1x4x129xbf16>
    %743 = vector.shape_cast %742 : vector<1x4x129xbf16> to vector<4x129xbf16>
    %744 = vector.shape_cast %741 : vector<4x129xbf16> to vector<1x4x129xbf16>
    tpu.vector_store %arg20[%c3_836, %c116_837, %c0_838], %744 {strides = array<i32>} : memref<4x164x129xbf16, #tpu.memory_space<vmem>>, vector<1x4x129xbf16>,
    %c12_839 = arith.constant 12 : index
    %c30_840 = arith.constant 30 : index
    %745 = vector.load %arg19[%c12_839, %c30_840] : memref<16x169xbf16, #tpu.memory_space<vmem>>, vector<4x129xbf16>
    %c3_841 = arith.constant 3 : index
    %c120_842 = arith.constant 120 : index
    %c0_843 = arith.constant 0 : index
    %746 = vector.load %arg20[%c3_841, %c120_842, %c0_843] : memref<4x164x129xbf16, #tpu.memory_space<vmem>>, vector<1x4x129xbf16>
    %747 = vector.shape_cast %746 : vector<1x4x129xbf16> to vector<4x129xbf16>
    %748 = vector.shape_cast %745 : vector<4x129xbf16> to vector<1x4x129xbf16>
    tpu.vector_store %arg20[%c3_841, %c120_842, %c0_843], %748 {strides = array<i32>} : memref<4x164x129xbf16, #tpu.memory_space<vmem>>, vector<1x4x129xbf16>,
    %c12_844 = arith.constant 12 : index
    %c31_845 = arith.constant 31 : index
    %749 = vector.load %arg19[%c12_844, %c31_845] : memref<16x169xbf16, #tpu.memory_space<vmem>>, vector<4x129xbf16>
    %c3_846 = arith.constant 3 : index
    %c124_847 = arith.constant 124 : index
    %c0_848 = arith.constant 0 : index
    %750 = vector.load %arg20[%c3_846, %c124_847, %c0_848] : memref<4x164x129xbf16, #tpu.memory_space<vmem>>, vector<1x4x129xbf16>
    %751 = vector.shape_cast %750 : vector<1x4x129xbf16> to vector<4x129xbf16>
    %752 = vector.shape_cast %749 : vector<4x129xbf16> to vector<1x4x129xbf16>
    tpu.vector_store %arg20[%c3_846, %c124_847, %c0_848], %752 {strides = array<i32>} : memref<4x164x129xbf16, #tpu.memory_space<vmem>>, vector<1x4x129xbf16>,
    %c12_849 = arith.constant 12 : index
    %c32_850 = arith.constant 32 : index
    %753 = vector.load %arg19[%c12_849, %c32_850] : memref<16x169xbf16, #tpu.memory_space<vmem>>, vector<4x129xbf16>
    %c3_851 = arith.constant 3 : index
    %c128_852 = arith.constant 128 : index
    %c0_853 = arith.constant 0 : index
    %754 = vector.load %arg20[%c3_851, %c128_852, %c0_853] : memref<4x164x129xbf16, #tpu.memory_space<vmem>>, vector<1x4x129xbf16>
    %755 = vector.shape_cast %754 : vector<1x4x129xbf16> to vector<4x129xbf16>
    %756 = vector.shape_cast %753 : vector<4x129xbf16> to vector<1x4x129xbf16>
    tpu.vector_store %arg20[%c3_851, %c128_852, %c0_853], %756 {strides = array<i32>} : memref<4x164x129xbf16, #tpu.memory_space<vmem>>, vector<1x4x129xbf16>,
    %c12_854 = arith.constant 12 : index
    %c33_855 = arith.constant 33 : index
    %757 = vector.load %arg19[%c12_854, %c33_855] : memref<16x169xbf16, #tpu.memory_space<vmem>>, vector<4x129xbf16>
    %c3_856 = arith.constant 3 : index
    %c132_857 = arith.constant 132 : index
    %c0_858 = arith.constant 0 : index
    %758 = vector.load %arg20[%c3_856, %c132_857, %c0_858] : memref<4x164x129xbf16, #tpu.memory_space<vmem>>, vector<1x4x129xbf16>
    %759 = vector.shape_cast %758 : vector<1x4x129xbf16> to vector<4x129xbf16>
    %760 = vector.shape_cast %757 : vector<4x129xbf16> to vector<1x4x129xbf16>
    tpu.vector_store %arg20[%c3_856, %c132_857, %c0_858], %760 {strides = array<i32>} : memref<4x164x129xbf16, #tpu.memory_space<vmem>>, vector<1x4x129xbf16>,
    %c12_859 = arith.constant 12 : index
    %c34_860 = arith.constant 34 : index
    %761 = vector.load %arg19[%c12_859, %c34_860] : memref<16x169xbf16, #tpu.memory_space<vmem>>, vector<4x129xbf16>
    %c3_861 = arith.constant 3 : index
    %c136_862 = arith.constant 136 : index
    %c0_863 = arith.constant 0 : index
    %762 = vector.load %arg20[%c3_861, %c136_862, %c0_863] : memref<4x164x129xbf16, #tpu.memory_space<vmem>>, vector<1x4x129xbf16>
    %763 = vector.shape_cast %762 : vector<1x4x129xbf16> to vector<4x129xbf16>
    %764 = vector.shape_cast %761 : vector<4x129xbf16> to vector<1x4x129xbf16>
    tpu.vector_store %arg20[%c3_861, %c136_862, %c0_863], %764 {strides = array<i32>} : memref<4x164x129xbf16, #tpu.memory_space<vmem>>, vector<1x4x129xbf16>,
    %c12_864 = arith.constant 12 : index
    %c35_865 = arith.constant 35 : index
    %765 = vector.load %arg19[%c12_864, %c35_865] : memref<16x169xbf16, #tpu.memory_space<vmem>>, vector<4x129xbf16>
    %c3_866 = arith.constant 3 : index
    %c140_867 = arith.constant 140 : index
    %c0_868 = arith.constant 0 : index
    %766 = vector.load %arg20[%c3_866, %c140_867, %c0_868] : memref<4x164x129xbf16, #tpu.memory_space<vmem>>, vector<1x4x129xbf16>
    %767 = vector.shape_cast %766 : vector<1x4x129xbf16> to vector<4x129xbf16>
    %768 = vector.shape_cast %765 : vector<4x129xbf16> to vector<1x4x129xbf16>
    tpu.vector_store %arg20[%c3_866, %c140_867, %c0_868], %768 {strides = array<i32>} : memref<4x164x129xbf16, #tpu.memory_space<vmem>>, vector<1x4x129xbf16>,
    %c12_869 = arith.constant 12 : index
    %c36_870 = arith.constant 36 : index
    %769 = vector.load %arg19[%c12_869, %c36_870] : memref<16x169xbf16, #tpu.memory_space<vmem>>, vector<4x129xbf16>
    %c3_871 = arith.constant 3 : index
    %c144_872 = arith.constant 144 : index
    %c0_873 = arith.constant 0 : index
    %770 = vector.load %arg20[%c3_871, %c144_872, %c0_873] : memref<4x164x129xbf16, #tpu.memory_space<vmem>>, vector<1x4x129xbf16>
    %771 = vector.shape_cast %770 : vector<1x4x129xbf16> to vector<4x129xbf16>
    %772 = vector.shape_cast %769 : vector<4x129xbf16> to vector<1x4x129xbf16>
    tpu.vector_store %arg20[%c3_871, %c144_872, %c0_873], %772 {strides = array<i32>} : memref<4x164x129xbf16, #tpu.memory_space<vmem>>, vector<1x4x129xbf16>,
    %c12_874 = arith.constant 12 : index
    %c37_875 = arith.constant 37 : index
    %773 = vector.load %arg19[%c12_874, %c37_875] : memref<16x169xbf16, #tpu.memory_space<vmem>>, vector<4x129xbf16>
    %c3_876 = arith.constant 3 : index
    %c148_877 = arith.constant 148 : index
    %c0_878 = arith.constant 0 : index
    %774 = vector.load %arg20[%c3_876, %c148_877, %c0_878] : memref<4x164x129xbf16, #tpu.memory_space<vmem>>, vector<1x4x129xbf16>
    %775 = vector.shape_cast %774 : vector<1x4x129xbf16> to vector<4x129xbf16>
    %776 = vector.shape_cast %773 : vector<4x129xbf16> to vector<1x4x129xbf16>
    tpu.vector_store %arg20[%c3_876, %c148_877, %c0_878], %776 {strides = array<i32>} : memref<4x164x129xbf16, #tpu.memory_space<vmem>>, vector<1x4x129xbf16>,
    %c12_879 = arith.constant 12 : index
    %c38_880 = arith.constant 38 : index
    %777 = vector.load %arg19[%c12_879, %c38_880] : memref<16x169xbf16, #tpu.memory_space<vmem>>, vector<4x129xbf16>
    %c3_881 = arith.constant 3 : index
    %c152_882 = arith.constant 152 : index
    %c0_883 = arith.constant 0 : index
    %778 = vector.load %arg20[%c3_881, %c152_882, %c0_883] : memref<4x164x129xbf16, #tpu.memory_space<vmem>>, vector<1x4x129xbf16>
    %779 = vector.shape_cast %778 : vector<1x4x129xbf16> to vector<4x129xbf16>
    %780 = vector.shape_cast %777 : vector<4x129xbf16> to vector<1x4x129xbf16>
    tpu.vector_store %arg20[%c3_881, %c152_882, %c0_883], %780 {strides = array<i32>} : memref<4x164x129xbf16, #tpu.memory_space<vmem>>, vector<1x4x129xbf16>,
    %c12_884 = arith.constant 12 : index
    %c39_885 = arith.constant 39 : index
    %781 = vector.load %arg19[%c12_884, %c39_885] : memref<16x169xbf16, #tpu.memory_space<vmem>>, vector<4x129xbf16>
    %c3_886 = arith.constant 3 : index
    %c156_887 = arith.constant 156 : index
    %c0_888 = arith.constant 0 : index
    %782 = vector.load %arg20[%c3_886, %c156_887, %c0_888] : memref<4x164x129xbf16, #tpu.memory_space<vmem>>, vector<1x4x129xbf16>
    %783 = vector.shape_cast %782 : vector<1x4x129xbf16> to vector<4x129xbf16>
    %784 = vector.shape_cast %781 : vector<4x129xbf16> to vector<1x4x129xbf16>
    tpu.vector_store %arg20[%c3_886, %c156_887, %c0_888], %784 {strides = array<i32>} : memref<4x164x129xbf16, #tpu.memory_space<vmem>>, vector<1x4x129xbf16>,
    %c12_889 = arith.constant 12 : index
    %c40_890 = arith.constant 40 : index
    %785 = vector.load %arg19[%c12_889, %c40_890] : memref<16x169xbf16, #tpu.memory_space<vmem>>, vector<4x129xbf16>
    %c3_891 = arith.constant 3 : index
    %c160_892 = arith.constant 160 : index
    %c0_893 = arith.constant 0 : index
    %786 = vector.load %arg20[%c3_891, %c160_892, %c0_893] : memref<4x164x129xbf16, #tpu.memory_space<vmem>>, vector<1x4x129xbf16>
    %787 = vector.shape_cast %786 : vector<1x4x129xbf16> to vector<4x129xbf16>
    %788 = vector.shape_cast %785 : vector<4x129xbf16> to vector<1x4x129xbf16>
    tpu.vector_store %arg20[%c3_891, %c160_892, %c0_893], %788 {strides = array<i32>} : memref<4x164x129xbf16, #tpu.memory_space<vmem>>, vector<1x4x129xbf16>,
    %c3_894 = arith.constant 3 : index
    %c0_895 = arith.constant 0 : index
    %c0_896 = arith.constant 0 : index
    %789 = vector.load %arg5[%c3_894, %c0_895, %c0_896] : memref<4x8x164xbf16, #tpu.memory_space<vmem>>, vector<1x8x164xbf16>
    %790 = vector.shape_cast %789 : vector<1x8x164xbf16> to vector<8x164xbf16>
    %c3_897 = arith.constant 3 : index
    %c0_898 = arith.constant 0 : index
    %c0_899 = arith.constant 0 : index
    %791 = vector.load %arg20[%c3_897, %c0_898, %c0_899] : memref<4x164x129xbf16, #tpu.memory_space<vmem>>, vector<1x164x129xbf16>
    %792 = vector.shape_cast %791 : vector<1x164x129xbf16> to vector<164x129xbf16>
    %cst_900 = arith.constant dense<0.000000e+00> : vector<8x129xf32>
    %793 = tpu.matmul %790, %792, %cst_900 {dimension_numbers = #tpu.dot_dimension_numbers<[1], [0], [0], [1], [0, 0, 1, 1], [], []>} : vector<8x164xbf16>, vector<164x129xbf16>, vector<8x129xf32> -> vector<8x129xf32>
    %c24_901 = arith.constant 24 : index
    %c0_902 = arith.constant 0 : index
    %794 = vector.load %arg21[%c24_901, %c0_902] : memref<32x129xf32, #tpu.memory_space<vmem>>, vector<8x129xf32>
    tpu.vector_store %arg21[%c24_901, %c0_902], %793 {strides = array<i32>} : memref<32x129xf32, #tpu.memory_space<vmem>>, vector<8x129xf32>,
    %c0_903 = arith.constant 0 : index
    %c0_904 = arith.constant 0 : index
    %795 = vector.load %arg21[%c0_903, %c0_904] : memref<32x129xf32, #tpu.memory_space<vmem>>, vector<32x129xf32>
    %796 = arith.truncf %795 : vector<32x129xf32> to vector<32x129xbf16>
    %797 = arith.extf %796 : vector<32x129xbf16> to vector<32x129xf32>
    %798 = arith.subf %795, %797 : vector<32x129xf32>
    %799 = arith.truncf %798 : vector<32x129xf32> to vector<32x129xbf16>
    %c0_905 = arith.constant 0 : index
    %c0_906 = arith.constant 0 : index
    %800 = vector.load %arg7[%c0_905, %c0_906] : memref<512x256xbf16, #tpu.memory_space<vmem>>, vector<129x65xbf16>
    %cst_907 = arith.constant dense<0.000000e+00> : vector<32x65xf32>
    %801 = tpu.matmul %796, %800, %cst_907 {dimension_numbers = #tpu.dot_dimension_numbers<[1], [0], [0], [1], [0, 0, 1, 1], [], []>} : vector<32x129xbf16>, vector<129x65xbf16>, vector<32x65xf32> -> vector<32x65xf32>
    %cst_908 = arith.constant dense<0.000000e+00> : vector<32x65xf32>
    %802 = tpu.matmul %799, %800, %cst_908 {dimension_numbers = #tpu.dot_dimension_numbers<[1], [0], [0], [1], [0, 0, 1, 1], [], []>} : vector<32x129xbf16>, vector<129x65xbf16>, vector<32x65xf32> -> vector<32x65xf32>
    %803 = arith.addf %801, %802 : vector<32x65xf32>
    %c0_909 = arith.constant 0 : index
    %c0_910 = arith.constant 0 : index
    %804 = vector.load %arg22[%c0_909, %c0_910] : memref<32x65xf32, #tpu.memory_space<vmem>>, vector<32x65xf32>
    tpu.vector_store %arg22[%c0_909, %c0_910], %803 {strides = array<i32>} : memref<32x65xf32, #tpu.memory_space<vmem>>, vector<32x65xf32>,
    %c0_911 = arith.constant 0 : index
    %c0_912 = arith.constant 0 : index
    %805 = vector.load %arg22[%c0_911, %c0_912] : memref<32x65xf32, #tpu.memory_space<vmem>>, vector<32x65xf32>
    %c0_913 = arith.constant 0 : index
    %c0_914 = arith.constant 0 : index
    %806 = vector.load %arg6[%c0_913, %c0_914] : memref<32x1xf32, #tpu.memory_space<vmem>>, vector<32x1xf32>
    %807 = vector.broadcast %806 : vector<32x1xf32> to vector<32x65xf32>
    %808 = arith.addf %805, %807 : vector<32x65xf32>
    %cst_915 = arith.constant 0.000000e+00 : f32
    %809 = vector.broadcast %cst_915 : f32 to vector<32x65xf32>
    %810 = arith.cmpf oge, %808, %809 : vector<32x65xf32>
    %cst_916 = arith.constant 0.00999999977 : f32
    %811 = vector.broadcast %cst_916 : f32 to vector<32x65xf32>
    %812 = arith.mulf %811, %808 : vector<32x65xf32>
    %813 = arith.select %810, %808, %812 : vector<32x65xi1>, vector<32x65xf32>
    %c0_917 = arith.constant 0 : index
    %c0_918 = arith.constant 0 : index
    %c0_919 = arith.constant 0 : index
    %814 = vector.load %arg13[%c0_917, %c0_918, %c0_919] : memref<1x32x65xf32, #tpu.memory_space<vmem>>, vector<1x32x65xf32>
    %815 = vector.shape_cast %814 : vector<1x32x65xf32> to vector<32x65xf32>
    %816 = vector.shape_cast %813 : vector<32x65xf32> to vector<1x32x65xf32>
    tpu.vector_store %arg13[%c0_917, %c0_918, %c0_919], %816 {strides = array<i32>} : memref<1x32x65xf32, #tpu.memory_space<vmem>>, vector<1x32x65xf32>,
    %cst_920 = arith.constant 0.000000e+00 : bf16
    %817 = vector.broadcast %cst_920 : bf16 to vector<32x2xbf16>
    %c0_921 = arith.constant 0 : index
    %c0_922 = arith.constant 0 : index
    %818 = vector.load %arg23[%c0_921, %c0_922] : memref<32x69xbf16, #tpu.memory_space<vmem>>, vector<32x2xbf16>
    tpu.vector_store %arg23[%c0_921, %c0_922], %817 {strides = array<i32>} : memref<32x69xbf16, #tpu.memory_space<vmem>>, vector<32x2xbf16>,
    %cst_923 = arith.constant 0.000000e+00 : bf16
    %819 = vector.broadcast %cst_923 : bf16 to vector<32x2xbf16>
    %c0_924 = arith.constant 0 : index
    %c67 = arith.constant 67 : index
    %820 = vector.load %arg23[%c0_924, %c67] : memref<32x69xbf16, #tpu.memory_space<vmem>>, vector<32x2xbf16>
    tpu.vector_store %arg23[%c0_924, %c67], %819 {strides = array<i32>} : memref<32x69xbf16, #tpu.memory_space<vmem>>, vector<32x2xbf16>,
    %821 = arith.truncf %813 : vector<32x65xf32> to vector<32x65xbf16>
    %c0_925 = arith.constant 0 : index
    %c2_926 = arith.constant 2 : index
    %822 = vector.load %arg23[%c0_925, %c2_926] : memref<32x69xbf16, #tpu.memory_space<vmem>>, vector<32x65xbf16>
    tpu.vector_store %arg23[%c0_925, %c2_926], %821 {strides = array<i32>} : memref<32x69xbf16, #tpu.memory_space<vmem>>, vector<32x65xbf16>,
    %c0_927 = arith.constant 0 : index
    %c0_928 = arith.constant 0 : index
    %823 = vector.load %arg23[%c0_927, %c0_928] : memref<32x69xbf16, #tpu.memory_space<vmem>>, vector<32x65xbf16>
    %c0_929 = arith.constant 0 : index
    %c0_930 = arith.constant 0 : index
    %c0_931 = arith.constant 0 : index
    %824 = vector.load %arg24[%c0_929, %c0_930, %c0_931] : memref<1x160x65xbf16, #tpu.memory_space<vmem>>, vector<1x32x65xbf16>
    %825 = vector.shape_cast %824 : vector<1x32x65xbf16> to vector<32x65xbf16>
    %826 = vector.shape_cast %823 : vector<32x65xbf16> to vector<1x32x65xbf16>
    tpu.vector_store %arg24[%c0_929, %c0_930, %c0_931], %826 {strides = array<i32>} : memref<1x160x65xbf16, #tpu.memory_space<vmem>>, vector<1x32x65xbf16>,
    %c0_932 = arith.constant 0 : index
    %c1_933 = arith.constant 1 : index
    %827 = vector.load %arg23[%c0_932, %c1_933] : memref<32x69xbf16, #tpu.memory_space<vmem>>, vector<32x65xbf16>
    %c0_934 = arith.constant 0 : index
    %c32_935 = arith.constant 32 : index
    %c0_936 = arith.constant 0 : index
    %828 = vector.load %arg24[%c0_934, %c32_935, %c0_936] : memref<1x160x65xbf16, #tpu.memory_space<vmem>>, vector<1x32x65xbf16>
    %829 = vector.shape_cast %828 : vector<1x32x65xbf16> to vector<32x65xbf16>
    %830 = vector.shape_cast %827 : vector<32x65xbf16> to vector<1x32x65xbf16>
    tpu.vector_store %arg24[%c0_934, %c32_935, %c0_936], %830 {strides = array<i32>} : memref<1x160x65xbf16, #tpu.memory_space<vmem>>, vector<1x32x65xbf16>,
    %c0_937 = arith.constant 0 : index
    %c2_938 = arith.constant 2 : index
    %831 = vector.load %arg23[%c0_937, %c2_938] : memref<32x69xbf16, #tpu.memory_space<vmem>>, vector<32x65xbf16>
    %c0_939 = arith.constant 0 : index
    %c64_940 = arith.constant 64 : index
    %c0_941 = arith.constant 0 : index
    %832 = vector.load %arg24[%c0_939, %c64_940, %c0_941] : memref<1x160x65xbf16, #tpu.memory_space<vmem>>, vector<1x32x65xbf16>
    %833 = vector.shape_cast %832 : vector<1x32x65xbf16> to vector<32x65xbf16>
    %834 = vector.shape_cast %831 : vector<32x65xbf16> to vector<1x32x65xbf16>
    tpu.vector_store %arg24[%c0_939, %c64_940, %c0_941], %834 {strides = array<i32>} : memref<1x160x65xbf16, #tpu.memory_space<vmem>>, vector<1x32x65xbf16>,
    %c0_942 = arith.constant 0 : index
    %c3_943 = arith.constant 3 : index
    %835 = vector.load %arg23[%c0_942, %c3_943] : memref<32x69xbf16, #tpu.memory_space<vmem>>, vector<32x65xbf16>
    %c0_944 = arith.constant 0 : index
    %c96_945 = arith.constant 96 : index
    %c0_946 = arith.constant 0 : index
    %836 = vector.load %arg24[%c0_944, %c96_945, %c0_946] : memref<1x160x65xbf16, #tpu.memory_space<vmem>>, vector<1x32x65xbf16>
    %837 = vector.shape_cast %836 : vector<1x32x65xbf16> to vector<32x65xbf16>
    %838 = vector.shape_cast %835 : vector<32x65xbf16> to vector<1x32x65xbf16>
    tpu.vector_store %arg24[%c0_944, %c96_945, %c0_946], %838 {strides = array<i32>} : memref<1x160x65xbf16, #tpu.memory_space<vmem>>, vector<1x32x65xbf16>,
    %c0_947 = arith.constant 0 : index
    %c4_948 = arith.constant 4 : index
    %839 = vector.load %arg23[%c0_947, %c4_948] : memref<32x69xbf16, #tpu.memory_space<vmem>>, vector<32x65xbf16>
    %c0_949 = arith.constant 0 : index
    %c128_950 = arith.constant 128 : index
    %c0_951 = arith.constant 0 : index
    %840 = vector.load %arg24[%c0_949, %c128_950, %c0_951] : memref<1x160x65xbf16, #tpu.memory_space<vmem>>, vector<1x32x65xbf16>
    %841 = vector.shape_cast %840 : vector<1x32x65xbf16> to vector<32x65xbf16>
    %842 = vector.shape_cast %839 : vector<32x65xbf16> to vector<1x32x65xbf16>
    tpu.vector_store %arg24[%c0_949, %c128_950, %c0_951], %842 {strides = array<i32>} : memref<1x160x65xbf16, #tpu.memory_space<vmem>>, vector<1x32x65xbf16>,
    %c0_952 = arith.constant 0 : index
    %c0_953 = arith.constant 0 : index
    %c0_954 = arith.constant 0 : index
    %843 = vector.load %arg8[%c0_952, %c0_953, %c0_954] : memref<1x32x160xbf16, #tpu.memory_space<vmem>>, vector<1x32x160xbf16>
    %844 = vector.shape_cast %843 : vector<1x32x160xbf16> to vector<32x160xbf16>
    %c0_955 = arith.constant 0 : index
    %c0_956 = arith.constant 0 : index
    %c0_957 = arith.constant 0 : index
    %845 = vector.load %arg24[%c0_955, %c0_956, %c0_957] : memref<1x160x65xbf16, #tpu.memory_space<vmem>>, vector<1x160x65xbf16>
    %846 = vector.shape_cast %845 : vector<1x160x65xbf16> to vector<160x65xbf16>
    %cst_958 = arith.constant dense<0.000000e+00> : vector<32x65xf32>
    %847 = tpu.matmul %844, %846, %cst_958 {dimension_numbers = #tpu.dot_dimension_numbers<[1], [0], [0], [1], [0, 0, 1, 1], [], []>} : vector<32x160xbf16>, vector<160x65xbf16>, vector<32x65xf32> -> vector<32x65xf32>
    %c0_959 = arith.constant 0 : index
    %c0_960 = arith.constant 0 : index
    %848 = vector.load %arg9[%c0_959, %c0_960] : memref<32x1xf32, #tpu.memory_space<vmem>>, vector<32x1xf32>
    %849 = vector.broadcast %848 : vector<32x1xf32> to vector<32x65xf32>
    %850 = arith.addf %847, %849 : vector<32x65xf32>
    %cst_961 = arith.constant 0.000000e+00 : f32
    %851 = vector.broadcast %cst_961 : f32 to vector<32x65xf32>
    %852 = arith.cmpf oge, %850, %851 : vector<32x65xf32>
    %cst_962 = arith.constant 0.00999999977 : f32
    %853 = vector.broadcast %cst_962 : f32 to vector<32x65xf32>
    %854 = arith.mulf %853, %850 : vector<32x65xf32>
    %855 = arith.select %852, %850, %854 : vector<32x65xi1>, vector<32x65xf32>
    %c0_963 = arith.constant 0 : index
    %c0_964 = arith.constant 0 : index
    %c0_965 = arith.constant 0 : index
    %856 = vector.load %arg14[%c0_963, %c0_964, %c0_965] : memref<1x32x65xf32, #tpu.memory_space<vmem>>, vector<1x32x65xf32>
    %857 = vector.shape_cast %856 : vector<1x32x65xf32> to vector<32x65xf32>
    %858 = vector.shape_cast %855 : vector<32x65xf32> to vector<1x32x65xf32>
    tpu.vector_store %arg14[%c0_963, %c0_964, %c0_965], %858 {strides = array<i32>} : memref<1x32x65xf32, #tpu.memory_space<vmem>>, vector<1x32x65xf32>,
    %cst_966 = arith.constant 0.000000e+00 : bf16
    %859 = vector.broadcast %cst_966 : bf16 to vector<32x1xbf16>
    %c0_967 = arith.constant 0 : index
    %c0_968 = arith.constant 0 : index
    %860 = vector.load %arg25[%c0_967, %c0_968] : memref<32x67xbf16, #tpu.memory_space<vmem>>, vector<32x1xbf16>
    tpu.vector_store %arg25[%c0_967, %c0_968], %859 {strides = array<i32>} : memref<32x67xbf16, #tpu.memory_space<vmem>>, vector<32x1xbf16>,
    %cst_969 = arith.constant 0.000000e+00 : bf16
    %861 = vector.broadcast %cst_969 : bf16 to vector<32x1xbf16>
    %c0_970 = arith.constant 0 : index
    %c66 = arith.constant 66 : index
    %862 = vector.load %arg25[%c0_970, %c66] : memref<32x67xbf16, #tpu.memory_space<vmem>>, vector<32x1xbf16>
    tpu.vector_store %arg25[%c0_970, %c66], %861 {strides = array<i32>} : memref<32x67xbf16, #tpu.memory_space<vmem>>, vector<32x1xbf16>,
    %863 = arith.truncf %855 : vector<32x65xf32> to vector<32x65xbf16>
    %c0_971 = arith.constant 0 : index
    %c1_972 = arith.constant 1 : index
    %864 = vector.load %arg25[%c0_971, %c1_972] : memref<32x67xbf16, #tpu.memory_space<vmem>>, vector<32x65xbf16>
    tpu.vector_store %arg25[%c0_971, %c1_972], %863 {strides = array<i32>} : memref<32x67xbf16, #tpu.memory_space<vmem>>, vector<32x65xbf16>,
    %c0_973 = arith.constant 0 : index
    %c0_974 = arith.constant 0 : index
    %865 = vector.load %arg25[%c0_973, %c0_974] : memref<32x67xbf16, #tpu.memory_space<vmem>>, vector<32x65xbf16>
    %c0_975 = arith.constant 0 : index
    %c0_976 = arith.constant 0 : index
    %c0_977 = arith.constant 0 : index
    %866 = vector.load %arg26[%c0_975, %c0_976, %c0_977] : memref<1x96x65xbf16, #tpu.memory_space<vmem>>, vector<1x32x65xbf16>
    %867 = vector.shape_cast %866 : vector<1x32x65xbf16> to vector<32x65xbf16>
    %868 = vector.shape_cast %865 : vector<32x65xbf16> to vector<1x32x65xbf16>
    tpu.vector_store %arg26[%c0_975, %c0_976, %c0_977], %868 {strides = array<i32>} : memref<1x96x65xbf16, #tpu.memory_space<vmem>>, vector<1x32x65xbf16>,
    %c0_978 = arith.constant 0 : index
    %c1_979 = arith.constant 1 : index
    %869 = vector.load %arg25[%c0_978, %c1_979] : memref<32x67xbf16, #tpu.memory_space<vmem>>, vector<32x65xbf16>
    %c0_980 = arith.constant 0 : index
    %c32_981 = arith.constant 32 : index
    %c0_982 = arith.constant 0 : index
    %870 = vector.load %arg26[%c0_980, %c32_981, %c0_982] : memref<1x96x65xbf16, #tpu.memory_space<vmem>>, vector<1x32x65xbf16>
    %871 = vector.shape_cast %870 : vector<1x32x65xbf16> to vector<32x65xbf16>
    %872 = vector.shape_cast %869 : vector<32x65xbf16> to vector<1x32x65xbf16>
    tpu.vector_store %arg26[%c0_980, %c32_981, %c0_982], %872 {strides = array<i32>} : memref<1x96x65xbf16, #tpu.memory_space<vmem>>, vector<1x32x65xbf16>,
    %c0_983 = arith.constant 0 : index
    %c2_984 = arith.constant 2 : index
    %873 = vector.load %arg25[%c0_983, %c2_984] : memref<32x67xbf16, #tpu.memory_space<vmem>>, vector<32x65xbf16>
    %c0_985 = arith.constant 0 : index
    %c64_986 = arith.constant 64 : index
    %c0_987 = arith.constant 0 : index
    %874 = vector.load %arg26[%c0_985, %c64_986, %c0_987] : memref<1x96x65xbf16, #tpu.memory_space<vmem>>, vector<1x32x65xbf16>
    %875 = vector.shape_cast %874 : vector<1x32x65xbf16> to vector<32x65xbf16>
    %876 = vector.shape_cast %873 : vector<32x65xbf16> to vector<1x32x65xbf16>
    tpu.vector_store %arg26[%c0_985, %c64_986, %c0_987], %876 {strides = array<i32>} : memref<1x96x65xbf16, #tpu.memory_space<vmem>>, vector<1x32x65xbf16>,
    %c0_988 = arith.constant 0 : index
    %c0_989 = arith.constant 0 : index
    %c0_990 = arith.constant 0 : index
    %877 = vector.load %arg10[%c0_988, %c0_989, %c0_990] : memref<1x1x96xbf16, #tpu.memory_space<vmem>>, vector<1x1x96xbf16>
    %878 = vector.shape_cast %877 : vector<1x1x96xbf16> to vector<1x96xbf16>
    %c0_991 = arith.constant 0 : index
    %c0_992 = arith.constant 0 : index
    %c0_993 = arith.constant 0 : index
    %879 = vector.load %arg26[%c0_991, %c0_992, %c0_993] : memref<1x96x65xbf16, #tpu.memory_space<vmem>>, vector<1x96x65xbf16>
    %880 = vector.shape_cast %879 : vector<1x96x65xbf16> to vector<96x65xbf16>
    %cst_994 = arith.constant dense<0.000000e+00> : vector<1x65xf32>
    %881 = tpu.matmul %878, %880, %cst_994 {dimension_numbers = #tpu.dot_dimension_numbers<[1], [0], [0], [1], [0, 0, 1, 1], [], []>} : vector<1x96xbf16>, vector<96x65xbf16>, vector<1x65xf32> -> vector<1x65xf32>
    %c0_995 = arith.constant 0 : index
    %c0_996 = arith.constant 0 : index
    %882 = vector.load %arg11[%c0_995, %c0_996] : memref<1x1xf32, #tpu.memory_space<vmem>>, vector<1x1xf32>
    %883 = vector.broadcast %882 : vector<1x1xf32> to vector<1x65xf32>
    %884 = arith.addf %881, %883 : vector<1x65xf32>
    %c0_997 = arith.constant 0 : index
    %c0_998 = arith.constant 0 : index
    %c0_999 = arith.constant 0 : index
    %885 = vector.load %arg15[%c0_997, %c0_998, %c0_999] : memref<1x1x65xf32, #tpu.memory_space<vmem>>, vector<1x1x65xf32>
    %886 = vector.shape_cast %885 : vector<1x1x65xf32> to vector<1x65xf32>
    %887 = vector.shape_cast %884 : vector<1x65xf32> to vector<1x1x65xf32>
    tpu.vector_store %arg15[%c0_997, %c0_998, %c0_999], %887 {strides = array<i32>} : memref<1x1x65xf32, #tpu.memory_space<vmem>>, vector<1x1x65xf32>,
    return
  }
  func.func @transform_0(%arg0: i32) -> (i32, i32, i32) {
    %c0_i32 = arith.constant 0 : i32
    %c0_i32_0 = arith.constant 0 : i32
    %c0_i32_1 = arith.constant 0 : i32
    return %arg0, %c0_i32, %c0_i32_0 : i32, i32, i32
  }
  func.func @transform_1(%arg0: i32) -> (i32, i32) {
    %c0_i32 = arith.constant 0 : i32
    %c0_i32_0 = arith.constant 0 : i32
    %c0_i32_1 = arith.constant 0 : i32
    return %c0_i32, %c0_i32_0 : i32, i32
  }
  func.func @transform_2(%arg0: i32) -> (i32, i32, i32) {
    %c0_i32 = arith.constant 0 : i32
    %c0_i32_0 = arith.constant 0 : i32
    %c0_i32_1 = arith.constant 0 : i32
    %c0_i32_2 = arith.constant 0 : i32
    return %c0_i32, %c0_i32_0, %c0_i32_1 : i32, i32, i32
  }
  func.func @transform_3(%arg0: i32) -> (i32, i32) {
    %c0_i32 = arith.constant 0 : i32
    %c0_i32_0 = arith.constant 0 : i32
    %c0_i32_1 = arith.constant 0 : i32
    return %c0_i32, %c0_i32_0 : i32, i32
  }
  func.func @transform_4(%arg0: i32) -> (i32, i32, i32) {
    %c0_i32 = arith.constant 0 : i32
    %c0_i32_0 = arith.constant 0 : i32
    %c0_i32_1 = arith.constant 0 : i32
    %c0_i32_2 = arith.constant 0 : i32
    return %c0_i32, %c0_i32_0, %c0_i32_1 : i32, i32, i32
  }
  func.func @transform_5(%arg0: i32) -> (i32, i32) {
    %c0_i32 = arith.constant 0 : i32
    %c0_i32_0 = arith.constant 0 : i32
    %c0_i32_1 = arith.constant 0 : i32
    return %c0_i32, %c0_i32_0 : i32, i32
  }
  func.func @transform_6(%arg0: i32) -> (i32, i32) {
    %c0_i32 = arith.constant 0 : i32
    %c0_i32_0 = arith.constant 0 : i32
    %c0_i32_1 = arith.constant 0 : i32
    return %c0_i32, %c0_i32_0 : i32, i32
  }
  func.func @transform_7(%arg0: i32) -> (i32, i32, i32) {
    %c0_i32 = arith.constant 0 : i32
    %c0_i32_0 = arith.constant 0 : i32
    %c0_i32_1 = arith.constant 0 : i32
    %c0_i32_2 = arith.constant 0 : i32
    return %c0_i32, %c0_i32_0, %c0_i32_1 : i32, i32, i32
  }
  func.func @transform_8(%arg0: i32) -> (i32, i32) {
    %c0_i32 = arith.constant 0 : i32
    %c0_i32_0 = arith.constant 0 : i32
    %c0_i32_1 = arith.constant 0 : i32
    return %c0_i32, %c0_i32_0 : i32, i32
  }
  func.func @transform_9(%arg0: i32) -> (i32, i32, i32) {
    %c0_i32 = arith.constant 0 : i32
    %c0_i32_0 = arith.constant 0 : i32
    %c0_i32_1 = arith.constant 0 : i32
    %c0_i32_2 = arith.constant 0 : i32
    return %c0_i32, %c0_i32_0, %c0_i32_1 : i32, i32, i32
  }
  func.func @transform_10(%arg0: i32) -> (i32, i32) {
    %c0_i32 = arith.constant 0 : i32
    %c0_i32_0 = arith.constant 0 : i32
    %c0_i32_1 = arith.constant 0 : i32
    return %c0_i32, %c0_i32_0 : i32, i32
  }
  func.func @transform_11(%arg0: i32) -> (i32, i32, i32) {
    %c0_i32 = arith.constant 0 : i32
    %c0_i32_0 = arith.constant 0 : i32
    %c0_i32_1 = arith.constant 0 : i32
    return %arg0, %c0_i32, %c0_i32_0 : i32, i32, i32
  }
  func.func @transform_12(%arg0: i32) -> (i32, i32, i32) {
    %c0_i32 = arith.constant 0 : i32
    %c0_i32_0 = arith.constant 0 : i32
    %c0_i32_1 = arith.constant 0 : i32
    return %arg0, %c0_i32, %c0_i32_0 : i32, i32, i32
  }
  func.func @transform_13(%arg0: i32) -> (i32, i32, i32) {
    %c0_i32 = arith.constant 0 : i32
    %c0_i32_0 = arith.constant 0 : i32
    %c0_i32_1 = arith.constant 0 : i32
    return %arg0, %c0_i32, %c0_i32_0 : i32, i32, i32
  }
  func.func @transform_14(%arg0: i32) -> (i32, i32, i32) {
    %c0_i32 = arith.constant 0 : i32
    %c0_i32_0 = arith.constant 0 : i32
    %c0_i32_1 = arith.constant 0 : i32
    return %arg0, %c0_i32, %c0_i32_0 : i32, i32, i32
  }
}

</mosaic_0001>

<bundles_post_ra>
// kernel: tpu_custom_call.1
= control target key start
LH: loop header
LB: loop body
LE: loop exit
PB: predicated region body
PF: predicated region fallthrough
CT: control target
= control target key end

     0   :  { %s7788_s0 = inlined_call_operand.vmem [shape: f32[2,1,256], index: 0, kind: input, shape index: {}]   ;;  %s7789_s1 = inlined_call_operand.hbm [shape: bf16[514,256], index: 1, kind: input, shape index: {}]   ;;  %s7790_s2 = inlined_call_operand.vmem [shape: bf16[1,16,15], index: 2, kind: input, shape index: {}]   ;;  %s7791_s3 = inlined_call_operand.vmem [shape: f32[16,1], index: 3, kind: input, shape index: {}]   ;;  %s7792_s4 = inlined_call_operand.vmem [shape: bf16[4,8,164], index: 4, kind: input, shape index: {}]   ;;  %s7793_s5 = inlined_call_operand.vmem [shape: f32[32,1], index: 5, kind: input, shape index: {}]   ;;  %s7794_s6 = inlined_call_operand.hbm [shape: bf16[512,256], index: 6, kind: input, shape index: {}]   ;;  %s7795_s7 = inlined_call_operand.vmem [shape: bf16[1,32,160], index: 7, kind: input, shape index: {}]   ;;  %s7796_s8 = inlined_call_operand.vmem [shape: f32[32,1], index: 8, kind: input, shape index: {}]   ;;  %s7797_s9 = inlined_call_operand.vmem [shape: bf16[1,1,96], index: 9, kind: input, shape index: {}]   ;;  %s7798_s10 = inlined_call_operand.<no memory space> [shape: f32[1,1], index: 10, kind: input, shape index: {}]   ;;  %s7799_s11 = inlined_call_operand.hbm [shape: f32[2,16,129], index: 11, kind: output, shape index: {0}]   ;;  %s7800_s12 = inlined_call_operand.hbm [shape: f32[2,32,65], index: 12, kind: output, shape index: {1}]   ;;  %s7801_s13 = inlined_call_operand.hbm [shape: f32[2,32,65], index: 13, kind: output, shape index: {2}]   ;;  %s7802_s14 = inlined_call_operand.hbm [shape: f32[2,1,65], index: 14, kind: output, shape index: {3}]  }
   0x1   :  { %7958 = sst [smem:[#allocation42_spill]] %s7788_s0  ;;  %v20_v0 = vstv %s7798_s10 }
   0x2   :  { %7959 = sst [smem:[#allocation43_spill]] %s7789_s1  ;;  %21 = vst [vmem:[#allocation13] sm:$0x1] %v20_v0 }
   0x3   :  { %7960 = sst [smem:[#allocation44_spill]] %s7790_s2 }
   0x4   :  { %7961 = sst [smem:[#allocation45_spill]] %s7791_s3 }
   0x5   :  { %7962 = sst [smem:[#allocation46_spill]] %s7792_s4 }
   0x6   :  { %7963 = sst [smem:[#allocation47_spill]] %s7793_s5 }
   0x7   :  { %7964 = sst [smem:[#allocation48_spill]] %s7794_s6 }
   0x8   :  { %7965 = sst [smem:[#allocation49_spill]] %s7795_s7 }
   0x9   :  { %7966 = sst [smem:[#allocation50_spill]] %s7796_s8 }
   0xa   :  { %7967 = sst [smem:[#allocation51_spill]] %s7797_s9 }
   0xb   :  { %7968 = sst [smem:[#allocation52_spill]] %s7799_s11 }
   0xc   :  { %7969 = sst [smem:[#allocation53_spill]] %s7800_s12 }
   0xd   :  { %7970 = sst [smem:[#allocation54_spill]] %s7801_s13 }
   0xe   :  { %7971 = sst [smem:[#allocation55_spill]] %s7802_s14 }
   0xf   :  { %22 = vsyncpa [#allocation15], 0 }
  0x10   :  { %23 = vsyncpa [#allocation18], 0 }
  0x11   :  { %24 = vsyncpa [#allocation16], 0 }
  0x12   :  { %26 = vsyncpa [#allocation16 + $0x1], 0 }
  0x13   :  { %27 = vsyncpa [#allocation21], 0 }
  0x14   :  { %29 = vsyncpa [#allocation21 + $0x1], 0 }
  0x15   :  { %30 = vsyncpa [#allocation24], 0 }
  0x16   :  { %32 = vsyncpa [#allocation24 + $0x1], 0  ;;  %s6495_s15 = smov 0   ;;  %s6497_s16 = smov 0  }
  0x17   :  { %s6499_s17 = smov 0   ;;  %s6501_s18 = smov 0  }
  0x18 LB: > { %7972 = sst [smem:[#allocation30_spill]] %s6342_s15  ;;  %s6516_s10 = sadd.s32 4294967295, %s6354_s18   ;;  %s6354_s18 = sphi %s6501_s18, %s8194_s18   ;;  %s6350_s17 = sphi %s6499_s17, %s8197_s17   ;;  %s6346_s16 = sphi %s6497_s16, %s8196_s16   ;;  %s6342_s15 = sphi %s6495_s15, %s8195_s15  }
  0x19   : > { %7973 = sst [smem:[#allocation31_spill]] %s6346_s16  ;;  %s7803_s19 = sadd.s32 4294967294, %s6354_s18  }
  0x1a   : > { %7974 = sst [smem:[#allocation32_spill]] %s6350_s17  ;;  %s6520_s20 = sadd.s32 1, %s6354_s18  }
  0x1b   : > { %7975 = sst [smem:[#allocation33_spill]] %s6354_s18  ;;  %s281_s21 = sadd.s32 1, %s6350_s17 }
  0x1c   : > { %7976 = sst [smem:[#allocation34_spill]] %s6516_s10  ;;  %s278_s22 = ssub.s32 %s6354_s18, %s6520_s20 }
  0x1d   : > { %7977 = sst [smem:[#allocation35_spill]] %s6520_s20  ;;  %p291_p0 = scmp.ne.s32.totalorder %s6350_s17, %s6346_s16 }
  0x1e   : > { %p279_p1 = scmp.eq.s32.totalorder %s278_s22, 0  ;;  %p292_p2 = scmp.eq.s32.totalorder %s6516_s10, 1 }
  0x1f   : > { %p297_p3 = scmp.ne.s32.totalorder %s6346_s16, %s6342_s15  ;;  %p298_p4 = scmp.eq.s32.totalorder %s7803_s19, 1 }
  0x20   : > { %s6533_s23 = scalar_select %p279_p1, %s6350_s17, %s281_s21  }
  0x21   : > { %p6535_p5 = por %p292_p2, %p291_p0  ;;  %p6539_p6 = por %p298_p4, %p297_p3 }
  0x22   : > { %7978 = sst [smem:[#allocation36_spill]] %s6533_s23  ;;  %p5203_p7 = scmp.ge.s32.totalorder %s6354_s18, 1 }
  0x23   : > { %s7979_s24 = scalar_select %p6535_p5, 1, 0 }
  0x24   : > { %s7981_s25 = scalar_select %p6539_p6, 1, 0 }
  0x25   : > { %7980 = sst [smem:[#allocation37_spill]] %s7979_s24  ;;  %p383_p8 = scmp.lt.s32.totalorder %s6354_s18, 3 }
  0x26   : > { %7982 = sst [smem:[#allocation38_spill]] %s7981_s25  ;;  %p7808_p9 = scmp.eq.s32.totalorder %s6516_s10, 0 }
  0x27   : > { %p6546_p10 = pnand %p5203_p7, %p383_p8  ;;  %s6356_s27 = smov [#allocation14]  }
  0x28   : > { %s395_s28 = sshll.u32 %s6356_s27, 4  ;;  %s6357_s30 = smov [#allocation17]   ;;  %s396_s28 = int_to_ptr.vmem [resolvable:$true] %s395_s28 }
  0x29   : > { %s7983_s26 = scalar_select %p6546_p10, 1, 0 }
  0x2a   : > { %p5654_p11 = pneg %p6546_p10  ;;  %s420_s21 = sshll.u32 %s6357_s30, 4  ;;  %s6558_s21 = int_to_ptr.vmem [resolvable:$true] %s420_s21 }
  0x2b   : > { %s7985_s1 = sld [smem:[#allocation43_spill]] }
  0x2c   : > { %p6554_p12 = pnand %p7808_p9, %p5654_p11 }
  0x2e   : > { %p6138_p0 = pneg %p6554_p12 }
  0x31   : > { %s6136_s23 = scalar_lea.hbm %s7985_s1, 8320 }
  0x32   : > { %p6137_p13 = scmp.ne.s32.totalorder %s7985_s1, %s6136_s23  ;;  %p6143_p3 = scmp.lt.u32.totalorder %s6136_s23, %s7985_s1 }
  0x34   : > { %p6139_p1 = pnand %p6138_p0, %p6137_p13 }
  0x36   : > { %p6140_p2 = pneg %p6139_p1 }
  0x38   : > { %p6145_p4 = pnand %p6143_p3, %p6140_p2 }
  0x3a   : > { %6148 = shalt.err (!%p6145_p4)
}
  0x3b   : > { %s6149_s30 = scalar_lea.vmem %s396_s28, 8320  ;;  %p6157_p9 = scmp.lt.s32.totalorder %s396_s28, %s396_s28 }
  0x3c   : > { %p6150_p7 = scmp.ne.s32.totalorder %s396_s28, %s6149_s30  ;;  %p6158_p6 = scmp.lt.s32.totalorder %s6149_s30, %s6149_s30 }
  0x3e   : > { %p6152_p8 = pnand %p6150_p7, %p6138_p0  ;;  %p6159_p5 = por %p6158_p6, %p6157_p9 }
  0x40   : > { %p6153_p11 = pneg %p6152_p8 }
  0x42   : > { %p6160_p10 = pnand %p6159_p5, %p6153_p11 }
  0x44   : > { %6163 = shalt.err (!%p6160_p10)
}
  0x45   : > { %s6358_s17 = smov 128   ;;  %s6359_s19 = smov 8  }
  0x46   : > { %5657 = dma.hbm_to_vmem [thread:$0]  (!%p6554_p12), %s7985_s1, 8320, %s396_s28, [#allocation15], %s6358_s17, %s6358_s17, %s6359_s19  }
  0x47   : > { %s7986_s6 = sld [smem:[#allocation48_spill]] }
  0x4d   : > { %s6164_s27 = scalar_lea.hbm %s7986_s6, 8192 }
  0x4e   : > { %p6165_p13 = scmp.ne.s32.totalorder %s7986_s6, %s6164_s27  ;;  %p6171_p9 = scmp.lt.u32.totalorder %s6164_s27, %s7986_s6 }
  0x50   : > { %p6167_p5 = pnand %p6165_p13, %p6138_p0 }
  0x52   : > { %p6168_p6 = pneg %p6167_p5 }
  0x54   : > { %p6173_p10 = pnand %p6171_p9, %p6168_p6 }
  0x56   : > { %6176 = shalt.err (!%p6173_p10)
}
  0x57   : > { %s6177_s28 = scalar_lea.vmem %s6558_s21, 8192  ;;  %p6185_p4 = scmp.lt.s32.totalorder %s6558_s21, %s6558_s21 }
  0x58   : > { %p6178_p1 = scmp.ne.s32.totalorder %s6558_s21, %s6177_s28  ;;  %p6186_p7 = scmp.lt.s32.totalorder %s6177_s28, %s6177_s28 }
  0x5a   : > { %p6180_p2 = pnand %p6178_p1, %p6138_p0  ;;  %p6187_p8 = por %p6186_p7, %p6185_p4 }
  0x5c   : > { %p6181_p3 = pneg %p6180_p2 }
  0x5e   : > { %p6188_p11 = pnand %p6187_p8, %p6181_p3 }
  0x60   : > { %6191 = shalt.err (!%p6188_p11)
}
  0x61   : > { %5660 = dma.hbm_to_vmem [thread:$0]  (!%p6554_p12), %s7986_s6, 8192, %s6558_s21, [#allocation18], %s6358_s17, %s6358_s17, %s6359_s19  }
  0x62   : > { %p7987_p13 = scmp.ne.s32.totalorder %s7983_s26, 0 }
  0x64   : > { %455 = sbr.rel (%p7987_p13) target bundleno = 3046 (0xbe6), region = 64 }
  0x6b   : > { %p7988_p5 = scmp.eq.s32.totalorder %s6516_s10, 0 }
  0x6d   : > { %6321 = dma.done.wait (%p7988_p5), [#allocation15], 8320   ;;  %p7989_p0 = pmov %p7988_p5 }
  0x6f   : > { %6323 = vsyncadd (%p7989_p0), [#allocation15], 4294958976  ;;  %p7990_p6 = pmov %p7989_p0 }
  0x70   : > { %p7991_p9 = pmov %p7989_p0 }
  0x71   : > { %6325 = dma.done.wait (%p7990_p6), [#allocation18], 8192  }
  0x72   : > { %6327 = vsyncadd (%p7991_p9), [#allocation18], 4294959104  ;;  %p518_p10 = scmp.lt.s32.totalorder %s6516_s10, 1  ;;  %v536_v1 = vlaneseq  ;;  %v6360_v2 = vmov 1966171168   ;;  %s7992_s0 = sld [smem:[#allocation42_spill]] }
  0x73   : > { %v552_v3 = vunpack.c.l.s4 %v6360_v2  ;;  %vm568_vm0 = vcmask 15360   ;;  %v6361_v8 = vmov 0   ;;  %v5770_v13 = vld [vmem:[#allocation14 + $0x4] ss:$8 sps:$4 sm:$0xff]   ;;  %v5772_v14 = vld [vmem:[#allocation14] ss:$8 sps:$4 sm:$0xff]  }
  0x74   : > { %s519_s18 = scalar_select %p518_p10, %s6516_s10, 1  ;;  %v6620_v4 = vshrl.u32 %v536_v1, 7  ;;  %4649 = vst.msk [vmem:[#allocation9] sm:$0xff] %vm568_vm0, %v6361_v8  ;;  %4650 = vst.msk [vmem:[#allocation9 + $0x8] sm:$0xff] %vm568_vm0, %v6361_v8  ;;  %1299 = vmatprep.mubr.bf16.mxu1 %v6361_v8  ;;  %5768 = vset.pattern.permute.xlu0 %v6361_v8  ;;  %v5773_v15 = vld [vmem:[#allocation14 + $0x14] ss:$8 sps:$4 sm:$0xff]  }
  0x75   : > { %v553_v7 = vunpack.c.0.s8 %v552_v3  ;;  %5769 = vset.pattern.permute.xlu1 %v6361_v8  ;;  %830 = vmatprep.subr.bf16.mxu0 %v5770_v13  ;;  %v5775_v17 = vld [vmem:[#allocation14 + $0x10] ss:$8 sps:$4 sm:$0xff]   ;;  %v5776_v19 = vld [vmem:[#allocation14 + $0x24] ss:$8 sps:$4 sm:$0xff]   ;;  %v5778_v21 = vld [vmem:[#allocation14 + $0x20] ss:$8 sps:$4 sm:$0xff]  }
  0x76   : > { %s5213_s26 = sshll.u32 %s519_s18, 1  ;;  %v538_v5 = vsub.s32 0, %v6620_v4  ;;  %v542_v6 = vsub.s32 1, %v6620_v4  ;;  %831 = vmatpush1.bf16.msra.mxu0 %v5772_v14  ;;  %s7815_s19 = smov 2   ;;  %v5779_v22 = vld [vmem:[#allocation14 + $0x34] ss:$8 sps:$4 sm:$0xff]  }
  0x77   : > { %v6637_v12 = vsub.s32 %v553_v7, %v6620_v4  ;;  %832 = vmatprep.subr.bf16.mxu0 %v5773_v15  ;;  %vm523_vm1 = vcmask 8192   ;;  %v5781_v23 = vld [vmem:[#allocation14 + $0x30] ss:$8 sps:$4 sm:$0xff]   ;;  %vm524_vm2 = vsmask.f32 256  ;;  %vm529_vm3 = vcmask 24592  }
  0x78   : > { %s521_s17 = scalar_lea.vmem %s7992_s0, %s5213_s26  ;;  %v5782_v24 = vld [vmem:[#allocation14 + $0x44] ss:$8 sps:$4 sm:$0xff]   ;;  %vm6643_vm4 = vmand %vm523_vm1, %vm524_vm2  ;;  %vm584_vm5 = vcmask 49152   ;;  %v5784_v26 = vld [vmem:[#allocation14 + $0x40] ss:$8 sps:$4 sm:$0xff]   ;;  %vm589_vm7 = vcmask 114752  }
  0x79   : > { %v534_v9 = vld [vmem:[%s521_s17] sm:$0x3]  ;;  %vm6648_vm6 = vmand %vm529_vm3, %vm524_vm2  ;;  %v586_v28 = vld [vmem:[#allocation3] sm:$0x1]  ;;  %vm7921_vm10 = vcmask 1041408   ;;  %vm571_vm11 = vcmask 1040400  }
  0x7a   : > { %v539_v10 = vrot.slane %v534_v9, %v538_v5  ;;  %v543_v11 = vrot.slane %v534_v9, %v542_v6  ;;  %833 = vmatpush1.bf16.msra.mxu0 %v5775_v17  ;;  %v5785_v29 = vld [vmem:[#allocation14 + $0x54] ss:$8 sps:$4 sm:$0xff]   ;;  %v591_v30 = vld [vmem:[#allocation3 + $0x1] sm:$0x1]  ;;  %v526_v31 = vld [vmem:[#allocation2] sm:$0x1] }
  0x7b   : > { %834 = vmatprep.subr.bf16.mxu0 %v5776_v19  ;;  %vm585_vm8 = vmand %vm584_vm5, %vm524_vm2  ;;  %v527_v32 = vsel %vm6643_vm4, 0, %v526_v31  ;;  %v531_v33 = vld [vmem:[#allocation2 + $0x2] sm:$0x1]  ;;  %v5787_v36 = vld [vmem:[#allocation14 + $0x50] ss:$8 sps:$4 sm:$0xff]   ;;  %vm573_vm12 = vcmask 1041409  }
  0x7c   : > { %v5214_v16 = vpack.c.bf16 %v543_v11, %v539_v10  ;;  %v587_v34 = vsel %vm585_vm8, 0, %v586_v28  ;;  %vm590_vm9 = vmand %vm589_vm7, %vm524_vm2  ;;  %528 = vst [vmem:[#allocation2] sm:$0x1] %v527_v32  ;;  %v532_v35 = vsel %vm6648_vm6, 0, %v531_v33  ;;  %v5788_v38 = vld [vmem:[#allocation14 + $0x64] ss:$8 sps:$4 sm:$0xff]  }
  0x7d   : > { %v592_v37 = vsel %vm590_vm9, 0, %v591_v30  ;;  %533 = vst [vmem:[#allocation2 + $0x2] sm:$0x1] %v532_v35  ;;  %588 = vst [vmem:[#allocation3] sm:$0x1] %v587_v34  ;;  %vm577_vm1 = vcmask 10242  }
  0x7e   : > { %v557_v18 = vrot.slane %v5214_v16, %v6637_v12  ;;  %835 = vmatpush1.bf16.msra.mxu0 %v5778_v21  ;;  %593 = vst [vmem:[#allocation3 + $0x1] sm:$0x1] %v592_v37  ;;  %v5790_v39 = vld [vmem:[#allocation14 + $0x60] ss:$8 sps:$4 sm:$0xff]   ;;  %v5791_v40 = vld [vmem:[#allocation14 + $0x74] ss:$8 sps:$4 sm:$0xff]   ;;  %vm572_vm14 = vmand %vm571_vm11, %vm524_vm2 }
  0x7f   : > { %836 = vmatprep.subr.bf16.mxu0 %v5779_v22  ;;  %v5793_v41 = vld [vmem:[#allocation14 + $0x70] ss:$8 sps:$4 sm:$0xff]   ;;  %v5794_v42 = vld [vmem:[#allocation14 + $0x84] ss:$8 sps:$4 sm:$0xff]   ;;  %v5796_v43 = vld [vmem:[#allocation14 + $0x80] ss:$8 sps:$4 sm:$0xff]  }
  0x80   : > { %v564_v20 = vrot.slane %v557_v18, %v6637_v12  ;;  %v5797_v44 = vld [vmem:[#allocation14 + $0x94] ss:$8 sps:$4 sm:$0xff]   ;;  %v5799_v45 = vld [vmem:[#allocation14 + $0x90] ss:$8 sps:$4 sm:$0xff]   ;;  %v5800_v46 = vld [vmem:[#allocation14 + $0xa4] ss:$8 sps:$4 sm:$0xff]  }
  0x81   : > { %v5802_v47 = vld [vmem:[#allocation14 + $0xa0] ss:$8 sps:$4 sm:$0xff]   ;;  %v5803_v48 = vld [vmem:[#allocation14 + $0xb4] ss:$8 sps:$4 sm:$0xff]   ;;  %v5805_v49 = vld [vmem:[#allocation14 + $0xb0] ss:$8 sps:$4 sm:$0xff]  }
  0x82   : > { %565 = vrot.lane.b32.xlu0 %v564_v20, %s7815_s19  ;;  %837 = vmatpush1.bf16.msra.mxu0 %v5781_v23  ;;  %v5806_v50 = vld [vmem:[#allocation14 + $0xc4] ss:$8 sps:$4 sm:$0xff]   ;;  %v5808_v51 = vld [vmem:[#allocation14 + $0xc0] ss:$8 sps:$4 sm:$0xff]   ;;  %v5809_v52 = vld [vmem:[#allocation14 + $0xd4] ss:$8 sps:$4 sm:$0xff]  }
  0x83   : > { %838 = vmatprep.subr.bf16.mxu0 %v5782_v24  ;;  %v5811_v53 = vld [vmem:[#allocation14 + $0xd0] ss:$8 sps:$4 sm:$0xff]   ;;  %v5812_v54 = vld [vmem:[#allocation14 + $0xe4] ss:$8 sps:$4 sm:$0xff]   ;;  %v5814_v55 = vld [vmem:[#allocation14 + $0xe0] ss:$8 sps:$4 sm:$0xff]  }
  0x84   : > { %v5815_v56 = vld [vmem:[#allocation14 + $0xf4] ss:$8 sps:$4 sm:$0xff]   ;;  %v627_v57 = vld [vmem:[#allocation14 + $0x100] sm:$0x33]  ;;  %v5817_v58 = vld [vmem:[#allocation14 + $0xf0] ss:$8 sps:$4 sm:$0xff]  }
  0x85   : > { %v5249_v59 = vcombine.high %v627_v57, %v627_v57  ;;  %vm574_vm13 = vsmask.f32 1280  ;;  %vm578_vm3 = vsmask.f32 2304  ;;  %v581_v62 = vld [vmem:[#allocation2] sm:$0x7]  ;;  %v5248_v3 = vcombine.low %v627_v57, %v627_v57 }
  0x86   : > { %839 = vmatpush1.bf16.msra.mxu0 %v5784_v26  ;;  %vm575_vm15 = vmand %vm573_vm12, %vm574_vm13  ;;  %vm819_vm7 = vcmask 31744   ;;  %s6363_s20 = smov 7   ;;  %vm939_vm8 = vcmask 58369   ;;  %vm934_vm12 = vcmask 56320   ;;  %v942_v21 = vld [vmem:[#allocation3] sm:$0x3] }
  0x87   : > { %840 = vmatprep.subr.bf16.mxu0 %v5785_v29  ;;  %vm576_vm4 = vmor %vm575_vm15, %vm572_vm14  ;;  %v825_v10 = vsel %vm7921_vm10, %v5248_v3, 0  ;;  %s7829_s23 = smov 125   ;;  %s7841_s25 = smov 127   ;;  %vm975_vm15 = vcmask 1039360  }
  0x88   : > { %vm579_vm5 = vmand %vm577_vm1, %vm578_vm3  ;;  %s7831_s22 = smov 123   ;;  %s7897_s27 = smov 126   ;;  %vm1051_vm1 = vcmask 1006592   ;;  %vm994_vm3 = vcmask 1031168  }
  0x89   : > { %vm580_vm6 = vmor %vm579_vm5, %vm576_vm4  ;;  %s7833_s30 = smov 121   ;;  %s7895_s28 = smov 124   ;;  %vm7957_vm4 = vcmask 990208   ;;  %vm1032_vm5 = vcmask 1014784  }
  0x8a   : > { %841 = vmatpush1.bf16.msra.mxu0 %v5787_v36  ;;  %vm940_vm11 = vmand %vm939_vm8, %vm574_vm13  ;;  %s7819_s14 = smov 119   ;;  %s7899_s15 = smov 122   ;;  %vm1013_vm13 = vcmask 1022976   ;;  %vm7956_vm8 = vcmask 982016  }
  0x8b   : > { %842 = vmatprep.subr.bf16.mxu0 %v5788_v38  ;;  %s7817_s18 = smov 117   ;;  %s7835_s26 = smov 120  }
  0x8c   : > { %s7821_s29 = smov 115   ;;  %s7837_s21 = smov 118  }
  0x8d   : > { %s7839_s17 = smov 116   ;;  %s7999_s3 = sld [smem:[#allocation45_spill]] }
  0x8e   : > { %843 = vmatpush1.bf16.msra.mxu0 %v5790_v39  ;;  %s8000_s2 = sld [smem:[#allocation44_spill]]  ;;  %s8016_s0 = smov 110  }
  0x8f   : > { %844 = vmatprep.subr.bf16.mxu0 %v5791_v40  ;;  %s8017_s1 = smov 108   ;;  %s8022_s6 = smov 111  }
  0x90   : > { %s8026_s11 = smov 109   ;;  %s8028_s13 = smov 107  }
  0x91   : > { %s8029_s12 = smov 100   ;;  %s8030_s24 = smov 105  }
  0x92   : > { %845 = vmatpush1.bf16.msra.mxu0 %v5793_v41  ;;  %s8031_s9 = smov 98   ;;  %s8033_s10 = smov 103  }
  0x93   : > { %846 = vmatprep.subr.bf16.mxu0 %v5794_v42  ;;  %s8037_s7 = smov 101   ;;  %s8039_s8 = smov 94  }
  0x94   : > { %s8043_s5 = smov 92   ;;  %s8044_s4 = smov 97  }
  0x96   : > { %847 = vmatpush1.bf16.msra.mxu0 %v5796_v43 }
  0x97   : > { %848 = vmatprep.subr.bf16.mxu0 %v5797_v44 }
  0x9a   : > { %849 = vmatpush1.bf16.msra.mxu0 %v5799_v45  ;;  %v5820_v45 = vld [vmem:[%s8000_s2] sm:$0xff]   ;;  %s8018_s2 = smov 113  }
  0x9b   : > { %850 = vmatprep.subr.bf16.mxu0 %v5800_v46 }
  0x9e   : > { %851 = vmatpush1.bf16.msra.mxu0 %v5802_v47 }
  0x9f   : > { %852 = vmatprep.subr.bf16.mxu0 %v5803_v48 }
  0xa2   : > { %853 = vmatpush1.bf16.msra.mxu0 %v5805_v49 }
  0xa3   : > { %854 = vmatprep.subr.bf16.mxu0 %v5806_v50 }
  0xa6   : > { %855 = vmatpush1.bf16.msra.mxu0 %v5808_v51 }
  0xa7   : > { %856 = vmatprep.subr.bf16.mxu0 %v5809_v52 }
  0xaa   : > { %857 = vmatpush1.bf16.msra.mxu0 %v5811_v53 }
  0xab   : > { %858 = vmatprep.subr.bf16.mxu0 %v5812_v54 }
  0xae   : > { %859 = vmatpush1.bf16.msra.mxu0 %v5814_v55 }
  0xaf   : > { %860 = vmatprep.subr.bf16.mxu0 %v5815_v56 }
  0xb2   : > { %861 = vmatpush1.bf16.msra.mxu0 %v5817_v58 }
  0xb3   : > { %5250 = vmatprep.subr.msk.bf16.mxu0 %vm7921_vm10, %v5249_v59 }
  0xf4   : > { %v566_v60 = vpop.permute.xlu0 %565 }
  0xf5   : > { %v567_v61 = vrot.slane %v566_v60, 7 }
  0xf7   : > { %v569_v63 = vsel %vm568_vm0, %v567_v61, %v566_v60  ;;  %vm937_vm0 = vcmask 1040440  }
  0xf8   : > { %v582_v0 = vsel %vm580_vm6, %v569_v63, %v581_v62  ;;  %vm938_vm9 = vmand %vm937_vm0, %vm524_vm2  ;;  %vm6679_vm2 = vcmp.lt.s32.totalorder %v536_v1, 129  ;;  %vm7828_vm6 = vcmask 973824   ;;  %vm7824_vm0 = vcmask 957440  }
  0xf9   : > { %583 = vst [vmem:[#allocation2] sm:$0x7] %v582_v0  ;;  %vm941_vm14 = vmor %vm940_vm11, %vm938_vm9  ;;  %vm7823_vm9 = vcmask 941056   ;;  %vm7827_vm11 = vcmask 965632  }
 0x100   : > { %v5215_v2 = vld.sshfl [vmem:[#allocation2] sm:$0x13 pattern:$0x75316420] }
 0x101   : > { %v636_v6 = vcombine.high %v5215_v2, %v5215_v2  ;;  %v643_v9 = vrot.slane %v5215_v2, %v6637_v12 }
 0x103   : > { %v650_v7 = vrot.slane %v636_v6, %v6637_v12  ;;  %v651_v11 = vcombine.high %v643_v9, %v643_v9 }
 0x105   : > { %862 = vmatprep.mubr.bf16.mxu0 %v650_v7 }
 0x106   : > { %863 = vmatmul.mubr.bf16.vlgmr.msra.gmra.mrb[0].mxu0 %v643_v9 }
 0x107   : > { %872 = vmatpush1.bf16.msra.mxu0 %v825_v10  ;;  %903 = vmatprep.mubr.bf16.mxu0 %v6361_v8  ;;  %v1236_v10 = vld [vmem:[%s7999_s3] sm:$0xff] }
 0x112   : > { %5251 = vmatmul.mubr.msk.bf16.vlgmr.msra.gmra.mrb[0].mxu0 %vm819_vm7, %v651_v11  ;;  %v1237_v11 = vld [vmem:[%s7999_s3 + $0x8] sm:$0xff]  ;;  %vm1070_vm7 = vcmask 998400   ;;  %s8021_s3 = smov 106  }
 0x1e5   : > { %v905_v13 = vpop.f32.mrb[0].mxu0 }
 0x1e6   : > { %v907_v14 = vpop.f32.mrb[1].mxu0 }
 0x1e7   : > { %v5252_v15 = vpack.c.bf16 %v907_v14, %v905_v13  ;;  %v909_v16 = vpop.f32.mrb[2].mxu0 }
 0x1e8   : > { %v910_v17 = vpop.f32.mrb[3].mxu0 }
 0x1e9   : > { %v923_v18 = vrot.slane %v5252_v15, %v6637_v12 }
 0x1eb   : > { %v930_v19 = vrot.slane %v923_v18, %v6637_v12 }
 0x1ed   : > { %931 = vrot.lane.b32.xlu0 %v930_v19, %s6363_s20  ;;  %s7843_s20 = smov 114  }
 0x25f   : > { %v932_v20 = vpop.permute.xlu0 %931 }
 0x260   : > { %v933_v22 = vrot.slane %v932_v20, 7 }
 0x262   : > { %v935_v23 = vsel %vm934_vm12, %v933_v22, %v932_v20  ;;  %vm7826_vm12 = vcmask 949248  }
 0x263   : > { %v943_v24 = vsel %vm941_vm14, %v935_v23, %v942_v21  ;;  %vm7825_vm14 = vcmask 932864  }
 0x264   : > { %944 = vst [vmem:[#allocation3] sm:$0x3] %v943_v24 }
 0x26b   : > { %v1000_v25 = vld [vmem:[#allocation3] sm:$0x3] }
 0x26c   : > { %v962_v26 = vld [vmem:[#allocation3] sm:$0x3]  ;;  %v1001_v28 = vunpack.c.l.bf16 %v1000_v25 }
 0x26d   : > { %v1038_v27 = vld [vmem:[#allocation3] sm:$0x3]  ;;  %v963_v29 = vunpack.c.l.bf16 %v962_v26 }
 0x26e   : > { %v981_v30 = vld [vmem:[#allocation3] sm:$0x3]  ;;  %v1009_v31 = vrot.slane %v1001_v28, %v6637_v12  ;;  %v1039_v33 = vunpack.c.l.bf16 %v1038_v27 }
 0x26f   : > { %v971_v32 = vrot.slane %v963_v29, %v6637_v12  ;;  %v982_v34 = vunpack.c.l.bf16 %v981_v30  ;;  %v1076_v35 = vld [vmem:[#allocation3] sm:$0x3] }
 0x270   : > { %v1019_v36 = vld [vmem:[#allocation3] sm:$0x3]  ;;  %1010 = vrot.lane.b32.xlu0 %v1009_v31, %s7829_s23  ;;  %v1047_v38 = vrot.slane %v1039_v33, %v6637_v12  ;;  %v1077_v40 = vunpack.c.l.bf16 %v1076_v35 }
 0x271   : > { %972 = vrot.lane.b32.xlu1 %v971_v32, %s7841_s25  ;;  %v945_v37 = vld [vmem:[#allocation3] sm:$0x3]  ;;  %v990_v39 = vrot.slane %v982_v34, %v6637_v12  ;;  %v1020_v41 = vunpack.c.l.bf16 %v1019_v36 }
 0x272   : > { %v1114_v42 = vld [vmem:[#allocation3] sm:$0x3]  ;;  %v946_v44 = vunpack.c.l.bf16 %v945_v37  ;;  %v1085_v47 = vrot.slane %v1077_v40, %v6637_v12 }
 0x273   : > { %v1057_v43 = vld [vmem:[#allocation3] sm:$0x3]  ;;  %v1115_v46 = vunpack.c.l.bf16 %v1114_v42  ;;  %v1028_v48 = vrot.slane %v1020_v41, %v6637_v12 }
 0x274   : > { %1048 = vrot.lane.b32.xlu0 %v1047_v38, %s7831_s22  ;;  %v1058_v49 = vunpack.c.l.bf16 %v1057_v43  ;;  %v954_v50 = vrot.slane %v946_v44, %v6637_v12  ;;  %v1152_v51 = vld [vmem:[#allocation3] sm:$0x3] }
 0x275   : > { %991 = vrot.lane.b32.xlu1 %v990_v39, %s7897_s27  ;;  %v1095_v52 = vld [vmem:[#allocation3] sm:$0x3]  ;;  %v1123_v1 = vrot.slane %v1115_v46, %v6637_v12  ;;  %v1153_v54 = vunpack.c.l.bf16 %v1152_v51 }
 0x276   : > { %960 = vst.msk [vmem:[#allocation4] ss:$8 sm:$0x3] %vm6679_vm2, %v954_v50  ;;  %v1066_v53 = vrot.slane %v1058_v49, %v6637_v12  ;;  %v1096_v55 = vunpack.c.l.bf16 %v1095_v52  ;;  %v1190_v56 = vld [vmem:[#allocation3] sm:$0x3] }
 0x277   : > { %v1133_v57 = vld [vmem:[#allocation3] sm:$0x3]  ;;  %v1161_v58 = vrot.slane %v1153_v54, %v6637_v12  ;;  %v1191_v60 = vunpack.c.l.bf16 %v1190_v56  ;;  %v6378_v54 = vmov 65535  }
 0x278   : > { %1086 = vrot.lane.b32.xlu0 %v1085_v47, %s7833_s30  ;;  %v1104_v59 = vrot.slane %v1096_v55, %v6637_v12  ;;  %v1134_v61 = vunpack.c.l.bf16 %v1133_v57  ;;  %v1171_v62 = vld [vmem:[#allocation3] sm:$0x3] }
 0x279   : > { %1029 = vrot.lane.b32.xlu1 %v1028_v48, %s7895_s28  ;;  %v1199_v63 = vrot.slane %v1191_v60, %v6637_v12  ;;  %v1172_v2 = vunpack.c.l.bf16 %v1171_v62  ;;  %v1209_v3 = vld [vmem:[#allocation3] sm:$0x3] }
 0x27a   : > { %v1142_v0 = vrot.slane %v1134_v61, %v6637_v12  ;;  %v1210_v7 = vunpack.c.l.bf16 %v1209_v3 }
 0x27b   : > { %v1180_v6 = vrot.slane %v1172_v2, %v6637_v12 }
 0x27c   : > { %1124 = vrot.lane.b32.xlu0 %v1123_v1, %s7819_s14  ;;  %v1218_v9 = vrot.slane %v1210_v7, %v6637_v12  ;;  %s6379_s14 = smov 20  }
 0x27d   : > { %1067 = vrot.lane.b32.xlu1 %v1066_v53, %s7899_s15 }
 0x280   : > { %1162 = vrot.lane.b32.xlu0 %v1161_v58, %s7817_s18  ;;  %s6764_s18 = sand.u32 1, %s6346_s16   ;;  %s8025_s16 = smov 104  }
 0x281   : > { %1105 = vrot.lane.b32.xlu1 %v1104_v59, %s7835_s26  ;;  %8001 = sst [smem:[#allocation39_spill]] %s6764_s18 }
 0x284   : > { %1200 = vrot.lane.b32.xlu0 %v1199_v63, %s7821_s29  ;;  %s6768_s29 = sshll.u32 %s6764_s18, 5  ;;  %s8027_s18 = smov 102  }
 0x285   : > { %1143 = vrot.lane.b32.xlu1 %v1142_v0, %s7837_s21  ;;  %8002 = sst [smem:[#allocation40_spill]] %s6768_s29  ;;  %s6771_s19 = scalar_lea.vmem [#allocation19], %s6768_s29 }
 0x286   : > { %8003 = sst [smem:[#allocation41_spill]] %s6771_s19  ;;  %s8041_s29 = smov 99  }
 0x288   : > { %1240 = vperm.xlu0 %5768, %v1236_v10  }
 0x289   : > { %1181 = vrot.lane.b32.xlu1 %v1180_v6, %s7839_s17 }
 0x28d   : > { %1219 = vrot.lane.b32.xlu1 %v1218_v9, %s7843_s20 }
 0x291   : > { %1245 = vperm.xlu1 %5769, %v1237_v11  }
 0x2e2   : > { %v1011_v13 = vpop.permute.xlu0 %1010 }
 0x2e3   : > { %v973_v14 = vpop.permute.xlu1 %972  ;;  %v1012_v15 = vrot.slane %v1011_v13, 1 }
 0x2e4   : > { %v974_v16 = vrot.slane %v973_v14, 1 }
 0x2e5   : > { %v1014_v12 = vsel %vm1013_vm13, %v1011_v13, %v1012_v15 }
 0x2e6   : > { %v976_v17 = vsel %vm975_vm15, %v973_v14, %v974_v16  ;;  %1017 = vst.msk [vmem:[#allocation4 + $0x3] ss:$8 sm:$0x3] %vm6679_vm2, %v1014_v12  ;;  %v1049_v18 = vpop.permute.xlu0 %1048 }
 0x2e7   : > { %979 = vst.msk [vmem:[#allocation4 + $0x1] ss:$8 sm:$0x3] %vm6679_vm2, %v976_v17  ;;  %v992_v19 = vpop.permute.xlu1 %991  ;;  %v1050_v20 = vrot.slane %v1049_v18, 1 }
 0x2e8   : > { %v993_v21 = vrot.slane %v992_v19, 1 }
 0x2e9   : > { %v1052_v22 = vsel %vm1051_vm1, %v1049_v18, %v1050_v20 }
 0x2ea   : > { %v995_v23 = vsel %vm994_vm3, %v992_v19, %v993_v21  ;;  %1055 = vst.msk [vmem:[#allocation4 + $0x5] ss:$8 sm:$0x3] %vm6679_vm2, %v1052_v22  ;;  %v1087_v24 = vpop.permute.xlu0 %1086 }
 0x2eb   : > { %998 = vst.msk [vmem:[#allocation4 + $0x2] ss:$8 sm:$0x3] %vm6679_vm2, %v995_v23  ;;  %v1030_v25 = vpop.permute.xlu1 %1029  ;;  %v1088_v26 = vrot.slane %v1087_v24, 1 }
 0x2ec   : > { %v1031_v27 = vrot.slane %v1030_v25, 1 }
 0x2ed   : > { %v1090_v28 = vsel %vm7957_vm4, %v1087_v24, %v1088_v26 }
 0x2ee   : > { %v1033_v29 = vsel %vm1032_vm5, %v1030_v25, %v1031_v27  ;;  %1093 = vst.msk [vmem:[#allocation4 + $0x7] ss:$8 sm:$0x3] %vm6679_vm2, %v1090_v28  ;;  %v1125_v30 = vpop.permute.xlu0 %1124 }
 0x2ef   : > { %1036 = vst.msk [vmem:[#allocation4 + $0x4] ss:$8 sm:$0x3] %vm6679_vm2, %v1033_v29  ;;  %v1068_v31 = vpop.permute.xlu1 %1067  ;;  %v1126_v32 = vrot.slane %v1125_v30, 1 }
 0x2f0   : > { %v1069_v33 = vrot.slane %v1068_v31, 1 }
 0x2f1   : > { %v1128_v34 = vsel %vm7828_vm6, %v1125_v30, %v1126_v32  ;;  %vm1345_vm6 = vcmask 171008  }
 0x2f2   : > { %v1071_v35 = vsel %vm1070_vm7, %v1068_v31, %v1069_v33  ;;  %1131 = vst.msk [vmem:[#allocation4 + $0x11] ss:$8 sm:$0x3] %vm6679_vm2, %v1128_v34  ;;  %v1163_v36 = vpop.permute.xlu0 %1162 }
 0x2f3   : > { %1074 = vst.msk [vmem:[#allocation4 + $0x6] ss:$8 sm:$0x3] %vm6679_vm2, %v1071_v35  ;;  %v1106_v37 = vpop.permute.xlu1 %1105  ;;  %v1164_v38 = vrot.slane %v1163_v36, 1 }
 0x2f4   : > { %v1107_v39 = vrot.slane %v1106_v37, 1 }
 0x2f5   : > { %v1166_v40 = vsel %vm7824_vm0, %v1163_v36, %v1164_v38  ;;  %vm1258_vm0 = vcmask 1047552  }
 0x2f6   : > { %v1109_v41 = vsel %vm7956_vm8, %v1106_v37, %v1107_v39  ;;  %1169 = vst.msk [vmem:[#allocation4 + $0x13] ss:$8 sm:$0x3] %vm6679_vm2, %v1166_v40  ;;  %v1201_v42 = vpop.permute.xlu0 %1200 }
 0x2f7   : > { %1112 = vst.msk [vmem:[#allocation4 + $0x10] ss:$8 sm:$0x3] %vm6679_vm2, %v1109_v41  ;;  %v1144_v43 = vpop.permute.xlu1 %1143  ;;  %v1202_v44 = vrot.slane %v1201_v42, 1 }
 0x2f8   : > { %v1145_v46 = vrot.slane %v1144_v43, 1 }
 0x2f9   : > { %v1204_v47 = vsel %vm7823_vm9, %v1201_v42, %v1202_v44  ;;  %vm1257_vm9 = vcmask 1046528  }
 0x2fa   : > { %v1147_v48 = vsel %vm7827_vm11, %v1144_v43, %v1145_v46  ;;  %1207 = vst.msk [vmem:[#allocation4 + $0x15] ss:$8 sm:$0x3] %vm6679_vm2, %v1204_v47  ;;  %v1259_v55 = vsel %vm1257_vm9, 4294967295, %v6378_v54  ;;  %v1231_v56 = vld [vmem:[#allocation4 + $0x8] sm:$0xff]  ;;  %v1230_v59 = vld [vmem:[#allocation4] sm:$0xff] }
 0x2fb   : > { %1150 = vst.msk [vmem:[#allocation4 + $0x12] ss:$8 sm:$0x3] %vm6679_vm2, %v1147_v48  ;;  %v1182_v49 = vpop.permute.xlu1 %1181  ;;  %v1260_v58 = vsel %vm1258_vm0, %v1259_v55, 0  ;;  %vm1327_vm0 = vcmask 162816   ;;  %vm1329_vm9 = vcmask 335016  }
 0x2fc   : > { %v1183_v50 = vrot.slane %v1182_v49, 1  ;;  %1328 = vst.msk [vmem:[#allocation5] sm:$0xff] %vm1327_vm0, %v6361_v8 }
 0x2fd   : > { %1330 = vst.msk [vmem:[#allocation5 + $0x8] sm:$0xff] %vm1329_vm9, %v6361_v8 }
 0x2fe   : > { %v1185_v51 = vsel %vm7826_vm12, %v1182_v49, %v1183_v50 }
 0x2ff   : > { %1188 = vst.msk [vmem:[#allocation4 + $0x14] ss:$8 sm:$0x3] %vm6679_vm2, %v1185_v51  ;;  %v1220_v52 = vpop.permute.xlu1 %1219 }
 0x300   : > { %v1221_v1 = vrot.slane %v1220_v52, 1 }
 0x302   : > { %v1223_v53 = vsel %vm7825_vm14, %v1220_v52, %v1221_v1  ;;  %vm7920_vm14 = vcmask 7168  }
 0x303   : > { %1226 = vst.msk [vmem:[#allocation4 + $0x16] ss:$8 sm:$0x3] %vm6679_vm2, %v1223_v53  ;;  %vm1253_vm2 = vcmask 121856  }
 0x304   : > { %4847 = vst.msk [vmem:[#allocation11] sm:$0xff] %vm7920_vm14, %v6361_v8  ;;  %4848 = vst.msk [vmem:[#allocation11 + $0x8] sm:$0xff] %vm7920_vm14, %v6361_v8 }
 0x307   : > { %v1241_v2 = vpop.permute.xlu0 %1240 }
 0x30a   : > { %v1233_v57 = vld [vmem:[#allocation4 + $0x18] sm:$0x7f]  ;;  %v1232_v60 = vld [vmem:[#allocation4 + $0x10] sm:$0x7f] }
 0x30b   : > { %v1235_v61 = vpack.c.bf16 %v1233_v57, %v1231_v56  ;;  %v1234_v62 = vpack.c.bf16 %v1232_v60, %v1230_v59 }
 0x30d   : > { %v1265_v63 = vand.u32 %v1260_v58, %v1235_v61  ;;  %v1262_v0 = vand.u32 %v1260_v58, %v1234_v62 }
 0x30f   : > { %1267 = vmatprep.subr.bf16.mxu1 %v1265_v63 }
 0x310   : > { %1268 = vmatpush1.bf16.msra.mxu1 %v1262_v0  ;;  %v1246_v6 = vpop.permute.xlu1 %1245 }
 0x313   : > { %5254 = vmatmul.mubr.msk.bf16.vlgmr.msra.gmra.mrb[0].mxu1 %vm1253_vm2, %v5820_v45 }
 0x3e6   : > { %v1301_v3 = vpop.f32.mrb[0].mxu1 }
 0x3e7   : > { %v1302_v7 = vadd.f32 %v1301_v3, %v1241_v2  ;;  %v1303_v9 = vpop.f32.mrb[1].mxu1 }
 0x3e8   : > { %v1304_v10 = vadd.f32 %v1303_v9, %v1241_v2  ;;  %v1305_v11 = vpop.f32.mrb[2].mxu1 }
 0x3e9   : > { %vm1310_vm2 = vcmp.ge.f32.partialorder %v1302_v7, 0.0  ;;  %v1314_v13 = vmul.f32 0.01, %v1302_v7  ;;  %v1306_v14 = vadd.f32 %v1305_v11, %v1246_v6  ;;  %v1307_v15 = vpop.f32.mrb[3].mxu1 }
 0x3ea   : > { %vm1311_vm12 = vcmp.ge.f32.partialorder %v1304_v10, 0.0  ;;  %v1315_v16 = vmul.f32 0.01, %v1304_v10  ;;  %v1308_v12 = vadd.f32 %v1307_v15, %v1246_v6 }
 0x3eb   : > { %vm1312_vm11 = vcmp.ge.f32.partialorder %v1306_v14, 0.0  ;;  %v1316_v17 = vmul.f32 0.01, %v1306_v14  ;;  %v1318_v18 = vsel %vm1310_vm2, %v1302_v7, %v1314_v13  ;;  %vm1343_vm2 = vcmask 1047712  }
 0x3ec   : > { %vm1313_vm9 = vcmp.ge.f32.partialorder %v1308_v12, 0.0  ;;  %v1317_v19 = vmul.f32 0.01, %v1308_v12  ;;  %1322 = vst [vmem:[%s6771_s19] sm:$0xff] %v1318_v18  ;;  %v1319_v20 = vsel %vm1311_vm12, %v1304_v10, %v1315_v16  ;;  %vm1355_vm12 = vcmask 5124  }
 0x3ed   : > { %v1320_v21 = vsel %vm1312_vm11, %v1306_v14, %v1316_v17  ;;  %1324 = vst.msk [vmem:[%s6771_s19 + $0x8] sm:$0xff] %vm7920_vm14, %v1319_v20  ;;  %vm1373_vm11 = vcmask 7174  }
 0x3ee   : > { %1325 = vst [vmem:[%s6771_s19 + $0x10] sm:$0xff] %v1320_v21  ;;  %v1331_v22 = vpack.c.bf16 %v1320_v21, %v1318_v18  ;;  %v1321_v23 = vsel %vm1313_vm9, %v1308_v12, %v1317_v19  ;;  %vm6846_vm9 = vmor %vm1355_vm12, %vm7921_vm10  ;;  %vm8038_vm12 = vcmask 949248   ;;  %vm7927_vm10 = vcmask 883712  }
 0x3ef   : > { %1326 = vst.msk [vmem:[%s6771_s19 + $0x18] sm:$0xff] %vm7920_vm14, %v1321_v23  ;;  %v1332_v24 = vpack.c.bf16 %v1321_v23, %v1319_v20  ;;  %s8035_s19 = smov 96   ;;  %vm7926_vm14 = vcmask 891904  }
 0x3f0   : > { %1335 = vrot.lane.b32.xlu1 %v1331_v22, %s6379_s14 }
 0x3f1   : > { %1337 = vrot.lane.b32.xlu0 %v1332_v24, %s6379_s14  ;;  %s8004_s14 = smov 119  }
 0x462   : > { %v1336_v25 = vpop.permute.xlu1 %1335 }
 0x463   : > { %1344 = vst.msk [vmem:[#allocation5] sm:$0xff] %vm1343_vm2, %v1336_v25  ;;  %v1338_v26 = vpop.permute.xlu0 %1337  ;;  %vm8032_vm2 = vcmask 973824  }
 0x464   : > { %v1340_v27 = vsel %vm1327_vm0, %v1336_v25, %v1338_v26 }
 0x465   : > { %1346 = vst.msk [vmem:[#allocation5 + $0x8] sm:$0xff] %vm1345_vm6, %v1340_v27  ;;  %vm1372_vm6 = vcmask 1043458  }
 0x466   : > { %vm6838_vm0 = vmor %vm1373_vm11, %vm1372_vm6  ;;  %vm8034_vm6 = vcmask 965632   ;;  %vm8036_vm11 = vcmask 957440  }
 0x46c   : > { %v5821_v28 = vld [vmem:[#allocation5] ss:$8 sps:$4 sm:$0xcc]   ;;  %v5822_v29 = vld [vmem:[#allocation5] ss:$8 sps:$4 sm:$0x33]  }
 0x46d   : > { %2146 = vrot.lane.b32.xlu1 %v5821_v28, %s7841_s25  ;;  %1383 = vrot.lane.b32.xlu0 %v5822_v29, %s7897_s27  ;;  %v5823_v30 = vld [vmem:[#allocation5] ss:$8 sps:$4 sm:$0xcc]   ;;  %v5824_v31 = vld [vmem:[#allocation5] ss:$8 sps:$4 sm:$0x33]  }
 0x46e   : > { %v5825_v32 = vld [vmem:[#allocation5] ss:$8 sps:$4 sm:$0xcc]   ;;  %v5826_v33 = vld [vmem:[#allocation5] ss:$8 sps:$4 sm:$0x33]  }
 0x46f   : > { %v5827_v34 = vld [vmem:[#allocation5] ss:$8 sps:$4 sm:$0xcc]   ;;  %v5828_v35 = vld [vmem:[#allocation5] ss:$8 sps:$4 sm:$0x33]  }
 0x470   : > { %v5829_v36 = vld [vmem:[#allocation5] ss:$8 sps:$4 sm:$0xcc]   ;;  %v5830_v37 = vld [vmem:[#allocation5] ss:$8 sps:$4 sm:$0x33]  }
 0x471   : > { %2174 = vrot.lane.b32.xlu1 %v5823_v30, %s7829_s23  ;;  %1412 = vrot.lane.b32.xlu0 %v5824_v31, %s7895_s28  ;;  %v5831_v38 = vld [vmem:[#allocation5] ss:$8 sps:$4 sm:$0xcc]   ;;  %v5832_v39 = vld [vmem:[#allocation5] ss:$8 sps:$4 sm:$0x33]  }
 0x472   : > { %s8005_s23 = smov 117   ;;  %v5833_v40 = vld [vmem:[#allocation5] ss:$8 sps:$4 sm:$0xcc]   ;;  %s7853_s25 = smov 109  }
 0x473   : > { %v5834_v41 = vld [vmem:[#allocation5] ss:$8 sps:$4 sm:$0x33]   ;;  %v5835_v42 = vld [vmem:[#allocation5] ss:$8 sps:$4 sm:$0xcc]  }
 0x474   : > { %v5836_v43 = vld [vmem:[#allocation5] ss:$8 sps:$4 sm:$0x33]   ;;  %v5837_v44 = vld [vmem:[#allocation5] ss:$8 sps:$4 sm:$0xcc]  }
 0x475   : > { %2202 = vrot.lane.b32.xlu1 %v5825_v32, %s7831_s22  ;;  %1441 = vrot.lane.b32.xlu0 %v5826_v33, %s7899_s15  ;;  %s8006_s22 = smov 115   ;;  %v5838_v46 = vld [vmem:[#allocation5] ss:$8 sps:$4 sm:$0x33]  }
 0x476   : > { %v5839_v47 = vld [vmem:[#allocation5] ss:$8 sps:$4 sm:$0xcc]   ;;  %v5840_v48 = vld [vmem:[#allocation5] ss:$8 sps:$4 sm:$0x33]  }
 0x477   : > { %v5841_v49 = vld [vmem:[#allocation5] ss:$8 sps:$4 sm:$0xcc]   ;;  %v5842_v50 = vld [vmem:[#allocation5] ss:$8 sps:$4 sm:$0x33]  }
 0x478   : > { %v5843_v51 = vld [vmem:[#allocation5] ss:$8 sps:$4 sm:$0xcc]   ;;  %v5844_v52 = vld [vmem:[#allocation5] ss:$8 sps:$4 sm:$0x33]  }
 0x479   : > { %2230 = vrot.lane.b32.xlu1 %v5827_v34, %s7833_s30  ;;  %1470 = vrot.lane.b32.xlu0 %v5828_v35, %s7835_s26  ;;  %s7845_s30 = smov 113   ;;  %s7847_s26 = smov 112   ;;  %v5845_v1 = vld [vmem:[#allocation5] ss:$8 sps:$4 sm:$0xcc]  }
 0x47a   : > { %v5846_v53 = vld [vmem:[#allocation5] ss:$8 sps:$4 sm:$0x33]   ;;  %v5847_v54 = vld [vmem:[#allocation5] ss:$8 sps:$4 sm:$0xcc]  }
 0x47b   : > { %v5848_v55 = vld [vmem:[#allocation5] ss:$8 sps:$4 sm:$0x33]   ;;  %v5849_v56 = vld [vmem:[#allocation5] ss:$8 sps:$4 sm:$0xcc]  }
 0x47c   : > { %v5850_v57 = vld [vmem:[#allocation5] ss:$8 sps:$4 sm:$0x33]   ;;  %v5851_v58 = vld [vmem:[#allocation5] ss:$8 sps:$4 sm:$0xcc]  }
 0x47d   : > { %2258 = vrot.lane.b32.xlu1 %v5829_v36, %s8004_s14  ;;  %1499 = vrot.lane.b32.xlu0 %v5830_v37, %s7837_s21  ;;  %s7849_s21 = smov 111   ;;  %v5852_v59 = vld [vmem:[#allocation5] ss:$8 sps:$4 sm:$0x33]  }
 0x47e   : > { %v5853_v60 = vld [vmem:[#allocation5] ss:$8 sps:$4 sm:$0xcc]   ;;  %v5854_v61 = vld [vmem:[#allocation5] ss:$8 sps:$4 sm:$0x33]  }
 0x47f   : > { %v5855_v62 = vld [vmem:[#allocation5] ss:$8 sps:$4 sm:$0xcc]   ;;  %v5856_v63 = vld [vmem:[#allocation5] ss:$8 sps:$4 sm:$0x33]  }
 0x480   : > { %v5857_v0 = vld [vmem:[#allocation5] ss:$8 sps:$4 sm:$0xcc]   ;;  %v5858_v45 = vld [vmem:[#allocation5] ss:$8 sps:$4 sm:$0x33]  }
 0x481   : > { %2286 = vrot.lane.b32.xlu1 %v5831_v38, %s8005_s23  ;;  %1528 = vrot.lane.b32.xlu0 %v5832_v39, %s7839_s17  ;;  %s7851_s17 = smov 110   ;;  %v5859_v2 = vld [vmem:[#allocation5] ss:$8 sps:$4 sm:$0xcc]  }
 0x482   : > { %v5860_v3 = vld [vmem:[#allocation5] ss:$8 sps:$4 sm:$0x33]   ;;  %v5861_v6 = vld [vmem:[#allocation5 + $0x4] ss:$8 sps:$4 sm:$0x33]  }
 0x483   : > { %v5862_v7 = vld [vmem:[#allocation5 + $0x4] ss:$8 sps:$4 sm:$0x33]   ;;  %v5864_v10 = vld [vmem:[#allocation5 + $0x4] ss:$8 sps:$4 sm:$0xcc]  }
 0x484   : > { %v5863_v9 = vld [vmem:[#allocation5 + $0x4] ss:$8 sps:$4 sm:$0x33]   ;;  %v5866_v13 = vld [vmem:[#allocation5 + $0x4] ss:$8 sps:$4 sm:$0xcc]  }
 0x485   : > { %2314 = vrot.lane.b32.xlu1 %v5833_v40, %s8006_s22  ;;  %1557 = vrot.lane.b32.xlu0 %v5834_v41, %s7843_s20  ;;  %s7855_s20 = smov 108   ;;  %v5865_v11 = vld [vmem:[#allocation5 + $0x4] ss:$8 sps:$4 sm:$0x33]  }
 0x486   : > { %v5867_v14 = vld [vmem:[#allocation5 + $0x4] ss:$8 sps:$4 sm:$0x33]   ;;  %v5868_v15 = vld [vmem:[#allocation5 + $0x4] ss:$8 sps:$4 sm:$0xcc]  }
 0x487   : > { %v5869_v16 = vld [vmem:[#allocation5 + $0x4] ss:$8 sps:$4 sm:$0x33]   ;;  %v5870_v12 = vld [vmem:[#allocation5 + $0x4] ss:$8 sps:$4 sm:$0xcc]  }
 0x488   : > { %v5871_v17 = vld [vmem:[#allocation5 + $0x4] ss:$8 sps:$4 sm:$0x33]   ;;  %v5872_v18 = vld [vmem:[#allocation5 + $0x4] ss:$8 sps:$4 sm:$0xcc]  }
 0x489   : > { %2342 = vrot.lane.b32.xlu1 %v5835_v42, %s7845_s30  ;;  %1586 = vrot.lane.b32.xlu0 %v5836_v43, %s7847_s26  ;;  %s7857_s30 = smov 107   ;;  %s7859_s26 = smov 106   ;;  %v5873_v19 = vld [vmem:[#allocation5 + $0x4] ss:$8 sps:$4 sm:$0x33]  }
 0x48a   : > { %v5874_v20 = vld [vmem:[#allocation5 + $0x4] ss:$8 sps:$4 sm:$0xcc]   ;;  %v5875_v21 = vld [vmem:[#allocation5 + $0x4] ss:$8 sps:$4 sm:$0x33]  }
 0x48b   : > { %v5876_v22 = vld [vmem:[#allocation5 + $0x4] ss:$8 sps:$4 sm:$0xcc]   ;;  %v5877_v23 = vld [vmem:[#allocation5 + $0x4] ss:$8 sps:$4 sm:$0x33]  }
 0x48c   : > { %v5878_v24 = vld [vmem:[#allocation5 + $0x4] ss:$8 sps:$4 sm:$0xcc]   ;;  %v5879_v26 = vld [vmem:[#allocation5 + $0x4] ss:$8 sps:$4 sm:$0x33]  }
 0x48d   : > { %2370 = vrot.lane.b32.xlu1 %v5837_v44, %s7849_s21  ;;  %1615 = vrot.lane.b32.xlu0 %v5838_v46, %s7851_s17  ;;  %s7861_s21 = smov 105   ;;  %s7863_s17 = smov 104   ;;  %v5880_v30 = vld [vmem:[#allocation5 + $0x4] ss:$8 sps:$4 sm:$0xcc]  }
 0x48e   : > { %v5881_v33 = vld [vmem:[#allocation5 + $0x4] ss:$8 sps:$4 sm:$0x33]   ;;  %v5882_v37 = vld [vmem:[#allocation5 + $0x4] ss:$8 sps:$4 sm:$0xcc]  }
 0x48f   : > { %v5883_v44 = vld [vmem:[#allocation5 + $0x4] ss:$8 sps:$4 sm:$0x33]  }
 0x491   : > { %2398 = vrot.lane.b32.xlu1 %v5839_v47, %s7853_s25  ;;  %1644 = vrot.lane.b32.xlu0 %v5840_v48, %s7855_s20  ;;  %s7865_s25 = smov 103   ;;  %s7867_s20 = smov 102   ;;  %v5884_v48 = vld [vmem:[#allocation5 + $0x4] ss:$8 sps:$4 sm:$0xcc]  }
 0x495   : > { %2426 = vrot.lane.b32.xlu1 %v5841_v49, %s7857_s30  ;;  %1673 = vrot.lane.b32.xlu0 %v5842_v50, %s7859_s26  ;;  %s7869_s30 = smov 101   ;;  %s7871_s26 = smov 100  }
 0x499   : > { %2454 = vrot.lane.b32.xlu1 %v5843_v51, %s7861_s21  ;;  %1702 = vrot.lane.b32.xlu0 %v5844_v52, %s7863_s17  ;;  %s7873_s21 = smov 99   ;;  %s7875_s17 = smov 98   ;;  %v5885_v51 = vld [vmem:[#allocation5 + $0x4] ss:$8 sps:$4 sm:$0x33]  }
 0x49d   : > { %2482 = vrot.lane.b32.xlu1 %v5845_v1, %s7865_s25  ;;  %1731 = vrot.lane.b32.xlu0 %v5846_v53, %s7867_s20  ;;  %s7877_s25 = smov 97   ;;  %s7879_s20 = smov 96   ;;  %v5886_v53 = vld [vmem:[#allocation5 + $0x4] ss:$8 sps:$4 sm:$0xcc]  }
 0x4a1   : > { %2510 = vrot.lane.b32.xlu1 %v5847_v54, %s7869_s30  ;;  %1760 = vrot.lane.b32.xlu0 %v5848_v55, %s7871_s26  ;;  %s7881_s30 = smov 95   ;;  %s7883_s26 = smov 94  }
 0x4a5   : > { %2538 = vrot.lane.b32.xlu1 %v5849_v56, %s7873_s21  ;;  %1789 = vrot.lane.b32.xlu0 %v5850_v57, %s7875_s17  ;;  %s7893_s21 = smov 93   ;;  %s7901_s17 = smov 92  }
 0x4a9   : > { %2566 = vrot.lane.b32.xlu1 %v5851_v58, %s7877_s25  ;;  %1818 = vrot.lane.b32.xlu0 %v5852_v59, %s7879_s20  ;;  %s7885_s25 = smov 91   ;;  %s7887_s20 = smov 90   ;;  %v5887_v58 = vld [vmem:[#allocation5 + $0x4] ss:$8 sps:$4 sm:$0x33]  }
 0x4ad   : > { %2594 = vrot.lane.b32.xlu1 %v5853_v60, %s7881_s30  ;;  %1847 = vrot.lane.b32.xlu0 %v5854_v61, %s7883_s26  ;;  %s7889_s30 = smov 89   ;;  %s7891_s26 = smov 88  }
 0x4b1   : > { %2622 = vrot.lane.b32.xlu1 %v5855_v62, %s7893_s21  ;;  %1876 = vrot.lane.b32.xlu0 %v5856_v63, %s7901_s17  ;;  %s8011_s21 = smov 123   ;;  %s8015_s17 = smov 112   ;;  %v5888_v63 = vld [vmem:[#allocation5 + $0x4] ss:$8 sps:$4 sm:$0xcc]  }
 0x4b5   : > { %2650 = vrot.lane.b32.xlu1 %v5857_v0, %s7885_s25  ;;  %1905 = vrot.lane.b32.xlu0 %v5858_v45, %s7887_s20  ;;  %s8007_s25 = smov 127   ;;  %s8008_s20 = smov 120  }
 0x4b9   : > { %2678 = vrot.lane.b32.xlu1 %v5859_v2, %s7889_s30  ;;  %1934 = vrot.lane.b32.xlu0 %v5860_v3, %s7891_s26  ;;  %s8009_s30 = smov 125   ;;  %s8010_s26 = smov 118   ;;  %v5889_v2 = vld [vmem:[#allocation5 + $0x4] ss:$8 sps:$4 sm:$0x33]  }
 0x4bd   : > { %2943 = vrot.lane.b32.xlu1 %v5861_v6, %s7895_s28  ;;  %2916 = vrot.lane.b32.xlu0 %v5862_v7, %s7897_s27  ;;  %s8012_s28 = smov 116   ;;  %s8013_s27 = smov 121   ;;  %v5890_v7 = vld [vmem:[#allocation5 + $0x4] ss:$8 sps:$4 sm:$0xcc]  }
 0x4c1   : > { %2970 = vrot.lane.b32.xlu1 %v5863_v9, %s7899_s15  ;;  %3640 = vrot.lane.b32.xlu0 %v5864_v10, %s8007_s25  ;;  %s8014_s15 = smov 114  }
 0x4c5   : > { %2997 = vrot.lane.b32.xlu1 %v5865_v11, %s8008_s20  ;;  %3668 = vrot.lane.b32.xlu0 %v5866_v13, %s8009_s30 }
 0x4c9   : > { %3024 = vrot.lane.b32.xlu1 %v5867_v14, %s8010_s26  ;;  %3696 = vrot.lane.b32.xlu0 %v5868_v15, %s8011_s21 }
 0x4cd   : > { %3051 = vrot.lane.b32.xlu1 %v5869_v16, %s8012_s28  ;;  %3724 = vrot.lane.b32.xlu0 %v5870_v12, %s8013_s27  ;;  %v5891_v16 = vld [vmem:[#allocation5 + $0x4] ss:$8 sps:$4 sm:$0x33]  }
 0x4d1   : > { %3078 = vrot.lane.b32.xlu1 %v5871_v17, %s8014_s15  ;;  %3752 = vrot.lane.b32.xlu0 %v5872_v18, %s8004_s14  ;;  %v5892_v18 = vld [vmem:[#allocation5 + $0x4] ss:$8 sps:$4 sm:$0xcc]  }
 0x4d5   : > { %3105 = vrot.lane.b32.xlu1 %v5873_v19, %s8015_s17  ;;  %3780 = vrot.lane.b32.xlu0 %v5874_v20, %s8005_s23  ;;  %v5893_v20 = vld [vmem:[#allocation5 + $0x4] ss:$8 sps:$4 sm:$0x33]  }
 0x4d9   : > { %3132 = vrot.lane.b32.xlu1 %v5875_v21, %s8016_s0  ;;  %3808 = vrot.lane.b32.xlu0 %v5876_v22, %s8006_s22  ;;  %v5894_v22 = vld [vmem:[#allocation5 + $0x4] ss:$8 sps:$4 sm:$0xcc]  }
 0x4dd   : > { %3159 = vrot.lane.b32.xlu1 %v5877_v23, %s8017_s1  ;;  %3836 = vrot.lane.b32.xlu0 %v5878_v24, %s8018_s2 }
 0x4df   : > { %v2147_v25 = vpop.permute.xlu1 %2146  ;;  %v1384_v29 = vpop.permute.xlu0 %1383 }
 0x4e0   : > { %v2148_v28 = vrot.slane %v2147_v25, 4  ;;  %v1385_v31 = vrot.slane %v1384_v29, 4 }
 0x4e1   : > { %3186 = vrot.lane.b32.xlu1 %v5879_v26, %s8021_s3  ;;  %3864 = vrot.lane.b32.xlu0 %v5880_v30, %s8022_s6 }
 0x4e2   : > { %v2149_v32 = vsel %vm975_vm15, %v2147_v25, %v2148_v28  ;;  %v1387_v35 = vsel %vm994_vm3, %v1384_v29, %v1385_v31  ;;  %v5896_v25 = vld [vmem:[#allocation5] ss:$8 sps:$4 sm:$0x33]  }
 0x4e3   : > { %2151 = vst.msk [vmem:[#allocation6 + $0xa8] sm:$0xcc] %vm6838_vm0, %v2149_v32  ;;  %v2175_v36 = vpop.permute.xlu1 %2174  ;;  %v1413_v39 = vpop.permute.xlu0 %1412  ;;  %v5898_v31 = vld [vmem:[#allocation5] ss:$8 sps:$4 sm:$0x33]  }
 0x4e4   : > { %1389 = vst.msk [vmem:[#allocation6 + $0x8] sm:$0x33] %vm6846_vm9, %v1387_v35  ;;  %v2176_v38 = vrot.slane %v2175_v36, 4  ;;  %v1414_v40 = vrot.slane %v1413_v39, 4  ;;  %v1365_v35 = vrot.slane %v5896_v25, 6 }
 0x4e5   : > { %3213 = vrot.lane.b32.xlu1 %v5881_v33, %s8025_s16  ;;  %3892 = vrot.lane.b32.xlu0 %v5882_v37, %s8026_s11  ;;  %v5907_v25 = vld [vmem:[#allocation5] ss:$8 sps:$4 sm:$0xcc]  }
 0x4e6   : > { %v2177_v41 = vsel %vm1013_vm13, %v2175_v36, %v2176_v38  ;;  %v1416_v42 = vsel %vm1032_vm5, %v1413_v39, %v1414_v40  ;;  %v5895_v38 = vld [vmem:[#allocation5 + $0x4] ss:$8 sps:$4 sm:$0xcc]  }
 0x4e7   : > { %2179 = vst.msk [vmem:[#allocation6 + $0xb0] sm:$0xcc] %vm6838_vm0, %v2177_v41  ;;  %v2203_v43 = vpop.permute.xlu1 %2202  ;;  %v1442_v47 = vpop.permute.xlu0 %1441  ;;  %v5897_v41 = vld [vmem:[#allocation5 + $0x4] ss:$8 sps:$4 sm:$0xcc]  }
 0x4e8   : > { %1418 = vst.msk [vmem:[#allocation6 + $0x10] sm:$0x33] %vm6846_vm9, %v1416_v42  ;;  %v2204_v46 = vrot.slane %v2203_v43, 4  ;;  %v1443_v49 = vrot.slane %v1442_v47, 4 }
 0x4e9   : > { %3240 = vrot.lane.b32.xlu1 %v5883_v44, %s8027_s18  ;;  %3920 = vrot.lane.b32.xlu0 %v5884_v48, %s8028_s13  ;;  %v1397_v44 = vrot.slane %v5898_v31, 6 }
 0x4ea   : > { %v2205_v50 = vsel %vm1051_vm1, %v2203_v43, %v2204_v46  ;;  %v1445_v52 = vsel %vm1070_vm7, %v1442_v47, %v1443_v49  ;;  %v5900_v46 = vld [vmem:[#allocation5] ss:$8 sps:$4 sm:$0x33]  }
 0x4eb   : > { %2207 = vst.msk [vmem:[#allocation6 + $0xb8] sm:$0xcc] %vm6838_vm0, %v2205_v50  ;;  %v2231_v1 = vpop.permute.xlu1 %2230  ;;  %v1471_v55 = vpop.permute.xlu0 %1470 }
 0x4ec   : > { %1447 = vst.msk [vmem:[#allocation6 + $0x18] sm:$0x33] %vm6846_vm9, %v1445_v52  ;;  %v2232_v54 = vrot.slane %v2231_v1, 4  ;;  %v1472_v56 = vrot.slane %v1471_v55, 4 }
 0x4ed   : > { %3267 = vrot.lane.b32.xlu1 %v5885_v51, %s8029_s12  ;;  %3948 = vrot.lane.b32.xlu0 %v5886_v53, %s8030_s24  ;;  %v5902_v53 = vld [vmem:[#allocation5] ss:$8 sps:$4 sm:$0x33]  }
 0x4ee   : > { %v2233_v57 = vsel %vm7957_vm4, %v2231_v1, %v2232_v54  ;;  %v1474_v59 = vsel %vm7956_vm8, %v1471_v55, %v1472_v56  ;;  %v1426_v1 = vrot.slane %v5900_v46, 6  ;;  %v5899_v56 = vld [vmem:[#allocation5 + $0x4] ss:$8 sps:$4 sm:$0xcc]  }
 0x4ef   : > { %2235 = vst.msk [vmem:[#allocation6 + $0xc0] sm:$0xcc] %vm6838_vm0, %v2233_v57  ;;  %v2259_v60 = vpop.permute.xlu1 %2258  ;;  %v1500_v62 = vpop.permute.xlu0 %1499 }
 0x4f0   : > { %1476 = vst.msk [vmem:[#allocation6 + $0x20] sm:$0x33] %vm6846_vm9, %v1474_v59  ;;  %v2260_v61 = vrot.slane %v2259_v60, 4  ;;  %v1501_v0 = vrot.slane %v1500_v62, 4 }
 0x4f1   : > { %3294 = vrot.lane.b32.xlu1 %v5887_v58, %s8031_s9  ;;  %3976 = vrot.lane.b32.xlu0 %v5888_v63, %s8033_s10  ;;  %v5901_v59 = vld [vmem:[#allocation5 + $0x4] ss:$8 sps:$4 sm:$0xcc]   ;;  %v1455_v63 = vrot.slane %v5902_v53, 6 }
 0x4f2   : > { %v2261_v45 = vsel %vm8032_vm2, %v2259_v60, %v2260_v61  ;;  %v1503_v3 = vsel %vm8034_vm6, %v1500_v62, %v1501_v0  ;;  %vm8040_vm2 = vcmask 941056   ;;  %vm8042_vm6 = vcmask 932864   ;;  %v5903_v60 = vld [vmem:[#allocation5] ss:$8 sps:$4 sm:$0xcc]  }
 0x4f3   : > { %2263 = vst.msk [vmem:[#allocation6 + $0xc8] sm:$0xcc] %vm6838_vm0, %v2261_v45  ;;  %v2287_v6 = vpop.permute.xlu1 %2286  ;;  %v1529_v10 = vpop.permute.xlu0 %1528  ;;  %v5904_v0 = vld [vmem:[#allocation5] ss:$8 sps:$4 sm:$0x33]  }
 0x4f4   : > { %1505 = vst.msk [vmem:[#allocation6 + $0x28] sm:$0x33] %vm6846_vm9, %v1503_v3  ;;  %v2288_v9 = vrot.slane %v2287_v6, 4  ;;  %v1530_v11 = vrot.slane %v1529_v10, 4 }
 0x4f5   : > { %3321 = vrot.lane.b32.xlu1 %v5889_v2, %s8035_s19  ;;  %4004 = vrot.lane.b32.xlu0 %v5890_v7, %s8037_s7 }
 0x4f6   : > { %v2289_v13 = vsel %vm8036_vm11, %v2287_v6, %v2288_v9  ;;  %v1532_v14 = vsel %vm8038_vm12, %v1529_v10, %v1530_v11  ;;  %vm7923_vm11 = vcmask 924672   ;;  %vm7955_vm12 = vcmask 916480   ;;  %v5905_v6 = vld [vmem:[#allocation5] ss:$8 sps:$4 sm:$0xcc]  }
 0x4f7   : > { %2291 = vst.msk [vmem:[#allocation6 + $0xd0] sm:$0xcc] %vm6838_vm0, %v2289_v13  ;;  %v2315_v15 = vpop.permute.xlu1 %2314  ;;  %v1558_v17 = vpop.permute.xlu0 %1557  ;;  %v1484_v11 = vrot.slane %v5904_v0, 6  ;;  %v5906_v13 = vld [vmem:[#allocation5] ss:$8 sps:$4 sm:$0x33]  }
 0x4f8   : > { %1534 = vst.msk [vmem:[#allocation6 + $0x30] sm:$0x33] %vm6846_vm9, %v1532_v14  ;;  %v2316_v12 = vrot.slane %v2315_v15, 4  ;;  %v1559_v19 = vrot.slane %v1558_v17, 4 }
 0x4f9   : > { %3348 = vrot.lane.b32.xlu1 %v5891_v16, %s8039_s8  ;;  %4032 = vrot.lane.b32.xlu0 %v5892_v18, %s8041_s29  ;;  %v5326_v16 = vrot.slane %v5903_v60, 10  ;;  %v5916_v0 = vld [vmem:[#allocation5] ss:$8 sps:$4 sm:$0x33]  }
 0x4fa   : > { %v2317_v21 = vsel %vm8040_vm2, %v2315_v15, %v2316_v12  ;;  %v1561_v23 = vsel %vm8042_vm6, %v1558_v17, %v1559_v19  ;;  %vm7922_vm2 = vcmask 908288   ;;  %vm7930_vm6 = vcmask 900096  }
 0x4fb   : > { %2319 = vst.msk [vmem:[#allocation6 + $0xd8] sm:$0xcc] %vm6838_vm0, %v2317_v21  ;;  %v2343_v24 = vpop.permute.xlu1 %2342  ;;  %v1587_v28 = vpop.permute.xlu0 %1586  ;;  %v5329_v17 = vrot.slane %v5905_v6, 10  ;;  %v1513_v21 = vrot.slane %v5906_v13, 6  ;;  %v1658_v13 = vrot.slane %v5916_v0, 6 }
 0x4fc   : > { %1563 = vst.msk [vmem:[#allocation6 + $0x38] sm:$0x33] %vm6846_vm9, %v1561_v23  ;;  %v2344_v26 = vrot.slane %v2343_v24, 4  ;;  %v1588_v29 = vrot.slane %v1587_v28, 4 }
 0x4fd   : > { %3375 = vrot.lane.b32.xlu1 %v5893_v20, %s8043_s5  ;;  %4060 = vrot.lane.b32.xlu0 %v5894_v22, %s8044_s4  ;;  %s8045_s5 = smov 95   ;;  %v5908_v22 = vld [vmem:[#allocation5] ss:$8 sps:$4 sm:$0x33]  }
 0x4fe   : > { %v2345_v30 = vsel %vm7923_vm11, %v2343_v24, %v2344_v26  ;;  %v1590_v32 = vsel %vm7955_vm12, %v1587_v28, %v1588_v29  ;;  %vm7932_vm11 = vcmask 867328   ;;  %v5909_v29 = vld [vmem:[#allocation5] ss:$8 sps:$4 sm:$0xcc]  }
 0x4ff   : > { %2347 = vst.msk [vmem:[#allocation6 + $0xe0] sm:$0xcc] %vm6838_vm0, %v2345_v30  ;;  %v2371_v33 = vpop.permute.xlu1 %2370  ;;  %v1616_v37 = vpop.permute.xlu0 %1615 }
 0x500   : > { %1592 = vst.msk [vmem:[#allocation6 + $0x40] sm:$0x33] %vm6846_vm9, %v1590_v32  ;;  %v2372_v36 = vrot.slane %v2371_v33, 4  ;;  %v1617_v39 = vrot.slane %v1616_v37, 4  ;;  %v1542_v32 = vrot.slane %v5908_v22, 6 }
 0x501   : > { %1366 = vrot.lane.b32.xlu1 %v1365_v35, %s8007_s25  ;;  %4088 = vrot.lane.b32.xlu0 %v5895_v38, %s8045_s5  ;;  %s8046_s25 = smov 93  }
 0x502   : > { %v2373_v40 = vsel %vm7922_vm2, %v2371_v33, %v2372_v36  ;;  %v1619_v42 = vsel %vm7930_vm6, %v1616_v37, %v1617_v39  ;;  %vm7929_vm2 = vcmask 875520   ;;  %vm7943_vm6 = vcmask 834560   ;;  %v5910_v33 = vld [vmem:[#allocation5] ss:$8 sps:$4 sm:$0x33]  }
 0x503   : > { %2375 = vst.msk [vmem:[#allocation6 + $0xe8] sm:$0xcc] %vm6838_vm0, %v2373_v40  ;;  %v2399_v43 = vpop.permute.xlu1 %2398  ;;  %v1645_v48 = vpop.permute.xlu0 %1644  ;;  %v5332_v37 = vrot.slane %v5907_v25, 10  ;;  %v5911_v40 = vld [vmem:[#allocation5] ss:$8 sps:$4 sm:$0xcc]  }
 0x504   : > { %1621 = vst.msk [vmem:[#allocation6 + $0x48] sm:$0x33] %vm6846_vm9, %v1619_v42  ;;  %v2400_v47 = vrot.slane %v2399_v43, 4  ;;  %v1646_v49 = vrot.slane %v1645_v48, 4 }
 0x505   : > { %1398 = vrot.lane.b32.xlu1 %v1397_v44, %s8009_s30  ;;  %4116 = vrot.lane.b32.xlu0 %v5897_v41, %s8046_s25  ;;  %s8047_s30 = smov 91   ;;  %v5912_v41 = vld [vmem:[#allocation5] ss:$8 sps:$4 sm:$0x33]   ;;  %v1571_v44 = vrot.slane %v5910_v33, 6 }
 0x506   : > { %v2401_v50 = vsel %vm7926_vm14, %v2399_v43, %v2400_v47  ;;  %v1648_v51 = vsel %vm7927_vm10, %v1645_v48, %v1646_v49  ;;  %vm7931_vm14 = vcmask 859136   ;;  %vm7936_vm10 = vcmask 850944   ;;  %v5913_v49 = vld [vmem:[#allocation5] ss:$8 sps:$4 sm:$0xcc]  }
 0x507   : > { %2403 = vst.msk [vmem:[#allocation6 + $0xf0] sm:$0xcc] %vm6838_vm0, %v2401_v50  ;;  %v2427_v52 = vpop.permute.xlu1 %2426  ;;  %v1674_v55 = vpop.permute.xlu0 %1673  ;;  %v5335_v48 = vrot.slane %v5909_v29, 10  ;;  %v1600_v53 = vrot.slane %v5912_v41, 6 }
 0x508   : > { %1650 = vst.msk [vmem:[#allocation6 + $0x50] sm:$0x33] %vm6846_vm9, %v1648_v51  ;;  %v2428_v54 = vrot.slane %v2427_v52, 4  ;;  %v1675_v57 = vrot.slane %v1674_v55, 4 }
 0x509   : > { %1427 = vrot.lane.b32.xlu1 %v1426_v1, %s8011_s21  ;;  %4144 = vrot.lane.b32.xlu0 %v5899_v56, %s8047_s30  ;;  %s8048_s21 = smov 89  }
 0x50a   : > { %v2429_v58 = vsel %vm7929_vm2, %v2427_v52, %v2428_v54  ;;  %v1677_v61 = vsel %vm7932_vm11, %v1674_v55, %v1675_v57  ;;  %vm7934_vm2 = vcmask 842752   ;;  %vm7939_vm11 = vcmask 818176   ;;  %v5914_v54 = vld [vmem:[#allocation5] ss:$8 sps:$4 sm:$0x33]  }
 0x50b   : > { %2431 = vst.msk [vmem:[#allocation6 + $0xf8] sm:$0xcc] %vm6838_vm0, %v2429_v58  ;;  %v2455_v62 = vpop.permute.xlu1 %2454  ;;  %v1703_v2 = vpop.permute.xlu0 %1702  ;;  %v5338_v57 = vrot.slane %v5911_v40, 10  ;;  %v5923_v40 = vld [vmem:[#allocation5] ss:$8 sps:$4 sm:$0xcc]  }
 0x50c   : > { %1679 = vst.msk [vmem:[#allocation6 + $0x58] sm:$0x33] %vm6846_vm9, %v1677_v61  ;;  %v2456_v45 = vrot.slane %v2455_v62, 4  ;;  %v1704_v3 = vrot.slane %v1703_v2, 4 }
 0x50d   : > { %1456 = vrot.lane.b32.xlu1 %v1455_v63, %s8013_s27  ;;  %4172 = vrot.lane.b32.xlu0 %v5901_v59, %s8048_s21  ;;  %s8049_s27 = smov 126   ;;  %v5341_v59 = vrot.slane %v5913_v49, 10  ;;  %v1629_v63 = vrot.slane %v5914_v54, 6 }
 0x50e   : > { %v2457_v7 = vsel %vm7931_vm14, %v2455_v62, %v2456_v45  ;;  %v1706_v9 = vsel %vm7936_vm10, %v1703_v2, %v1704_v3  ;;  %vm7938_vm14 = vcmask 826368   ;;  %vm7941_vm10 = vcmask 801792   ;;  %v5915_v3 = vld [vmem:[#allocation5] ss:$8 sps:$4 sm:$0xcc]  }
 0x50f   : > { %2459 = vst.msk [vmem:[#allocation6 + $0x100] sm:$0xcc] %vm6838_vm0, %v2457_v7  ;;  %v2483_v10 = vpop.permute.xlu1 %2482  ;;  %v1732_v15 = vpop.permute.xlu0 %1731 }
 0x510   : > { %1708 = vst.msk [vmem:[#allocation6 + $0x60] sm:$0x33] %vm6846_vm9, %v1706_v9  ;;  %v2484_v14 = vrot.slane %v2483_v10, 4  ;;  %v1733_v12 = vrot.slane %v1732_v15, 4 }
 0x511   : > { %1485 = vrot.lane.b32.xlu1 %v1484_v11, %s8004_s14  ;;  %2161 = vrot.lane.b32.xlu0 %v5326_v16, %s8049_s27  ;;  %s8050_s14 = smov 124   ;;  %v5917_v9 = vld [vmem:[#allocation5] ss:$8 sps:$4 sm:$0xcc]  }
 0x512   : > { %v2485_v18 = vsel %vm7934_vm2, %v2483_v10, %v2484_v14  ;;  %v1735_v19 = vsel %vm7943_vm6, %v1732_v15, %v1733_v12  ;;  %vm7940_vm2 = vcmask 809984   ;;  %vm7947_vm6 = vcmask 752640   ;;  %v5918_v14 = vld [vmem:[#allocation5] ss:$8 sps:$4 sm:$0x33]  }
 0x513   : > { %2487 = vst.msk [vmem:[#allocation6 + $0x108] sm:$0xcc] %vm6838_vm0, %v2485_v18  ;;  %v2511_v20 = vpop.permute.xlu1 %2510  ;;  %v1761_v24 = vpop.permute.xlu0 %1760  ;;  %v5344_v12 = vrot.slane %v5915_v3, 10  ;;  %v1687_v22 = vrot.slane %v5918_v14, 6  ;;  %v5347_v25 = vrot.slane %v5917_v9, 10 }
 0x514   : > { %1737 = vst.msk [vmem:[#allocation6 + $0x68] sm:$0x33] %vm6846_vm9, %v1735_v19  ;;  %v2512_v23 = vrot.slane %v2511_v20, 4  ;;  %v1762_v26 = vrot.slane %v1761_v24, 4 }
 0x515   : > { %1514 = vrot.lane.b32.xlu1 %v1513_v21, %s8005_s23  ;;  %2189 = vrot.lane.b32.xlu0 %v5329_v17, %s8050_s14  ;;  %s8051_s23 = smov 122   ;;  %v5920_v19 = vld [vmem:[#allocation5] ss:$8 sps:$4 sm:$0x33]  }
 0x516   : > { %v2513_v28 = vsel %vm7938_vm14, %v2511_v20, %v2512_v23  ;;  %v1764_v30 = vsel %vm7939_vm11, %v1761_v24, %v1762_v26  ;;  %vm7942_vm14 = vcmask 793600   ;;  %vm7945_vm11 = vcmask 785408   ;;  %v5919_v26 = vld [vmem:[#allocation5] ss:$8 sps:$4 sm:$0xcc]  }
 0x517   : > { %2515 = vst.msk [vmem:[#allocation6 + $0x110] sm:$0xcc] %vm6838_vm0, %v2513_v28  ;;  %v2539_v31 = vpop.permute.xlu1 %2538  ;;  %v1790_v36 = vpop.permute.xlu0 %1789  ;;  %v1716_v33 = vrot.slane %v5920_v19, 6 }
 0x518   : > { %1766 = vst.msk [vmem:[#allocation6 + $0x70] sm:$0x33] %vm6846_vm9, %v1764_v30  ;;  %v2540_v35 = vrot.slane %v2539_v31, 4  ;;  %v1791_v38 = vrot.slane %v1790_v36, 4 }
 0x519   : > { %1543 = vrot.lane.b32.xlu1 %v1542_v32, %s8006_s22  ;;  %2217 = vrot.lane.b32.xlu0 %v5332_v37, %s8051_s23  ;;  %v5921_v30 = vld [vmem:[#allocation5] ss:$8 sps:$4 sm:$0xcc]  }
 0x51a   : > { %v2541_v39 = vsel %vm7940_vm2, %v2539_v31, %v2540_v35  ;;  %v1793_v42 = vsel %vm7941_vm10, %v1790_v36, %v1791_v38  ;;  %vm7944_vm2 = vcmask 777216   ;;  %vm1850_vm10 = vcmask 769024   ;;  %v5922_v35 = vld [vmem:[#allocation5] ss:$8 sps:$4 sm:$0x33]  }
 0x51b   : > { %2543 = vst.msk [vmem:[#allocation6 + $0x118] sm:$0xcc] %vm6838_vm0, %v2541_v39  ;;  %v2567_v43 = vpop.permute.xlu1 %2566  ;;  %v1819_v47 = vpop.permute.xlu0 %1818  ;;  %v5350_v38 = vrot.slane %v5919_v26, 10  ;;  %v5353_v49 = vrot.slane %v5921_v30, 10 }
 0x51c   : > { %1795 = vst.msk [vmem:[#allocation6 + $0x78] sm:$0x33] %vm6846_vm9, %v1793_v42  ;;  %v2568_v46 = vrot.slane %v2567_v43, 4  ;;  %v1820_v50 = vrot.slane %v1819_v47, 4 }
 0x51d   : > { %1572 = vrot.lane.b32.xlu1 %v1571_v44, %s8018_s2  ;;  %2245 = vrot.lane.b32.xlu0 %v5335_v48, %s8008_s20  ;;  %v1745_v44 = vrot.slane %v5922_v35, 6 }
 0x51e   : > { %v2569_v51 = vsel %vm7942_vm14, %v2567_v43, %v2568_v46  ;;  %v1822_v52 = vsel %vm7945_vm11, %v1819_v47, %v1820_v50  ;;  %vm7946_vm14 = vcmask 760832   ;;  %vm7949_vm11 = vcmask 736256   ;;  %v5924_v46 = vld [vmem:[#allocation5] ss:$8 sps:$4 sm:$0x33]  }
 0x51f   : > { %2571 = vst.msk [vmem:[#allocation6 + $0x120] sm:$0xcc] %vm6838_vm0, %v2569_v51  ;;  %v2595_v1 = vpop.permute.xlu1 %2594  ;;  %v1848_v56 = vpop.permute.xlu0 %1847 }
 0x520   : > { %1824 = vst.msk [vmem:[#allocation6 + $0x80] sm:$0x33] %vm6846_vm9, %v1822_v52  ;;  %v2596_v55 = vrot.slane %v2595_v1, 4  ;;  %v1849_v58 = vrot.slane %v1848_v56, 4  ;;  %v5356_v52 = vrot.slane %v5923_v40, 10 }
 0x521   : > { %1601 = vrot.lane.b32.xlu1 %v1600_v53, %s8022_s6  ;;  %2273 = vrot.lane.b32.xlu0 %v5338_v57, %s8010_s26  ;;  %v5963_v53 = vld [vmem:[#allocation5] ss:$8 sps:$4 sm:$0x33]   ;;  %v5933_v40 = vld [vmem:[#allocation5] ss:$8 sps:$4 sm:$0xcc]  }
 0x522   : > { %v2597_v60 = vsel %vm7944_vm2, %v2595_v1, %v2596_v55  ;;  %v1851_v61 = vsel %vm1850_vm10, %v1848_v56, %v1849_v58  ;;  %vm1894_vm2 = vcmask 744448   ;;  %v5925_v1 = vld [vmem:[#allocation5] ss:$8 sps:$4 sm:$0xcc]   ;;  %v1774_v56 = vrot.slane %v5924_v46, 6 }
 0x523   : > { %2599 = vst.msk [vmem:[#allocation6 + $0x128] sm:$0xcc] %vm6838_vm0, %v2597_v60  ;;  %v2623_v62 = vpop.permute.xlu1 %2622  ;;  %v1877_v2 = vpop.permute.xlu0 %1876  ;;  %v5926_v57 = vld [vmem:[#allocation5] ss:$8 sps:$4 sm:$0x33]  }
 0x524   : > { %1853 = vst.msk [vmem:[#allocation6 + $0x88] sm:$0x33] %vm6846_vm9, %v1851_v61  ;;  %v2624_v45 = vrot.slane %v2623_v62, 4  ;;  %v1878_v6 = vrot.slane %v1877_v2, 4  ;;  %1357 = vst.msk [vmem:[#allocation6] sm:$0x33] %vm6846_vm9, %v5963_v53 }
 0x525   : > { %1630 = vrot.lane.b32.xlu1 %v1629_v63, %s8026_s11  ;;  %2301 = vrot.lane.b32.xlu0 %v5341_v59, %s8012_s28  ;;  %v5927_v60 = vld [vmem:[#allocation5] ss:$8 sps:$4 sm:$0xcc]  }
 0x526   : > { %v2625_v7 = vsel %vm7946_vm14, %v2623_v62, %v2624_v45  ;;  %v1880_v10 = vsel %vm7947_vm6, %v1877_v2, %v1878_v6  ;;  %vm1923_vm14 = vcmask 728064   ;;  %vm7948_vm6 = vcmask 719872   ;;  %v5928_v2 = vld [vmem:[#allocation5] ss:$8 sps:$4 sm:$0x33]  }
 0x527   : > { %2627 = vst.msk [vmem:[#allocation6 + $0x130] sm:$0xcc] %vm6838_vm0, %v2625_v7  ;;  %v2651_v11 = vpop.permute.xlu1 %2650  ;;  %v1906_v16 = vpop.permute.xlu0 %1905  ;;  %v1803_v45 = vrot.slane %v5926_v57, 6  ;;  %v5359_v7 = vrot.slane %v5925_v1, 10 }
 0x528   : > { %1882 = vst.msk [vmem:[#allocation6 + $0x90] sm:$0x33] %vm6846_vm9, %v1880_v10  ;;  %v2652_v15 = vrot.slane %v2651_v11, 4  ;;  %v1907_v17 = vrot.slane %v1906_v16, 4  ;;  %v5362_v10 = vrot.slane %v5927_v60, 10 }
 0x529   : > { %1659 = vrot.lane.b32.xlu1 %v1658_v13, %s8028_s13  ;;  %2329 = vrot.lane.b32.xlu0 %v5344_v12, %s8014_s15  ;;  %v5937_v53 = vld [vmem:[#allocation5] ss:$8 sps:$4 sm:$0xcc]   ;;  %v5938_v57 = vld [vmem:[#allocation5 + $0x4] ss:$8 sps:$4 sm:$0x33]  }
 0x52a   : > { %v2653_v18 = vsel %vm1894_vm2, %v2651_v11, %v2652_v15  ;;  %v1909_v20 = vsel %vm7949_vm11, %v1906_v16, %v1907_v17  ;;  %v1832_v15 = vrot.slane %v5928_v2, 6  ;;  %v5930_v16 = vld [vmem:[#allocation5] ss:$8 sps:$4 sm:$0x33]   ;;  %vm8055_vm11 = vcmask 973824  }
 0x52b   : > { %2655 = vst.msk [vmem:[#allocation6 + $0x138] sm:$0xcc] %vm6838_vm0, %v2653_v18  ;;  %v2679_v21 = vpop.permute.xlu1 %2678  ;;  %v1935_v24 = vpop.permute.xlu0 %1934  ;;  %v5929_v18 = vld [vmem:[#allocation5] ss:$8 sps:$4 sm:$0xcc]   ;;  %v2902_v2 = vrot.slane %v5938_v57, 6 }
 0x52c   : > { %1911 = vst.msk [vmem:[#allocation6 + $0x98] sm:$0x33] %vm6846_vm9, %v1909_v20  ;;  %v2680_v23 = vrot.slane %v2679_v21, 4  ;;  %v1936_v28 = vrot.slane %v1935_v24, 4 }
 0x52d   : > { %1688 = vrot.lane.b32.xlu1 %v1687_v22, %s8030_s24  ;;  %2357 = vrot.lane.b32.xlu0 %v5347_v25, %s8015_s17  ;;  %v5932_v25 = vld [vmem:[#allocation5] ss:$8 sps:$4 sm:$0x33]   ;;  %v5939_v60 = vld [vmem:[#allocation5] ss:$8 sps:$4 sm:$0xcc]  }
 0x52e   : > { %v2681_v29 = vsel %vm1923_vm14, %v2679_v21, %v2680_v23  ;;  %v1938_v31 = vsel %vm7948_vm6, %v1935_v24, %v1936_v28  ;;  %vm8052_vm6 = vcmask 965632   ;;  %v5931_v21 = vld [vmem:[#allocation5] ss:$8 sps:$4 sm:$0xcc]   ;;  %v1861_v24 = vrot.slane %v5930_v16, 6 }
 0x52f   : > { %2683 = vst.msk [vmem:[#allocation6 + $0x140] sm:$0xcc] %vm6838_vm0, %v2681_v29  ;;  %v2944_v32 = vpop.permute.xlu1 %2943  ;;  %v2917_v37 = vpop.permute.xlu0 %2916  ;;  %v5365_v29 = vrot.slane %v5929_v18, 10  ;;  %v5942_v18 = vld [vmem:[#allocation5 + $0x4] ss:$8 sps:$4 sm:$0xcc]  }
 0x530   : > { %1940 = vst.msk [vmem:[#allocation6 + $0xa0] sm:$0x33] %vm6846_vm9, %v1938_v31  ;;  %v2945_v36 = vrot.slane %v2944_v32, 4  ;;  %v2918_v39 = vrot.slane %v2917_v37, 4 }
 0x531   : > { %1717 = vrot.lane.b32.xlu1 %v1716_v33, %s8033_s10  ;;  %2385 = vrot.lane.b32.xlu0 %v5350_v38, %s8016_s0  ;;  %v5947_v57 = vld [vmem:[#allocation5 + $0x4] ss:$8 sps:$4 sm:$0x33]  }
 0x532   : > { %v2946_v41 = vsel %vm1032_vm5, %v2944_v32, %v2945_v36  ;;  %v2919_v42 = vsel %vm994_vm3, %v2917_v37, %v2918_v39  ;;  %v5934_v32 = vld [vmem:[#allocation5] ss:$8 sps:$4 sm:$0x33]   ;;  %v1890_v36 = vrot.slane %v5932_v25, 6  ;;  %v5368_v39 = vrot.slane %v5931_v21, 10 }
 0x533   : > { %2948 = vst.msk [vmem:[#allocation6 + $0x160] sm:$0x33] %vm6846_vm9, %v2946_v41  ;;  %v2971_v43 = vpop.permute.xlu1 %2970  ;;  %2921 = vst.msk [vmem:[#allocation6 + $0x158] sm:$0x33] %vm6846_vm9, %v2919_v42  ;;  %v3641_v48 = vpop.permute.xlu0 %3640  ;;  %v1919_v46 = vrot.slane %v5934_v32, 6 }
 0x534   : > { %v2972_v47 = vrot.slane %v2971_v43, 4  ;;  %v3642_v50 = vrot.slane %v3641_v48, 4  ;;  %v5944_v32 = vld [vmem:[#allocation5 + $0x4] ss:$8 sps:$4 sm:$0xcc]  }
 0x535   : > { %1746 = vrot.lane.b32.xlu1 %v1745_v44, %s8037_s7  ;;  %2413 = vrot.lane.b32.xlu0 %v5353_v49, %s8017_s1 }
 0x536   : > { %v2973_v51 = vsel %vm1070_vm7, %v2971_v43, %v2972_v47  ;;  %v3643_v54 = vsel %vm975_vm15, %v3641_v48, %v3642_v50  ;;  %v5935_v47 = vld [vmem:[#allocation5] ss:$8 sps:$4 sm:$0xcc]   ;;  %v5371_v50 = vrot.slane %v5933_v40, 10 }
 0x537   : > { %2975 = vst.msk [vmem:[#allocation6 + $0x168] sm:$0x33] %vm6846_vm9, %v2973_v51  ;;  %v2998_v55 = vpop.permute.xlu1 %2997  ;;  %v3669_v59 = vpop.permute.xlu0 %3668 }
 0x538   : > { %3645 = vst.msk [vmem:[#allocation6 + $0x1f8] sm:$0xcc] %vm6838_vm0, %v3643_v54  ;;  %v2999_v58 = vrot.slane %v2998_v55, 4  ;;  %v3670_v61 = vrot.slane %v3669_v59, 4 }
 0x539   : > { %1775 = vrot.lane.b32.xlu1 %v1774_v56, %s8041_s29  ;;  %2441 = vrot.lane.b32.xlu0 %v5356_v52, %s8021_s3  ;;  %v5936_v52 = vld [vmem:[#allocation5 + $0x4] ss:$8 sps:$4 sm:$0x33]   ;;  %v5374_v56 = vrot.slane %v5935_v47, 10 }
 0x53a   : > { %v3000_v62 = vsel %vm7956_vm8, %v2998_v55, %v2999_v58  ;;  %v3671_v63 = vsel %vm1013_vm13, %v3669_v59, %v3670_v61 }
 0x53b   : > { %3002 = vst.msk [vmem:[#allocation6 + $0x170] sm:$0x33] %vm6846_vm9, %v3000_v62  ;;  %v3025_v0 = vpop.permute.xlu1 %3024  ;;  %v3697_v6 = vpop.permute.xlu0 %3696 }
 0x53c   : > { %3673 = vst.msk [vmem:[#allocation6 + $0x200] sm:$0xcc] %vm6838_vm0, %v3671_v63  ;;  %v3026_v3 = vrot.slane %v3025_v0, 4  ;;  %v3698_v9 = vrot.slane %v3697_v6, 4 }
 0x53d   : > { %1804 = vrot.lane.b32.xlu1 %v1803_v45, %s8044_s4  ;;  %2469 = vrot.lane.b32.xlu0 %v5359_v7, %s8025_s16  ;;  %v5940_v63 = vld [vmem:[#allocation5 + $0x4] ss:$8 sps:$4 sm:$0x33]  }
 0x53e   : > { %v3027_v11 = vsel %vm8052_vm6, %v3025_v0, %v3026_v3  ;;  %v3699_v13 = vsel %vm1051_vm1, %v3697_v6, %v3698_v9  ;;  %vm8053_vm6 = vcmask 949248   ;;  %v6014_v3 = vld [vmem:[#allocation5] ss:$8 sps:$4 sm:$0xcc]   ;;  %v5377_v9 = vrot.slane %v5937_v53, 10 }
 0x53f   : > { %3029 = vst.msk [vmem:[#allocation6 + $0x178] sm:$0x33] %vm6846_vm9, %v3027_v11  ;;  %v3052_v14 = vpop.permute.xlu1 %3051  ;;  %v3725_v17 = vpop.permute.xlu0 %3724  ;;  %v5323_v11 = vrot.slane %v6014_v3, 10  ;;  %v2929_v16 = vrot.slane %v5940_v63, 6 }
 0x540   : > { %3701 = vst.msk [vmem:[#allocation6 + $0x208] sm:$0xcc] %vm6838_vm0, %v3699_v13  ;;  %v3053_v12 = vrot.slane %v3052_v14, 4  ;;  %v3726_v19 = vrot.slane %v3725_v17, 4 }
 0x541   : > { %1833 = vrot.lane.b32.xlu1 %v1832_v15, %s8045_s5  ;;  %2497 = vrot.lane.b32.xlu0 %v5362_v10, %s8027_s18  ;;  %v6023_v13 = vld [vmem:[#allocation5 + $0x4] ss:$8 sps:$4 sm:$0x33]   ;;  %v5380_v15 = vrot.slane %v5939_v60, 10  ;;  %2138 = vst.msk [vmem:[#allocation6 + $0xa8] sm:$0x33] %vm6846_vm9, %v5323_v11 }
 0x542   : > { %v3054_v20 = vsel %vm8053_vm6, %v3052_v14, %v3053_v12  ;;  %v3727_v22 = vsel %vm7957_vm4, %v3725_v17, %v3726_v19  ;;  %vm8054_vm6 = vcmask 932864   ;;  %2894 = vst.msk [vmem:[#allocation6 + $0x150] sm:$0x33] %vm6846_vm9, %v6023_v13  ;;  %v6065_v19 = vld [vmem:[#allocation5 + $0x4] ss:$8 sps:$4 sm:$0xcc]  }
 0x543   : > { %3056 = vst.msk [vmem:[#allocation6 + $0x180] sm:$0x33] %vm6846_vm9, %v3054_v20  ;;  %v3079_v23 = vpop.permute.xlu1 %3078  ;;  %v3753_v28 = vpop.permute.xlu0 %3752  ;;  %s8067_s5 = smov 125   ;;  %v5948_v53 = vld [vmem:[#allocation5 + $0x4] ss:$8 sps:$4 sm:$0xcc]  }
 0x544   : > { %3729 = vst.msk [vmem:[#allocation6 + $0x210] sm:$0xcc] %vm6838_vm0, %v3727_v22  ;;  %v3080_v26 = vrot.slane %v3079_v23, 4  ;;  %v3754_v30 = vrot.slane %v3753_v28, 4 }
 0x545   : > { %1862 = vrot.lane.b32.xlu1 %v1861_v24, %s8046_s25  ;;  %2525 = vrot.lane.b32.xlu0 %v5365_v29, %s8029_s12  ;;  %s8064_s25 = smov 92   ;;  %v5941_v22 = vld [vmem:[#allocation5] ss:$8 sps:$4 sm:$0xcc]  }
 0x546   : > { %v3081_v31 = vsel %vm8054_vm6, %v3079_v23, %v3080_v26  ;;  %v3755_v33 = vsel %vm8055_vm11, %v3753_v28, %v3754_v30  ;;  %vm8056_vm11 = vcmask 957440   ;;  %vm8057_vm6 = vcmask 900096   ;;  %v5950_v63 = vld [vmem:[#allocation5 + $0x4] ss:$8 sps:$4 sm:$0xcc]  }
 0x547   : > { %3083 = vst.msk [vmem:[#allocation6 + $0x188] sm:$0x33] %vm6846_vm9, %v3081_v31  ;;  %v3106_v35 = vpop.permute.xlu1 %3105  ;;  %v3781_v38 = vpop.permute.xlu0 %3780  ;;  %v5480_v26 = vrot.slane %v6065_v19, 10  ;;  %v5483_v31 = vrot.slane %v5942_v18, 10  ;;  %v5495_v11 = vrot.slane %v5950_v63, 10 }
 0x548   : > { %3757 = vst.msk [vmem:[#allocation6 + $0x218] sm:$0xcc] %vm6838_vm0, %v3755_v33  ;;  %v3107_v37 = vrot.slane %v3106_v35, 4  ;;  %v3782_v41 = vrot.slane %v3781_v38, 4 }
 0x549   : > { %1891 = vrot.lane.b32.xlu1 %v1890_v36, %s8047_s30  ;;  %2553 = vrot.lane.b32.xlu0 %v5368_v39, %s8031_s9  ;;  %s8062_s30 = smov 127   ;;  %3632 = vst.msk [vmem:[#allocation6 + $0x1f8] sm:$0x33] %vm6846_vm9, %v5480_v26  ;;  %v5383_v36 = vrot.slane %v5941_v22, 10 }
 0x54a   : > { %v3108_v42 = vsel %vm7955_vm12, %v3106_v35, %v3107_v37  ;;  %v3783_v43 = vsel %vm8056_vm11, %v3781_v38, %v3782_v41  ;;  %vm8058_vm11 = vcmask 941056   ;;  %vm8069_vm12 = vcmask 891904   ;;  %v5943_v37 = vld [vmem:[#allocation5 + $0x4] ss:$8 sps:$4 sm:$0x33]  }
 0x54b   : > { %3110 = vst.msk [vmem:[#allocation6 + $0x190] sm:$0x33] %vm6846_vm9, %v3108_v42  ;;  %v3133_v44 = vpop.permute.xlu1 %3132  ;;  %v3809_v49 = vpop.permute.xlu0 %3808  ;;  %v5486_v42 = vrot.slane %v5944_v32, 10  ;;  %v2956_v47 = vrot.slane %v5943_v37, 6 }
 0x54c   : > { %3785 = vst.msk [vmem:[#allocation6 + $0x220] sm:$0xcc] %vm6838_vm0, %v3783_v43  ;;  %v3134_v48 = vrot.slane %v3133_v44, 4  ;;  %v3810_v51 = vrot.slane %v3809_v49, 4 }
 0x54d   : > { %1920 = vrot.lane.b32.xlu1 %v1919_v46, %s8048_s21  ;;  %2581 = vrot.lane.b32.xlu0 %v5371_v50, %s8035_s19  ;;  %s8059_s21 = smov 90   ;;  %v5946_v43 = vld [vmem:[#allocation5 + $0x4] ss:$8 sps:$4 sm:$0xcc]  }
 0x54e   : > { %v3135_v1 = vsel %vm8057_vm6, %v3133_v44, %v3134_v48  ;;  %v3811_v54 = vsel %vm8058_vm11, %v3809_v49, %v3810_v51  ;;  %vm8060_vm6 = vcmask 883712   ;;  %vm8061_vm11 = vcmask 924672   ;;  %v5945_v48 = vld [vmem:[#allocation5 + $0x4] ss:$8 sps:$4 sm:$0x33]  }
 0x54f   : > { %3137 = vst.msk [vmem:[#allocation6 + $0x198] sm:$0x33] %vm6846_vm9, %v3135_v1  ;;  %v3160_v55 = vpop.permute.xlu1 %3159  ;;  %v3837_v59 = vpop.permute.xlu0 %3836  ;;  %v5489_v1 = vrot.slane %v5946_v43, 10  ;;  %v5949_v3 = vld [vmem:[#allocation5 + $0x4] ss:$8 sps:$4 sm:$0x33]  }
 0x550   : > { %3813 = vst.msk [vmem:[#allocation6 + $0x228] sm:$0xcc] %vm6838_vm0, %v3811_v54  ;;  %v3161_v58 = vrot.slane %v3160_v55, 4  ;;  %v3838_v61 = vrot.slane %v3837_v59, 4 }
 0x551   : > { %3402 = vrot.lane.b32.xlu1 %v5936_v52, %s8059_s21  ;;  %2609 = vrot.lane.b32.xlu0 %v5374_v56, %s8039_s8  ;;  %s8066_s8 = sld [smem:[#allocation46_spill]]  ;;  %v2983_v56 = vrot.slane %v5945_v48, 6  ;;  %v5952_v13 = vld [vmem:[#allocation5 + $0x4] ss:$8 sps:$4 sm:$0xcc]  }
 0x552   : > { %v3162_v62 = vsel %vm8060_vm6, %v3160_v55, %v3161_v58  ;;  %v3839_v0 = vsel %vm8061_vm11, %v3837_v59, %v3838_v61  ;;  %vm8063_vm6 = vcmask 867328   ;;  %vm8065_vm11 = vcmask 908288   ;;  %v5954_v22 = vld [vmem:[#allocation5 + $0x4] ss:$8 sps:$4 sm:$0xcc]  }
 0x553   : > { %3164 = vst.msk [vmem:[#allocation6 + $0x1a0] sm:$0x33] %vm6846_vm9, %v3162_v62  ;;  %v3187_v45 = vpop.permute.xlu1 %3186  ;;  %v3865_v7 = vpop.permute.xlu0 %3864  ;;  %v5492_v62 = vrot.slane %v5948_v53, 10 }
 0x554   : > { %3841 = vst.msk [vmem:[#allocation6 + $0x230] sm:$0xcc] %vm6838_vm0, %v3839_v0  ;;  %v3188_v6 = vrot.slane %v3187_v45, 4  ;;  %v3866_v10 = vrot.slane %v3865_v7, 4 }
 0x555   : > { %2903 = vrot.lane.b32.xlu1 %v2902_v2, %s8062_s30  ;;  %2637 = vrot.lane.b32.xlu0 %v5377_v9, %s8064_s25  ;;  %s8071_s25 = smov 88   ;;  %s8074_s30 = smov 123   ;;  %v3010_v2 = vrot.slane %v5947_v57, 6 }
 0x556   : > { %v3189_v14 = vsel %vm8063_vm6, %v3187_v45, %v3188_v6  ;;  %v3867_v12 = vsel %vm8065_vm11, %v3865_v7, %v3866_v10  ;;  %vm2074_vm6 = vcmask 293888   ;;  %vm8068_vm11 = vcmask 850944  }
 0x557   : > { %3191 = vst.msk [vmem:[#allocation6 + $0x1a8] sm:$0x33] %vm6846_vm9, %v3189_v14  ;;  %v3214_v17 = vpop.permute.xlu1 %3213  ;;  %v3893_v21 = vpop.permute.xlu0 %3892  ;;  %v7096_v23 = vld [vmem:[%s8066_s8] sm:$0xff] }
 0x558   : > { %3869 = vst.msk [vmem:[#allocation6 + $0x238] sm:$0xcc] %vm6838_vm0, %v3867_v12  ;;  %v3215_v20 = vrot.slane %v3214_v17, 4  ;;  %v3894_v24 = vrot.slane %v3893_v21, 4  ;;  %v5297_v25 = vcombine.high %v7096_v23, %v7096_v23 }
 0x559   : > { %2930 = vrot.lane.b32.xlu1 %v2929_v16, %s8067_s5  ;;  %2665 = vrot.lane.b32.xlu0 %v5380_v15, %s8059_s21  ;;  %v3037_v16 = vrot.slane %v5949_v3, 6  ;;  %v5951_v12 = vld [vmem:[#allocation5 + $0x4] ss:$8 sps:$4 sm:$0x33]  }
 0x55a   : > { %v3216_v28 = vsel %vm8068_vm11, %v3214_v17, %v3215_v20  ;;  %v3895_v29 = vsel %vm8069_vm12, %v3893_v21, %v3894_v24  ;;  %5321 = vmatprep.mubr.msk.bf16.mxu1 %vm2074_vm6, %v5297_v25  ;;  %vm8070_vm11 = vcmask 834560   ;;  %vm8072_vm12 = vcmask 875520  }
 0x55b   : > { %3218 = vst.msk [vmem:[#allocation6 + $0x1b0] sm:$0x33] %vm6846_vm9, %v3216_v28  ;;  %v3241_v30 = vpop.permute.xlu1 %3240  ;;  %v3921_v35 = vpop.permute.xlu0 %3920  ;;  %v5498_v21 = vrot.slane %v5952_v13, 10  ;;  %v3064_v26 = vrot.slane %v5951_v12, 6 }
 0x55c   : > { %3897 = vst.msk [vmem:[#allocation6 + $0x240] sm:$0xcc] %vm6838_vm0, %v3895_v29  ;;  %v3242_v33 = vrot.slane %v3241_v30, 4  ;;  %v3922_v38 = vrot.slane %v3921_v35, 4 }
 0x55d   : > { %3655 = vrot.lane.b32.xlu1 %v5483_v31, %s8049_s27  ;;  %2693 = vrot.lane.b32.xlu0 %v5383_v36, %s8071_s25  ;;  %v5953_v28 = vld [vmem:[#allocation5 + $0x4] ss:$8 sps:$4 sm:$0x33]   ;;  %v5968_v12 = vld [vmem:[#allocation5 + $0x4] ss:$8 sps:$4 sm:$0xcc]  }
 0x55e   : > { %v3243_v39 = vsel %vm8070_vm11, %v3241_v30, %v3242_v33  ;;  %v3923_v40 = vsel %vm8072_vm12, %v3921_v35, %v3922_v38  ;;  %vm8073_vm11 = vcmask 818176   ;;  %vm8075_vm12 = vcmask 859136   ;;  %v5956_v35 = vld [vmem:[#allocation5 + $0x4] ss:$8 sps:$4 sm:$0xcc]  }
 0x55f   : > { %3245 = vst.msk [vmem:[#allocation6 + $0x1b8] sm:$0x33] %vm6846_vm9, %v3243_v39  ;;  %v3268_v41 = vpop.permute.xlu1 %3267  ;;  %v3949_v46 = vpop.permute.xlu0 %3948  ;;  %v5501_v33 = vrot.slane %v5954_v22, 10  ;;  %v3091_v38 = vrot.slane %v5953_v28, 6 }
 0x560   : > { %3925 = vst.msk [vmem:[#allocation6 + $0x248] sm:$0xcc] %vm6838_vm0, %v3923_v40  ;;  %v3269_v44 = vrot.slane %v3268_v41, 4  ;;  %v3950_v49 = vrot.slane %v3949_v46, 4 }
 0x561   : > { %3683 = vrot.lane.b32.xlu1 %v5486_v42, %s8050_s14  ;;  %2957 = vrot.lane.b32.xlu0 %v2956_v47, %s8074_s30  ;;  %s8077_s30 = smov 121   ;;  %v5955_v39 = vld [vmem:[#allocation5 + $0x4] ss:$8 sps:$4 sm:$0x33]  }
 0x562   : > { %v3270_v50 = vsel %vm8073_vm11, %v3268_v41, %v3269_v44  ;;  %v3951_v51 = vsel %vm8075_vm12, %v3949_v46, %v3950_v49  ;;  %vm8076_vm11 = vcmask 801792   ;;  %vm8078_vm12 = vcmask 842752   ;;  %v5958_v46 = vld [vmem:[#allocation5 + $0x4] ss:$8 sps:$4 sm:$0xcc]  }
 0x563   : > { %3272 = vst.msk [vmem:[#allocation6 + $0x1c0] sm:$0x33] %vm6846_vm9, %v3270_v50  ;;  %v3295_v52 = vpop.permute.xlu1 %3294  ;;  %v3977_v55 = vpop.permute.xlu0 %3976  ;;  %v5504_v44 = vrot.slane %v5956_v35, 10  ;;  %v3118_v49 = vrot.slane %v5955_v39, 6 }
 0x564   : > { %3953 = vst.msk [vmem:[#allocation6 + $0x250] sm:$0xcc] %vm6838_vm0, %v3951_v51  ;;  %v3296_v54 = vrot.slane %v3295_v52, 4  ;;  %v3978_v58 = vrot.slane %v3977_v55, 4 }
 0x565   : > { %3711 = vrot.lane.b32.xlu1 %v5489_v1, %s8051_s23  ;;  %2984 = vrot.lane.b32.xlu0 %v2983_v56, %s8077_s30  ;;  %s8080_s23 = smov 119   ;;  %v5957_v50 = vld [vmem:[#allocation5 + $0x4] ss:$8 sps:$4 sm:$0x33]   ;;  %s8175_s30 = smov 127  }
 0x566   : > { %v3297_v59 = vsel %vm8076_vm11, %v3295_v52, %v3296_v54  ;;  %v3979_v60 = vsel %vm8078_vm12, %v3977_v55, %v3978_v58  ;;  %vm8079_vm11 = vcmask 785408   ;;  %vm8081_vm12 = vcmask 826368   ;;  %v5960_v55 = vld [vmem:[#allocation5 + $0x4] ss:$8 sps:$4 sm:$0xcc]  }
 0x567   : > { %3299 = vst.msk [vmem:[#allocation6 + $0x1c8] sm:$0x33] %vm6846_vm9, %v3297_v59  ;;  %v3322_v61 = vpop.permute.xlu1 %3321  ;;  %v4005_v45 = vpop.permute.xlu0 %4004  ;;  %v5507_v54 = vrot.slane %v5958_v46, 10  ;;  %v3145_v58 = vrot.slane %v5957_v50, 6 }
 0x568   : > { %3981 = vst.msk [vmem:[#allocation6 + $0x258] sm:$0xcc] %vm6838_vm0, %v3979_v60  ;;  %v3323_v0 = vrot.slane %v3322_v61, 4  ;;  %v4006_v6 = vrot.slane %v4005_v45, 4 }
 0x569   : > { %3739 = vrot.lane.b32.xlu1 %v5492_v62, %s8008_s20  ;;  %3011 = vrot.lane.b32.xlu0 %v3010_v2, %s8080_s23  ;;  %s8082_s20 = smov 117   ;;  %v5959_v59 = vld [vmem:[#allocation5 + $0x4] ss:$8 sps:$4 sm:$0x33]  }
 0x56a   : > { %v3324_v7 = vsel %vm8079_vm11, %v3322_v61, %v3323_v0  ;;  %v4007_v9 = vsel %vm8081_vm12, %v4005_v45, %v4006_v6  ;;  %vm8083_vm11 = vcmask 809984   ;;  %vm8084_vm12 = vcmask 752640   ;;  %v5962_v45 = vld [vmem:[#allocation5 + $0x4] ss:$8 sps:$4 sm:$0xcc]  }
 0x56b   : > { %3326 = vst.msk [vmem:[#allocation6 + $0x1d0] sm:$0x33] %vm6846_vm9, %v3324_v7  ;;  %v3349_v10 = vpop.permute.xlu1 %3348  ;;  %v4033_v15 = vpop.permute.xlu0 %4032  ;;  %v5510_v0 = vrot.slane %v5960_v55, 10  ;;  %v3172_v6 = vrot.slane %v5959_v59, 6 }
 0x56c   : > { %4009 = vst.msk [vmem:[#allocation6 + $0x260] sm:$0xcc] %vm6838_vm0, %v4007_v9  ;;  %v3350_v14 = vrot.slane %v3349_v10, 4  ;;  %v4034_v17 = vrot.slane %v4033_v15, 4 }
 0x56d   : > { %3767 = vrot.lane.b32.xlu1 %v5495_v11, %s8010_s26  ;;  %3038 = vrot.lane.b32.xlu0 %v3037_v16, %s8082_s20  ;;  %v5961_v7 = vld [vmem:[#allocation5 + $0x4] ss:$8 sps:$4 sm:$0x33]   ;;  %v5513_v16 = vrot.slane %v5962_v45, 10  ;;  %s8178_s26 = sld [smem:[#allocation41_spill]] }
 0x56e   : > { %v3351_v18 = vsel %vm1850_vm10, %v3349_v10, %v3350_v14  ;;  %v4035_v19 = vsel %vm8083_vm11, %v4033_v15, %v4034_v17  ;;  %vm8085_vm11 = vcmask 793600   ;;  %v5970_v28 = vld [vmem:[#allocation5 + $0x4] ss:$8 sps:$4 sm:$0xcc]  }
 0x56f   : > { %3353 = vst.msk [vmem:[#allocation6 + $0x1d8] sm:$0x33] %vm6846_vm9, %v3351_v18  ;;  %v3376_v20 = vpop.permute.xlu1 %3375  ;;  %v4061_v25 = vpop.permute.xlu0 %4060  ;;  %v5974_v46 = vld [vmem:[#allocation5 + $0x4] ss:$8 sps:$4 sm:$0x33]  }
 0x570   : > { %4037 = vst.msk [vmem:[#allocation6 + $0x268] sm:$0xcc] %vm6838_vm0, %v4035_v19  ;;  %v3377_v24 = vrot.slane %v3376_v20, 4  ;;  %v4062_v29 = vrot.slane %v4061_v25, 4  ;;  %v3199_v19 = vrot.slane %v5961_v7, 6 }
 0x571   : > { %3795 = vrot.lane.b32.xlu1 %v5498_v21, %s8012_s28  ;;  %3065 = vrot.lane.b32.xlu0 %v3064_v26, %s8006_s22  ;;  %v5516_v26 = vrot.slane %v5968_v12, 10  ;;  %v5976_v55 = vld [vmem:[#allocation5 + $0x4] ss:$8 sps:$4 sm:$0x33]  }
 0x572   : > { %v3378_v30 = vsel %vm8084_vm12, %v3376_v20, %v3377_v24  ;;  %v4063_v31 = vsel %vm8085_vm11, %v4061_v25, %v4062_v29  ;;  %vm8086_vm12 = vcmask 777216   ;;  %vm8087_vm11 = vcmask 760832   ;;  %v5967_v20 = vld [vmem:[#allocation5 + $0x4] ss:$8 sps:$4 sm:$0x33]  }
 0x573   : > { %3380 = vst.msk [vmem:[#allocation6 + $0x1e0] sm:$0x33] %vm6846_vm9, %v3378_v30  ;;  %v1367_v32 = vpop.permute.xlu1 %1366  ;;  %v4089_v36 = vpop.permute.xlu0 %4088  ;;  %v5983_v12 = vld [vmem:[#allocation5 + $0x4] ss:$8 sps:$4 sm:$0x33]  }
 0x574   : > { %4065 = vst.msk [vmem:[#allocation6 + $0x270] sm:$0xcc] %vm6838_vm0, %v4063_v31  ;;  %v1368_v37 = vrot.slane %v1367_v32, 4  ;;  %v4090_v40 = vrot.slane %v4089_v36, 4  ;;  %v3226_v31 = vrot.slane %v5967_v20, 6 }
 0x575   : > { %3823 = vrot.lane.b32.xlu1 %v5501_v33, %s8014_s15  ;;  %3092 = vrot.lane.b32.xlu0 %v3091_v38, %s8018_s2  ;;  %s8099_s2 = smov 93   ;;  %s6406_s15 = smov 1  }
 0x576   : > { %v1370_v41 = vsel %vm975_vm15, %v1367_v32, %v1368_v37  ;;  %v4091_v42 = vsel %vm8086_vm12, %v4089_v36, %v4090_v40  ;;  %vm8088_vm12 = vcmask 973824   ;;  %v5969_v32 = vld [vmem:[#allocation5 + $0x4] ss:$8 sps:$4 sm:$0x33]   ;;  %v5519_v40 = vrot.slane %v5970_v28, 10 }
 0x577   : > { %1375 = vst.msk [vmem:[#allocation6] sm:$0xcc] %vm6838_vm0, %v1370_v41  ;;  %v1399_v43 = vpop.permute.xlu1 %1398  ;;  %4093 = vst.msk [vmem:[#allocation6 + $0x278] sm:$0xcc] %vm6838_vm0, %v4091_v42  ;;  %v4117_v47 = vpop.permute.xlu0 %4116 }
 0x578   : > { %v1400_v48 = vrot.slane %v1399_v43, 4  ;;  %v4118_v51 = vrot.slane %v4117_v47, 4  ;;  %v5975_v41 = vld [vmem:[#allocation5 + $0x4] ss:$8 sps:$4 sm:$0xcc]  }
 0x579   : > { %3851 = vrot.lane.b32.xlu1 %v5504_v44, %s8015_s17  ;;  %3119 = vrot.lane.b32.xlu0 %v3118_v49, %s8022_s6  ;;  %v3253_v44 = vrot.slane %v5969_v32, 6  ;;  %s8106_s6 = smov 89  }
 0x57a   : > { %v1402_v52 = vsel %vm1013_vm13, %v1399_v43, %v1400_v48  ;;  %v4119_v1 = vsel %vm8087_vm11, %v4117_v47, %v4118_v51  ;;  %vm8089_vm11 = vcmask 957440   ;;  %v5522_v51 = vrot.slane %v5975_v41, 10  ;;  %v5990_v41 = vld [vmem:[#allocation5 + $0x4] ss:$8 sps:$4 sm:$0x33]  }
 0x57b   : > { %1404 = vst.msk [vmem:[#allocation6 + $0x8] sm:$0xcc] %vm6838_vm0, %v1402_v52  ;;  %v1428_v53 = vpop.permute.xlu1 %1427  ;;  %4121 = vst.msk [vmem:[#allocation6 + $0x280] sm:$0xcc] %vm6838_vm0, %v4119_v1  ;;  %v4145_v56 = vpop.permute.xlu0 %4144 }
 0x57c   : > { %v1429_v57 = vrot.slane %v1428_v53, 4  ;;  %v4146_v60 = vrot.slane %v4145_v56, 4  ;;  %v5977_v52 = vld [vmem:[#allocation5 + $0x4] ss:$8 sps:$4 sm:$0xcc]  }
 0x57d   : > { %3879 = vrot.lane.b32.xlu1 %v5507_v54, %s8016_s0  ;;  %3146 = vrot.lane.b32.xlu0 %v3145_v58, %s8026_s11  ;;  %v3280_v54 = vrot.slane %v5974_v46, 6  ;;  %s8095_s0 = smov 95   ;;  %s8108_s11 = sld [smem:[#allocation47_spill]] }
 0x57e   : > { %v1431_v61 = vsel %vm1051_vm1, %v1428_v53, %v1429_v57  ;;  %v4147_v62 = vsel %vm1894_vm2, %v4145_v56, %v4146_v60 }
 0x57f   : > { %1433 = vst.msk [vmem:[#allocation6 + $0x10] sm:$0xcc] %vm6838_vm0, %v1431_v61  ;;  %v1457_v63 = vpop.permute.xlu1 %1456  ;;  %4149 = vst.msk [vmem:[#allocation6 + $0x288] sm:$0xcc] %vm6838_vm0, %v4147_v62  ;;  %v4173_v2 = vpop.permute.xlu0 %4172  ;;  %v5525_v62 = vrot.slane %v5977_v52, 10  ;;  %v3415_v52 = vrot.slane %v5990_v41, 6 }
 0x580   : > { %v1458_v3 = vrot.slane %v1457_v63, 4  ;;  %v4174_v9 = vrot.slane %v4173_v2, 4 }
 0x581   : > { %3907 = vrot.lane.b32.xlu1 %v5510_v0, %s8017_s1  ;;  %3173 = vrot.lane.b32.xlu0 %v3172_v6, %s8028_s13  ;;  %s8097_s1 = smov 94  }
 0x582   : > { %v1460_v10 = vsel %vm7957_vm4, %v1457_v63, %v1458_v3  ;;  %v5964_v11 = vld [vmem:[#allocation6] ss:$8 sps:$4 sm:$0xff]   ;;  %v5966_v13 = vld [vmem:[#allocation6 + $0x4] ss:$8 sps:$4 sm:$0xff]   ;;  %v4175_v14 = vsel %vm1923_vm14, %v4173_v2, %v4174_v9  ;;  %v3307_v2 = vrot.slane %v5976_v55, 6  ;;  %vm8118_vm4 = vcmask 818176  }
 0x583   : > { %1462 = vst.msk [vmem:[#allocation6 + $0x18] sm:$0xcc] %vm6838_vm0, %v1460_v10  ;;  %v1486_v15 = vpop.permute.xlu1 %1485  ;;  %4177 = vst.msk [vmem:[#allocation6 + $0x290] sm:$0xcc] %vm6838_vm0, %v4175_v14  ;;  %v2162_v17 = vpop.permute.xlu0 %2161  ;;  %2084 = vmatprep.subr.bf16.mxu1 %v5966_v13 }
 0x584   : > { %v1487_v18 = vrot.slane %v1486_v15, 4  ;;  %v2163_v21 = vrot.slane %v2162_v17, 4  ;;  %2085 = vmatpush1.bf16.msra.mxu1 %v5964_v11  ;;  %v5982_v63 = vld [vmem:[#allocation5 + $0x4] ss:$8 sps:$4 sm:$0xcc]  }
 0x585   : > { %3935 = vrot.lane.b32.xlu1 %v5513_v16, %s8021_s3  ;;  %3200 = vrot.lane.b32.xlu0 %v3199_v19, %s8030_s24  ;;  %v5981_v3 = vld [vmem:[#allocation5 + $0x4] ss:$8 sps:$4 sm:$0x33]   ;;  %v5528_v11 = vrot.slane %v5982_v63, 10  ;;  %s8101_s3 = smov 92  }
 0x586   : > { %v1489_v22 = vsel %vm8088_vm12, %v1486_v15, %v1487_v18  ;;  %v2164_v24 = vsel %vm994_vm3, %v2162_v17, %v2163_v21  ;;  %vm8090_vm12 = vcmask 941056   ;;  %v5984_v13 = vld [vmem:[#allocation5 + $0x4] ss:$8 sps:$4 sm:$0xcc]   ;;  %v3334_v16 = vrot.slane %v5981_v3, 6 }
 0x587   : > { %1491 = vst.msk [vmem:[#allocation6 + $0x20] sm:$0xcc] %vm6838_vm0, %v1489_v22  ;;  %v1515_v25 = vpop.permute.xlu1 %1514  ;;  %v2190_v29 = vpop.permute.xlu0 %2189 }
 0x588   : > { %2166 = vst.msk [vmem:[#allocation6 + $0xb0] sm:$0x33] %vm6846_vm9, %v2164_v24  ;;  %v1516_v30 = vrot.slane %v1515_v25, 4  ;;  %v2191_v33 = vrot.slane %v2190_v29, 4  ;;  %v5531_v24 = vrot.slane %v5984_v13, 10 }
 0x589   : > { %3963 = vrot.lane.b32.xlu1 %v5516_v26, %s8025_s16  ;;  %3227 = vrot.lane.b32.xlu0 %v3226_v31, %s8033_s10  ;;  %s6409_s16 = smov [#allocation20]  }
 0x58a   : > { %v1518_v35 = vsel %vm8089_vm11, %v1515_v25, %v1516_v30  ;;  %v5971_v36 = vld [vmem:[#allocation6 + $0x10] ss:$8 sps:$4 sm:$0xff]   ;;  %v5973_v37 = vld [vmem:[#allocation6 + $0x14] ss:$8 sps:$4 sm:$0xff]   ;;  %v2192_v38 = vsel %vm1032_vm5, %v2190_v29, %v2191_v33  ;;  %vm8091_vm11 = vcmask 924672   ;;  %v3361_v29 = vrot.slane %v5983_v12, 6 }
 0x58b   : > { %1520 = vst.msk [vmem:[#allocation6 + $0x28] sm:$0xcc] %vm6838_vm0, %v1518_v35  ;;  %v1544_v39 = vpop.permute.xlu1 %1543  ;;  %v2218_v42 = vpop.permute.xlu0 %2217  ;;  %2086 = vmatprep.subr.bf16.mxu1 %v5973_v37  ;;  %v5989_v25 = vld [vmem:[#allocation5 + $0x4] ss:$8 sps:$4 sm:$0xcc]   ;;  %s6196_s10 = sshll.u32 %s6409_s16, 4  ;;  %s6197_s10 = int_to_ptr.vmem [resolvable:$false] %s6196_s10 }
 0x58c   : > { %2194 = vst.msk [vmem:[#allocation6 + $0xb8] sm:$0x33] %vm6846_vm9, %v2192_v38  ;;  %v1545_v43 = vrot.slane %v1544_v39, 4  ;;  %v2219_v47 = vrot.slane %v2218_v42, 4  ;;  %2087 = vmatpush1.bf16.msra.mxu1 %v5971_v36  ;;  %v5534_v36 = vrot.slane %v5989_v25, 10  ;;  %s6198_s24 = scalar_lea.vmem %s6197_s10, 1024 }
 0x58d   : > { %3991 = vrot.lane.b32.xlu1 %v5519_v40, %s8027_s18  ;;  %3254 = vrot.lane.b32.xlu0 %v3253_v44, %s8037_s7  ;;  %v5988_v30 = vld [vmem:[#allocation5 + $0x4] ss:$8 sps:$4 sm:$0x33]   ;;  %v5991_v37 = vld [vmem:[#allocation5 + $0x4] ss:$8 sps:$4 sm:$0xcc]  }
 0x58e   : > { %v1547_v48 = vsel %vm8090_vm12, %v1544_v39, %v1545_v43  ;;  %v2220_v49 = vsel %vm1070_vm7, %v2218_v42, %v2219_v47  ;;  %vm8092_vm12 = vcmask 908288   ;;  %v3388_v40 = vrot.slane %v5988_v30, 6  ;;  %s8180_s18 = sld [smem:[#allocation51_spill]] }
 0x58f   : > { %1549 = vst.msk [vmem:[#allocation6 + $0x30] sm:$0xcc] %vm6838_vm0, %v1547_v48  ;;  %v1573_v50 = vpop.permute.xlu1 %1572  ;;  %v2246_v1 = vpop.permute.xlu0 %2245 }
 0x590   : > { %2222 = vst.msk [vmem:[#allocation6 + $0xc0] sm:$0x33] %vm6846_vm9, %v2220_v49  ;;  %v1574_v53 = vrot.slane %v1573_v50, 4  ;;  %v2247_v56 = vrot.slane %v2246_v1, 4  ;;  %v5537_v49 = vrot.slane %v5991_v37, 10 }
 0x591   : > { %4019 = vrot.lane.b32.xlu1 %v5522_v51, %s8029_s12  ;;  %3281 = vrot.lane.b32.xlu0 %v3280_v54, %s8041_s29  ;;  %s8173_s29 = sld [smem:[#allocation40_spill]]  ;;  %s8177_s12 = sld [smem:[#allocation49_spill]] }
 0x592   : > { %v1576_v57 = vsel %vm8091_vm11, %v1573_v50, %v1574_v53  ;;  %v5978_v58 = vld [vmem:[#allocation6 + $0x20] ss:$8 sps:$4 sm:$0xff]   ;;  %v5980_v59 = vld [vmem:[#allocation6 + $0x24] ss:$8 sps:$4 sm:$0xff]   ;;  %v2248_v60 = vsel %vm7956_vm8, %v2246_v1, %v2247_v56  ;;  %vm8093_vm11 = vcmask 965632   ;;  %vm8115_vm8 = vcmask 777216  }
 0x593   : > { %1578 = vst.msk [vmem:[#allocation6 + $0x38] sm:$0xcc] %vm6838_vm0, %v1576_v57  ;;  %v1602_v61 = vpop.permute.xlu1 %1601  ;;  %v2274_v0 = vpop.permute.xlu0 %2273  ;;  %2088 = vmatprep.subr.bf16.mxu1 %v5980_v59  ;;  %v5995_v1 = vld [vmem:[#allocation5 + $0x4] ss:$8 sps:$4 sm:$0xcc]  }
 0x594   : > { %2250 = vst.msk [vmem:[#allocation6 + $0xc8] sm:$0x33] %vm6846_vm9, %v2248_v60  ;;  %v1603_v45 = vrot.slane %v1602_v61, 4  ;;  %v2275_v6 = vrot.slane %v2274_v0, 4  ;;  %2089 = vmatpush1.bf16.msra.mxu1 %v5978_v58  ;;  %v5540_v60 = vrot.slane %v5995_v1, 10 }
 0x595   : > { %4047 = vrot.lane.b32.xlu1 %v5525_v62, %s8031_s9  ;;  %3308 = vrot.lane.b32.xlu0 %v3307_v2, %s8044_s4  ;;  %s8103_s4 = smov 91   ;;  %v5996_v57 = vld [vmem:[#allocation5 + $0x4] ss:$8 sps:$4 sm:$0x33]   ;;  %v4604_v62 = vld [vmem:[%s8108_s11] sm:$0xff] }
 0x596   : > { %v1605_v7 = vsel %vm8092_vm12, %v1602_v61, %v1603_v45  ;;  %v2276_v9 = vsel %vm8093_vm11, %v2274_v0, %v2275_v6  ;;  %vm8094_vm12 = vcmask 891904   ;;  %vm8096_vm11 = vcmask 949248   ;;  %v4605_v6 = vld [vmem:[%s8108_s11 + $0x8] sm:$0xff] }
 0x597   : > { %1607 = vst.msk [vmem:[#allocation6 + $0x40] sm:$0xcc] %vm6838_vm0, %v1605_v7  ;;  %v1631_v10 = vpop.permute.xlu1 %1630  ;;  %v2302_v14 = vpop.permute.xlu0 %2301  ;;  %v7278_v7 = vld [vmem:[%s8066_s8 + $0x10] sm:$0xff]  ;;  %s7605_s28 = scalar_lea.vmem [#allocation22], %s8173_s29 }
 0x598   : > { %2278 = vst.msk [vmem:[#allocation6 + $0xd0] sm:$0x33] %vm6846_vm9, %v2276_v9  ;;  %v1632_v15 = vrot.slane %v1631_v10, 4  ;;  %v2303_v17 = vrot.slane %v2302_v14, 4 }
 0x599   : > { %4075 = vrot.lane.b32.xlu1 %v5528_v11, %s8035_s19  ;;  %3335 = vrot.lane.b32.xlu0 %v3334_v16, %s8095_s0  ;;  %v5454_v11 = vcombine.high %v7278_v7, %v7278_v7  ;;  %s7537_s19 = scalar_lea.vmem [#allocation20], %s8173_s29  ;;  %s8176_s0 = sld [smem:[#allocation50_spill]] }
 0x59a   : > { %v1634_v18 = vsel %vm8094_vm12, %v1631_v10, %v1632_v15  ;;  %v5985_v19 = vld [vmem:[#allocation6 + $0x30] ss:$8 sps:$4 sm:$0xff]   ;;  %v5987_v20 = vld [vmem:[#allocation6 + $0x34] ss:$8 sps:$4 sm:$0xff]   ;;  %v2304_v21 = vsel %vm8096_vm11, %v2302_v14, %v2303_v17  ;;  %vm8098_vm12 = vcmask 875520   ;;  %vm8100_vm11 = vcmask 932864  }
 0x59b   : > { %1636 = vst.msk [vmem:[#allocation6 + $0x48] sm:$0xcc] %vm6838_vm0, %v1634_v18  ;;  %v1660_v22 = vpop.permute.xlu1 %1659  ;;  %v2330_v26 = vpop.permute.xlu0 %2329  ;;  %2090 = vmatprep.subr.bf16.mxu1 %v5987_v20  ;;  %v4606_v15 = vld [vmem:[%s8108_s11 + $0x10] sm:$0xff]  ;;  %5478 = vmatprep.mubr.msk.bf16.mxu0 %vm2074_vm6, %v5454_v11  ;;  %v4607_v17 = vld [vmem:[%s8108_s11 + $0x18] sm:$0xff]  ;;  %s8181_s29 = sld [smem:[#allocation37_spill]]  ;;  %s5000_s23 = sshll.u32 %s7537_s19, 4  ;;  %s7646_s23 = int_to_ptr.vmem [resolvable:$true] %s5000_s23 }
 0x59c   : > { %2306 = vst.msk [vmem:[#allocation6 + $0xd8] sm:$0x33] %vm6846_vm9, %v2304_v21  ;;  %v1661_v28 = vrot.slane %v1660_v22, 4  ;;  %v2331_v31 = vrot.slane %v2330_v26, 4  ;;  %2091 = vmatpush1.bf16.msra.mxu1 %v5985_v19  ;;  %s6192_s13 = scalar_lea.vmem %s7646_s23, 512  ;;  %p6199_p4 = scmp.lt.s32.totalorder %s7646_s23, %s6197_s10 }
 0x59d   : > { %4103 = vrot.lane.b32.xlu1 %v5531_v24, %s8097_s1  ;;  %3362 = vrot.lane.b32.xlu0 %v3361_v29, %s8099_s2  ;;  %p6193_p12 = scmp.ne.s32.totalorder %s7646_s23, %s6192_s13  ;;  %p6200_p7 = scmp.lt.s32.totalorder %s6198_s24, %s6192_s13 }
 0x59e   : > { %v1663_v32 = vsel %vm8098_vm12, %v1660_v22, %v1661_v28  ;;  %v2332_v33 = vsel %vm8100_vm11, %v2330_v26, %v2331_v31  ;;  %vm8102_vm12 = vcmask 859136   ;;  %vm8104_vm11 = vcmask 916480  }
 0x59f   : > { %1665 = vst.msk [vmem:[#allocation6 + $0x50] sm:$0xcc] %vm6838_vm0, %v1663_v32  ;;  %v1689_v35 = vpop.permute.xlu1 %1688  ;;  %v2358_v38 = vpop.permute.xlu0 %2357  ;;  %p6201_p8 = por %p6200_p7, %p6199_p4 }
 0x5a0   : > { %2334 = vst.msk [vmem:[#allocation6 + $0xe0] sm:$0x33] %vm6846_vm9, %v2332_v33  ;;  %v1690_v39 = vrot.slane %v1689_v35, 4  ;;  %v2359_v42 = vrot.slane %v2358_v38, 4 }
 0x5a1   : > { %4131 = vrot.lane.b32.xlu1 %v5534_v36, %s8101_s3  ;;  %3389 = vrot.lane.b32.xlu0 %v3388_v40, %s8103_s4  ;;  %s8183_s4 = sld [smem:[#allocation53_spill]]  ;;  %p8185_p1 = scmp.ne.s32.totalorder %s8181_s29, 0 }
 0x5a2   : > { %v1692_v43 = vsel %vm8102_vm12, %v1689_v35, %v1690_v39  ;;  %v5992_v44 = vld [vmem:[#allocation6 + $0x40] ss:$8 sps:$4 sm:$0xff]   ;;  %v5994_v46 = vld [vmem:[#allocation6 + $0x44] ss:$8 sps:$4 sm:$0xff]   ;;  %v2360_v47 = vsel %vm8104_vm11, %v2358_v38, %v2359_v42  ;;  %vm8105_vm12 = vcmask 842752   ;;  %vm8107_vm11 = vcmask 900096  }
 0x5a3   : > { %1694 = vst.msk [vmem:[#allocation6 + $0x58] sm:$0xcc] %vm6838_vm0, %v1692_v43  ;;  %v1718_v48 = vpop.permute.xlu1 %1717  ;;  %v2386_v50 = vpop.permute.xlu0 %2385  ;;  %2092 = vmatprep.subr.bf16.mxu1 %v5994_v46  ;;  %p6194_p2 = pnand %p6193_p12, %p8185_p1 }
 0x5a4   : > { %2362 = vst.msk [vmem:[#allocation6 + $0xe8] sm:$0x33] %vm6846_vm9, %v2360_v47  ;;  %v1719_v51 = vrot.slane %v1718_v48, 4  ;;  %v2387_v53 = vrot.slane %v2386_v50, 4  ;;  %2093 = vmatpush1.bf16.msra.mxu1 %v5992_v44 }
 0x5a5   : > { %4159 = vrot.lane.b32.xlu1 %v5537_v49, %s8059_s21  ;;  %3416 = vrot.lane.b32.xlu0 %v3415_v52, %s8106_s6  ;;  %p6195_p3 = pneg %p6194_p2 }
 0x5a6   : > { %v1721_v54 = vsel %vm8105_vm12, %v1718_v48, %v1719_v51  ;;  %v2388_v55 = vsel %vm8107_vm11, %v2386_v50, %v2387_v53  ;;  %vm8109_vm12 = vcmask 826368   ;;  %vm8110_vm11 = vcmask 883712  }
 0x5a7   : > { %1723 = vst.msk [vmem:[#allocation6 + $0x60] sm:$0xcc] %vm6838_vm0, %v1721_v54  ;;  %v1747_v56 = vpop.permute.xlu1 %1746  ;;  %v2414_v58 = vpop.permute.xlu0 %2413  ;;  %p6202_p11 = pnand %p6201_p8, %p6195_p3 }
 0x5a8   : > { %2390 = vst.msk [vmem:[#allocation6 + $0xf0] sm:$0x33] %vm6846_vm9, %v2388_v55  ;;  %v1748_v59 = vrot.slane %v1747_v56, 4  ;;  %v2415_v61 = vrot.slane %v2414_v58, 4 }
 0x5a9   : > { %3429 = vrot.lane.b32.xlu1 %v5996_v57, %s8071_s25  ;;  %4187 = vrot.lane.b32.xlu0 %v5540_v60, %s8071_s25  ;;  %s8174_s25 = smov 2  }
 0x5aa   : > { %v1750_v63 = vsel %vm8109_vm12, %v1747_v56, %v1748_v59  ;;  %v5997_v0 = vld [vmem:[#allocation6 + $0x50] ss:$8 sps:$4 sm:$0xff]   ;;  %v5999_v45 = vld [vmem:[#allocation6 + $0x54] ss:$8 sps:$4 sm:$0xff]   ;;  %v2416_v2 = vsel %vm8110_vm11, %v2414_v58, %v2415_v61  ;;  %vm8111_vm12 = vcmask 809984   ;;  %vm8112_vm11 = vcmask 867328  }
 0x5ab   : > { %1752 = vst.msk [vmem:[#allocation6 + $0x68] sm:$0xcc] %vm6838_vm0, %v1750_v63  ;;  %v1776_v3 = vpop.permute.xlu1 %1775  ;;  %v2442_v9 = vpop.permute.xlu0 %2441  ;;  %2094 = vmatprep.subr.bf16.mxu1 %v5999_v45 }
 0x5ac   : > { %2418 = vst.msk [vmem:[#allocation6 + $0xf8] sm:$0x33] %vm6846_vm9, %v2416_v2  ;;  %v1777_v10 = vrot.slane %v1776_v3, 4  ;;  %v2443_v13 = vrot.slane %v2442_v9, 4  ;;  %2095 = vmatpush1.bf16.msra.mxu1 %v5997_v0  ;;  %v1962_v2 = vld [vmem:[#allocation6 + $0xa0] sm:$0x33] }
 0x5ad   : > { %4610 = vperm.xlu1 %5769, %v4604_v62   ;;  %4615 = vperm.xlu0 %5768, %v4605_v6  }
 0x5ae   : > { %v1779_v14 = vsel %vm8111_vm12, %v1776_v3, %v1777_v10  ;;  %v2444_v16 = vsel %vm8112_vm11, %v2442_v9, %v2443_v13  ;;  %vm8113_vm12 = vcmask 793600   ;;  %vm8114_vm11 = vcmask 850944  }
 0x5af   : > { %1781 = vst.msk [vmem:[#allocation6 + $0x70] sm:$0xcc] %vm6838_vm0, %v1779_v14  ;;  %v1805_v12 = vpop.permute.xlu1 %1804  ;;  %v2470_v18 = vpop.permute.xlu0 %2469 }
 0x5b0   : > { %2446 = vst.msk [vmem:[#allocation6 + $0x100] sm:$0x33] %vm6846_vm9, %v2444_v16  ;;  %v1806_v19 = vrot.slane %v1805_v12, 4  ;;  %v2471_v20 = vrot.slane %v2470_v18, 4  ;;  %v5318_v16 = vcombine.low %v1962_v2, %v1962_v2 }
 0x5b1   : > { %4620 = vperm.xlu1 %5769, %v4606_v15   ;;  %4625 = vperm.xlu0 %5768, %v4607_v17   ;;  %v5319_v15 = vcombine.high %v1962_v2, %v1962_v2 }
 0x5b2   : > { %v1808_v21 = vsel %vm8113_vm12, %v1805_v12, %v1806_v19  ;;  %v6000_v22 = vld [vmem:[#allocation6 + $0x60] ss:$8 sps:$4 sm:$0xff]   ;;  %v6002_v24 = vld [vmem:[#allocation6 + $0x64] ss:$8 sps:$4 sm:$0xff]   ;;  %v2472_v25 = vsel %vm8114_vm11, %v2470_v18, %v2471_v20  ;;  %vm8116_vm12 = vcmask 834560   ;;  %vm8117_vm11 = vcmask 760832  }
 0x5b3   : > { %1810 = vst.msk [vmem:[#allocation6 + $0x78] sm:$0xcc] %vm6838_vm0, %v1808_v21  ;;  %v1834_v26 = vpop.permute.xlu1 %1833  ;;  %v2498_v28 = vpop.permute.xlu0 %2497  ;;  %2096 = vmatprep.subr.bf16.mxu1 %v6002_v24  ;;  %v7344_v18 = vld [vmem:[%s8066_s8 + $0x8] sm:$0xff] }
 0x5b4   : > { %2474 = vst.msk [vmem:[#allocation6 + $0x108] sm:$0x33] %vm6846_vm9, %v2472_v25  ;;  %v1835_v29 = vrot.slane %v1834_v26, 4  ;;  %v2499_v30 = vrot.slane %v2498_v28, 4  ;;  %2097 = vmatpush1.bf16.msra.mxu1 %v6000_v22  ;;  %v6017_v25 = vld [vmem:[#allocation6 + $0xac] ss:$8 sps:$4 sm:$0xff]  }
 0x5b6   : > { %v1837_v31 = vsel %vm8115_vm8, %v1834_v26, %v1835_v29  ;;  %v2500_v32 = vsel %vm8116_vm12, %v2498_v28, %v2499_v30  ;;  %vm8119_vm8 = vcmask 801792   ;;  %vm8121_vm12 = vcmask 736256  }
 0x5b7   : > { %1839 = vst.msk [vmem:[#allocation6 + $0x80] sm:$0xcc] %vm6838_vm0, %v1837_v31  ;;  %v1863_v33 = vpop.permute.xlu1 %1862  ;;  %v2526_v35 = vpop.permute.xlu0 %2525  ;;  %v5296_v26 = vcombine.low %v7096_v23, %v7096_v23  ;;  %v5386_v29 = vcombine.high %v7344_v18, %v7344_v18 }
 0x5b8   : > { %2502 = vst.msk [vmem:[#allocation6 + $0x110] sm:$0x33] %vm6846_vm9, %v2500_v32  ;;  %v1864_v36 = vrot.slane %v1863_v33, 4  ;;  %v2527_v37 = vrot.slane %v2526_v35, 4 }
 0x5ba   : > { %v1866_v38 = vsel %vm8117_vm11, %v1863_v33, %v1864_v36  ;;  %v6003_v39 = vld [vmem:[#allocation6 + $0x70] ss:$8 sps:$4 sm:$0xff]   ;;  %v6005_v40 = vld [vmem:[#allocation6 + $0x74] ss:$8 sps:$4 sm:$0xff]   ;;  %v2528_v41 = vsel %vm8118_vm4, %v2526_v35, %v2527_v37  ;;  %vm8120_vm4 = vcmask 785408   ;;  %vm8122_vm11 = vcmask 752640  }
 0x5bb   : > { %1868 = vst.msk [vmem:[#allocation6 + $0x88] sm:$0xcc] %vm6838_vm0, %v1866_v38  ;;  %v1892_v42 = vpop.permute.xlu1 %1891  ;;  %v2554_v43 = vpop.permute.xlu0 %2553  ;;  %2098 = vmatprep.subr.bf16.mxu1 %v6005_v40  ;;  %v6015_v33 = vld [vmem:[#allocation6 + $0xa8] ss:$8 sps:$4 sm:$0xff]   ;;  %v6022_v36 = vld [vmem:[#allocation6 + $0xbc] ss:$8 sps:$4 sm:$0xff]  }
 0x5bc   : > { %2530 = vst.msk [vmem:[#allocation6 + $0x118] sm:$0x33] %vm6846_vm9, %v2528_v41  ;;  %v1893_v44 = vrot.slane %v1892_v42, 4  ;;  %v2555_v46 = vrot.slane %v2554_v43, 4  ;;  %2099 = vmatpush1.bf16.msra.mxu1 %v6003_v39 }
 0x5be   : > { %v1895_v47 = vsel %vm1894_vm2, %v1892_v42, %v1893_v44  ;;  %v2556_v48 = vsel %vm8119_vm8, %v2554_v43, %v2555_v46  ;;  %vm8124_vm8 = vmmov %vm8121_vm12  ;;  %v6020_v43 = vld [vmem:[#allocation6 + $0xb8] ss:$8 sps:$4 sm:$0xff]  }
 0x5bf   : > { %1897 = vst.msk [vmem:[#allocation6 + $0x90] sm:$0xcc] %vm6838_vm0, %v1895_v47  ;;  %v1921_v49 = vpop.permute.xlu1 %1920  ;;  %v2582_v50 = vpop.permute.xlu0 %2581  ;;  %v6029_v47 = vld [vmem:[#allocation6 + $0xcc] ss:$8 sps:$4 sm:$0xff]  }
 0x5c0   : > { %2558 = vst.msk [vmem:[#allocation6 + $0x120] sm:$0x33] %vm6846_vm9, %v2556_v48  ;;  %v1922_v51 = vrot.slane %v1921_v49, 4  ;;  %v2583_v52 = vrot.slane %v2582_v50, 4 }
 0x5c2   : > { %v1924_v1 = vsel %vm1923_vm14, %v1921_v49, %v1922_v51  ;;  %v6006_v53 = vld [vmem:[#allocation6 + $0x80] ss:$8 sps:$4 sm:$0xff]   ;;  %v6008_v54 = vld [vmem:[#allocation6 + $0x84] ss:$8 sps:$4 sm:$0xff]   ;;  %v2584_v55 = vsel %vm8120_vm4, %v2582_v50, %v2583_v52 }
 0x5c3   : > { %1926 = vst.msk [vmem:[#allocation6 + $0x98] sm:$0xcc] %vm6838_vm0, %v1924_v1  ;;  %v3403_v56 = vpop.permute.xlu1 %3402  ;;  %v2610_v57 = vpop.permute.xlu0 %2609  ;;  %2100 = vmatprep.subr.bf16.mxu1 %v6008_v54  ;;  %v6027_v52 = vld [vmem:[#allocation6 + $0xc8] ss:$8 sps:$4 sm:$0xff]   ;;  %v6032_v54 = vld [vmem:[#allocation6 + $0xdc] ss:$8 sps:$4 sm:$0xff]  }
 0x5c4   : > { %2586 = vst.msk [vmem:[#allocation6 + $0x128] sm:$0x33] %vm6846_vm9, %v2584_v55  ;;  %v3404_v58 = vrot.slane %v3403_v56, 4  ;;  %v2611_v59 = vrot.slane %v2610_v57, 4  ;;  %2101 = vmatpush1.bf16.msra.mxu1 %v6006_v53 }
 0x5c6   : > { %v3405_v60 = vsel %vm8121_vm12, %v3403_v56, %v3404_v58  ;;  %v2612_v61 = vsel %vm1850_vm10, %v2610_v57, %v2611_v59  ;;  %v6030_v59 = vld [vmem:[#allocation6 + $0xd8] ss:$8 sps:$4 sm:$0xff]   ;;  %vm8131_vm12 = vcmask 957440  }
 0x5c7   : > { %3407 = vst.msk [vmem:[#allocation6 + $0x1e8] sm:$0x33] %vm6846_vm9, %v3405_v60  ;;  %v2904_v62 = vpop.permute.xlu1 %2903  ;;  %2614 = vst.msk [vmem:[#allocation6 + $0x130] sm:$0x33] %vm6846_vm9, %v2612_v61  ;;  %v2638_v63 = vpop.permute.xlu0 %2637 }
 0x5c8   : > { %v2905_v0 = vrot.slane %v2904_v62, 4  ;;  %v2639_v45 = vrot.slane %v2638_v63, 4 }
 0x5ca   : > { %v2906_v3 = vsel %vm975_vm15, %v2904_v62, %v2905_v0  ;;  %v6009_v6 = vld [vmem:[#allocation6 + $0x90] ss:$8 sps:$4 sm:$0xff]   ;;  %v6011_v9 = vld [vmem:[#allocation6 + $0x94] ss:$8 sps:$4 sm:$0xff]   ;;  %v2640_v10 = vsel %vm8122_vm11, %v2638_v63, %v2639_v45  ;;  %vm8123_vm15 = vcmask 1041408   ;;  %vm8132_vm11 = vcmask 949248  }
 0x5cb   : > { %2908 = vst.msk [vmem:[#allocation6 + $0x150] sm:$0xcc] %vm6838_vm0, %v2906_v3  ;;  %v2931_v11 = vpop.permute.xlu1 %2930  ;;  %v2666_v13 = vpop.permute.xlu0 %2665  ;;  %2102 = vmatprep.subr.bf16.mxu1 %v6011_v9  ;;  %vm8125_vm4 = vmmov %vm8123_vm15  ;;  %v6035_v62 = vld [vmem:[#allocation6 + $0xec] ss:$8 sps:$4 sm:$0xff]   ;;  %v6033_v45 = vld [vmem:[#allocation6 + $0xe8] ss:$8 sps:$4 sm:$0xff]  }
 0x5cc   : > { %2642 = vst.msk [vmem:[#allocation6 + $0x138] sm:$0x33] %vm6846_vm9, %v2640_v10  ;;  %v2932_v14 = vrot.slane %v2931_v11, 4  ;;  %v2667_v12 = vrot.slane %v2666_v13, 4  ;;  %2103 = vmatpush1.bf16.msra.mxu1 %v6009_v6  ;;  %v2079_v24 = vsel %vm8125_vm4, %v5318_v16, 0  ;;  %vm8135_vm4 = vcmask 924672  }
 0x5cd   : > { %5320 = vmatprep.subr.msk.bf16.mxu1 %vm8123_vm15, %v5319_v15  ;;  %vm8133_vm15 = vcmask 941056  }
 0x5ce   : > { %v2933_v17 = vsel %vm1013_vm13, %v2931_v11, %v2932_v14  ;;  %v2668_v19 = vsel %vm8124_vm8, %v2666_v13, %v2667_v12  ;;  %vm8126_vm13 = vcmask 719872   ;;  %v6041_v13 = vld [vmem:[#allocation6 + $0xfc] ss:$8 sps:$4 sm:$0xff]   ;;  %vm8134_vm8 = vcmask 932864  }
 0x5cf   : > { %2935 = vst.msk [vmem:[#allocation6 + $0x158] sm:$0xcc] %vm6838_vm0, %v2933_v17  ;;  %v3656_v20 = vpop.permute.xlu1 %3655  ;;  %v2694_v21 = vpop.permute.xlu0 %2693  ;;  %v6039_v17 = vld [vmem:[#allocation6 + $0xf8] ss:$8 sps:$4 sm:$0xff]  }
 0x5d0   : > { %2670 = vst.msk [vmem:[#allocation6 + $0x140] sm:$0x33] %vm6846_vm9, %v2668_v19  ;;  %v3657_v22 = vrot.slane %v3656_v20, 4  ;;  %v2695_v28 = vrot.slane %v2694_v21, 4  ;;  %2105 = vmatpush1.bf16.msra.mxu1 %v2079_v24 }
 0x5d1   : > { %2842 = vmatprep.subr.bf16.mxu1 %v6017_v25  ;;  %v6042_v25 = vld [vmem:[#allocation6 + $0x108] ss:$8 sps:$4 sm:$0xff]  }
 0x5d2   : > { %v3658_v30 = vsel %vm994_vm3, %v3656_v20, %v3657_v22  ;;  %v2696_v31 = vsel %vm8126_vm13, %v2694_v21, %v2695_v28  ;;  %vm8127_vm3 = vcmask 990208   ;;  %v6044_v21 = vld [vmem:[#allocation6 + $0x10c] ss:$8 sps:$4 sm:$0xff]   ;;  %vm8136_vm13 = vcmask 916480  }
 0x5d3   : > { %3660 = vst.msk [vmem:[#allocation6 + $0x200] sm:$0x33] %vm6846_vm9, %v3658_v30  ;;  %v3684_v32 = vpop.permute.xlu1 %3683  ;;  %2698 = vst.msk [vmem:[#allocation6 + $0x148] sm:$0x33] %vm6846_vm9, %v2696_v31  ;;  %v2958_v35 = vpop.permute.xlu0 %2957  ;;  %2117 = vmatmul.mubr.bf16.vlgmr.msra.gmra.mrb[4].mxu1 %v5296_v26 }
 0x5d4   : > { %v3685_v23 = vrot.slane %v3684_v32, 4  ;;  %v2959_v37 = vrot.slane %v2958_v35, 4  ;;  %2843 = vmatpush1.bf16.msra.mxu1 %v6015_v33  ;;  %5410 = vmatprep.mubr.msk.bf16.mxu1 %vm2074_vm6, %v5386_v29  ;;  %v6050_v33 = vld [vmem:[#allocation6 + $0x11c] ss:$8 sps:$4 sm:$0xff]  }
 0x5d5   : > { %2844 = vmatprep.subr.bf16.mxu1 %v6022_v36 }
 0x5d6   : > { %v3686_v38 = vsel %vm1032_vm5, %v3684_v32, %v3685_v23  ;;  %v6024_v39 = vld [vmem:[#allocation6 + $0x150] ss:$8 sps:$4 sm:$0xff]   ;;  %v6026_v40 = vld [vmem:[#allocation6 + $0x154] ss:$8 sps:$4 sm:$0xff]   ;;  %v2960_v41 = vsel %vm1051_vm1, %v2958_v35, %v2959_v37  ;;  %vm8128_vm1 = vcmask 982016   ;;  %vm8129_vm5 = vcmask 973824  }
 0x5d7   : > { %3688 = vst.msk [vmem:[#allocation6 + $0x208] sm:$0x33] %vm6846_vm9, %v3686_v38  ;;  %v3712_v42 = vpop.permute.xlu1 %3711  ;;  %v2985_v44 = vpop.permute.xlu0 %2984  ;;  %3578 = vmatprep.subr.bf16.mxu0 %v6026_v40  ;;  %v6048_v38 = vld [vmem:[#allocation6 + $0x118] ss:$8 sps:$4 sm:$0xff]  }
 0x5d8   : > { %2962 = vst.msk [vmem:[#allocation6 + $0x160] sm:$0xcc] %vm6838_vm0, %v2960_v41  ;;  %v3713_v46 = vrot.slane %v3712_v42, 4  ;;  %v2986_v48 = vrot.slane %v2985_v44, 4  ;;  %2845 = vmatpush1.bf16.msra.mxu1 %v6020_v43  ;;  %3579 = vmatpush1.bf16.msra.mxu0 %v6024_v39  ;;  %v6053_v41 = vld [vmem:[#allocation6 + $0x12c] ss:$8 sps:$4 sm:$0xff]  }
 0x5d9   : > { %2846 = vmatprep.subr.bf16.mxu1 %v6029_v47 }
 0x5da   : > { %v3714_v49 = vsel %vm1070_vm7, %v3712_v42, %v3713_v46  ;;  %v2987_v50 = vsel %vm8127_vm3, %v2985_v44, %v2986_v48  ;;  %vm8130_vm7 = vcmask 965632   ;;  %vm8137_vm3 = vcmask 908288   ;;  %v6051_v44 = vld [vmem:[#allocation6 + $0x128] ss:$8 sps:$4 sm:$0xff]  }
 0x5db   : > { %3716 = vst.msk [vmem:[#allocation6 + $0x210] sm:$0x33] %vm6846_vm9, %v3714_v49  ;;  %v3740_v51 = vpop.permute.xlu1 %3739  ;;  %v3012_v1 = vpop.permute.xlu0 %3011 }
 0x5dc   : > { %2989 = vst.msk [vmem:[#allocation6 + $0x168] sm:$0xcc] %vm6838_vm0, %v2987_v50  ;;  %v3741_v53 = vrot.slane %v3740_v51, 4  ;;  %v3013_v55 = vrot.slane %v3012_v1, 4  ;;  %2847 = vmatpush1.bf16.msra.mxu1 %v6027_v52  ;;  %v6059_v52 = vld [vmem:[#allocation6 + $0x13c] ss:$8 sps:$4 sm:$0xff]  }
 0x5dd   : > { %2848 = vmatprep.subr.bf16.mxu1 %v6032_v54 }
 0x5de   : > { %v3742_v56 = vsel %vm8128_vm1, %v3740_v51, %v3741_v53  ;;  %v3014_v57 = vsel %vm8129_vm5, %v3012_v1, %v3013_v55  ;;  %vm8138_vm1 = vcmask 900096   ;;  %vm8139_vm5 = vcmask 891904   ;;  %v2721_v53 = vld [vmem:[#allocation6 + $0x148] sm:$0x33] }
 0x5df   : > { %3744 = vst.msk [vmem:[#allocation6 + $0x218] sm:$0x33] %vm6846_vm9, %v3742_v56  ;;  %v3768_v58 = vpop.permute.xlu1 %3767  ;;  %v3039_v60 = vpop.permute.xlu0 %3038 }
 0x5e0   : > { %3016 = vst.msk [vmem:[#allocation6 + $0x170] sm:$0xcc] %vm6838_vm0, %v3014_v57  ;;  %v3769_v61 = vrot.slane %v3768_v58, 4  ;;  %v3040_v63 = vrot.slane %v3039_v60, 4  ;;  %2849 = vmatpush1.bf16.msra.mxu1 %v6030_v59  ;;  %v6057_v57 = vld [vmem:[#allocation6 + $0x138] ss:$8 sps:$4 sm:$0xff]  }
 0x5e1   : > { %2850 = vmatprep.subr.bf16.mxu1 %v6035_v62 }
 0x5e2   : > { %v3770_v0 = vsel %vm8130_vm7, %v3768_v58, %v3769_v61  ;;  %v3041_v2 = vsel %vm8131_vm12, %v3039_v60, %v3040_v63  ;;  %vm8140_vm7 = vcmask 883712   ;;  %vm8141_vm12 = vcmask 875520  }
 0x5e3   : > { %3772 = vst.msk [vmem:[#allocation6 + $0x220] sm:$0x33] %vm6846_vm9, %v3770_v0  ;;  %v3796_v3 = vpop.permute.xlu1 %3795  ;;  %v6036_v6 = vld [vmem:[#allocation6 + $0x160] ss:$8 sps:$4 sm:$0xff]   ;;  %v6038_v9 = vld [vmem:[#allocation6 + $0x164] ss:$8 sps:$4 sm:$0xff]   ;;  %v3066_v10 = vpop.permute.xlu0 %3065  ;;  %v5408_v60 = vcombine.high %v2721_v53, %v2721_v53  ;;  %v5407_v61 = vcombine.low %v2721_v53, %v2721_v53 }
 0x5e4   : > { %3043 = vst.msk [vmem:[#allocation6 + $0x178] sm:$0xcc] %vm6838_vm0, %v3041_v2  ;;  %v3797_v11 = vrot.slane %v3796_v3, 4  ;;  %v3067_v14 = vrot.slane %v3066_v10, 4  ;;  %3580 = vmatprep.subr.bf16.mxu0 %v6038_v9  ;;  %2851 = vmatpush1.bf16.msra.mxu1 %v6033_v45  ;;  %v7422_v0 = vld [vmem:[%s8066_s8 + $0x18] sm:$0xff] }
 0x5e5   : > { %3581 = vmatpush1.bf16.msra.mxu0 %v6036_v6  ;;  %2852 = vmatprep.subr.bf16.mxu1 %v6041_v13  ;;  %v6068_v13 = vld [vmem:[#allocation6 + $0x1fc] ss:$8 sps:$4 sm:$0xff]  }
 0x5e6   : > { %v3798_v15 = vsel %vm8132_vm11, %v3796_v3, %v3797_v11  ;;  %v3068_v16 = vsel %vm8133_vm15, %v3066_v10, %v3067_v14  ;;  %vm8142_vm11 = vcmask 867328   ;;  %vm8143_vm15 = vcmask 1041408  }
 0x5e7   : > { %3800 = vst.msk [vmem:[#allocation6 + $0x228] sm:$0x33] %vm6846_vm9, %v3798_v15  ;;  %v3824_v12 = vpop.permute.xlu1 %3823  ;;  %v3093_v19 = vpop.permute.xlu0 %3092  ;;  %v5385_v14 = vcombine.low %v7344_v18, %v7344_v18 }
 0x5e8   : > { %3070 = vst.msk [vmem:[#allocation6 + $0x180] sm:$0xcc] %vm6838_vm0, %v3068_v16  ;;  %v3825_v20 = vrot.slane %v3824_v12, 4  ;;  %v3094_v22 = vrot.slane %v3093_v19, 4  ;;  %2853 = vmatpush1.bf16.msra.mxu1 %v6039_v17  ;;  %v5543_v16 = vcombine.high %v7422_v0, %v7422_v0 }
 0x5e9   : > { %2854 = vmatprep.subr.bf16.mxu1 %v6044_v21 }
 0x5ea   : > { %v3826_v24 = vsel %vm8134_vm8, %v3824_v12, %v3825_v20  ;;  %v3095_v26 = vsel %vm8135_vm4, %v3093_v19, %v3094_v22  ;;  %vm8144_vm8 = vcmask 859136   ;;  %vm8145_vm4 = vmmov %vm8143_vm15  ;;  %v6066_v20 = vld [vmem:[#allocation6 + $0x1f8] ss:$8 sps:$4 sm:$0xff]   ;;  %v6073_v22 = vld [vmem:[#allocation6 + $0x20c] ss:$8 sps:$4 sm:$0xff]  }
 0x5eb   : > { %3828 = vst.msk [vmem:[#allocation6 + $0x230] sm:$0x33] %vm6846_vm9, %v3826_v24  ;;  %v3852_v28 = vpop.permute.xlu1 %3851  ;;  %v6045_v29 = vld [vmem:[#allocation6 + $0x170] ss:$8 sps:$4 sm:$0xff]   ;;  %v6047_v30 = vld [vmem:[#allocation6 + $0x174] ss:$8 sps:$4 sm:$0xff]   ;;  %v3120_v31 = vpop.permute.xlu0 %3119 }
 0x5ec   : > { %3097 = vst.msk [vmem:[#allocation6 + $0x188] sm:$0xcc] %vm6838_vm0, %v3095_v26  ;;  %v3853_v32 = vrot.slane %v3852_v28, 4  ;;  %v3121_v35 = vrot.slane %v3120_v31, 4  ;;  %3582 = vmatprep.subr.bf16.mxu0 %v6047_v30  ;;  %2855 = vmatpush1.bf16.msra.mxu1 %v6042_v25  ;;  %v2837_v11 = vsel %vm8145_vm4, %v5407_v61, 0  ;;  %vm8156_vm4 = vcmask 760832  }
 0x5ed   : > { %3583 = vmatpush1.bf16.msra.mxu0 %v6045_v29  ;;  %2856 = vmatprep.subr.bf16.mxu1 %v6050_v33  ;;  %v6071_v26 = vld [vmem:[#allocation6 + $0x208] ss:$8 sps:$4 sm:$0xff]  }
 0x5ee   : > { %v3854_v23 = vsel %vm8136_vm13, %v3852_v28, %v3853_v32  ;;  %v3122_v36 = vsel %vm8137_vm3, %v3120_v31, %v3121_v35  ;;  %vm8146_vm13 = vcmask 850944   ;;  %vm8147_vm3 = vcmask 842752   ;;  %v6079_v35 = vld [vmem:[#allocation6 + $0x21c] ss:$8 sps:$4 sm:$0xff]  }
 0x5ef   : > { %3856 = vst.msk [vmem:[#allocation6 + $0x238] sm:$0x33] %vm6846_vm9, %v3854_v23  ;;  %v3880_v37 = vpop.permute.xlu1 %3879  ;;  %v3147_v39 = vpop.permute.xlu0 %3146 }
 0x5f0   : > { %3124 = vst.msk [vmem:[#allocation6 + $0x190] sm:$0xcc] %vm6838_vm0, %v3122_v36  ;;  %v3881_v40 = vrot.slane %v3880_v37, 4  ;;  %v3148_v42 = vrot.slane %v3147_v39, 4  ;;  %2857 = vmatpush1.bf16.msra.mxu1 %v6048_v38 }
 0x5f1   : > { %2858 = vmatprep.subr.bf16.mxu1 %v6053_v41 }
 0x5f2   : > { %v3882_v43 = vsel %vm8138_vm1, %v3880_v37, %v3881_v40  ;;  %v3149_v46 = vsel %vm8139_vm5, %v3147_v39, %v3148_v42  ;;  %vm8148_vm1 = vcmask 834560   ;;  %vm8149_vm5 = vcmask 826368   ;;  %v6077_v39 = vld [vmem:[#allocation6 + $0x218] ss:$8 sps:$4 sm:$0xff]   ;;  %v6082_v42 = vld [vmem:[#allocation6 + $0x22c] ss:$8 sps:$4 sm:$0xff]  }
 0x5f3   : > { %3884 = vst.msk [vmem:[#allocation6 + $0x240] sm:$0x33] %vm6846_vm9, %v3882_v43  ;;  %v3908_v47 = vpop.permute.xlu1 %3907  ;;  %v6054_v48 = vld [vmem:[#allocation6 + $0x180] ss:$8 sps:$4 sm:$0xff]   ;;  %v6056_v49 = vld [vmem:[#allocation6 + $0x184] ss:$8 sps:$4 sm:$0xff]   ;;  %v3174_v50 = vpop.permute.xlu0 %3173 }
 0x5f4   : > { %3151 = vst.msk [vmem:[#allocation6 + $0x198] sm:$0xcc] %vm6838_vm0, %v3149_v46  ;;  %v3909_v51 = vrot.slane %v3908_v47, 4  ;;  %v3175_v1 = vrot.slane %v3174_v50, 4  ;;  %3584 = vmatprep.subr.bf16.mxu0 %v6056_v49  ;;  %2859 = vmatpush1.bf16.msra.mxu1 %v6051_v44  ;;  %v6080_v46 = vld [vmem:[#allocation6 + $0x228] ss:$8 sps:$4 sm:$0xff]  }
 0x5f5   : > { %3585 = vmatpush1.bf16.msra.mxu0 %v6054_v48  ;;  %2860 = vmatprep.subr.bf16.mxu1 %v6059_v52 }
 0x5f6   : > { %v3910_v54 = vsel %vm8140_vm7, %v3908_v47, %v3909_v51  ;;  %v3176_v55 = vsel %vm8141_vm12, %v3174_v50, %v3175_v1  ;;  %vm8151_vm7 = vcmask 809984   ;;  %vm8152_vm12 = vcmask 801792  }
 0x5f7   : > { %3912 = vst.msk [vmem:[#allocation6 + $0x248] sm:$0x33] %vm6846_vm9, %v3910_v54  ;;  %v3936_v56 = vpop.permute.xlu1 %3935  ;;  %v3201_v58 = vpop.permute.xlu0 %3200 }
 0x5f8   : > { %3178 = vst.msk [vmem:[#allocation6 + $0x1a0] sm:$0xcc] %vm6838_vm0, %v3176_v55  ;;  %v3937_v59 = vrot.slane %v3936_v56, 4  ;;  %v3202_v62 = vrot.slane %v3201_v58, 4  ;;  %2861 = vmatpush1.bf16.msra.mxu1 %v6057_v57 }
 0x5f9   : > { %5409 = vmatprep.subr.msk.bf16.mxu1 %vm8143_vm15, %v5408_v60  ;;  %vm8154_vm15 = vcmask 785408  }
 0x5fa   : > { %v3938_v63 = vsel %vm8142_vm11, %v3936_v56, %v3937_v59  ;;  %v3203_v45 = vsel %vm8144_vm8, %v3201_v58, %v3202_v62  ;;  %vm8153_vm11 = vcmask 793600   ;;  %v6088_v1 = vld [vmem:[#allocation6 + $0x23c] ss:$8 sps:$4 sm:$0xff]   ;;  %vm8155_vm8 = vcmask 777216   ;;  %v6086_v57 = vld [vmem:[#allocation6 + $0x238] ss:$8 sps:$4 sm:$0xff]  }
 0x5fb   : > { %3940 = vst.msk [vmem:[#allocation6 + $0x250] sm:$0x33] %vm6846_vm9, %v3938_v63  ;;  %v3964_v2 = vpop.permute.xlu1 %3963  ;;  %v6061_v3 = vld [vmem:[#allocation6 + $0x190] ss:$8 sps:$4 sm:$0xff]   ;;  %v6063_v6 = vld [vmem:[#allocation6 + $0x194] ss:$8 sps:$4 sm:$0xff]   ;;  %v3228_v9 = vpop.permute.xlu0 %3227 }
 0x5fc   : > { %3205 = vst.msk [vmem:[#allocation6 + $0x1a8] sm:$0xcc] %vm6838_vm0, %v3203_v45  ;;  %v3965_v10 = vrot.slane %v3964_v2, 4  ;;  %v3229_v15 = vrot.slane %v3228_v9, 4  ;;  %3586 = vmatprep.subr.bf16.mxu0 %v6063_v6  ;;  %2863 = vmatpush1.bf16.msra.mxu1 %v2837_v11 }
 0x5fd   : > { %3587 = vmatpush1.bf16.msra.mxu0 %v6061_v3  ;;  %4336 = vmatprep.subr.bf16.mxu1 %v6068_v13 }
 0x5fe   : > { %v3966_v12 = vsel %vm8146_vm13, %v3964_v2, %v3965_v10  ;;  %v3230_v17 = vsel %vm8147_vm3, %v3228_v9, %v3229_v15  ;;  %vm8158_vm13 = vcmask 736256  }
 0x5ff   : > { %3968 = vst.msk [vmem:[#allocation6 + $0x258] sm:$0x33] %vm6846_vm9, %v3966_v12  ;;  %v3992_v19 = vpop.permute.xlu1 %3991  ;;  %v3255_v18 = vpop.permute.xlu0 %3254  ;;  %2875 = vmatmul.mubr.bf16.vlgmr.msra.gmra.mrb[8].mxu1 %v5385_v14 }
 0x600   : > { %3232 = vst.msk [vmem:[#allocation6 + $0x1b0] sm:$0xcc] %vm6838_vm0, %v3230_v17  ;;  %v3993_v21 = vrot.slane %v3992_v19, 4  ;;  %v3256_v24 = vrot.slane %v3255_v18, 4  ;;  %4337 = vmatpush1.bf16.msra.mxu1 %v6066_v20  ;;  %5567 = vmatprep.mubr.msk.bf16.mxu1 %vm2074_vm6, %v5543_v16  ;;  %vm8150_vm6 = vcmask 818176  }
 0x601   : > { %4338 = vmatprep.subr.bf16.mxu1 %v6073_v22 }
 0x602   : > { %v3994_v25 = vsel %vm8148_vm1, %v3992_v19, %v3993_v21  ;;  %v3257_v28 = vsel %vm8149_vm5, %v3255_v18, %v3256_v24  ;;  %v6091_v60 = vld [vmem:[#allocation6 + $0x24c] ss:$8 sps:$4 sm:$0xff]   ;;  %v6089_v63 = vld [vmem:[#allocation6 + $0x248] ss:$8 sps:$4 sm:$0xff]   ;;  %vm4485_vm5 = vcmask 1040384  }
 0x603   : > { %3996 = vst.msk [vmem:[#allocation6 + $0x260] sm:$0x33] %vm6846_vm9, %v3994_v25  ;;  %v4020_v29 = vpop.permute.xlu1 %4019  ;;  %v6074_v30 = vld [vmem:[#allocation6 + $0x1a0] ss:$8 sps:$4 sm:$0xff]   ;;  %v6076_v31 = vld [vmem:[#allocation6 + $0x1a4] ss:$8 sps:$4 sm:$0xff]   ;;  %v3282_v32 = vpop.permute.xlu0 %3281 }
 0x604   : > { %3259 = vst.msk [vmem:[#allocation6 + $0x1b8] sm:$0xcc] %vm6838_vm0, %v3257_v28  ;;  %v4021_v33 = vrot.slane %v4020_v29, 4  ;;  %v3283_v23 = vrot.slane %v3282_v32, 4  ;;  %3588 = vmatprep.subr.bf16.mxu0 %v6076_v31  ;;  %4339 = vmatpush1.bf16.msra.mxu1 %v6071_v26 }
 0x605   : > { %3589 = vmatpush1.bf16.msra.mxu0 %v6074_v30  ;;  %4340 = vmatprep.subr.bf16.mxu1 %v6079_v35 }
 0x606   : > { %v4022_v36 = vsel %vm8150_vm6, %v4020_v29, %v4021_v33  ;;  %v3284_v37 = vsel %vm8151_vm7, %v3282_v32, %v3283_v23  ;;  %vm8165_vm6 = vcmask 7168  }
 0x607   : > { %4024 = vst.msk [vmem:[#allocation6 + $0x268] sm:$0x33] %vm6846_vm9, %v4022_v36  ;;  %v4048_v38 = vpop.permute.xlu1 %4047  ;;  %v3309_v40 = vpop.permute.xlu0 %3308  ;;  %vm8166_vm7 = vmmov %vm8165_vm6 }
 0x608   : > { %3286 = vst.msk [vmem:[#allocation6 + $0x1c0] sm:$0xcc] %vm6838_vm0, %v3284_v37  ;;  %v4049_v41 = vrot.slane %v4048_v38, 4  ;;  %v3310_v43 = vrot.slane %v3309_v40, 4  ;;  %4341 = vmatpush1.bf16.msra.mxu1 %v6077_v39 }
 0x609   : > { %4342 = vmatprep.subr.bf16.mxu1 %v6082_v42 }
 0x60a   : > { %v4050_v44 = vsel %vm8152_vm12, %v4048_v38, %v4049_v41  ;;  %v3311_v47 = vsel %vm8153_vm11, %v3309_v40, %v3310_v43  ;;  %v6097_v11 = vld [vmem:[#allocation6 + $0x25c] ss:$8 sps:$4 sm:$0xff]   ;;  %v6095_v12 = vld [vmem:[#allocation6 + $0x258] ss:$8 sps:$4 sm:$0xff]   ;;  %vm8167_vm12 = vmmov %vm8165_vm6 }
 0x60b   : > { %4052 = vst.msk [vmem:[#allocation6 + $0x270] sm:$0x33] %vm6846_vm9, %v4050_v44  ;;  %v4076_v48 = vpop.permute.xlu1 %4075  ;;  %v6083_v49 = vld [vmem:[#allocation6 + $0x1b0] ss:$8 sps:$4 sm:$0xff]   ;;  %v6085_v50 = vld [vmem:[#allocation6 + $0x1b4] ss:$8 sps:$4 sm:$0xff]   ;;  %v3336_v51 = vpop.permute.xlu0 %3335  ;;  %vm8168_vm11 = vmmov %vm8165_vm6 }
 0x60c   : > { %3313 = vst.msk [vmem:[#allocation6 + $0x1c8] sm:$0xcc] %vm6838_vm0, %v3311_v47  ;;  %v4077_v52 = vrot.slane %v4076_v48, 4  ;;  %v3337_v53 = vrot.slane %v3336_v51, 4  ;;  %3590 = vmatprep.subr.bf16.mxu0 %v6085_v50  ;;  %4343 = vmatpush1.bf16.msra.mxu1 %v6080_v46  ;;  %v5453_v46 = vcombine.low %v7278_v7, %v7278_v7  ;;  %v6122_v50 = vld [vmem:[#allocation17 + $0x10] ss:$8 sps:$4 sm:$0xff]  }
 0x60d   : > { %3591 = vmatpush1.bf16.msra.mxu0 %v6083_v49  ;;  %4344 = vmatprep.subr.bf16.mxu1 %v6088_v1  ;;  %v6121_v49 = vld [vmem:[#allocation17] ss:$8 sps:$4 sm:$0xff]  }
 0x60e   : > { %v4078_v54 = vsel %vm8154_vm15, %v4076_v48, %v4077_v52  ;;  %v3338_v55 = vsel %vm8155_vm8, %v3336_v51, %v3337_v53  ;;  %v5542_v48 = vcombine.low %v7422_v0, %v7422_v0  ;;  %v6123_v7 = vld [vmem:[#allocation17 + $0x20] ss:$8 sps:$4 sm:$0xff]   ;;  %v6124_v51 = vld [vmem:[#allocation17 + $0x30] ss:$8 sps:$4 sm:$0xff]   ;;  %vm8169_vm15 = vmmov %vm8165_vm6 }
 0x60f   : > { %4080 = vst.msk [vmem:[#allocation6 + $0x278] sm:$0x33] %vm6846_vm9, %v4078_v54  ;;  %v4104_v56 = vpop.permute.xlu1 %4103  ;;  %v3363_v58 = vpop.permute.xlu0 %3362  ;;  %v6125_v0 = vld [vmem:[#allocation17 + $0x40] ss:$8 sps:$4 sm:$0xff]   ;;  %v6126_v52 = vld [vmem:[#allocation17 + $0x50] ss:$8 sps:$4 sm:$0xff]   ;;  %vm8170_vm8 = vmmov %vm8165_vm6 }
 0x610   : > { %3340 = vst.msk [vmem:[#allocation6 + $0x1d0] sm:$0xcc] %vm6838_vm0, %v3338_v55  ;;  %v4105_v59 = vrot.slane %v4104_v56, 4  ;;  %v3364_v61 = vrot.slane %v3363_v58, 4  ;;  %4345 = vmatpush1.bf16.msra.mxu1 %v6086_v57  ;;  %v6127_v1 = vld [vmem:[#allocation17 + $0x60] ss:$8 sps:$4 sm:$0xff]  }
 0x611   : > { %4346 = vmatprep.subr.bf16.mxu1 %v6091_v60  ;;  %v6128_v53 = vld [vmem:[#allocation17 + $0x70] ss:$8 sps:$4 sm:$0xff]   ;;  %v6129_v54 = vld [vmem:[#allocation17 + $0x80] ss:$0 sps:$4 sm:$0x11]   ;;  %v4487_v55 = vsel %vm4485_vm5, 65535, %v6361_v8 }
 0x612   : > { %v4106_v62 = vsel %vm1850_vm10, %v4104_v56, %v4105_v59  ;;  %v3365_v45 = vsel %vm8156_vm4, %v3363_v58, %v3364_v61  ;;  %vm8157_vm10 = vcmask 752640   ;;  %v6100_v20 = vld [vmem:[#allocation6 + $0x26c] ss:$8 sps:$4 sm:$0xff]   ;;  %v6098_v22 = vld [vmem:[#allocation6 + $0x268] ss:$8 sps:$4 sm:$0xff]   ;;  %v4489_v56 = vand.u32 %v6129_v54, %v4487_v55  ;;  %vm8171_vm4 = vmmov %vm8165_vm6 }
 0x613   : > { %4108 = vst.msk [vmem:[#allocation6 + $0x280] sm:$0x33] %vm6846_vm9, %v4106_v62  ;;  %v4132_v2 = vpop.permute.xlu1 %4131  ;;  %v6092_v3 = vld [vmem:[#allocation6 + $0x1c0] ss:$8 sps:$4 sm:$0xff]   ;;  %v6094_v6 = vld [vmem:[#allocation6 + $0x1c4] ss:$8 sps:$4 sm:$0xff]   ;;  %v3390_v9 = vpop.permute.xlu0 %3389 }
 0x614   : > { %3367 = vst.msk [vmem:[#allocation6 + $0x1d8] sm:$0xcc] %vm6838_vm0, %v3365_v45  ;;  %v4133_v10 = vrot.slane %v4132_v2, 4  ;;  %v3391_v13 = vrot.slane %v3390_v9, 4  ;;  %3592 = vmatprep.subr.bf16.mxu0 %v6094_v6  ;;  %4347 = vmatpush1.bf16.msra.mxu1 %v6089_v63  ;;  %vm4775_vm5 = vcmask 261120  }
 0x615   : > { %3593 = vmatpush1.bf16.msra.mxu0 %v6092_v3  ;;  %4348 = vmatprep.subr.bf16.mxu1 %v6097_v11 }
 0x616   : > { %v4134_v14 = vsel %vm8157_vm10, %v4132_v2, %v4133_v10  ;;  %v3392_v15 = vsel %vm1894_vm2, %v3390_v9, %v3391_v13  ;;  %vm8159_vm2 = vcmask 719872   ;;  %vm8172_vm10 = vmmov %vm8171_vm4 }
 0x617   : > { %4136 = vst.msk [vmem:[#allocation6 + $0x288] sm:$0x33] %vm6846_vm9, %v4134_v14  ;;  %v4160_v16 = vpop.permute.xlu1 %4159  ;;  %v3417_v17 = vpop.permute.xlu0 %3416 }
 0x618   : > { %3394 = vst.msk [vmem:[#allocation6 + $0x1e0] sm:$0xcc] %vm6838_vm0, %v3392_v15  ;;  %v4161_v19 = vrot.slane %v4160_v16, 4  ;;  %v3418_v18 = vrot.slane %v3417_v17, 4  ;;  %4349 = vmatpush1.bf16.msra.mxu1 %v6095_v12 }
 0x619   : > { %4350 = vmatprep.subr.bf16.mxu1 %v6100_v20 }
 0x61a   : > { %v4162_v21 = vsel %vm8158_vm13, %v4160_v16, %v4161_v19  ;;  %v3419_v24 = vsel %vm1923_vm14, %v3417_v17, %v3418_v18  ;;  %v6106_v31 = vld [vmem:[#allocation6 + $0x27c] ss:$8 sps:$4 sm:$0xff]   ;;  %vm8160_vm14 = vmmov %vm8159_vm2  ;;  %v6104_v23 = vld [vmem:[#allocation6 + $0x278] ss:$8 sps:$4 sm:$0xff]   ;;  %vm4651_vm13 = vcmask 564760  }
 0x61b   : > { %4164 = vst.msk [vmem:[#allocation6 + $0x290] sm:$0x33] %vm6846_vm9, %v4162_v21  ;;  %v3430_v25 = vpop.permute.xlu1 %3429  ;;  %v6101_v26 = vld [vmem:[#allocation6 + $0x1d0] ss:$8 sps:$4 sm:$0xff]   ;;  %v6103_v28 = vld [vmem:[#allocation6 + $0x1d4] ss:$8 sps:$4 sm:$0xff]   ;;  %v4188_v29 = vpop.permute.xlu0 %4187 }
 0x61c   : > { %3421 = vst.msk [vmem:[#allocation6 + $0x1e8] sm:$0xcc] %vm6838_vm0, %v3419_v24  ;;  %v3431_v30 = vrot.slane %v3430_v25, 4  ;;  %v4189_v32 = vrot.slane %v4188_v29, 4  ;;  %3594 = vmatprep.subr.bf16.mxu0 %v6103_v28  ;;  %4351 = vmatpush1.bf16.msra.mxu1 %v6098_v22  ;;  %vm8161_vm0 = vcmask 1041408  }
 0x61d   : > { %3595 = vmatpush1.bf16.msra.mxu0 %v6101_v26  ;;  %4352 = vmatprep.subr.bf16.mxu1 %v6106_v31  ;;  %vm8162_vm3 = vmmov %vm8161_vm0  ;;  %4652 = vst.msk [vmem:[#allocation9] sm:$0xff] %vm4651_vm13, %v6361_v8 }
 0x61e   : > { %v3432_v33 = vsel %vm8159_vm2, %v3430_v25, %v3431_v30  ;;  %v4190_v35 = vsel %vm8160_vm14, %v4188_v29, %v4189_v32  ;;  %vm8164_vm1 = vmmov %vm8161_vm0  ;;  %4653 = vst.msk [vmem:[#allocation9 + $0x8] sm:$0xff] %vm4651_vm13, %v6361_v8  ;;  %vm4595_vm2 = vcmask 531456  }
 0x61f   : > { %3434 = vst.msk [vmem:[#allocation6 + $0x1f0] sm:$0x33] %vm6846_vm9, %v3432_v33  ;;  %4192 = vst.msk [vmem:[#allocation6 + $0x298] sm:$0x33] %vm6846_vm9, %v4190_v35 }
 0x620   : > { %4353 = vmatpush1.bf16.msra.mxu1 %v6104_v23  ;;  %vm8163_vm9 = vmmov %vm8161_vm0 }
 0x622   : > { %v6110_v27 = vld [vmem:[#allocation6 + $0x288] ss:$8 sps:$4 sm:$0xff]   ;;  %v6112_v36 = vld [vmem:[#allocation6 + $0x28c] ss:$8 sps:$4 sm:$0xff]  }
 0x623   : > { %v6107_v37 = vld [vmem:[#allocation6 + $0x1e0] ss:$8 sps:$4 sm:$0xff]   ;;  %v6109_v38 = vld [vmem:[#allocation6 + $0x1e4] ss:$8 sps:$4 sm:$0xff]   ;;  %4354 = vmatprep.subr.bf16.mxu1 %v6112_v36 }
 0x624   : > { %3596 = vmatprep.subr.bf16.mxu0 %v6109_v38  ;;  %4355 = vmatpush1.bf16.msra.mxu1 %v6110_v27 }
 0x625   : > { %3597 = vmatpush1.bf16.msra.mxu0 %v6107_v37 }
 0x626   : > { %v3457_v39 = vld [vmem:[#allocation6 + $0x1f0] sm:$0x33]  ;;  %v4215_v41 = vld [vmem:[#allocation6 + $0x298] sm:$0x33] }
 0x627   : > { %v5476_v40 = vcombine.high %v3457_v39, %v3457_v39  ;;  %v5475_v42 = vcombine.low %v3457_v39, %v3457_v39  ;;  %v5565_v43 = vcombine.high %v4215_v41, %v4215_v41  ;;  %v5564_v44 = vcombine.low %v4215_v41, %v4215_v41 }
 0x629   : > { %5477 = vmatprep.subr.msk.bf16.mxu0 %vm8161_vm0, %v5476_v40  ;;  %v3573_v34 = vsel %vm8162_vm3, %v5475_v42, 0  ;;  %5566 = vmatprep.subr.msk.bf16.mxu1 %vm8163_vm9, %v5565_v43  ;;  %v4331_v47 = vsel %vm8164_vm1, %v5564_v44, 0  ;;  %vm4664_vm1 = vcmask 547856  }
 0x62a   : > { %3599 = vmatpush1.bf16.msra.mxu0 %v3573_v34  ;;  %4357 = vmatpush1.bf16.msra.mxu1 %v4331_v47 }
 0x62b   : > { %4491 = vmatprep.subr.bf16.mxu0 %v6361_v8  ;;  %4782 = vmatprep.subr.bf16.mxu1 %v6361_v8 }
 0x62c   : > { %v4611_v47 = vpop.permute.xlu1 %4610 }
 0x62d   : > { %3611 = vmatmul.mubr.bf16.vlgmr.msra.gmra.mrb[4].mxu0 %v5453_v46  ;;  %4369 = vmatmul.mubr.bf16.vlgmr.msra.gmra.mrb[12].mxu1 %v5542_v48 }
 0x62e   : > { %4492 = vmatpush1.bf16.msra.mxu0 %v6121_v49 }
 0x62f   : > { %4493 = vmatprep.subr.bf16.mxu0 %v6361_v8 }
 0x632   : > { %4494 = vmatpush1.bf16.msra.mxu0 %v6122_v50 }
 0x633   : > { %4495 = vmatprep.subr.bf16.mxu0 %v6361_v8 }
 0x636   : > { %4496 = vmatpush1.bf16.msra.mxu0 %v6123_v7 }
 0x637   : > { %4497 = vmatprep.subr.bf16.mxu0 %v6361_v8 }
 0x63a   : > { %4498 = vmatpush1.bf16.msra.mxu0 %v6124_v51 }
 0x63b   : > { %4499 = vmatprep.subr.bf16.mxu0 %v6361_v8 }
 0x63e   : > { %4500 = vmatpush1.bf16.msra.mxu0 %v6125_v0 }
 0x63f   : > { %4501 = vmatprep.subr.bf16.mxu0 %v6361_v8 }
 0x642   : > { %4502 = vmatpush1.bf16.msra.mxu0 %v6126_v52 }
 0x643   : > { %4503 = vmatprep.subr.bf16.mxu0 %v6361_v8 }
 0x646   : > { %4504 = vmatpush1.bf16.msra.mxu0 %v6127_v1 }
 0x647   : > { %4505 = vmatprep.subr.bf16.mxu0 %v6361_v8 }
 0x64a   : > { %4506 = vmatpush1.bf16.msra.mxu0 %v6128_v53 }
 0x64b   : > { %4507 = vmatprep.subr.bf16.mxu0 %v6361_v8 }
 0x64e   : > { %4508 = vmatpush1.bf16.msra.mxu0 %v4489_v56 }
 0x64f   : > { %4546 = vmatprep.subr.bf16.mxu0 %v6361_v8 }
 0x6a6   : > { %v2118_v57 = vpop.f32.mrb[4].mxu1 }
 0x6a7   : > { %v2120_v58 = vpop.f32.mrb[5].mxu1 }
 0x6a8   : > { %2126 = vst.msk [vmem:[#allocation7 + $0x8] sm:$0xff] %vm8165_vm6, %v2120_v58  ;;  %v2122_v59 = vpop.f32.mrb[6].mxu1  ;;  %v4621_v58 = vpop.permute.xlu1 %4620  ;;  %vm4849_vm6 = vcmask 548368  }
 0x6a9   : > { %v2123_v60 = vpop.f32.mrb[7].mxu1  ;;  %4850 = vst.msk [vmem:[#allocation11] sm:$0xff] %vm4849_vm6, %v6361_v8  ;;  %4851 = vst.msk [vmem:[#allocation11 + $0x8] sm:$0xff] %vm4849_vm6, %v6361_v8 }
 0x6af   : > { %v4380_v13 = vld [vmem:[#allocation7 + $0x8] sm:$0xff] }
 0x6d2   : > { %v2876_v61 = vpop.f32.mrb[8].mxu1 }
 0x6d3   : > { %v2878_v62 = vpop.f32.mrb[9].mxu1  ;;  %v7510_v63 = vpack.c.bf16 %v2876_v61, %v2118_v57 }
 0x6d4   : > { %2884 = vst.msk [vmem:[#allocation7 + $0x18] sm:$0xff] %vm8166_vm7, %v2878_v62  ;;  %v2880_v45 = vpop.f32.mrb[10].mxu1 }
 0x6d5   : > { %v2881_v2 = vpop.f32.mrb[11].mxu1  ;;  %v4391_v3 = vunpack.c.l.bf16 %v7510_v63  ;;  %v4393_v6 = vunpack.c.h.bf16 %v7510_v63 }
 0x6d7   : > { %v4399_v9 = vsub.f32 %v2118_v57, %v4391_v3  ;;  %v4401_v10 = vsub.f32 %v2876_v61, %v4393_v6 }
 0x6d9   : > { %v4407_v11 = vpack.c.bf16 %v4401_v10, %v4399_v9 }
 0x6db   : > { %v4382_v14 = vld [vmem:[#allocation7 + $0x18] sm:$0xff] }
 0x6dc   : > { %v4388_v15 = vpack.c.bf16 %v4382_v14, %v4380_v13 }
 0x6de   : > { %v4392_v16 = vunpack.c.l.bf16 %v4388_v15  ;;  %v4394_v12 = vunpack.c.h.bf16 %v4388_v15 }
 0x6e0   : > { %v4400_v17 = vsub.f32 %v4380_v13, %v4392_v16  ;;  %v4402_v19 = vsub.f32 %v4382_v14, %v4394_v12  ;;  %v4733_v12 = vld [vmem:[%s8176_s0] sm:$0xff] }
 0x6e2   : > { %v4408_v20 = vpack.c.bf16 %v4402_v19, %v4400_v17  ;;  %v4735_v19 = vld [vmem:[%s8176_s0 + $0x10] sm:$0xff] }
 0x6e4   : > { %5577 = vmatprep.mubr.msk.bf16.mxu0 %vm8167_vm12, %v4408_v20  ;;  %v4734_v20 = vld [vmem:[%s8176_s0 + $0x8] sm:$0xff] }
 0x6e5   : > { %4524 = vmatmul.mubr.bf16.vlgmr.msra.gmra.mrb[8].mxu0 %v4407_v11 }
 0x6e6   : > { %4547 = vmatpush1.bf16.msra.mxu0 %v6121_v49 }
 0x6e7   : > { %4548 = vmatprep.subr.bf16.mxu0 %v6361_v8 }
 0x6ea   : > { %4549 = vmatpush1.bf16.msra.mxu0 %v6122_v50 }
 0x6eb   : > { %4550 = vmatprep.subr.bf16.mxu0 %v6361_v8 }
 0x6ee   : > { %4551 = vmatpush1.bf16.msra.mxu0 %v6123_v7 }
 0x6ef   : > { %4552 = vmatprep.subr.bf16.mxu0 %v6361_v8 }
 0x6f2   : > { %4553 = vmatpush1.bf16.msra.mxu0 %v6124_v51  ;;  %v4616_v51 = vpop.permute.xlu0 %4615 }
 0x6f3   : > { %4554 = vmatprep.subr.bf16.mxu0 %v6361_v8 }
 0x6f6   : > { %4555 = vmatpush1.bf16.msra.mxu0 %v6125_v0  ;;  %v4626_v62 = vpop.permute.xlu0 %4625 }
 0x6f7   : > { %4556 = vmatprep.subr.bf16.mxu0 %v6361_v8 }
 0x6fa   : > { %4557 = vmatpush1.bf16.msra.mxu0 %v6126_v52 }
 0x6fb   : > { %4558 = vmatprep.subr.bf16.mxu0 %v6361_v8 }
 0x6fe   : > { %4559 = vmatpush1.bf16.msra.mxu0 %v6127_v1 }
 0x6ff   : > { %4560 = vmatprep.subr.bf16.mxu0 %v6361_v8 }
 0x700   : > { %v3612_v18 = vpop.f32.mrb[4].mxu0  ;;  %v4370_v21 = vpop.f32.mrb[12].mxu1 }
 0x701   : > { %v3614_v22 = vpop.f32.mrb[5].mxu0  ;;  %v4372_v24 = vpop.f32.mrb[13].mxu1  ;;  %v4389_v26 = vpack.c.bf16 %v4370_v21, %v3612_v18 }
 0x702   : > { %3620 = vst.msk [vmem:[#allocation7 + $0x28] sm:$0xff] %vm8168_vm11, %v3614_v22  ;;  %v3616_v25 = vpop.f32.mrb[6].mxu0  ;;  %v4374_v28 = vpop.f32.mrb[14].mxu1  ;;  %4561 = vmatpush1.bf16.msra.mxu0 %v6128_v53 }
 0x703   : > { %4378 = vst.msk [vmem:[#allocation7 + $0x38] sm:$0xff] %vm8169_vm15, %v4372_v24  ;;  %v3617_v29 = vpop.f32.mrb[7].mxu0  ;;  %v4375_v30 = vpop.f32.mrb[15].mxu1  ;;  %v4395_v31 = vunpack.c.l.bf16 %v4389_v26  ;;  %v4397_v32 = vunpack.c.h.bf16 %v4389_v26  ;;  %4562 = vmatprep.subr.bf16.mxu0 %v6361_v8 }
 0x705   : > { %v4403_v33 = vsub.f32 %v3612_v18, %v4395_v31  ;;  %v4405_v35 = vsub.f32 %v4370_v21, %v4397_v32  ;;  %v4736_v18 = vld [vmem:[%s8176_s0 + $0x18] sm:$0xff]  ;;  %v6130_v21 = vld [vmem:[%s8177_s12 + $0x4] ss:$8 sps:$4 sm:$0xff]  }
 0x706   : > { %4563 = vmatpush1.bf16.msra.mxu0 %v4489_v56  ;;  %5585 = vmatprep.mubr.msk.bf16.mxu1 %vm4775_vm5, %v6130_v21  ;;  %v4893_v21 = vld [vmem:[%s8180_s18] sm:$0x1] }
 0x707   : > { %v4409_v23 = vpack.c.bf16 %v4405_v35, %v4403_v33 }
 0x709   : > { %v4384_v27 = vld [vmem:[#allocation7 + $0x28] sm:$0xff] }
 0x70a   : > { %v4386_v36 = vld [vmem:[#allocation7 + $0x38] sm:$0xff] }
 0x70b   : > { %v4390_v37 = vpack.c.bf16 %v4386_v36, %v4384_v27 }
 0x70d   : > { %v4396_v38 = vunpack.c.l.bf16 %v4390_v37  ;;  %v4398_v39 = vunpack.c.h.bf16 %v4390_v37 }
 0x70f   : > { %v4404_v40 = vsub.f32 %v4384_v27, %v4396_v38  ;;  %v4406_v41 = vsub.f32 %v4386_v36, %v4398_v39  ;;  %v6132_v39 = vld [vmem:[%s8177_s12] ss:$8 sps:$4 sm:$0xff]  }
 0x711   : > { %v4410_v42 = vpack.c.bf16 %v4406_v41, %v4404_v40  ;;  %v6133_v40 = vld [vmem:[%s8177_s12 + $0x14] ss:$8 sps:$4 sm:$0xff]   ;;  %v6135_v41 = vld [vmem:[%s8177_s12 + $0x10] ss:$8 sps:$4 sm:$0xff]  }
 0x713   : > { %5578 = vmatprep.mubr.msk.bf16.mxu0 %vm8170_vm8, %v4410_v42  ;;  %vm4862_vm8 = vcmask 539656  }
 0x714   : > { %4532 = vmatmul.mubr.bf16.gmra.mrb[12].mxu0 %v4409_v23 }
 0x715   : > { %5579 = vmatprep.mubr.msk.bf16.mxu0 %vm8171_vm4, %v4388_v15  ;;  %vm6408_vm4 = vmmov 0  }
 0x71c   : > { %4579 = vmatmul.mubr.bf16.vlgmr.msra.gmra.mrb[8].mxu0 %v7510_v63 }
 0x71d   : > { %5580 = vmatprep.mubr.msk.bf16.mxu0 %vm8172_vm10, %v4390_v37  ;;  %vm8182_vm10 = vcmask 785408  }
 0x724   : > { %4587 = vmatmul.mubr.bf16.gmra.mrb[12].mxu0 %v4389_v26 }
 0x7ef   : > { %v4580_v43 = vpop.f32.mrb[8].mxu0 }
 0x7f0   : > { %4596 = vst.msk [vmem:[#allocation8] sm:$0xff] %vm4595_vm2, %v4580_v43  ;;  %v4582_v44 = vpop.f32.mrb[9].mxu0 }
 0x7f1   : > { %v4583_v34 = vpop.f32.mrb[10].mxu0 }
 0x7f2   : > { %4597 = vst.msk [vmem:[#allocation8 + $0x8] sm:$0xff] %vm4595_vm2, %v4583_v34  ;;  %v4585_v46 = vpop.f32.mrb[11].mxu0 }
 0x7f7   : > { %v4588_v48 = vpop.f32.mrb[12].mxu0  ;;  %v4600_v49 = vld [vmem:[#allocation8] sm:$0xff] }
 0x7f8   : > { %4598 = vst.msk [vmem:[#allocation8 + $0x10] sm:$0xff] %vm4595_vm2, %v4588_v48  ;;  %v4590_v50 = vpop.f32.mrb[13].mxu0  ;;  %v4628_v7 = vadd.f32 %v4611_v47, %v4600_v49 }
 0x7f9   : > { %v4591_v0 = vpop.f32.mrb[14].mxu0  ;;  %v4601_v52 = vld [vmem:[#allocation8 + $0x8] sm:$0xff] }
 0x7fa   : > { %4599 = vst.msk [vmem:[#allocation8 + $0x18] sm:$0xff] %vm4595_vm2, %v4591_v0  ;;  %v4593_v1 = vpop.f32.mrb[15].mxu0  ;;  %v4629_v53 = vadd.f32 %v4616_v51, %v4601_v52  ;;  %vm4632_vm14 = vcmp.ge.f32.partialorder %v4628_v7, 0.0  ;;  %v4636_v54 = vmul.f32 0.01, %v4628_v7 }
 0x7fc   : > { %vm4633_vm0 = vcmp.ge.f32.partialorder %v4629_v53, 0.0  ;;  %v4637_v55 = vmul.f32 0.01, %v4629_v53  ;;  %v4640_v56 = vsel %vm4632_vm14, %v4628_v7, %v4636_v54 }
 0x7fd   : > { %4644 = vst.msk [vmem:[%s7537_s19] sm:$0xff] %vm4595_vm2, %v4640_v56 }
 0x7fe   : > { %v4641_v57 = vsel %vm4633_vm0, %v4629_v53, %v4637_v55 }
 0x7ff   : > { %v4654_v59 = vpack.c.bf16 %v4641_v57, %v4640_v56  ;;  %4645 = vst.msk [vmem:[%s7537_s19 + $0x8] sm:$0xff] %vm4595_vm2, %v4641_v57  ;;  %v4602_v60 = vld [vmem:[#allocation8 + $0x10] sm:$0xff] }
 0x800   : > { %v4630_v61 = vadd.f32 %v4621_v58, %v4602_v60 }
 0x801   : > { %4658 = vrot.lane.b32.xlu1 %v4654_v59, %s8174_s25  ;;  %v4603_v63 = vld [vmem:[#allocation8 + $0x18] sm:$0xff] }
 0x802   : > { %v4631_v45 = vadd.f32 %v4626_v62, %v4603_v63  ;;  %vm4634_vm3 = vcmp.ge.f32.partialorder %v4630_v61, 0.0  ;;  %v4638_v2 = vmul.f32 0.01, %v4630_v61  ;;  %v6407_v62 = vmov 0.0  }
 0x804   : > { %vm4635_vm9 = vcmp.ge.f32.partialorder %v4631_v45, 0.0  ;;  %v4639_v3 = vmul.f32 0.01, %v4631_v45  ;;  %v4642_v6 = vsel %vm4634_vm3, %v4630_v61, %v4638_v2 }
 0x805   : > { %4646 = vst.msk [vmem:[%s7537_s19 + $0x10] sm:$0xff] %vm4595_vm2, %v4642_v6 }
 0x806   : > { %v4643_v9 = vsel %vm4635_vm9, %v4631_v45, %v4639_v3 }
 0x807   : > { %v4655_v10 = vpack.c.bf16 %v4643_v9, %v4642_v6  ;;  %4647 = vst.msk [vmem:[%s7537_s19 + $0x18] sm:$0xff] %vm4595_vm2, %v4643_v9  ;;  %v4900_v9 = vld [vmem:[#allocation13] sm:$0x1] }
 0x809   : > { %4660 = vrot.lane.b32.xlu0 %v4655_v10, %s8174_s25  ;;  %s4984_s25 = sshll.u32 %s8178_s26, 4  ;;  %s7632_s25 = int_to_ptr.vmem [resolvable:$true] %s4984_s25 }
 0x873   : > { %v4659_v11 = vpop.permute.xlu1 %4658 }
 0x874   : > { %4665 = vst.msk [vmem:[#allocation9] sm:$0xff] %vm4664_vm1, %v4659_v11 }
 0x87b   : > { %v4667_v13 = vld [vmem:[#allocation9] sm:$0xff]  ;;  %v4661_v14 = vpop.permute.xlu0 %4660 }
 0x87c   : > { %4669 = vst.msk [vmem:[#allocation10] sm:$0xff] %vm4595_vm2, %v4667_v13  ;;  %4675 = vrot.lane.b32.xlu1 %v4667_v13, %s8175_s30 }
 0x87d   : > { %4666 = vst.msk [vmem:[#allocation9 + $0x8] sm:$0xff] %vm4664_vm1, %v4661_v14 }
 0x880   : > { %4687 = vrot.lane.b32.xlu1 %v4667_v13, %s8049_s27 }
 0x883   : > { %v4723_v16 = vld [vmem:[#allocation10] sm:$0xff] }
 0x884   : > { %v4668_v15 = vld [vmem:[#allocation9 + $0x8] sm:$0xff]  ;;  %4699 = vrot.lane.b32.xlu1 %v4667_v13, %s8067_s5  ;;  %4783 = vmatpush1.bf16.msra.mxu1 %v4723_v16 }
 0x885   : > { %4670 = vst.msk [vmem:[#allocation10 + $0x8] sm:$0xff] %vm4595_vm2, %v4668_v15  ;;  %4677 = vrot.lane.b32.xlu0 %v4668_v15, %s8175_s30  ;;  %4784 = vmatprep.subr.bf16.mxu1 %v6361_v8 }
 0x888   : > { %4711 = vrot.lane.b32.xlu1 %v4667_v13, %s8050_s14 }
 0x889   : > { %4689 = vrot.lane.b32.xlu0 %v4668_v15, %s8049_s27 }
 0x88c   : > { %v4724_v17 = vld [vmem:[#allocation10 + $0x8] sm:$0xff]  ;;  %4739 = vperm.xlu1 %5769, %v4733_v12  }
 0x88d   : > { %4785 = vmatpush1.bf16.msra.mxu1 %v4724_v17  ;;  %4701 = vrot.lane.b32.xlu0 %v4668_v15, %s8067_s5  ;;  %s8184_s5 = sld [smem:[#allocation54_spill]] }
 0x88e   : > { %4786 = vmatprep.subr.bf16.mxu1 %v6361_v8 }
 0x890   : > { %4749 = vperm.xlu1 %5769, %v4735_v19  }
 0x891   : > { %4713 = vrot.lane.b32.xlu0 %v4668_v15, %s8050_s14 }
 0x895   : > { %4744 = vperm.xlu0 %5768, %v4734_v20  }
 0x899   : > { %4754 = vperm.xlu0 %5768, %v4736_v18  }
 0x8ee   : > { %v4676_v22 = vpop.permute.xlu1 %4675 }
 0x8ef   : > { %4681 = vst.msk [vmem:[#allocation10 + $0x10] sm:$0xff] %vm4595_vm2, %v4676_v22 }
 0x8f2   : > { %v4688_v24 = vpop.permute.xlu1 %4687 }
 0x8f3   : > { %4693 = vst.msk [vmem:[#allocation10 + $0x20] sm:$0xff] %vm4595_vm2, %v4688_v24 }
 0x8f6   : > { %v4700_v25 = vpop.permute.xlu1 %4699  ;;  %v4725_v26 = vld [vmem:[#allocation10 + $0x10] sm:$0xff] }
 0x8f7   : > { %4705 = vst.msk [vmem:[#allocation10 + $0x30] sm:$0xff] %vm4595_vm2, %v4700_v25  ;;  %v4678_v28 = vpop.permute.xlu0 %4677  ;;  %4787 = vmatpush1.bf16.msra.mxu1 %v4725_v26 }
 0x8f8   : > { %4682 = vst.msk [vmem:[#allocation10 + $0x18] sm:$0xff] %vm4595_vm2, %v4678_v28  ;;  %4788 = vmatprep.subr.bf16.mxu1 %v6361_v8 }
 0x8fa   : > { %v4712_v29 = vpop.permute.xlu1 %4711  ;;  %v4727_v35 = vld [vmem:[#allocation10 + $0x20] sm:$0xff] }
 0x8fb   : > { %4717 = vst.msk [vmem:[#allocation10 + $0x40] sm:$0xff] %vm4595_vm2, %v4712_v29  ;;  %v4690_v30 = vpop.permute.xlu0 %4689 }
 0x8fc   : > { %4694 = vst.msk [vmem:[#allocation10 + $0x28] sm:$0xff] %vm4595_vm2, %v4690_v30 }
 0x8fe   : > { %v4729_v27 = vld [vmem:[#allocation10 + $0x30] sm:$0xff] }
 0x8ff   : > { %v4702_v31 = vpop.permute.xlu0 %4701  ;;  %v4726_v32 = vld [vmem:[#allocation10 + $0x18] sm:$0xff] }
 0x900   : > { %4706 = vst.msk [vmem:[#allocation10 + $0x38] sm:$0xff] %vm4595_vm2, %v4702_v31  ;;  %4789 = vmatpush1.bf16.msra.mxu1 %v4726_v32 }
 0x901   : > { %4790 = vmatprep.subr.bf16.mxu1 %v6361_v8 }
 0x902   : > { %v4731_v37 = vld [vmem:[#allocation10 + $0x40] sm:$0xff] }
 0x903   : > { %v4714_v33 = vpop.permute.xlu0 %4713  ;;  %v4728_v23 = vld [vmem:[#allocation10 + $0x28] sm:$0xff] }
 0x904   : > { %4718 = vst.msk [vmem:[#allocation10 + $0x48] sm:$0xff] %vm4595_vm2, %v4714_v33  ;;  %4791 = vmatpush1.bf16.msra.mxu1 %v4727_v35 }
 0x905   : > { %4792 = vmatprep.subr.bf16.mxu1 %v6361_v8 }
 0x907   : > { %v4730_v36 = vld [vmem:[#allocation10 + $0x38] sm:$0xff] }
 0x908   : > { %4793 = vmatpush1.bf16.msra.mxu1 %v4728_v23 }
 0x909   : > { %4794 = vmatprep.subr.bf16.mxu1 %v6361_v8 }
 0x90b   : > { %v4732_v38 = vld [vmem:[#allocation10 + $0x48] sm:$0xff]  ;;  %v4740_v42 = vpop.permute.xlu1 %4739 }
 0x90c   : > { %4795 = vmatpush1.bf16.msra.mxu1 %v4729_v27 }
 0x90d   : > { %4796 = vmatprep.subr.bf16.mxu1 %v6361_v8 }
 0x90f   : > { %v4750_v0 = vpop.permute.xlu1 %4749 }
 0x910   : > { %4797 = vmatpush1.bf16.msra.mxu1 %v4730_v36 }
 0x911   : > { %4798 = vmatprep.subr.bf16.mxu1 %v6361_v8 }
 0x914   : > { %4799 = vmatpush1.bf16.msra.mxu1 %v4731_v37  ;;  %v4745_v46 = vpop.permute.xlu0 %4744 }
 0x915   : > { %4800 = vmatprep.subr.bf16.mxu1 %v6361_v8 }
 0x918   : > { %4801 = vmatpush1.bf16.msra.mxu1 %v4732_v38  ;;  %v4755_v55 = vpop.permute.xlu0 %4754 }
 0x919   : > { %5610 = vmatprep.subr.bf16.mxu1 %v6407_v62 }
 0x91b   : > { %4815 = vmatmul.mubr.bf16.vlgmr.msra.gmra.mrb[16].mxu1 %v6132_v39 }
 0x91c   : > { %5586 = vmatprep.mubr.msk.bf16.mxu1 %vm4775_vm5, %v6133_v40 }
 0x923   : > { %4823 = vmatmul.mubr.bf16.gmra.mrb[20].mxu1 %v6135_v41 }
 0x924   : > { %5622 = vmatprep.mubr.msk.bf16.mxu1 %vm6408_vm4, %v6407_v62 }
 0x9ee   : > { %v4816_v43 = vpop.f32.mrb[16].mxu1 }
 0x9ef   : > { %v4817_v44 = vadd.f32 %v4816_v43, %v4740_v42  ;;  %v4818_v34 = vpop.f32.mrb[17].mxu1 }
 0x9f0   : > { %v4819_v47 = vpop.f32.mrb[18].mxu1 }
 0x9f1   : > { %vm4831_vm7 = vcmp.ge.f32.partialorder %v4817_v44, 0.0  ;;  %v4835_v48 = vmul.f32 0.01, %v4817_v44  ;;  %v4820_v49 = vadd.f32 %v4819_v47, %v4745_v46  ;;  %v4821_v50 = vpop.f32.mrb[19].mxu1 }
 0x9f3   : > { %v4839_v7 = vsel %vm4831_vm7, %v4817_v44, %v4835_v48  ;;  %vm4832_vm12 = vcmp.ge.f32.partialorder %v4820_v49, 0.0  ;;  %v4836_v51 = vmul.f32 0.01, %v4820_v49 }
 0x9f4   : > { %4843 = vst.msk [vmem:[%s7605_s28] sm:$0xff] %vm4595_vm2, %v4839_v7 }
 0x9f5   : > { %v4840_v8 = vsel %vm4832_vm12, %v4820_v49, %v4836_v51 }
 0x9f6   : > { %4844 = vst.msk [vmem:[%s7605_s28 + $0x8] sm:$0xff] %vm4595_vm2, %v4840_v8  ;;  %v4852_v52 = vpack.c.bf16 %v4840_v8, %v4839_v7  ;;  %v4824_v1 = vpop.f32.mrb[20].mxu1 }
 0x9f7   : > { %v4825_v53 = vadd.f32 %v4824_v1, %v4750_v0  ;;  %v4826_v54 = vpop.f32.mrb[21].mxu1 }
 0x9f8   : > { %v4827_v56 = vpop.f32.mrb[22].mxu1  ;;  %4856 = vrot.lane.b32.xlu1 %v4852_v52, %s6406_s15 }
 0x9f9   : > { %vm4833_vm11 = vcmp.ge.f32.partialorder %v4825_v53, 0.0  ;;  %v4837_v57 = vmul.f32 0.01, %v4825_v53  ;;  %v4828_v58 = vadd.f32 %v4827_v56, %v4755_v55  ;;  %v4829_v59 = vpop.f32.mrb[23].mxu1 }
 0x9fb   : > { %v4841_v60 = vsel %vm4833_vm11, %v4825_v53, %v4837_v57  ;;  %vm4834_vm15 = vcmp.ge.f32.partialorder %v4828_v58, 0.0  ;;  %v4838_v61 = vmul.f32 0.01, %v4828_v58 }
 0x9fc   : > { %4845 = vst.msk [vmem:[%s7605_s28 + $0x10] sm:$0xff] %vm4595_vm2, %v4841_v60 }
 0x9fd   : > { %v4842_v63 = vsel %vm4834_vm15, %v4828_v58, %v4838_v61 }
 0x9fe   : > { %4846 = vst.msk [vmem:[%s7605_s28 + $0x18] sm:$0xff] %vm4595_vm2, %v4842_v63  ;;  %v4853_v45 = vpack.c.bf16 %v4842_v63, %v4841_v60 }
 0xa00   : > { %4858 = vrot.lane.b32.xlu0 %v4853_v45, %s6406_s15 }
 0xa6a   : > { %v4857_v2 = vpop.permute.xlu1 %4856 }
 0xa6b   : > { %4863 = vst.msk [vmem:[#allocation11] sm:$0xff] %vm4862_vm8, %v4857_v2 }
 0xa72   : > { %v4865_v3 = vld [vmem:[#allocation11] sm:$0xff]  ;;  %v4859_v6 = vpop.permute.xlu0 %4858 }
 0xa73   : > { %4867 = vst.msk [vmem:[#allocation12] sm:$0xff] %vm4595_vm2, %v4865_v3  ;;  %4873 = vrot.lane.b32.xlu1 %v4865_v3, %s8175_s30 }
 0xa74   : > { %4864 = vst.msk [vmem:[#allocation11 + $0x8] sm:$0xff] %vm4862_vm8, %v4859_v6 }
 0xa77   : > { %4885 = vrot.lane.b32.xlu1 %v4865_v3, %s8049_s27 }
 0xa7a   : > { %v4894_v11 = vld [vmem:[#allocation12] sm:$0xff] }
 0xa7b   : > { %v4866_v10 = vld [vmem:[#allocation11 + $0x8] sm:$0xff]  ;;  %4903 = vperm.xlu1 %5769, %v4900_v9   ;;  %5611 = vmatpush3.bf16.msra.mxu1 %v4894_v11 }
 0xa7c   : > { %4868 = vst.msk [vmem:[#allocation12 + $0x8] sm:$0xff] %vm4595_vm2, %v4866_v10  ;;  %4875 = vrot.lane.b32.xlu0 %v4866_v10, %s8175_s30  ;;  %5612 = vmatprep.subr.bf16.mxu1 %v6407_v62  ;;  %s5016_s30 = sshll.u32 %s7605_s28, 4  ;;  %s7634_s30 = int_to_ptr.vmem [resolvable:$true] %s5016_s30 }
 0xa80   : > { %4887 = vrot.lane.b32.xlu0 %v4866_v10, %s8049_s27  ;;  %s8179_s27 = sld [smem:[#allocation34_spill]] }
 0xa83   : > { %v4895_v13 = vld [vmem:[#allocation12 + $0x8] sm:$0xff] }
 0xa84   : > { %5613 = vmatpush3.bf16.msra.mxu1 %v4895_v13 }
 0xa85   : > { %5614 = vmatprep.subr.bf16.mxu1 %v6407_v62 }
 0xa86   : > { %s4961_s20 = sand.u32 1, %s8179_s27   ;;  %s7638_s1 = sshll.u32 %s8179_s27, 9 }
 0xa87   : > { %s7644_s6 = scalar_lea.hbm %s8183_s4, %s7638_s1  ;;  %s7652_s19 = scalar_lea.hbm %s8184_s5, %s7638_s1 }
 0xa88   : > { %s7654_s14 = scalar_lea.sflag [#allocation21], %s4961_s20 }
 0xae5   : > { %v4874_v14 = vpop.permute.xlu1 %4873 }
 0xae6   : > { %4879 = vst.msk [vmem:[#allocation12 + $0x10] sm:$0xff] %vm4595_vm2, %v4874_v14 }
 0xae9   : > { %v4886_v15 = vpop.permute.xlu1 %4885 }
 0xaea   : > { %4891 = vst.msk [vmem:[#allocation12 + $0x20] sm:$0xff] %vm4595_vm2, %v4886_v15 }
 0xaed   : > { %v4896_v12 = vld [vmem:[#allocation12 + $0x10] sm:$0xff] }
 0xaee   : > { %v4876_v16 = vpop.permute.xlu0 %4875  ;;  %5615 = vmatpush3.bf16.msra.mxu1 %v4896_v12 }
 0xaef   : > { %4880 = vst.msk [vmem:[#allocation12 + $0x18] sm:$0xff] %vm4595_vm2, %v4876_v16  ;;  %5616 = vmatprep.subr.bf16.mxu1 %v6407_v62 }
 0xaf1   : > { %v4898_v20 = vld [vmem:[#allocation12 + $0x20] sm:$0xff] }
 0xaf2   : > { %v4888_v17 = vpop.permute.xlu0 %4887 }
 0xaf3   : > { %4892 = vst.msk [vmem:[#allocation12 + $0x28] sm:$0xff] %vm4595_vm2, %v4888_v17 }
 0xaf6   : > { %v4897_v19 = vld [vmem:[#allocation12 + $0x18] sm:$0xff] }
 0xaf7   : > { %5617 = vmatpush3.bf16.msra.mxu1 %v4897_v19 }
 0xaf8   : > { %5618 = vmatprep.subr.bf16.mxu1 %v6407_v62 }
 0xafa   : > { %v4899_v18 = vld [vmem:[#allocation12 + $0x28] sm:$0xff] }
 0xafb   : > { %5619 = vmatpush3.bf16.msra.mxu1 %v4898_v20 }
 0xafc   : > { %5620 = vmatprep.subr.bf16.mxu1 %v6407_v62 }
 0xaff   : > { %5621 = vmatpush3.bf16.msra.mxu1 %v4899_v18 }
 0xb02   : > { %5623 = vmatmul.mubr.msk.bf16.vlgmr.msra.gmra.mrb[24].mxu1 %vm8182_vm10, %v4893_v21 }
 0xb03   : > { %6205 = shalt.err (!%p6202_p11)
}
 0xb04   : > { %s6206_s22 = scalar_lea.hbm %s7644_s6, 512  ;;  %s6210_s26 = scalar_lea.hbm %s8183_s4, 1024 }
 0xb05   : > { %p6207_p13 = scmp.ne.s32.totalorder %s7644_s6, %s6206_s22  ;;  %p6211_p6 = scmp.lt.u32.totalorder %s7644_s6, %s8183_s4 }
 0xb06   : > { %p6212_p9 = scmp.lt.u32.totalorder %s6210_s26, %s6206_s22  ;;  %p6214_p12 = scmp.lt.u32.totalorder %s6206_s22, %s7644_s6 }
 0xb07   : > { %p6208_p5 = pnand %p6207_p13, %p8185_p1 }
 0xb08   : > { %p6213_p10 = por %p6212_p9, %p6211_p6 }
 0xb09   : > { %p6209_p0 = pneg %p6208_p5 }
 0xb0a   : > { %p6215_p2 = por %p6214_p12, %p6213_p10 }
 0xb0c   : > { %p6216_p3 = pnand %p6215_p2, %p6209_p0 }
 0xb0e   : > { %6219 = shalt.err (!%p6216_p3)
}
 0xb0f   : > { %s6410_s18 = smov 128   ;;  %s8186_s20 = sld [smem:[#allocation39_spill]] }
 0xb10   : > { %s6411_s2 = smov 8   ;;  %s8187_s9 = sld [smem:[#allocation52_spill]] }
 0xb11   : > { %5647 = dma.vmem_to_hbm [thread:$0]  (%p8185_p1), %s7646_s23, 512, %s7644_s6, %s7654_s14, %s6410_s18, %s6410_s18, %s6411_s2  }
 0xb12   : > { %s6220_s10 = scalar_lea.vmem %s7632_s25, 512  ;;  %s6412_s24 = smov [#allocation19]  }
 0xb13   : > { %p6221_p4 = scmp.ne.s32.totalorder %s7632_s25, %s6220_s10  ;;  %s6224_s22 = sshll.u32 %s6412_s24, 4  ;;  %s6225_s22 = int_to_ptr.vmem [resolvable:$false] %s6224_s22 }
 0xb14   : > { %s6226_s28 = scalar_lea.vmem %s6225_s22, 1024  ;;  %p6227_p11 = scmp.lt.s32.totalorder %s7632_s25, %s6225_s22 }
 0xb15   : > { %s4957_s16 = scalar_lea.sflag [#allocation16], %s8186_s20  ;;  %p6222_p7 = pnand %p6221_p4, %p8185_p1 }
 0xb16   : > { %s7685_s13 = scalar_lea.hbm %s8187_s9, %s7638_s1  ;;  %p6228_p13 = scmp.lt.s32.totalorder %s6226_s28, %s6220_s10 }
 0xb17   : > { %p6223_p8 = pneg %p6222_p7 }
 0xb18   : > { %p6229_p5 = por %p6228_p13, %p6227_p11 }
 0xb1a   : > { %p6230_p0 = pnand %p6229_p5, %p6223_p8 }
 0xb1c   : > { %6233 = shalt.err (!%p6230_p0)
}
 0xb1d   : > { %s6234_s23 = scalar_lea.hbm %s7685_s13, 512  ;;  %s6238_s15 = scalar_lea.hbm %s8187_s9, 1024 }
 0xb1e   : > { %p6235_p6 = scmp.ne.s32.totalorder %s7685_s13, %s6234_s23  ;;  %p6239_p12 = scmp.lt.u32.totalorder %s7685_s13, %s8187_s9 }
 0xb1f   : > { %p6240_p2 = scmp.lt.u32.totalorder %s6238_s15, %s6234_s23  ;;  %p6242_p4 = scmp.lt.u32.totalorder %s6234_s23, %s7685_s13 }
 0xb20   : > { %p6236_p9 = pnand %p6235_p6, %p8185_p1 }
 0xb21   : > { %p6241_p3 = por %p6240_p2, %p6239_p12 }
 0xb22   : > { %p6237_p10 = pneg %p6236_p9 }
 0xb23   : > { %p6243_p7 = por %p6242_p4, %p6241_p3 }
 0xb25   : > { %p6244_p8 = pnand %p6243_p7, %p6237_p10 }
 0xb27   : > { %6247 = shalt.err (!%p6244_p8)
}
 0xb28   : > { %s6413_s17 = smov 256   ;;  %s6414_s3 = smov 16  }
 0xb29   : > { %5646 = dma.vmem_to_hbm [thread:$0]  (%p8185_p1), %s7632_s25, 512, %s7685_s13, %s4957_s16, %s6413_s17, %s6413_s17, %s6414_s3  }
 0xb2a   : > { %s6248_s7 = scalar_lea.vmem %s7634_s30, 512  ;;  %s6415_s10 = smov [#allocation22]  }
 0xb2b   : > { %p6249_p11 = scmp.ne.s32.totalorder %s7634_s30, %s6248_s7  ;;  %s6252_s24 = sshll.u32 %s6415_s10, 4  ;;  %s6253_s24 = int_to_ptr.vmem [resolvable:$false] %s6252_s24 }
 0xb2c   : > { %s6254_s22 = scalar_lea.vmem %s6253_s24, 1024  ;;  %p6255_p0 = scmp.lt.s32.totalorder %s7634_s30, %s6253_s24 }
 0xb2d   : > { %p6250_p13 = pnand %p6249_p11, %p8185_p1  ;;  %p6256_p6 = scmp.lt.s32.totalorder %s6254_s22, %s6248_s7 }
 0xb2f   : > { %p6251_p5 = pneg %p6250_p13  ;;  %p6257_p9 = por %p6256_p6, %p6255_p0 }
 0xb31   : > { %p6258_p10 = pnand %p6257_p9, %p6251_p5 }
 0xb33   : > { %6261 = shalt.err (!%p6258_p10)
}
 0xb34   : > { %s6262_s25 = scalar_lea.hbm %s7652_s19, 512  ;;  %s6266_s28 = scalar_lea.hbm %s8184_s5, 1024 }
 0xb35   : > { %p6263_p12 = scmp.ne.s32.totalorder %s7652_s19, %s6262_s25  ;;  %p6267_p4 = scmp.lt.u32.totalorder %s7652_s19, %s8184_s5 }
 0xb36   : > { %p6268_p7 = scmp.lt.u32.totalorder %s6266_s28, %s6262_s25  ;;  %p6270_p11 = scmp.lt.u32.totalorder %s6262_s25, %s7652_s19 }
 0xb37   : > { %p6264_p2 = pnand %p6263_p12, %p8185_p1 }
 0xb38   : > { %p6269_p8 = por %p6268_p7, %p6267_p4 }
 0xb39   : > { %p6265_p3 = pneg %p6264_p2 }
 0xb3a   : > { %p6271_p13 = por %p6270_p11, %p6269_p8 }
 0xb3c   : > { %p6272_p5 = pnand %p6271_p13, %p6265_p3 }
 0xb3e   : > { %6275 = shalt.err (!%p6272_p5)
}
 0xb3f   : > { %5648 = dma.vmem_to_hbm [thread:$0]  (%p8185_p1), %s7634_s30, 512, %s7652_s19, %s7654_s14, %s6410_s18, %s6410_s18, %s6411_s2   ;;  %v4904_v22 = vpop.permute.xlu1 %4903  ;;  %vm4954_vm13 = vcmask 524288  }
 0xb40   : > { %s5597_s6 = sshll.u32 %s8179_s27, 4  ;;  %s517_s15 = scalar_lea.vmem [#allocation23], %s8186_s20  ;;  %v4909_v24 = vrot.slane %v4904_v22, %v538_v5 }
 0xb41   : > { %s5032_s26 = sshll.u32 %s517_s15, 4  ;;  %s8188_s3 = sld [smem:[#allocation55_spill]]  ;;  %s7745_s26 = int_to_ptr.vmem [resolvable:$true] %s5032_s26 }
 0xb42   : > { %s4972_s27 = scalar_lea.sflag [#allocation24], %s8186_s20  ;;  %s6276_s30 = scalar_lea.vmem %s7745_s26, 16 }
 0xb43   : > { %p6277_p0 = scmp.ne.s32.totalorder %s7745_s26, %s6276_s30  ;;  %s6416_s19 = smov [#allocation23]  }
 0xb44   : > { %s6280_s14 = sshll.u32 %s6416_s19, 4  ;;  %s6281_s14 = int_to_ptr.vmem [resolvable:$false] %s6280_s14 }
 0xb45   : > { %p6278_p6 = pnand %p6277_p0, %p8185_p1  ;;  %s6282_s18 = scalar_lea.vmem %s6281_s14, 32 }
 0xb46   : > { %p6283_p10 = scmp.lt.s32.totalorder %s7745_s26, %s6281_s14  ;;  %p6284_p12 = scmp.lt.s32.totalorder %s6282_s18, %s6276_s30 }
 0xb47   : > { %s7743_s7 = scalar_lea.hbm %s8188_s3, %s5597_s6  ;;  %p6279_p9 = pneg %p6278_p6 }
 0xb48   : > { %p6285_p2 = por %p6284_p12, %p6283_p10 }
 0xb4a   : > { %p6286_p3 = pnand %p6285_p2, %p6279_p9 }
 0xbd5   : > { %v4948_v25 = vpop.f32.mrb[24].mxu1 }
 0xbd6   : > { %v4949_v26 = vadd.f32 %v4948_v25, %v4909_v24  ;;  %v5624_v28 = vpop.f32.mrb[25].mxu1 }
 0xbd7   : > { %v4951_v29 = vpop.f32.mrb[26].mxu1 }
 0xbd8   : > { %v5625_v30 = vpop.f32.mrb[27].mxu1  ;;  %4955 = vst.msk [vmem:[%s517_s15] sm:$0x1] %vm4954_vm13, %v4949_v26 }
 0xbd9   : > { %6289 = shalt.err (!%p6286_p3)
}
 0xbda   : > { %s6290_s20 = scalar_lea.hbm %s7743_s7, 16  ;;  %s6294_s24 = scalar_lea.hbm %s8188_s3, 32 }
 0xbdb   : > { %p6291_p4 = scmp.ne.s32.totalorder %s7743_s7, %s6290_s20  ;;  %p6295_p11 = scmp.lt.u32.totalorder %s7743_s7, %s8188_s3 }
 0xbdc   : > { %p6296_p13 = scmp.lt.u32.totalorder %s6294_s24, %s6290_s20  ;;  %p6298_p0 = scmp.lt.u32.totalorder %s6290_s20, %s7743_s7 }
 0xbdd   : > { %p6292_p7 = pnand %p6291_p4, %p8185_p1 }
 0xbde   : > { %p6297_p5 = por %p6296_p13, %p6295_p11 }
 0xbdf   : > { %p6293_p8 = pneg %p6292_p7 }
 0xbe0   : > { %p6299_p6 = por %p6298_p0, %p6297_p5 }
 0xbe2   : > { %p6300_p9 = pnand %p6299_p6, %p6293_p8 }
 0xbe4   : > { %6303 = shalt.err (!%p6300_p9)
}
 0xbe5   : > { %5649 = dma.vmem_to_hbm [thread:$0]  (%p8185_p1), %s7745_s26, 16, %s7743_s7, %s4972_s27  }
 0xbe6 PF: > { %s8189_s13 = sld [smem:[#allocation33_spill]]  ;;  %s8190_s16 = sld [smem:[#allocation30_spill]] }
 0xbe7   : > { %s8191_s28 = sld [smem:[#allocation38_spill]] }
 0xbec   : > { %p5678_p10 = scmp.ge.s32.totalorder %s8189_s13, 2  ;;  %s5044_s23 = sand.u32 1, %s8190_s16  }
 0xbed   : > { %p8192_p12 = scmp.ne.s32.totalorder %s8191_s28, 0  ;;  %s5045_s1 = scalar_lea.sflag [#allocation16], %s5044_s23 }
 0xbef   : > { %p5662_p2 = pnand %p5678_p10, %p8192_p12 }
 0xbf1   : > { %6329 = dma.done.wait (!%p5662_p2), %s5045_s1, 512  }
 0xbf2   : > { %6331 = vsyncadd (!%p5662_p2), %s5045_s1, 4294966784  ;;  %s8193_s6 = sadd.s32 4294967294, %s8189_s13  }
 0xbf3   : > { %s5053_s15 = sand.u32 1, %s8193_s6  }
 0xbf4   : > { %s5054_s21 = scalar_lea.sflag [#allocation21], %s5053_s15 }
 0xbf5   : > { %6333 = dma.done.wait (!%p5662_p2), %s5054_s21, 1024  }
 0xbf6   : > { %6335 = vsyncadd (!%p5662_p2), %s5054_s21, 4294966272  ;;  %s5072_s29 = scalar_lea.sflag [#allocation24], %s5044_s23 }
 0xbf7   : > { %6337 = dma.done.wait (!%p5662_p2), %s5072_s29, 16  }
 0xbf8   : > { %6339 = vsyncadd (!%p5662_p2), %s5072_s29, 4294967280  ;;  %s8194_s18 = sld [smem:[#allocation35_spill]]  ;;  %s8195_s15 = sld [smem:[#allocation31_spill]] }
 0xbf9   : > { %s8196_s16 = sld [smem:[#allocation32_spill]]  ;;  %s8197_s17 = sld [smem:[#allocation36_spill]] }
 0xbfe   : > { %p35_p1 = scmp.ge.s32.totalorder %s8194_s18, 4  }
 0xc00   :  { %37 = sbr.rel (!%p35_p1) target bundleno = 24 (0x18), region = 177 }
 0xc07   :  { %5076 = vsyncpa [#allocation15], 1 }
 0xc08   :  { %5078 = vsyncpa [#allocation15 + $0x1], 1 }
 0xc09   :  { %5079 = vsyncpa [#allocation18], 1 }
 0xc0a   :  { %5080 = vsyncpa [#allocation16], 1 }
 0xc0b   :  { %5082 = vsyncpa [#allocation16 + $0x1], 1 }
 0xc0c   :  { %5083 = vsyncpa [#allocation21], 1 }
 0xc0d   :  { %5085 = vsyncpa [#allocation21 + $0x1], 1 }
 0xc0e   :  { %5086 = vsyncpa [#allocation24], 1 }
 0xc0f   :  { %5088 = vsyncpa [#allocation24 + $0x1], 1 }

</bundles_post_ra>
